<compile_context>
chip_gen: v7x
topology: tpu7x:2x2x1
jax: 0.10.0
libtpu: 0.0.40
codegen_flags: <defaults>
</compile_context>

<pallas_src>
import jax
import jax.numpy as jnp
from jax.experimental import pallas as pl


def _lstm3_kernel(xg1_ref, whh1_ref, wcat2_ref, b2_ref, wcat3_ref, b3_ref,
                  h3_out_ref):
    """Runs the full 3-layer LSTM recurrence over T steps in one invocation.

    xg1_ref : (T, B, 4H)  precomputed x @ W_ih1 + b1 (layer-1 input projection)
    whh1_ref: (H, 4H)     layer-1 recurrent weights
    wcat2/3 : (2H, 4H)    fused [W_ih ; W_hh] for layers 2/3
    b2/b3   : (1, 4H)     combined biases (b_ih + b_hh) for layers 2/3
    h3_out  : (T, B, H)   top-layer hidden state for every timestep
    """
    T, B, _ = xg1_ref.shape
    H = h3_out_ref.shape[-1]

    # Weights are loaded once and reused across the unrolled time loop.
    whh1 = whh1_ref[...]
    wcat2 = wcat2_ref[...]
    b2 = b2_ref[...]
    wcat3 = wcat3_ref[...]
    b3 = b3_ref[...]

    def gates_to_hc(gates, c_prev):
        # PyTorch LSTM gate order: input, forget, cell(g), output.
        # Slices sit on 128-lane boundaries (H = 128) -> free.
        i_g = jax.nn.sigmoid(gates[:, 0 * H:1 * H])
        f_g = jax.nn.sigmoid(gates[:, 1 * H:2 * H])
        g_g = jnp.tanh(gates[:, 2 * H:3 * H])
        o_g = jax.nn.sigmoid(gates[:, 3 * H:4 * H])
        c_new = f_g * c_prev + i_g * g_g
        h_new = o_g * jnp.tanh(c_new)
        return h_new, c_new

    zeros = jnp.zeros((B, H), jnp.float32)
    h1, c1 = zeros, zeros
    h2, c2 = zeros, zeros
    h3, c3 = zeros, zeros

    # T is small and known at trace time: a fully-unrolled static loop lets the
    # scheduler overlap layer l at step t with layer l-1 at step t+1.
    for t in range(T):
        # Layer 1: input projection already folded in (bias included).
        g1 = xg1_ref[t] + jnp.dot(h1, whh1, preferred_element_type=jnp.float32)
        h1, c1 = gates_to_hc(g1, c1)

        # Layer 2: single fused matmul over concat([input, hidden]).
        g2 = jnp.dot(jnp.concatenate([h1, h2], axis=-1), wcat2,
                     preferred_element_type=jnp.float32) + b2
        h2, c2 = gates_to_hc(g2, c2)

        # Layer 3.
        g3 = jnp.dot(jnp.concatenate([h2, h3], axis=-1), wcat3,
                     preferred_element_type=jnp.float32) + b3
        h3, c3 = gates_to_hc(g3, c3)

        h3_out_ref[t] = h3    # lane-dense (B, 128) store


def trajectory_prediction_forward(x, params):
    """x: (B, T, input_size) float32, batch_first like the PyTorch module."""
    B, T, _ = x.shape
    H = params["whh1"].shape[0]
    O = params["wfc"].shape[1]

    x_tm = jnp.transpose(x, (1, 0, 2)).astype(jnp.float32)      # (T, B, d_in)

    # Layer-1 input projection is recurrence-free: one big XLA matmul.
    xg1 = jnp.einsum("tbi,ig->tbg", x_tm, params["wih1"]) + params["b1"]

    # Fused [W_ih ; W_hh] weights for layers 2 and 3 (K = 2H = 256, aligned).
    wcat2 = jnp.concatenate([params["wih2"], params["whh2"]], axis=0)
    wcat3 = jnp.concatenate([params["wih3"], params["whh3"]], axis=0)

    # Single kernel invocation: all operands are small, full VMEM blocks.
    h3_tm = pl.pallas_call(
        _lstm3_kernel,
        out_shape=jax.ShapeDtypeStruct((T, B, H), jnp.float32),
    )(xg1, params["whh1"], wcat2, params["b2"], wcat3, params["b3"])

    # Linear head hoisted out of the kernel: one lane-dense (T*B, H) @ (H, O).
    y = jnp.einsum("tbh,ho->tbo", h3_tm, params["wfc"]) + params["bfc"]
    return jnp.transpose(y, (1, 0, 2))                           # (B, T, O)


def lstm_forward_ref(x, params):
    """Pure-JAX reference matching PyTorch nn.LSTM(num_layers=3) + nn.Linear."""
    B, _, _ = x.shape
    H = params["whh1"].shape[0]

    def run_layer(seq, wih, whh, b):
        def step(carry, x_t):
            h, c = carry
            gates = x_t @ wih + h @ whh + b
            i = jax.nn.sigmoid(gates[:, :H])
            f = jax.nn.sigmoid(gates[:, H:2 * H])
            g = jnp.tanh(gates[:, 2 * H:3 * H])
            o = jax.nn.sigmoid(gates[:, 3 * H:])
            c = f * c + i * g
            h = o * jnp.tanh(c)
            return (h, c), h
        h0 = jnp.zeros((B, H), jnp.float32)
        _, hs = jax.lax.scan(step, (h0, h0), jnp.transpose(seq, (1, 0, 2)))
        return jnp.transpose(hs, (1, 0, 2))

    h = x
    for l in (1, 2, 3):
        h = run_layer(h, params[f"wih{l}"], params[f"whh{l}"], params[f"b{l}"])
    return h @ params["wfc"] + params["bfc"]


if __name__ == "__main__":
    INPUT_SIZE, HIDDEN_SIZE, OUTPUT_SIZE = 4, 128, 2
    B, T = 2, 8

    key = jax.random.PRNGKey(0)
    keys = jax.random.split(key, 16)
    scale = 1.0 / float(HIDDEN_SIZE) ** 0.5

    def u(k, shape):
        return jax.random.uniform(k, shape, jnp.float32, -scale, scale)

    # Deterministic synthetic parameters (PyTorch-style uniform(-1/sqrt(H), 1/sqrt(H))).
    params = {}
    kidx = 0
    in_sizes = [INPUT_SIZE, HIDDEN_SIZE, HIDDEN_SIZE]
    for l in range(3):
        params[f"wih{l + 1}"] = u(keys[kidx], (in_sizes[l], 4 * HIDDEN_SIZE)); kidx += 1
        params[f"whh{l + 1}"] = u(keys[kidx], (HIDDEN_SIZE, 4 * HIDDEN_SIZE)); kidx += 1
        b_ih = u(keys[kidx], (1, 4 * HIDDEN_SIZE)); kidx += 1
        b_hh = u(keys[kidx], (1, 4 * HIDDEN_SIZE)); kidx += 1
        params[f"b{l + 1}"] = b_ih + b_hh          # combined bias (b_ih + b_hh)
    params["wfc"] = u(keys[kidx], (HIDDEN_SIZE, OUTPUT_SIZE)); kidx += 1
    params["bfc"] = u(keys[kidx], (1, OUTPUT_SIZE)); kidx += 1

    x = jax.random.normal(keys[kidx], (B, T, INPUT_SIZE), jnp.float32)

    out = trajectory_prediction_forward(x, params)
    out = jax.block_until_ready(out)

    ref = lstm_forward_ref(x, params)
    assert out.shape == (B, T, OUTPUT_SIZE)
    if not jnp.allclose(out, ref, atol=5e-3, rtol=5e-3):
        raise AssertionError("Pallas kernel output mismatch vs pure-JAX reference")

    print("KERNEL_OK")
</pallas_src>

<mosaic_0001>
module attributes {stable_mosaic.version = 11 : i64} {
  func.func @_lstm3_kernel(%arg0: memref<8x2x512xf32, #tpu.memory_space<vmem>>, %arg1: memref<128x512xf32, #tpu.memory_space<vmem>>, %arg2: memref<256x512xf32, #tpu.memory_space<vmem>>, %arg3: memref<1x512xf32, #tpu.memory_space<vmem>>, %arg4: memref<256x512xf32, #tpu.memory_space<vmem>>, %arg5: memref<1x512xf32, #tpu.memory_space<vmem>>, %arg6: memref<8x2x128xf32, #tpu.memory_space<vmem>>) attributes {dimension_semantics = [], scalar_prefetch = 0 : i64, scratch_operands = 0 : i64, tpu.core_type = #tpu.core_type<tc>} {
    %c0 = arith.constant 0 : index
    %c0_0 = arith.constant 0 : index
    %0 = vector.load %arg1[%c0, %c0_0] : memref<128x512xf32, #tpu.memory_space<vmem>>, vector<128x512xf32>
    %c0_1 = arith.constant 0 : index
    %c0_2 = arith.constant 0 : index
    %1 = vector.load %arg2[%c0_1, %c0_2] : memref<256x512xf32, #tpu.memory_space<vmem>>, vector<256x512xf32>
    %c0_3 = arith.constant 0 : index
    %c0_4 = arith.constant 0 : index
    %2 = vector.load %arg3[%c0_3, %c0_4] : memref<1x512xf32, #tpu.memory_space<vmem>>, vector<1x512xf32>
    %c0_5 = arith.constant 0 : index
    %c0_6 = arith.constant 0 : index
    %3 = vector.load %arg4[%c0_5, %c0_6] : memref<256x512xf32, #tpu.memory_space<vmem>>, vector<256x512xf32>
    %c0_7 = arith.constant 0 : index
    %c0_8 = arith.constant 0 : index
    %4 = vector.load %arg5[%c0_7, %c0_8] : memref<1x512xf32, #tpu.memory_space<vmem>>, vector<1x512xf32>
    %cst = arith.constant 0.000000e+00 : f32
    %5 = vector.broadcast %cst : f32 to vector<2x128xf32>
    %c0_9 = arith.constant 0 : index
    %c0_10 = arith.constant 0 : index
    %c0_11 = arith.constant 0 : index
    %6 = vector.load %arg0[%c0_9, %c0_10, %c0_11] : memref<8x2x512xf32, #tpu.memory_space<vmem>>, vector<1x2x512xf32>
    %7 = vector.shape_cast %6 : vector<1x2x512xf32> to vector<2x512xf32>
    %cst_12 = arith.constant dense<0.000000e+00> : vector<2x512xf32>
    %8 = tpu.matmul %5, %0, %cst_12 {dimension_numbers = #tpu.dot_dimension_numbers<[1], [0], [0], [1], [0, 0, 1, 1], [], []>} : vector<2x128xf32>, vector<128x512xf32>, vector<2x512xf32> -> vector<2x512xf32>
    %9 = arith.addf %7, %8 : vector<2x512xf32>
    %10 = vector.extract_strided_slice %9 {offsets = [0, 0], sizes = [2, 128], strides = [1, 1]} : vector<2x512xf32> to vector<2x128xf32>
    %11 = arith.negf %10 : vector<2x128xf32>
    %12 = math.exp %11 : vector<2x128xf32>
    %cst_13 = arith.constant 1.000000e+00 : f32
    %13 = vector.broadcast %cst_13 : f32 to vector<2x128xf32>
    %14 = arith.addf %13, %12 : vector<2x128xf32>
    %15 = arith.divf %13, %14 : vector<2x128xf32>
    %16 = vector.extract_strided_slice %9 {offsets = [0, 128], sizes = [2, 128], strides = [1, 1]} : vector<2x512xf32> to vector<2x128xf32>
    %17 = arith.negf %16 : vector<2x128xf32>
    %18 = math.exp %17 : vector<2x128xf32>
    %cst_14 = arith.constant 1.000000e+00 : f32
    %19 = vector.broadcast %cst_14 : f32 to vector<2x128xf32>
    %20 = arith.addf %19, %18 : vector<2x128xf32>
    %21 = arith.divf %19, %20 : vector<2x128xf32>
    %22 = vector.extract_strided_slice %9 {offsets = [0, 256], sizes = [2, 128], strides = [1, 1]} : vector<2x512xf32> to vector<2x128xf32>
    %23 = math.tanh %22 : vector<2x128xf32>
    %24 = vector.extract_strided_slice %9 {offsets = [0, 384], sizes = [2, 128], strides = [1, 1]} : vector<2x512xf32> to vector<2x128xf32>
    %25 = arith.negf %24 : vector<2x128xf32>
    %26 = math.exp %25 : vector<2x128xf32>
    %cst_15 = arith.constant 1.000000e+00 : f32
    %27 = vector.broadcast %cst_15 : f32 to vector<2x128xf32>
    %28 = arith.addf %27, %26 : vector<2x128xf32>
    %29 = arith.divf %27, %28 : vector<2x128xf32>
    %30 = arith.mulf %21, %5 : vector<2x128xf32>
    %31 = arith.mulf %15, %23 : vector<2x128xf32>
    %32 = arith.addf %30, %31 : vector<2x128xf32>
    %33 = math.tanh %32 : vector<2x128xf32>
    %34 = arith.mulf %29, %33 : vector<2x128xf32>
    %35 = tpu.concatenate %34, %5 in 1 : vector<2x128xf32>, vector<2x128xf32> -> vector<2x256xf32>
    %cst_16 = arith.constant dense<0.000000e+00> : vector<2x512xf32>
    %36 = tpu.matmul %35, %1, %cst_16 {dimension_numbers = #tpu.dot_dimension_numbers<[1], [0], [0], [1], [0, 0, 1, 1], [], []>} : vector<2x256xf32>, vector<256x512xf32>, vector<2x512xf32> -> vector<2x512xf32>
    %37 = vector.broadcast %2 : vector<1x512xf32> to vector<2x512xf32>
    %38 = arith.addf %36, %37 : vector<2x512xf32>
    %39 = vector.extract_strided_slice %38 {offsets = [0, 0], sizes = [2, 128], strides = [1, 1]} : vector<2x512xf32> to vector<2x128xf32>
    %40 = arith.negf %39 : vector<2x128xf32>
    %41 = math.exp %40 : vector<2x128xf32>
    %cst_17 = arith.constant 1.000000e+00 : f32
    %42 = vector.broadcast %cst_17 : f32 to vector<2x128xf32>
    %43 = arith.addf %42, %41 : vector<2x128xf32>
    %44 = arith.divf %42, %43 : vector<2x128xf32>
    %45 = vector.extract_strided_slice %38 {offsets = [0, 128], sizes = [2, 128], strides = [1, 1]} : vector<2x512xf32> to vector<2x128xf32>
    %46 = arith.negf %45 : vector<2x128xf32>
    %47 = math.exp %46 : vector<2x128xf32>
    %cst_18 = arith.constant 1.000000e+00 : f32
    %48 = vector.broadcast %cst_18 : f32 to vector<2x128xf32>
    %49 = arith.addf %48, %47 : vector<2x128xf32>
    %50 = arith.divf %48, %49 : vector<2x128xf32>
    %51 = vector.extract_strided_slice %38 {offsets = [0, 256], sizes = [2, 128], strides = [1, 1]} : vector<2x512xf32> to vector<2x128xf32>
    %52 = math.tanh %51 : vector<2x128xf32>
    %53 = vector.extract_strided_slice %38 {offsets = [0, 384], sizes = [2, 128], strides = [1, 1]} : vector<2x512xf32> to vector<2x128xf32>
    %54 = arith.negf %53 : vector<2x128xf32>
    %55 = math.exp %54 : vector<2x128xf32>
    %cst_19 = arith.constant 1.000000e+00 : f32
    %56 = vector.broadcast %cst_19 : f32 to vector<2x128xf32>
    %57 = arith.addf %56, %55 : vector<2x128xf32>
    %58 = arith.divf %56, %57 : vector<2x128xf32>
    %59 = arith.mulf %50, %5 : vector<2x128xf32>
    %60 = arith.mulf %44, %52 : vector<2x128xf32>
    %61 = arith.addf %59, %60 : vector<2x128xf32>
    %62 = math.tanh %61 : vector<2x128xf32>
    %63 = arith.mulf %58, %62 : vector<2x128xf32>
    %64 = tpu.concatenate %63, %5 in 1 : vector<2x128xf32>, vector<2x128xf32> -> vector<2x256xf32>
    %cst_20 = arith.constant dense<0.000000e+00> : vector<2x512xf32>
    %65 = tpu.matmul %64, %3, %cst_20 {dimension_numbers = #tpu.dot_dimension_numbers<[1], [0], [0], [1], [0, 0, 1, 1], [], []>} : vector<2x256xf32>, vector<256x512xf32>, vector<2x512xf32> -> vector<2x512xf32>
    %66 = vector.broadcast %4 : vector<1x512xf32> to vector<2x512xf32>
    %67 = arith.addf %65, %66 : vector<2x512xf32>
    %68 = vector.extract_strided_slice %67 {offsets = [0, 0], sizes = [2, 128], strides = [1, 1]} : vector<2x512xf32> to vector<2x128xf32>
    %69 = arith.negf %68 : vector<2x128xf32>
    %70 = math.exp %69 : vector<2x128xf32>
    %cst_21 = arith.constant 1.000000e+00 : f32
    %71 = vector.broadcast %cst_21 : f32 to vector<2x128xf32>
    %72 = arith.addf %71, %70 : vector<2x128xf32>
    %73 = arith.divf %71, %72 : vector<2x128xf32>
    %74 = vector.extract_strided_slice %67 {offsets = [0, 128], sizes = [2, 128], strides = [1, 1]} : vector<2x512xf32> to vector<2x128xf32>
    %75 = arith.negf %74 : vector<2x128xf32>
    %76 = math.exp %75 : vector<2x128xf32>
    %cst_22 = arith.constant 1.000000e+00 : f32
    %77 = vector.broadcast %cst_22 : f32 to vector<2x128xf32>
    %78 = arith.addf %77, %76 : vector<2x128xf32>
    %79 = arith.divf %77, %78 : vector<2x128xf32>
    %80 = vector.extract_strided_slice %67 {offsets = [0, 256], sizes = [2, 128], strides = [1, 1]} : vector<2x512xf32> to vector<2x128xf32>
    %81 = math.tanh %80 : vector<2x128xf32>
    %82 = vector.extract_strided_slice %67 {offsets = [0, 384], sizes = [2, 128], strides = [1, 1]} : vector<2x512xf32> to vector<2x128xf32>
    %83 = arith.negf %82 : vector<2x128xf32>
    %84 = math.exp %83 : vector<2x128xf32>
    %cst_23 = arith.constant 1.000000e+00 : f32
    %85 = vector.broadcast %cst_23 : f32 to vector<2x128xf32>
    %86 = arith.addf %85, %84 : vector<2x128xf32>
    %87 = arith.divf %85, %86 : vector<2x128xf32>
    %88 = arith.mulf %79, %5 : vector<2x128xf32>
    %89 = arith.mulf %73, %81 : vector<2x128xf32>
    %90 = arith.addf %88, %89 : vector<2x128xf32>
    %91 = math.tanh %90 : vector<2x128xf32>
    %92 = arith.mulf %87, %91 : vector<2x128xf32>
    %c0_24 = arith.constant 0 : index
    %c0_25 = arith.constant 0 : index
    %c0_26 = arith.constant 0 : index
    %93 = vector.load %arg6[%c0_24, %c0_25, %c0_26] : memref<8x2x128xf32, #tpu.memory_space<vmem>>, vector<1x2x128xf32>
    %94 = vector.shape_cast %93 : vector<1x2x128xf32> to vector<2x128xf32>
    %95 = vector.shape_cast %92 : vector<2x128xf32> to vector<1x2x128xf32>
    tpu.vector_store %arg6[%c0_24, %c0_25, %c0_26], %95 {strides = array<i32>} : memref<8x2x128xf32, #tpu.memory_space<vmem>>, vector<1x2x128xf32>,
    %c1 = arith.constant 1 : index
    %c0_27 = arith.constant 0 : index
    %c0_28 = arith.constant 0 : index
    %96 = vector.load %arg0[%c1, %c0_27, %c0_28] : memref<8x2x512xf32, #tpu.memory_space<vmem>>, vector<1x2x512xf32>
    %97 = vector.shape_cast %96 : vector<1x2x512xf32> to vector<2x512xf32>
    %cst_29 = arith.constant dense<0.000000e+00> : vector<2x512xf32>
    %98 = tpu.matmul %34, %0, %cst_29 {dimension_numbers = #tpu.dot_dimension_numbers<[1], [0], [0], [1], [0, 0, 1, 1], [], []>} : vector<2x128xf32>, vector<128x512xf32>, vector<2x512xf32> -> vector<2x512xf32>
    %99 = arith.addf %97, %98 : vector<2x512xf32>
    %100 = vector.extract_strided_slice %99 {offsets = [0, 0], sizes = [2, 128], strides = [1, 1]} : vector<2x512xf32> to vector<2x128xf32>
    %101 = arith.negf %100 : vector<2x128xf32>
    %102 = math.exp %101 : vector<2x128xf32>
    %cst_30 = arith.constant 1.000000e+00 : f32
    %103 = vector.broadcast %cst_30 : f32 to vector<2x128xf32>
    %104 = arith.addf %103, %102 : vector<2x128xf32>
    %105 = arith.divf %103, %104 : vector<2x128xf32>
    %106 = vector.extract_strided_slice %99 {offsets = [0, 128], sizes = [2, 128], strides = [1, 1]} : vector<2x512xf32> to vector<2x128xf32>
    %107 = arith.negf %106 : vector<2x128xf32>
    %108 = math.exp %107 : vector<2x128xf32>
    %cst_31 = arith.constant 1.000000e+00 : f32
    %109 = vector.broadcast %cst_31 : f32 to vector<2x128xf32>
    %110 = arith.addf %109, %108 : vector<2x128xf32>
    %111 = arith.divf %109, %110 : vector<2x128xf32>
    %112 = vector.extract_strided_slice %99 {offsets = [0, 256], sizes = [2, 128], strides = [1, 1]} : vector<2x512xf32> to vector<2x128xf32>
    %113 = math.tanh %112 : vector<2x128xf32>
    %114 = vector.extract_strided_slice %99 {offsets = [0, 384], sizes = [2, 128], strides = [1, 1]} : vector<2x512xf32> to vector<2x128xf32>
    %115 = arith.negf %114 : vector<2x128xf32>
    %116 = math.exp %115 : vector<2x128xf32>
    %cst_32 = arith.constant 1.000000e+00 : f32
    %117 = vector.broadcast %cst_32 : f32 to vector<2x128xf32>
    %118 = arith.addf %117, %116 : vector<2x128xf32>
    %119 = arith.divf %117, %118 : vector<2x128xf32>
    %120 = arith.mulf %111, %32 : vector<2x128xf32>
    %121 = arith.mulf %105, %113 : vector<2x128xf32>
    %122 = arith.addf %120, %121 : vector<2x128xf32>
    %123 = math.tanh %122 : vector<2x128xf32>
    %124 = arith.mulf %119, %123 : vector<2x128xf32>
    %125 = tpu.concatenate %124, %63 in 1 : vector<2x128xf32>, vector<2x128xf32> -> vector<2x256xf32>
    %cst_33 = arith.constant dense<0.000000e+00> : vector<2x512xf32>
    %126 = tpu.matmul %125, %1, %cst_33 {dimension_numbers = #tpu.dot_dimension_numbers<[1], [0], [0], [1], [0, 0, 1, 1], [], []>} : vector<2x256xf32>, vector<256x512xf32>, vector<2x512xf32> -> vector<2x512xf32>
    %127 = vector.broadcast %2 : vector<1x512xf32> to vector<2x512xf32>
    %128 = arith.addf %126, %127 : vector<2x512xf32>
    %129 = vector.extract_strided_slice %128 {offsets = [0, 0], sizes = [2, 128], strides = [1, 1]} : vector<2x512xf32> to vector<2x128xf32>
    %130 = arith.negf %129 : vector<2x128xf32>
    %131 = math.exp %130 : vector<2x128xf32>
    %cst_34 = arith.constant 1.000000e+00 : f32
    %132 = vector.broadcast %cst_34 : f32 to vector<2x128xf32>
    %133 = arith.addf %132, %131 : vector<2x128xf32>
    %134 = arith.divf %132, %133 : vector<2x128xf32>
    %135 = vector.extract_strided_slice %128 {offsets = [0, 128], sizes = [2, 128], strides = [1, 1]} : vector<2x512xf32> to vector<2x128xf32>
    %136 = arith.negf %135 : vector<2x128xf32>
    %137 = math.exp %136 : vector<2x128xf32>
    %cst_35 = arith.constant 1.000000e+00 : f32
    %138 = vector.broadcast %cst_35 : f32 to vector<2x128xf32>
    %139 = arith.addf %138, %137 : vector<2x128xf32>
    %140 = arith.divf %138, %139 : vector<2x128xf32>
    %141 = vector.extract_strided_slice %128 {offsets = [0, 256], sizes = [2, 128], strides = [1, 1]} : vector<2x512xf32> to vector<2x128xf32>
    %142 = math.tanh %141 : vector<2x128xf32>
    %143 = vector.extract_strided_slice %128 {offsets = [0, 384], sizes = [2, 128], strides = [1, 1]} : vector<2x512xf32> to vector<2x128xf32>
    %144 = arith.negf %143 : vector<2x128xf32>
    %145 = math.exp %144 : vector<2x128xf32>
    %cst_36 = arith.constant 1.000000e+00 : f32
    %146 = vector.broadcast %cst_36 : f32 to vector<2x128xf32>
    %147 = arith.addf %146, %145 : vector<2x128xf32>
    %148 = arith.divf %146, %147 : vector<2x128xf32>
    %149 = arith.mulf %140, %61 : vector<2x128xf32>
    %150 = arith.mulf %134, %142 : vector<2x128xf32>
    %151 = arith.addf %149, %150 : vector<2x128xf32>
    %152 = math.tanh %151 : vector<2x128xf32>
    %153 = arith.mulf %148, %152 : vector<2x128xf32>
    %154 = tpu.concatenate %153, %92 in 1 : vector<2x128xf32>, vector<2x128xf32> -> vector<2x256xf32>
    %cst_37 = arith.constant dense<0.000000e+00> : vector<2x512xf32>
    %155 = tpu.matmul %154, %3, %cst_37 {dimension_numbers = #tpu.dot_dimension_numbers<[1], [0], [0], [1], [0, 0, 1, 1], [], []>} : vector<2x256xf32>, vector<256x512xf32>, vector<2x512xf32> -> vector<2x512xf32>
    %156 = vector.broadcast %4 : vector<1x512xf32> to vector<2x512xf32>
    %157 = arith.addf %155, %156 : vector<2x512xf32>
    %158 = vector.extract_strided_slice %157 {offsets = [0, 0], sizes = [2, 128], strides = [1, 1]} : vector<2x512xf32> to vector<2x128xf32>
    %159 = arith.negf %158 : vector<2x128xf32>
    %160 = math.exp %159 : vector<2x128xf32>
    %cst_38 = arith.constant 1.000000e+00 : f32
    %161 = vector.broadcast %cst_38 : f32 to vector<2x128xf32>
    %162 = arith.addf %161, %160 : vector<2x128xf32>
    %163 = arith.divf %161, %162 : vector<2x128xf32>
    %164 = vector.extract_strided_slice %157 {offsets = [0, 128], sizes = [2, 128], strides = [1, 1]} : vector<2x512xf32> to vector<2x128xf32>
    %165 = arith.negf %164 : vector<2x128xf32>
    %166 = math.exp %165 : vector<2x128xf32>
    %cst_39 = arith.constant 1.000000e+00 : f32
    %167 = vector.broadcast %cst_39 : f32 to vector<2x128xf32>
    %168 = arith.addf %167, %166 : vector<2x128xf32>
    %169 = arith.divf %167, %168 : vector<2x128xf32>
    %170 = vector.extract_strided_slice %157 {offsets = [0, 256], sizes = [2, 128], strides = [1, 1]} : vector<2x512xf32> to vector<2x128xf32>
    %171 = math.tanh %170 : vector<2x128xf32>
    %172 = vector.extract_strided_slice %157 {offsets = [0, 384], sizes = [2, 128], strides = [1, 1]} : vector<2x512xf32> to vector<2x128xf32>
    %173 = arith.negf %172 : vector<2x128xf32>
    %174 = math.exp %173 : vector<2x128xf32>
    %cst_40 = arith.constant 1.000000e+00 : f32
    %175 = vector.broadcast %cst_40 : f32 to vector<2x128xf32>
    %176 = arith.addf %175, %174 : vector<2x128xf32>
    %177 = arith.divf %175, %176 : vector<2x128xf32>
    %178 = arith.mulf %169, %90 : vector<2x128xf32>
    %179 = arith.mulf %163, %171 : vector<2x128xf32>
    %180 = arith.addf %178, %179 : vector<2x128xf32>
    %181 = math.tanh %180 : vector<2x128xf32>
    %182 = arith.mulf %177, %181 : vector<2x128xf32>
    %c1_41 = arith.constant 1 : index
    %c0_42 = arith.constant 0 : index
    %c0_43 = arith.constant 0 : index
    %183 = vector.load %arg6[%c1_41, %c0_42, %c0_43] : memref<8x2x128xf32, #tpu.memory_space<vmem>>, vector<1x2x128xf32>
    %184 = vector.shape_cast %183 : vector<1x2x128xf32> to vector<2x128xf32>
    %185 = vector.shape_cast %182 : vector<2x128xf32> to vector<1x2x128xf32>
    tpu.vector_store %arg6[%c1_41, %c0_42, %c0_43], %185 {strides = array<i32>} : memref<8x2x128xf32, #tpu.memory_space<vmem>>, vector<1x2x128xf32>,
    %c2 = arith.constant 2 : index
    %c0_44 = arith.constant 0 : index
    %c0_45 = arith.constant 0 : index
    %186 = vector.load %arg0[%c2, %c0_44, %c0_45] : memref<8x2x512xf32, #tpu.memory_space<vmem>>, vector<1x2x512xf32>
    %187 = vector.shape_cast %186 : vector<1x2x512xf32> to vector<2x512xf32>
    %cst_46 = arith.constant dense<0.000000e+00> : vector<2x512xf32>
    %188 = tpu.matmul %124, %0, %cst_46 {dimension_numbers = #tpu.dot_dimension_numbers<[1], [0], [0], [1], [0, 0, 1, 1], [], []>} : vector<2x128xf32>, vector<128x512xf32>, vector<2x512xf32> -> vector<2x512xf32>
    %189 = arith.addf %187, %188 : vector<2x512xf32>
    %190 = vector.extract_strided_slice %189 {offsets = [0, 0], sizes = [2, 128], strides = [1, 1]} : vector<2x512xf32> to vector<2x128xf32>
    %191 = arith.negf %190 : vector<2x128xf32>
    %192 = math.exp %191 : vector<2x128xf32>
    %cst_47 = arith.constant 1.000000e+00 : f32
    %193 = vector.broadcast %cst_47 : f32 to vector<2x128xf32>
    %194 = arith.addf %193, %192 : vector<2x128xf32>
    %195 = arith.divf %193, %194 : vector<2x128xf32>
    %196 = vector.extract_strided_slice %189 {offsets = [0, 128], sizes = [2, 128], strides = [1, 1]} : vector<2x512xf32> to vector<2x128xf32>
    %197 = arith.negf %196 : vector<2x128xf32>
    %198 = math.exp %197 : vector<2x128xf32>
    %cst_48 = arith.constant 1.000000e+00 : f32
    %199 = vector.broadcast %cst_48 : f32 to vector<2x128xf32>
    %200 = arith.addf %199, %198 : vector<2x128xf32>
    %201 = arith.divf %199, %200 : vector<2x128xf32>
    %202 = vector.extract_strided_slice %189 {offsets = [0, 256], sizes = [2, 128], strides = [1, 1]} : vector<2x512xf32> to vector<2x128xf32>
    %203 = math.tanh %202 : vector<2x128xf32>
    %204 = vector.extract_strided_slice %189 {offsets = [0, 384], sizes = [2, 128], strides = [1, 1]} : vector<2x512xf32> to vector<2x128xf32>
    %205 = arith.negf %204 : vector<2x128xf32>
    %206 = math.exp %205 : vector<2x128xf32>
    %cst_49 = arith.constant 1.000000e+00 : f32
    %207 = vector.broadcast %cst_49 : f32 to vector<2x128xf32>
    %208 = arith.addf %207, %206 : vector<2x128xf32>
    %209 = arith.divf %207, %208 : vector<2x128xf32>
    %210 = arith.mulf %201, %122 : vector<2x128xf32>
    %211 = arith.mulf %195, %203 : vector<2x128xf32>
    %212 = arith.addf %210, %211 : vector<2x128xf32>
    %213 = math.tanh %212 : vector<2x128xf32>
    %214 = arith.mulf %209, %213 : vector<2x128xf32>
    %215 = tpu.concatenate %214, %153 in 1 : vector<2x128xf32>, vector<2x128xf32> -> vector<2x256xf32>
    %cst_50 = arith.constant dense<0.000000e+00> : vector<2x512xf32>
    %216 = tpu.matmul %215, %1, %cst_50 {dimension_numbers = #tpu.dot_dimension_numbers<[1], [0], [0], [1], [0, 0, 1, 1], [], []>} : vector<2x256xf32>, vector<256x512xf32>, vector<2x512xf32> -> vector<2x512xf32>
    %217 = vector.broadcast %2 : vector<1x512xf32> to vector<2x512xf32>
    %218 = arith.addf %216, %217 : vector<2x512xf32>
    %219 = vector.extract_strided_slice %218 {offsets = [0, 0], sizes = [2, 128], strides = [1, 1]} : vector<2x512xf32> to vector<2x128xf32>
    %220 = arith.negf %219 : vector<2x128xf32>
    %221 = math.exp %220 : vector<2x128xf32>
    %cst_51 = arith.constant 1.000000e+00 : f32
    %222 = vector.broadcast %cst_51 : f32 to vector<2x128xf32>
    %223 = arith.addf %222, %221 : vector<2x128xf32>
    %224 = arith.divf %222, %223 : vector<2x128xf32>
    %225 = vector.extract_strided_slice %218 {offsets = [0, 128], sizes = [2, 128], strides = [1, 1]} : vector<2x512xf32> to vector<2x128xf32>
    %226 = arith.negf %225 : vector<2x128xf32>
    %227 = math.exp %226 : vector<2x128xf32>
    %cst_52 = arith.constant 1.000000e+00 : f32
    %228 = vector.broadcast %cst_52 : f32 to vector<2x128xf32>
    %229 = arith.addf %228, %227 : vector<2x128xf32>
    %230 = arith.divf %228, %229 : vector<2x128xf32>
    %231 = vector.extract_strided_slice %218 {offsets = [0, 256], sizes = [2, 128], strides = [1, 1]} : vector<2x512xf32> to vector<2x128xf32>
    %232 = math.tanh %231 : vector<2x128xf32>
    %233 = vector.extract_strided_slice %218 {offsets = [0, 384], sizes = [2, 128], strides = [1, 1]} : vector<2x512xf32> to vector<2x128xf32>
    %234 = arith.negf %233 : vector<2x128xf32>
    %235 = math.exp %234 : vector<2x128xf32>
    %cst_53 = arith.constant 1.000000e+00 : f32
    %236 = vector.broadcast %cst_53 : f32 to vector<2x128xf32>
    %237 = arith.addf %236, %235 : vector<2x128xf32>
    %238 = arith.divf %236, %237 : vector<2x128xf32>
    %239 = arith.mulf %230, %151 : vector<2x128xf32>
    %240 = arith.mulf %224, %232 : vector<2x128xf32>
    %241 = arith.addf %239, %240 : vector<2x128xf32>
    %242 = math.tanh %241 : vector<2x128xf32>
    %243 = arith.mulf %238, %242 : vector<2x128xf32>
    %244 = tpu.concatenate %243, %182 in 1 : vector<2x128xf32>, vector<2x128xf32> -> vector<2x256xf32>
    %cst_54 = arith.constant dense<0.000000e+00> : vector<2x512xf32>
    %245 = tpu.matmul %244, %3, %cst_54 {dimension_numbers = #tpu.dot_dimension_numbers<[1], [0], [0], [1], [0, 0, 1, 1], [], []>} : vector<2x256xf32>, vector<256x512xf32>, vector<2x512xf32> -> vector<2x512xf32>
    %246 = vector.broadcast %4 : vector<1x512xf32> to vector<2x512xf32>
    %247 = arith.addf %245, %246 : vector<2x512xf32>
    %248 = vector.extract_strided_slice %247 {offsets = [0, 0], sizes = [2, 128], strides = [1, 1]} : vector<2x512xf32> to vector<2x128xf32>
    %249 = arith.negf %248 : vector<2x128xf32>
    %250 = math.exp %249 : vector<2x128xf32>
    %cst_55 = arith.constant 1.000000e+00 : f32
    %251 = vector.broadcast %cst_55 : f32 to vector<2x128xf32>
    %252 = arith.addf %251, %250 : vector<2x128xf32>
    %253 = arith.divf %251, %252 : vector<2x128xf32>
    %254 = vector.extract_strided_slice %247 {offsets = [0, 128], sizes = [2, 128], strides = [1, 1]} : vector<2x512xf32> to vector<2x128xf32>
    %255 = arith.negf %254 : vector<2x128xf32>
    %256 = math.exp %255 : vector<2x128xf32>
    %cst_56 = arith.constant 1.000000e+00 : f32
    %257 = vector.broadcast %cst_56 : f32 to vector<2x128xf32>
    %258 = arith.addf %257, %256 : vector<2x128xf32>
    %259 = arith.divf %257, %258 : vector<2x128xf32>
    %260 = vector.extract_strided_slice %247 {offsets = [0, 256], sizes = [2, 128], strides = [1, 1]} : vector<2x512xf32> to vector<2x128xf32>
    %261 = math.tanh %260 : vector<2x128xf32>
    %262 = vector.extract_strided_slice %247 {offsets = [0, 384], sizes = [2, 128], strides = [1, 1]} : vector<2x512xf32> to vector<2x128xf32>
    %263 = arith.negf %262 : vector<2x128xf32>
    %264 = math.exp %263 : vector<2x128xf32>
    %cst_57 = arith.constant 1.000000e+00 : f32
    %265 = vector.broadcast %cst_57 : f32 to vector<2x128xf32>
    %266 = arith.addf %265, %264 : vector<2x128xf32>
    %267 = arith.divf %265, %266 : vector<2x128xf32>
    %268 = arith.mulf %259, %180 : vector<2x128xf32>
    %269 = arith.mulf %253, %261 : vector<2x128xf32>
    %270 = arith.addf %268, %269 : vector<2x128xf32>
    %271 = math.tanh %270 : vector<2x128xf32>
    %272 = arith.mulf %267, %271 : vector<2x128xf32>
    %c2_58 = arith.constant 2 : index
    %c0_59 = arith.constant 0 : index
    %c0_60 = arith.constant 0 : index
    %273 = vector.load %arg6[%c2_58, %c0_59, %c0_60] : memref<8x2x128xf32, #tpu.memory_space<vmem>>, vector<1x2x128xf32>
    %274 = vector.shape_cast %273 : vector<1x2x128xf32> to vector<2x128xf32>
    %275 = vector.shape_cast %272 : vector<2x128xf32> to vector<1x2x128xf32>
    tpu.vector_store %arg6[%c2_58, %c0_59, %c0_60], %275 {strides = array<i32>} : memref<8x2x128xf32, #tpu.memory_space<vmem>>, vector<1x2x128xf32>,
    %c3 = arith.constant 3 : index
    %c0_61 = arith.constant 0 : index
    %c0_62 = arith.constant 0 : index
    %276 = vector.load %arg0[%c3, %c0_61, %c0_62] : memref<8x2x512xf32, #tpu.memory_space<vmem>>, vector<1x2x512xf32>
    %277 = vector.shape_cast %276 : vector<1x2x512xf32> to vector<2x512xf32>
    %cst_63 = arith.constant dense<0.000000e+00> : vector<2x512xf32>
    %278 = tpu.matmul %214, %0, %cst_63 {dimension_numbers = #tpu.dot_dimension_numbers<[1], [0], [0], [1], [0, 0, 1, 1], [], []>} : vector<2x128xf32>, vector<128x512xf32>, vector<2x512xf32> -> vector<2x512xf32>
    %279 = arith.addf %277, %278 : vector<2x512xf32>
    %280 = vector.extract_strided_slice %279 {offsets = [0, 0], sizes = [2, 128], strides = [1, 1]} : vector<2x512xf32> to vector<2x128xf32>
    %281 = arith.negf %280 : vector<2x128xf32>
    %282 = math.exp %281 : vector<2x128xf32>
    %cst_64 = arith.constant 1.000000e+00 : f32
    %283 = vector.broadcast %cst_64 : f32 to vector<2x128xf32>
    %284 = arith.addf %283, %282 : vector<2x128xf32>
    %285 = arith.divf %283, %284 : vector<2x128xf32>
    %286 = vector.extract_strided_slice %279 {offsets = [0, 128], sizes = [2, 128], strides = [1, 1]} : vector<2x512xf32> to vector<2x128xf32>
    %287 = arith.negf %286 : vector<2x128xf32>
    %288 = math.exp %287 : vector<2x128xf32>
    %cst_65 = arith.constant 1.000000e+00 : f32
    %289 = vector.broadcast %cst_65 : f32 to vector<2x128xf32>
    %290 = arith.addf %289, %288 : vector<2x128xf32>
    %291 = arith.divf %289, %290 : vector<2x128xf32>
    %292 = vector.extract_strided_slice %279 {offsets = [0, 256], sizes = [2, 128], strides = [1, 1]} : vector<2x512xf32> to vector<2x128xf32>
    %293 = math.tanh %292 : vector<2x128xf32>
    %294 = vector.extract_strided_slice %279 {offsets = [0, 384], sizes = [2, 128], strides = [1, 1]} : vector<2x512xf32> to vector<2x128xf32>
    %295 = arith.negf %294 : vector<2x128xf32>
    %296 = math.exp %295 : vector<2x128xf32>
    %cst_66 = arith.constant 1.000000e+00 : f32
    %297 = vector.broadcast %cst_66 : f32 to vector<2x128xf32>
    %298 = arith.addf %297, %296 : vector<2x128xf32>
    %299 = arith.divf %297, %298 : vector<2x128xf32>
    %300 = arith.mulf %291, %212 : vector<2x128xf32>
    %301 = arith.mulf %285, %293 : vector<2x128xf32>
    %302 = arith.addf %300, %301 : vector<2x128xf32>
    %303 = math.tanh %302 : vector<2x128xf32>
    %304 = arith.mulf %299, %303 : vector<2x128xf32>
    %305 = tpu.concatenate %304, %243 in 1 : vector<2x128xf32>, vector<2x128xf32> -> vector<2x256xf32>
    %cst_67 = arith.constant dense<0.000000e+00> : vector<2x512xf32>
    %306 = tpu.matmul %305, %1, %cst_67 {dimension_numbers = #tpu.dot_dimension_numbers<[1], [0], [0], [1], [0, 0, 1, 1], [], []>} : vector<2x256xf32>, vector<256x512xf32>, vector<2x512xf32> -> vector<2x512xf32>
    %307 = vector.broadcast %2 : vector<1x512xf32> to vector<2x512xf32>
    %308 = arith.addf %306, %307 : vector<2x512xf32>
    %309 = vector.extract_strided_slice %308 {offsets = [0, 0], sizes = [2, 128], strides = [1, 1]} : vector<2x512xf32> to vector<2x128xf32>
    %310 = arith.negf %309 : vector<2x128xf32>
    %311 = math.exp %310 : vector<2x128xf32>
    %cst_68 = arith.constant 1.000000e+00 : f32
    %312 = vector.broadcast %cst_68 : f32 to vector<2x128xf32>
    %313 = arith.addf %312, %311 : vector<2x128xf32>
    %314 = arith.divf %312, %313 : vector<2x128xf32>
    %315 = vector.extract_strided_slice %308 {offsets = [0, 128], sizes = [2, 128], strides = [1, 1]} : vector<2x512xf32> to vector<2x128xf32>
    %316 = arith.negf %315 : vector<2x128xf32>
    %317 = math.exp %316 : vector<2x128xf32>
    %cst_69 = arith.constant 1.000000e+00 : f32
    %318 = vector.broadcast %cst_69 : f32 to vector<2x128xf32>
    %319 = arith.addf %318, %317 : vector<2x128xf32>
    %320 = arith.divf %318, %319 : vector<2x128xf32>
    %321 = vector.extract_strided_slice %308 {offsets = [0, 256], sizes = [2, 128], strides = [1, 1]} : vector<2x512xf32> to vector<2x128xf32>
    %322 = math.tanh %321 : vector<2x128xf32>
    %323 = vector.extract_strided_slice %308 {offsets = [0, 384], sizes = [2, 128], strides = [1, 1]} : vector<2x512xf32> to vector<2x128xf32>
    %324 = arith.negf %323 : vector<2x128xf32>
    %325 = math.exp %324 : vector<2x128xf32>
    %cst_70 = arith.constant 1.000000e+00 : f32
    %326 = vector.broadcast %cst_70 : f32 to vector<2x128xf32>
    %327 = arith.addf %326, %325 : vector<2x128xf32>
    %328 = arith.divf %326, %327 : vector<2x128xf32>
    %329 = arith.mulf %320, %241 : vector<2x128xf32>
    %330 = arith.mulf %314, %322 : vector<2x128xf32>
    %331 = arith.addf %329, %330 : vector<2x128xf32>
    %332 = math.tanh %331 : vector<2x128xf32>
    %333 = arith.mulf %328, %332 : vector<2x128xf32>
    %334 = tpu.concatenate %333, %272 in 1 : vector<2x128xf32>, vector<2x128xf32> -> vector<2x256xf32>
    %cst_71 = arith.constant dense<0.000000e+00> : vector<2x512xf32>
    %335 = tpu.matmul %334, %3, %cst_71 {dimension_numbers = #tpu.dot_dimension_numbers<[1], [0], [0], [1], [0, 0, 1, 1], [], []>} : vector<2x256xf32>, vector<256x512xf32>, vector<2x512xf32> -> vector<2x512xf32>
    %336 = vector.broadcast %4 : vector<1x512xf32> to vector<2x512xf32>
    %337 = arith.addf %335, %336 : vector<2x512xf32>
    %338 = vector.extract_strided_slice %337 {offsets = [0, 0], sizes = [2, 128], strides = [1, 1]} : vector<2x512xf32> to vector<2x128xf32>
    %339 = arith.negf %338 : vector<2x128xf32>
    %340 = math.exp %339 : vector<2x128xf32>
    %cst_72 = arith.constant 1.000000e+00 : f32
    %341 = vector.broadcast %cst_72 : f32 to vector<2x128xf32>
    %342 = arith.addf %341, %340 : vector<2x128xf32>
    %343 = arith.divf %341, %342 : vector<2x128xf32>
    %344 = vector.extract_strided_slice %337 {offsets = [0, 128], sizes = [2, 128], strides = [1, 1]} : vector<2x512xf32> to vector<2x128xf32>
    %345 = arith.negf %344 : vector<2x128xf32>
    %346 = math.exp %345 : vector<2x128xf32>
    %cst_73 = arith.constant 1.000000e+00 : f32
    %347 = vector.broadcast %cst_73 : f32 to vector<2x128xf32>
    %348 = arith.addf %347, %346 : vector<2x128xf32>
    %349 = arith.divf %347, %348 : vector<2x128xf32>
    %350 = vector.extract_strided_slice %337 {offsets = [0, 256], sizes = [2, 128], strides = [1, 1]} : vector<2x512xf32> to vector<2x128xf32>
    %351 = math.tanh %350 : vector<2x128xf32>
    %352 = vector.extract_strided_slice %337 {offsets = [0, 384], sizes = [2, 128], strides = [1, 1]} : vector<2x512xf32> to vector<2x128xf32>
    %353 = arith.negf %352 : vector<2x128xf32>
    %354 = math.exp %353 : vector<2x128xf32>
    %cst_74 = arith.constant 1.000000e+00 : f32
    %355 = vector.broadcast %cst_74 : f32 to vector<2x128xf32>
    %356 = arith.addf %355, %354 : vector<2x128xf32>
    %357 = arith.divf %355, %356 : vector<2x128xf32>
    %358 = arith.mulf %349, %270 : vector<2x128xf32>
    %359 = arith.mulf %343, %351 : vector<2x128xf32>
    %360 = arith.addf %358, %359 : vector<2x128xf32>
    %361 = math.tanh %360 : vector<2x128xf32>
    %362 = arith.mulf %357, %361 : vector<2x128xf32>
    %c3_75 = arith.constant 3 : index
    %c0_76 = arith.constant 0 : index
    %c0_77 = arith.constant 0 : index
    %363 = vector.load %arg6[%c3_75, %c0_76, %c0_77] : memref<8x2x128xf32, #tpu.memory_space<vmem>>, vector<1x2x128xf32>
    %364 = vector.shape_cast %363 : vector<1x2x128xf32> to vector<2x128xf32>
    %365 = vector.shape_cast %362 : vector<2x128xf32> to vector<1x2x128xf32>
    tpu.vector_store %arg6[%c3_75, %c0_76, %c0_77], %365 {strides = array<i32>} : memref<8x2x128xf32, #tpu.memory_space<vmem>>, vector<1x2x128xf32>,
    %c4 = arith.constant 4 : index
    %c0_78 = arith.constant 0 : index
    %c0_79 = arith.constant 0 : index
    %366 = vector.load %arg0[%c4, %c0_78, %c0_79] : memref<8x2x512xf32, #tpu.memory_space<vmem>>, vector<1x2x512xf32>
    %367 = vector.shape_cast %366 : vector<1x2x512xf32> to vector<2x512xf32>
    %cst_80 = arith.constant dense<0.000000e+00> : vector<2x512xf32>
    %368 = tpu.matmul %304, %0, %cst_80 {dimension_numbers = #tpu.dot_dimension_numbers<[1], [0], [0], [1], [0, 0, 1, 1], [], []>} : vector<2x128xf32>, vector<128x512xf32>, vector<2x512xf32> -> vector<2x512xf32>
    %369 = arith.addf %367, %368 : vector<2x512xf32>
    %370 = vector.extract_strided_slice %369 {offsets = [0, 0], sizes = [2, 128], strides = [1, 1]} : vector<2x512xf32> to vector<2x128xf32>
    %371 = arith.negf %370 : vector<2x128xf32>
    %372 = math.exp %371 : vector<2x128xf32>
    %cst_81 = arith.constant 1.000000e+00 : f32
    %373 = vector.broadcast %cst_81 : f32 to vector<2x128xf32>
    %374 = arith.addf %373, %372 : vector<2x128xf32>
    %375 = arith.divf %373, %374 : vector<2x128xf32>
    %376 = vector.extract_strided_slice %369 {offsets = [0, 128], sizes = [2, 128], strides = [1, 1]} : vector<2x512xf32> to vector<2x128xf32>
    %377 = arith.negf %376 : vector<2x128xf32>
    %378 = math.exp %377 : vector<2x128xf32>
    %cst_82 = arith.constant 1.000000e+00 : f32
    %379 = vector.broadcast %cst_82 : f32 to vector<2x128xf32>
    %380 = arith.addf %379, %378 : vector<2x128xf32>
    %381 = arith.divf %379, %380 : vector<2x128xf32>
    %382 = vector.extract_strided_slice %369 {offsets = [0, 256], sizes = [2, 128], strides = [1, 1]} : vector<2x512xf32> to vector<2x128xf32>
    %383 = math.tanh %382 : vector<2x128xf32>
    %384 = vector.extract_strided_slice %369 {offsets = [0, 384], sizes = [2, 128], strides = [1, 1]} : vector<2x512xf32> to vector<2x128xf32>
    %385 = arith.negf %384 : vector<2x128xf32>
    %386 = math.exp %385 : vector<2x128xf32>
    %cst_83 = arith.constant 1.000000e+00 : f32
    %387 = vector.broadcast %cst_83 : f32 to vector<2x128xf32>
    %388 = arith.addf %387, %386 : vector<2x128xf32>
    %389 = arith.divf %387, %388 : vector<2x128xf32>
    %390 = arith.mulf %381, %302 : vector<2x128xf32>
    %391 = arith.mulf %375, %383 : vector<2x128xf32>
    %392 = arith.addf %390, %391 : vector<2x128xf32>
    %393 = math.tanh %392 : vector<2x128xf32>
    %394 = arith.mulf %389, %393 : vector<2x128xf32>
    %395 = tpu.concatenate %394, %333 in 1 : vector<2x128xf32>, vector<2x128xf32> -> vector<2x256xf32>
    %cst_84 = arith.constant dense<0.000000e+00> : vector<2x512xf32>
    %396 = tpu.matmul %395, %1, %cst_84 {dimension_numbers = #tpu.dot_dimension_numbers<[1], [0], [0], [1], [0, 0, 1, 1], [], []>} : vector<2x256xf32>, vector<256x512xf32>, vector<2x512xf32> -> vector<2x512xf32>
    %397 = vector.broadcast %2 : vector<1x512xf32> to vector<2x512xf32>
    %398 = arith.addf %396, %397 : vector<2x512xf32>
    %399 = vector.extract_strided_slice %398 {offsets = [0, 0], sizes = [2, 128], strides = [1, 1]} : vector<2x512xf32> to vector<2x128xf32>
    %400 = arith.negf %399 : vector<2x128xf32>
    %401 = math.exp %400 : vector<2x128xf32>
    %cst_85 = arith.constant 1.000000e+00 : f32
    %402 = vector.broadcast %cst_85 : f32 to vector<2x128xf32>
    %403 = arith.addf %402, %401 : vector<2x128xf32>
    %404 = arith.divf %402, %403 : vector<2x128xf32>
    %405 = vector.extract_strided_slice %398 {offsets = [0, 128], sizes = [2, 128], strides = [1, 1]} : vector<2x512xf32> to vector<2x128xf32>
    %406 = arith.negf %405 : vector<2x128xf32>
    %407 = math.exp %406 : vector<2x128xf32>
    %cst_86 = arith.constant 1.000000e+00 : f32
    %408 = vector.broadcast %cst_86 : f32 to vector<2x128xf32>
    %409 = arith.addf %408, %407 : vector<2x128xf32>
    %410 = arith.divf %408, %409 : vector<2x128xf32>
    %411 = vector.extract_strided_slice %398 {offsets = [0, 256], sizes = [2, 128], strides = [1, 1]} : vector<2x512xf32> to vector<2x128xf32>
    %412 = math.tanh %411 : vector<2x128xf32>
    %413 = vector.extract_strided_slice %398 {offsets = [0, 384], sizes = [2, 128], strides = [1, 1]} : vector<2x512xf32> to vector<2x128xf32>
    %414 = arith.negf %413 : vector<2x128xf32>
    %415 = math.exp %414 : vector<2x128xf32>
    %cst_87 = arith.constant 1.000000e+00 : f32
    %416 = vector.broadcast %cst_87 : f32 to vector<2x128xf32>
    %417 = arith.addf %416, %415 : vector<2x128xf32>
    %418 = arith.divf %416, %417 : vector<2x128xf32>
    %419 = arith.mulf %410, %331 : vector<2x128xf32>
    %420 = arith.mulf %404, %412 : vector<2x128xf32>
    %421 = arith.addf %419, %420 : vector<2x128xf32>
    %422 = math.tanh %421 : vector<2x128xf32>
    %423 = arith.mulf %418, %422 : vector<2x128xf32>
    %424 = tpu.concatenate %423, %362 in 1 : vector<2x128xf32>, vector<2x128xf32> -> vector<2x256xf32>
    %cst_88 = arith.constant dense<0.000000e+00> : vector<2x512xf32>
    %425 = tpu.matmul %424, %3, %cst_88 {dimension_numbers = #tpu.dot_dimension_numbers<[1], [0], [0], [1], [0, 0, 1, 1], [], []>} : vector<2x256xf32>, vector<256x512xf32>, vector<2x512xf32> -> vector<2x512xf32>
    %426 = vector.broadcast %4 : vector<1x512xf32> to vector<2x512xf32>
    %427 = arith.addf %425, %426 : vector<2x512xf32>
    %428 = vector.extract_strided_slice %427 {offsets = [0, 0], sizes = [2, 128], strides = [1, 1]} : vector<2x512xf32> to vector<2x128xf32>
    %429 = arith.negf %428 : vector<2x128xf32>
    %430 = math.exp %429 : vector<2x128xf32>
    %cst_89 = arith.constant 1.000000e+00 : f32
    %431 = vector.broadcast %cst_89 : f32 to vector<2x128xf32>
    %432 = arith.addf %431, %430 : vector<2x128xf32>
    %433 = arith.divf %431, %432 : vector<2x128xf32>
    %434 = vector.extract_strided_slice %427 {offsets = [0, 128], sizes = [2, 128], strides = [1, 1]} : vector<2x512xf32> to vector<2x128xf32>
    %435 = arith.negf %434 : vector<2x128xf32>
    %436 = math.exp %435 : vector<2x128xf32>
    %cst_90 = arith.constant 1.000000e+00 : f32
    %437 = vector.broadcast %cst_90 : f32 to vector<2x128xf32>
    %438 = arith.addf %437, %436 : vector<2x128xf32>
    %439 = arith.divf %437, %438 : vector<2x128xf32>
    %440 = vector.extract_strided_slice %427 {offsets = [0, 256], sizes = [2, 128], strides = [1, 1]} : vector<2x512xf32> to vector<2x128xf32>
    %441 = math.tanh %440 : vector<2x128xf32>
    %442 = vector.extract_strided_slice %427 {offsets = [0, 384], sizes = [2, 128], strides = [1, 1]} : vector<2x512xf32> to vector<2x128xf32>
    %443 = arith.negf %442 : vector<2x128xf32>
    %444 = math.exp %443 : vector<2x128xf32>
    %cst_91 = arith.constant 1.000000e+00 : f32
    %445 = vector.broadcast %cst_91 : f32 to vector<2x128xf32>
    %446 = arith.addf %445, %444 : vector<2x128xf32>
    %447 = arith.divf %445, %446 : vector<2x128xf32>
    %448 = arith.mulf %439, %360 : vector<2x128xf32>
    %449 = arith.mulf %433, %441 : vector<2x128xf32>
    %450 = arith.addf %448, %449 : vector<2x128xf32>
    %451 = math.tanh %450 : vector<2x128xf32>
    %452 = arith.mulf %447, %451 : vector<2x128xf32>
    %c4_92 = arith.constant 4 : index
    %c0_93 = arith.constant 0 : index
    %c0_94 = arith.constant 0 : index
    %453 = vector.load %arg6[%c4_92, %c0_93, %c0_94] : memref<8x2x128xf32, #tpu.memory_space<vmem>>, vector<1x2x128xf32>
    %454 = vector.shape_cast %453 : vector<1x2x128xf32> to vector<2x128xf32>
    %455 = vector.shape_cast %452 : vector<2x128xf32> to vector<1x2x128xf32>
    tpu.vector_store %arg6[%c4_92, %c0_93, %c0_94], %455 {strides = array<i32>} : memref<8x2x128xf32, #tpu.memory_space<vmem>>, vector<1x2x128xf32>,
    %c5 = arith.constant 5 : index
    %c0_95 = arith.constant 0 : index
    %c0_96 = arith.constant 0 : index
    %456 = vector.load %arg0[%c5, %c0_95, %c0_96] : memref<8x2x512xf32, #tpu.memory_space<vmem>>, vector<1x2x512xf32>
    %457 = vector.shape_cast %456 : vector<1x2x512xf32> to vector<2x512xf32>
    %cst_97 = arith.constant dense<0.000000e+00> : vector<2x512xf32>
    %458 = tpu.matmul %394, %0, %cst_97 {dimension_numbers = #tpu.dot_dimension_numbers<[1], [0], [0], [1], [0, 0, 1, 1], [], []>} : vector<2x128xf32>, vector<128x512xf32>, vector<2x512xf32> -> vector<2x512xf32>
    %459 = arith.addf %457, %458 : vector<2x512xf32>
    %460 = vector.extract_strided_slice %459 {offsets = [0, 0], sizes = [2, 128], strides = [1, 1]} : vector<2x512xf32> to vector<2x128xf32>
    %461 = arith.negf %460 : vector<2x128xf32>
    %462 = math.exp %461 : vector<2x128xf32>
    %cst_98 = arith.constant 1.000000e+00 : f32
    %463 = vector.broadcast %cst_98 : f32 to vector<2x128xf32>
    %464 = arith.addf %463, %462 : vector<2x128xf32>
    %465 = arith.divf %463, %464 : vector<2x128xf32>
    %466 = vector.extract_strided_slice %459 {offsets = [0, 128], sizes = [2, 128], strides = [1, 1]} : vector<2x512xf32> to vector<2x128xf32>
    %467 = arith.negf %466 : vector<2x128xf32>
    %468 = math.exp %467 : vector<2x128xf32>
    %cst_99 = arith.constant 1.000000e+00 : f32
    %469 = vector.broadcast %cst_99 : f32 to vector<2x128xf32>
    %470 = arith.addf %469, %468 : vector<2x128xf32>
    %471 = arith.divf %469, %470 : vector<2x128xf32>
    %472 = vector.extract_strided_slice %459 {offsets = [0, 256], sizes = [2, 128], strides = [1, 1]} : vector<2x512xf32> to vector<2x128xf32>
    %473 = math.tanh %472 : vector<2x128xf32>
    %474 = vector.extract_strided_slice %459 {offsets = [0, 384], sizes = [2, 128], strides = [1, 1]} : vector<2x512xf32> to vector<2x128xf32>
    %475 = arith.negf %474 : vector<2x128xf32>
    %476 = math.exp %475 : vector<2x128xf32>
    %cst_100 = arith.constant 1.000000e+00 : f32
    %477 = vector.broadcast %cst_100 : f32 to vector<2x128xf32>
    %478 = arith.addf %477, %476 : vector<2x128xf32>
    %479 = arith.divf %477, %478 : vector<2x128xf32>
    %480 = arith.mulf %471, %392 : vector<2x128xf32>
    %481 = arith.mulf %465, %473 : vector<2x128xf32>
    %482 = arith.addf %480, %481 : vector<2x128xf32>
    %483 = math.tanh %482 : vector<2x128xf32>
    %484 = arith.mulf %479, %483 : vector<2x128xf32>
    %485 = tpu.concatenate %484, %423 in 1 : vector<2x128xf32>, vector<2x128xf32> -> vector<2x256xf32>
    %cst_101 = arith.constant dense<0.000000e+00> : vector<2x512xf32>
    %486 = tpu.matmul %485, %1, %cst_101 {dimension_numbers = #tpu.dot_dimension_numbers<[1], [0], [0], [1], [0, 0, 1, 1], [], []>} : vector<2x256xf32>, vector<256x512xf32>, vector<2x512xf32> -> vector<2x512xf32>
    %487 = vector.broadcast %2 : vector<1x512xf32> to vector<2x512xf32>
    %488 = arith.addf %486, %487 : vector<2x512xf32>
    %489 = vector.extract_strided_slice %488 {offsets = [0, 0], sizes = [2, 128], strides = [1, 1]} : vector<2x512xf32> to vector<2x128xf32>
    %490 = arith.negf %489 : vector<2x128xf32>
    %491 = math.exp %490 : vector<2x128xf32>
    %cst_102 = arith.constant 1.000000e+00 : f32
    %492 = vector.broadcast %cst_102 : f32 to vector<2x128xf32>
    %493 = arith.addf %492, %491 : vector<2x128xf32>
    %494 = arith.divf %492, %493 : vector<2x128xf32>
    %495 = vector.extract_strided_slice %488 {offsets = [0, 128], sizes = [2, 128], strides = [1, 1]} : vector<2x512xf32> to vector<2x128xf32>
    %496 = arith.negf %495 : vector<2x128xf32>
    %497 = math.exp %496 : vector<2x128xf32>
    %cst_103 = arith.constant 1.000000e+00 : f32
    %498 = vector.broadcast %cst_103 : f32 to vector<2x128xf32>
    %499 = arith.addf %498, %497 : vector<2x128xf32>
    %500 = arith.divf %498, %499 : vector<2x128xf32>
    %501 = vector.extract_strided_slice %488 {offsets = [0, 256], sizes = [2, 128], strides = [1, 1]} : vector<2x512xf32> to vector<2x128xf32>
    %502 = math.tanh %501 : vector<2x128xf32>
    %503 = vector.extract_strided_slice %488 {offsets = [0, 384], sizes = [2, 128], strides = [1, 1]} : vector<2x512xf32> to vector<2x128xf32>
    %504 = arith.negf %503 : vector<2x128xf32>
    %505 = math.exp %504 : vector<2x128xf32>
    %cst_104 = arith.constant 1.000000e+00 : f32
    %506 = vector.broadcast %cst_104 : f32 to vector<2x128xf32>
    %507 = arith.addf %506, %505 : vector<2x128xf32>
    %508 = arith.divf %506, %507 : vector<2x128xf32>
    %509 = arith.mulf %500, %421 : vector<2x128xf32>
    %510 = arith.mulf %494, %502 : vector<2x128xf32>
    %511 = arith.addf %509, %510 : vector<2x128xf32>
    %512 = math.tanh %511 : vector<2x128xf32>
    %513 = arith.mulf %508, %512 : vector<2x128xf32>
    %514 = tpu.concatenate %513, %452 in 1 : vector<2x128xf32>, vector<2x128xf32> -> vector<2x256xf32>
    %cst_105 = arith.constant dense<0.000000e+00> : vector<2x512xf32>
    %515 = tpu.matmul %514, %3, %cst_105 {dimension_numbers = #tpu.dot_dimension_numbers<[1], [0], [0], [1], [0, 0, 1, 1], [], []>} : vector<2x256xf32>, vector<256x512xf32>, vector<2x512xf32> -> vector<2x512xf32>
    %516 = vector.broadcast %4 : vector<1x512xf32> to vector<2x512xf32>
    %517 = arith.addf %515, %516 : vector<2x512xf32>
    %518 = vector.extract_strided_slice %517 {offsets = [0, 0], sizes = [2, 128], strides = [1, 1]} : vector<2x512xf32> to vector<2x128xf32>
    %519 = arith.negf %518 : vector<2x128xf32>
    %520 = math.exp %519 : vector<2x128xf32>
    %cst_106 = arith.constant 1.000000e+00 : f32
    %521 = vector.broadcast %cst_106 : f32 to vector<2x128xf32>
    %522 = arith.addf %521, %520 : vector<2x128xf32>
    %523 = arith.divf %521, %522 : vector<2x128xf32>
    %524 = vector.extract_strided_slice %517 {offsets = [0, 128], sizes = [2, 128], strides = [1, 1]} : vector<2x512xf32> to vector<2x128xf32>
    %525 = arith.negf %524 : vector<2x128xf32>
    %526 = math.exp %525 : vector<2x128xf32>
    %cst_107 = arith.constant 1.000000e+00 : f32
    %527 = vector.broadcast %cst_107 : f32 to vector<2x128xf32>
    %528 = arith.addf %527, %526 : vector<2x128xf32>
    %529 = arith.divf %527, %528 : vector<2x128xf32>
    %530 = vector.extract_strided_slice %517 {offsets = [0, 256], sizes = [2, 128], strides = [1, 1]} : vector<2x512xf32> to vector<2x128xf32>
    %531 = math.tanh %530 : vector<2x128xf32>
    %532 = vector.extract_strided_slice %517 {offsets = [0, 384], sizes = [2, 128], strides = [1, 1]} : vector<2x512xf32> to vector<2x128xf32>
    %533 = arith.negf %532 : vector<2x128xf32>
    %534 = math.exp %533 : vector<2x128xf32>
    %cst_108 = arith.constant 1.000000e+00 : f32
    %535 = vector.broadcast %cst_108 : f32 to vector<2x128xf32>
    %536 = arith.addf %535, %534 : vector<2x128xf32>
    %537 = arith.divf %535, %536 : vector<2x128xf32>
    %538 = arith.mulf %529, %450 : vector<2x128xf32>
    %539 = arith.mulf %523, %531 : vector<2x128xf32>
    %540 = arith.addf %538, %539 : vector<2x128xf32>
    %541 = math.tanh %540 : vector<2x128xf32>
    %542 = arith.mulf %537, %541 : vector<2x128xf32>
    %c5_109 = arith.constant 5 : index
    %c0_110 = arith.constant 0 : index
    %c0_111 = arith.constant 0 : index
    %543 = vector.load %arg6[%c5_109, %c0_110, %c0_111] : memref<8x2x128xf32, #tpu.memory_space<vmem>>, vector<1x2x128xf32>
    %544 = vector.shape_cast %543 : vector<1x2x128xf32> to vector<2x128xf32>
    %545 = vector.shape_cast %542 : vector<2x128xf32> to vector<1x2x128xf32>
    tpu.vector_store %arg6[%c5_109, %c0_110, %c0_111], %545 {strides = array<i32>} : memref<8x2x128xf32, #tpu.memory_space<vmem>>, vector<1x2x128xf32>,
    %c6 = arith.constant 6 : index
    %c0_112 = arith.constant 0 : index
    %c0_113 = arith.constant 0 : index
    %546 = vector.load %arg0[%c6, %c0_112, %c0_113] : memref<8x2x512xf32, #tpu.memory_space<vmem>>, vector<1x2x512xf32>
    %547 = vector.shape_cast %546 : vector<1x2x512xf32> to vector<2x512xf32>
    %cst_114 = arith.constant dense<0.000000e+00> : vector<2x512xf32>
    %548 = tpu.matmul %484, %0, %cst_114 {dimension_numbers = #tpu.dot_dimension_numbers<[1], [0], [0], [1], [0, 0, 1, 1], [], []>} : vector<2x128xf32>, vector<128x512xf32>, vector<2x512xf32> -> vector<2x512xf32>
    %549 = arith.addf %547, %548 : vector<2x512xf32>
    %550 = vector.extract_strided_slice %549 {offsets = [0, 0], sizes = [2, 128], strides = [1, 1]} : vector<2x512xf32> to vector<2x128xf32>
    %551 = arith.negf %550 : vector<2x128xf32>
    %552 = math.exp %551 : vector<2x128xf32>
    %cst_115 = arith.constant 1.000000e+00 : f32
    %553 = vector.broadcast %cst_115 : f32 to vector<2x128xf32>
    %554 = arith.addf %553, %552 : vector<2x128xf32>
    %555 = arith.divf %553, %554 : vector<2x128xf32>
    %556 = vector.extract_strided_slice %549 {offsets = [0, 128], sizes = [2, 128], strides = [1, 1]} : vector<2x512xf32> to vector<2x128xf32>
    %557 = arith.negf %556 : vector<2x128xf32>
    %558 = math.exp %557 : vector<2x128xf32>
    %cst_116 = arith.constant 1.000000e+00 : f32
    %559 = vector.broadcast %cst_116 : f32 to vector<2x128xf32>
    %560 = arith.addf %559, %558 : vector<2x128xf32>
    %561 = arith.divf %559, %560 : vector<2x128xf32>
    %562 = vector.extract_strided_slice %549 {offsets = [0, 256], sizes = [2, 128], strides = [1, 1]} : vector<2x512xf32> to vector<2x128xf32>
    %563 = math.tanh %562 : vector<2x128xf32>
    %564 = vector.extract_strided_slice %549 {offsets = [0, 384], sizes = [2, 128], strides = [1, 1]} : vector<2x512xf32> to vector<2x128xf32>
    %565 = arith.negf %564 : vector<2x128xf32>
    %566 = math.exp %565 : vector<2x128xf32>
    %cst_117 = arith.constant 1.000000e+00 : f32
    %567 = vector.broadcast %cst_117 : f32 to vector<2x128xf32>
    %568 = arith.addf %567, %566 : vector<2x128xf32>
    %569 = arith.divf %567, %568 : vector<2x128xf32>
    %570 = arith.mulf %561, %482 : vector<2x128xf32>
    %571 = arith.mulf %555, %563 : vector<2x128xf32>
    %572 = arith.addf %570, %571 : vector<2x128xf32>
    %573 = math.tanh %572 : vector<2x128xf32>
    %574 = arith.mulf %569, %573 : vector<2x128xf32>
    %575 = tpu.concatenate %574, %513 in 1 : vector<2x128xf32>, vector<2x128xf32> -> vector<2x256xf32>
    %cst_118 = arith.constant dense<0.000000e+00> : vector<2x512xf32>
    %576 = tpu.matmul %575, %1, %cst_118 {dimension_numbers = #tpu.dot_dimension_numbers<[1], [0], [0], [1], [0, 0, 1, 1], [], []>} : vector<2x256xf32>, vector<256x512xf32>, vector<2x512xf32> -> vector<2x512xf32>
    %577 = vector.broadcast %2 : vector<1x512xf32> to vector<2x512xf32>
    %578 = arith.addf %576, %577 : vector<2x512xf32>
    %579 = vector.extract_strided_slice %578 {offsets = [0, 0], sizes = [2, 128], strides = [1, 1]} : vector<2x512xf32> to vector<2x128xf32>
    %580 = arith.negf %579 : vector<2x128xf32>
    %581 = math.exp %580 : vector<2x128xf32>
    %cst_119 = arith.constant 1.000000e+00 : f32
    %582 = vector.broadcast %cst_119 : f32 to vector<2x128xf32>
    %583 = arith.addf %582, %581 : vector<2x128xf32>
    %584 = arith.divf %582, %583 : vector<2x128xf32>
    %585 = vector.extract_strided_slice %578 {offsets = [0, 128], sizes = [2, 128], strides = [1, 1]} : vector<2x512xf32> to vector<2x128xf32>
    %586 = arith.negf %585 : vector<2x128xf32>
    %587 = math.exp %586 : vector<2x128xf32>
    %cst_120 = arith.constant 1.000000e+00 : f32
    %588 = vector.broadcast %cst_120 : f32 to vector<2x128xf32>
    %589 = arith.addf %588, %587 : vector<2x128xf32>
    %590 = arith.divf %588, %589 : vector<2x128xf32>
    %591 = vector.extract_strided_slice %578 {offsets = [0, 256], sizes = [2, 128], strides = [1, 1]} : vector<2x512xf32> to vector<2x128xf32>
    %592 = math.tanh %591 : vector<2x128xf32>
    %593 = vector.extract_strided_slice %578 {offsets = [0, 384], sizes = [2, 128], strides = [1, 1]} : vector<2x512xf32> to vector<2x128xf32>
    %594 = arith.negf %593 : vector<2x128xf32>
    %595 = math.exp %594 : vector<2x128xf32>
    %cst_121 = arith.constant 1.000000e+00 : f32
    %596 = vector.broadcast %cst_121 : f32 to vector<2x128xf32>
    %597 = arith.addf %596, %595 : vector<2x128xf32>
    %598 = arith.divf %596, %597 : vector<2x128xf32>
    %599 = arith.mulf %590, %511 : vector<2x128xf32>
    %600 = arith.mulf %584, %592 : vector<2x128xf32>
    %601 = arith.addf %599, %600 : vector<2x128xf32>
    %602 = math.tanh %601 : vector<2x128xf32>
    %603 = arith.mulf %598, %602 : vector<2x128xf32>
    %604 = tpu.concatenate %603, %542 in 1 : vector<2x128xf32>, vector<2x128xf32> -> vector<2x256xf32>
    %cst_122 = arith.constant dense<0.000000e+00> : vector<2x512xf32>
    %605 = tpu.matmul %604, %3, %cst_122 {dimension_numbers = #tpu.dot_dimension_numbers<[1], [0], [0], [1], [0, 0, 1, 1], [], []>} : vector<2x256xf32>, vector<256x512xf32>, vector<2x512xf32> -> vector<2x512xf32>
    %606 = vector.broadcast %4 : vector<1x512xf32> to vector<2x512xf32>
    %607 = arith.addf %605, %606 : vector<2x512xf32>
    %608 = vector.extract_strided_slice %607 {offsets = [0, 0], sizes = [2, 128], strides = [1, 1]} : vector<2x512xf32> to vector<2x128xf32>
    %609 = arith.negf %608 : vector<2x128xf32>
    %610 = math.exp %609 : vector<2x128xf32>
    %cst_123 = arith.constant 1.000000e+00 : f32
    %611 = vector.broadcast %cst_123 : f32 to vector<2x128xf32>
    %612 = arith.addf %611, %610 : vector<2x128xf32>
    %613 = arith.divf %611, %612 : vector<2x128xf32>
    %614 = vector.extract_strided_slice %607 {offsets = [0, 128], sizes = [2, 128], strides = [1, 1]} : vector<2x512xf32> to vector<2x128xf32>
    %615 = arith.negf %614 : vector<2x128xf32>
    %616 = math.exp %615 : vector<2x128xf32>
    %cst_124 = arith.constant 1.000000e+00 : f32
    %617 = vector.broadcast %cst_124 : f32 to vector<2x128xf32>
    %618 = arith.addf %617, %616 : vector<2x128xf32>
    %619 = arith.divf %617, %618 : vector<2x128xf32>
    %620 = vector.extract_strided_slice %607 {offsets = [0, 256], sizes = [2, 128], strides = [1, 1]} : vector<2x512xf32> to vector<2x128xf32>
    %621 = math.tanh %620 : vector<2x128xf32>
    %622 = vector.extract_strided_slice %607 {offsets = [0, 384], sizes = [2, 128], strides = [1, 1]} : vector<2x512xf32> to vector<2x128xf32>
    %623 = arith.negf %622 : vector<2x128xf32>
    %624 = math.exp %623 : vector<2x128xf32>
    %cst_125 = arith.constant 1.000000e+00 : f32
    %625 = vector.broadcast %cst_125 : f32 to vector<2x128xf32>
    %626 = arith.addf %625, %624 : vector<2x128xf32>
    %627 = arith.divf %625, %626 : vector<2x128xf32>
    %628 = arith.mulf %619, %540 : vector<2x128xf32>
    %629 = arith.mulf %613, %621 : vector<2x128xf32>
    %630 = arith.addf %628, %629 : vector<2x128xf32>
    %631 = math.tanh %630 : vector<2x128xf32>
    %632 = arith.mulf %627, %631 : vector<2x128xf32>
    %c6_126 = arith.constant 6 : index
    %c0_127 = arith.constant 0 : index
    %c0_128 = arith.constant 0 : index
    %633 = vector.load %arg6[%c6_126, %c0_127, %c0_128] : memref<8x2x128xf32, #tpu.memory_space<vmem>>, vector<1x2x128xf32>
    %634 = vector.shape_cast %633 : vector<1x2x128xf32> to vector<2x128xf32>
    %635 = vector.shape_cast %632 : vector<2x128xf32> to vector<1x2x128xf32>
    tpu.vector_store %arg6[%c6_126, %c0_127, %c0_128], %635 {strides = array<i32>} : memref<8x2x128xf32, #tpu.memory_space<vmem>>, vector<1x2x128xf32>,
    %c7 = arith.constant 7 : index
    %c0_129 = arith.constant 0 : index
    %c0_130 = arith.constant 0 : index
    %636 = vector.load %arg0[%c7, %c0_129, %c0_130] : memref<8x2x512xf32, #tpu.memory_space<vmem>>, vector<1x2x512xf32>
    %637 = vector.shape_cast %636 : vector<1x2x512xf32> to vector<2x512xf32>
    %cst_131 = arith.constant dense<0.000000e+00> : vector<2x512xf32>
    %638 = tpu.matmul %574, %0, %cst_131 {dimension_numbers = #tpu.dot_dimension_numbers<[1], [0], [0], [1], [0, 0, 1, 1], [], []>} : vector<2x128xf32>, vector<128x512xf32>, vector<2x512xf32> -> vector<2x512xf32>
    %639 = arith.addf %637, %638 : vector<2x512xf32>
    %640 = vector.extract_strided_slice %639 {offsets = [0, 0], sizes = [2, 128], strides = [1, 1]} : vector<2x512xf32> to vector<2x128xf32>
    %641 = arith.negf %640 : vector<2x128xf32>
    %642 = math.exp %641 : vector<2x128xf32>
    %cst_132 = arith.constant 1.000000e+00 : f32
    %643 = vector.broadcast %cst_132 : f32 to vector<2x128xf32>
    %644 = arith.addf %643, %642 : vector<2x128xf32>
    %645 = arith.divf %643, %644 : vector<2x128xf32>
    %646 = vector.extract_strided_slice %639 {offsets = [0, 128], sizes = [2, 128], strides = [1, 1]} : vector<2x512xf32> to vector<2x128xf32>
    %647 = arith.negf %646 : vector<2x128xf32>
    %648 = math.exp %647 : vector<2x128xf32>
    %cst_133 = arith.constant 1.000000e+00 : f32
    %649 = vector.broadcast %cst_133 : f32 to vector<2x128xf32>
    %650 = arith.addf %649, %648 : vector<2x128xf32>
    %651 = arith.divf %649, %650 : vector<2x128xf32>
    %652 = vector.extract_strided_slice %639 {offsets = [0, 256], sizes = [2, 128], strides = [1, 1]} : vector<2x512xf32> to vector<2x128xf32>
    %653 = math.tanh %652 : vector<2x128xf32>
    %654 = vector.extract_strided_slice %639 {offsets = [0, 384], sizes = [2, 128], strides = [1, 1]} : vector<2x512xf32> to vector<2x128xf32>
    %655 = arith.negf %654 : vector<2x128xf32>
    %656 = math.exp %655 : vector<2x128xf32>
    %cst_134 = arith.constant 1.000000e+00 : f32
    %657 = vector.broadcast %cst_134 : f32 to vector<2x128xf32>
    %658 = arith.addf %657, %656 : vector<2x128xf32>
    %659 = arith.divf %657, %658 : vector<2x128xf32>
    %660 = arith.mulf %651, %572 : vector<2x128xf32>
    %661 = arith.mulf %645, %653 : vector<2x128xf32>
    %662 = arith.addf %660, %661 : vector<2x128xf32>
    %663 = math.tanh %662 : vector<2x128xf32>
    %664 = arith.mulf %659, %663 : vector<2x128xf32>
    %665 = tpu.concatenate %664, %603 in 1 : vector<2x128xf32>, vector<2x128xf32> -> vector<2x256xf32>
    %cst_135 = arith.constant dense<0.000000e+00> : vector<2x512xf32>
    %666 = tpu.matmul %665, %1, %cst_135 {dimension_numbers = #tpu.dot_dimension_numbers<[1], [0], [0], [1], [0, 0, 1, 1], [], []>} : vector<2x256xf32>, vector<256x512xf32>, vector<2x512xf32> -> vector<2x512xf32>
    %667 = vector.broadcast %2 : vector<1x512xf32> to vector<2x512xf32>
    %668 = arith.addf %666, %667 : vector<2x512xf32>
    %669 = vector.extract_strided_slice %668 {offsets = [0, 0], sizes = [2, 128], strides = [1, 1]} : vector<2x512xf32> to vector<2x128xf32>
    %670 = arith.negf %669 : vector<2x128xf32>
    %671 = math.exp %670 : vector<2x128xf32>
    %cst_136 = arith.constant 1.000000e+00 : f32
    %672 = vector.broadcast %cst_136 : f32 to vector<2x128xf32>
    %673 = arith.addf %672, %671 : vector<2x128xf32>
    %674 = arith.divf %672, %673 : vector<2x128xf32>
    %675 = vector.extract_strided_slice %668 {offsets = [0, 128], sizes = [2, 128], strides = [1, 1]} : vector<2x512xf32> to vector<2x128xf32>
    %676 = arith.negf %675 : vector<2x128xf32>
    %677 = math.exp %676 : vector<2x128xf32>
    %cst_137 = arith.constant 1.000000e+00 : f32
    %678 = vector.broadcast %cst_137 : f32 to vector<2x128xf32>
    %679 = arith.addf %678, %677 : vector<2x128xf32>
    %680 = arith.divf %678, %679 : vector<2x128xf32>
    %681 = vector.extract_strided_slice %668 {offsets = [0, 256], sizes = [2, 128], strides = [1, 1]} : vector<2x512xf32> to vector<2x128xf32>
    %682 = math.tanh %681 : vector<2x128xf32>
    %683 = vector.extract_strided_slice %668 {offsets = [0, 384], sizes = [2, 128], strides = [1, 1]} : vector<2x512xf32> to vector<2x128xf32>
    %684 = arith.negf %683 : vector<2x128xf32>
    %685 = math.exp %684 : vector<2x128xf32>
    %cst_138 = arith.constant 1.000000e+00 : f32
    %686 = vector.broadcast %cst_138 : f32 to vector<2x128xf32>
    %687 = arith.addf %686, %685 : vector<2x128xf32>
    %688 = arith.divf %686, %687 : vector<2x128xf32>
    %689 = arith.mulf %680, %601 : vector<2x128xf32>
    %690 = arith.mulf %674, %682 : vector<2x128xf32>
    %691 = arith.addf %689, %690 : vector<2x128xf32>
    %692 = math.tanh %691 : vector<2x128xf32>
    %693 = arith.mulf %688, %692 : vector<2x128xf32>
    %694 = tpu.concatenate %693, %632 in 1 : vector<2x128xf32>, vector<2x128xf32> -> vector<2x256xf32>
    %cst_139 = arith.constant dense<0.000000e+00> : vector<2x512xf32>
    %695 = tpu.matmul %694, %3, %cst_139 {dimension_numbers = #tpu.dot_dimension_numbers<[1], [0], [0], [1], [0, 0, 1, 1], [], []>} : vector<2x256xf32>, vector<256x512xf32>, vector<2x512xf32> -> vector<2x512xf32>
    %696 = vector.broadcast %4 : vector<1x512xf32> to vector<2x512xf32>
    %697 = arith.addf %695, %696 : vector<2x512xf32>
    %698 = vector.extract_strided_slice %697 {offsets = [0, 0], sizes = [2, 128], strides = [1, 1]} : vector<2x512xf32> to vector<2x128xf32>
    %699 = arith.negf %698 : vector<2x128xf32>
    %700 = math.exp %699 : vector<2x128xf32>
    %cst_140 = arith.constant 1.000000e+00 : f32
    %701 = vector.broadcast %cst_140 : f32 to vector<2x128xf32>
    %702 = arith.addf %701, %700 : vector<2x128xf32>
    %703 = arith.divf %701, %702 : vector<2x128xf32>
    %704 = vector.extract_strided_slice %697 {offsets = [0, 128], sizes = [2, 128], strides = [1, 1]} : vector<2x512xf32> to vector<2x128xf32>
    %705 = arith.negf %704 : vector<2x128xf32>
    %706 = math.exp %705 : vector<2x128xf32>
    %cst_141 = arith.constant 1.000000e+00 : f32
    %707 = vector.broadcast %cst_141 : f32 to vector<2x128xf32>
    %708 = arith.addf %707, %706 : vector<2x128xf32>
    %709 = arith.divf %707, %708 : vector<2x128xf32>
    %710 = vector.extract_strided_slice %697 {offsets = [0, 256], sizes = [2, 128], strides = [1, 1]} : vector<2x512xf32> to vector<2x128xf32>
    %711 = math.tanh %710 : vector<2x128xf32>
    %712 = vector.extract_strided_slice %697 {offsets = [0, 384], sizes = [2, 128], strides = [1, 1]} : vector<2x512xf32> to vector<2x128xf32>
    %713 = arith.negf %712 : vector<2x128xf32>
    %714 = math.exp %713 : vector<2x128xf32>
    %cst_142 = arith.constant 1.000000e+00 : f32
    %715 = vector.broadcast %cst_142 : f32 to vector<2x128xf32>
    %716 = arith.addf %715, %714 : vector<2x128xf32>
    %717 = arith.divf %715, %716 : vector<2x128xf32>
    %718 = arith.mulf %709, %630 : vector<2x128xf32>
    %719 = arith.mulf %703, %711 : vector<2x128xf32>
    %720 = arith.addf %718, %719 : vector<2x128xf32>
    %721 = math.tanh %720 : vector<2x128xf32>
    %722 = arith.mulf %717, %721 : vector<2x128xf32>
    %c7_143 = arith.constant 7 : index
    %c0_144 = arith.constant 0 : index
    %c0_145 = arith.constant 0 : index
    %723 = vector.load %arg6[%c7_143, %c0_144, %c0_145] : memref<8x2x128xf32, #tpu.memory_space<vmem>>, vector<1x2x128xf32>
    %724 = vector.shape_cast %723 : vector<1x2x128xf32> to vector<2x128xf32>
    %725 = vector.shape_cast %722 : vector<2x128xf32> to vector<1x2x128xf32>
    tpu.vector_store %arg6[%c7_143, %c0_144, %c0_145], %725 {strides = array<i32>} : memref<8x2x128xf32, #tpu.memory_space<vmem>>, vector<1x2x128xf32>,
    return
  }
}

</mosaic_0001>

<bundles_post_ra>
// kernel: tpu_custom_call.1
= control target key start
LH: loop header
LB: loop body
LE: loop exit
PB: predicated region body
PF: predicated region fallthrough
CT: control target
= control target key end

     0   :  { %11 = vsyncpa [#allocation3], 0  ;;  %s9862_s0 = inlined_call_operand.hbm [shape: f32[8,2,512], index: 0, kind: input, shape index: {}]   ;;  %s9863_s1 = inlined_call_operand.hbm [shape: f32[128,512], index: 1, kind: input, shape index: {}]   ;;  %s9864_s2 = inlined_call_operand.hbm [shape: f32[256,512], index: 2, kind: input, shape index: {}]   ;;  %s9865_s3 = inlined_call_operand.vmem [shape: f32[1,512], index: 3, kind: input, shape index: {}]   ;;  %s9866_s4 = inlined_call_operand.hbm [shape: f32[256,512], index: 4, kind: input, shape index: {}]   ;;  %s9867_s5 = inlined_call_operand.vmem [shape: f32[1,512], index: 5, kind: input, shape index: {}]   ;;  %s9868_s6 = inlined_call_operand.hbm [shape: f32[8,2,128], index: 6, kind: output, shape index: {}]  }
   0x1   :  { %12 = vsyncpa [#allocation6], 0 }
   0x2   :  { %13 = vsyncpa [#allocation9], 0 }
   0x3   :  { %14 = vsyncpa [#allocation4], 0  ;;  %s7862_s21 = smov [#allocation5]   ;;  %s7744_s25 = scalar_lea.hbm %s9863_s1, 8192 }
   0x4   :  { %s32_s22 = sshll.u32 %s7862_s21, 4  ;;  %p7745_p0 = scmp.ne.s32.totalorder %s9863_s1, %s7744_s25  ;;  %s33_s22 = int_to_ptr.vmem [resolvable:$true] %s32_s22 }
   0x5   :  { %p7748_p1 = scmp.lt.u32.totalorder %s7744_s25, %s9863_s1 }
   0x7   :  { %p7750_p2 = pnand %p7748_p1, %p7745_p0 }
   0x9   :  { %7753 = shalt.err (!%p7750_p2)
}
   0xa   :  { %s7754_s30 = scalar_lea.vmem %s33_s22, 8192  ;;  %p7759_p4 = scmp.lt.s32.totalorder %s33_s22, %s33_s22 }
   0xb   :  { %p7755_p3 = scmp.ne.s32.totalorder %s33_s22, %s7754_s30  ;;  %p7760_p5 = scmp.lt.s32.totalorder %s7754_s30, %s7754_s30 }
   0xd   :  { %p7761_p6 = por %p7760_p5, %p7759_p4 }
   0xf   :  { %p7762_p7 = pnand %p7761_p6, %p7755_p3 }
  0x11   :  { %7765 = shalt.err (!%p7762_p7)
}
  0x12   :  { %s7863_s7 = smov 512   ;;  %s7864_s8 = smov 32  }
  0x13   :  { %38 = dma.hbm_to_vmem [thread:$0]  %s9863_s1, 8192, %s33_s22, [#allocation6], %s7863_s7, %s7863_s7, %s7864_s8  }
  0x14   :  { %s7865_s11 = smov [#allocation2]   ;;  %s7766_s15 = scalar_lea.hbm %s9862_s0, 1024 }
  0x15   :  { %s20_s12 = sshll.u32 %s7865_s11, 4  ;;  %p7767_p8 = scmp.ne.s32.totalorder %s9862_s0, %s7766_s15  ;;  %s21_s12 = int_to_ptr.vmem [resolvable:$true] %s20_s12 }
  0x16   :  { %p7770_p9 = scmp.lt.u32.totalorder %s7766_s15, %s9862_s0 }
  0x18   :  { %p7772_p10 = pnand %p7770_p9, %p7767_p8 }
  0x1a   :  { %7775 = shalt.err (!%p7772_p10)
}
  0x1b   :  { %s7776_s20 = scalar_lea.vmem %s21_s12, 1024  ;;  %p7781_p12 = scmp.lt.s32.totalorder %s21_s12, %s21_s12 }
  0x1c   :  { %p7777_p11 = scmp.ne.s32.totalorder %s21_s12, %s7776_s20  ;;  %p7782_p13 = scmp.lt.s32.totalorder %s7776_s20, %s7776_s20 }
  0x1e   :  { %p7783_p0 = por %p7782_p13, %p7781_p12 }
  0x20   :  { %p7784_p1 = pnand %p7783_p0, %p7777_p11 }
  0x22   :  { %7787 = shalt.err (!%p7784_p1)
}
  0x23   :  { %s7866_s1 = smov 128   ;;  %s7867_s21 = smov 8  }
  0x24   :  { %26 = dma.hbm_to_vmem [thread:$0]  %s9862_s0, 1024, %s21_s12, [#allocation3], %s7866_s1, %s7866_s1, %s7867_s21  }
  0x25   :  { %s7868_s24 = smov [#allocation7]   ;;  %s7869_s26 = smov [#allocation8]  }
  0x26   :  { %s44_s25 = sshll.u32 %s7868_s24, 4  ;;  %s58_s27 = sshll.u32 %s7869_s26, 4  ;;  %s45_s25 = int_to_ptr.vmem [resolvable:$true] %s44_s25  ;;  %s7936_s27 = int_to_ptr.vmem [resolvable:$true] %s58_s27 }
  0x27   :  { %s7788_s30 = scalar_lea.hbm %s9864_s2, 16384 }
  0x28   :  { %p7789_p2 = scmp.ne.s32.totalorder %s9864_s2, %s7788_s30  ;;  %p7792_p3 = scmp.lt.u32.totalorder %s7788_s30, %s9864_s2 }
  0x2a   :  { %p7794_p4 = pnand %p7792_p3, %p7789_p2 }
  0x2c   :  { %7797 = shalt.err (!%p7794_p4)
}
  0x2d   :  { %s7798_s0 = scalar_lea.vmem %s45_s25, 16384  ;;  %p7803_p6 = scmp.lt.s32.totalorder %s45_s25, %s45_s25 }
  0x2e   :  { %p7799_p5 = scmp.ne.s32.totalorder %s45_s25, %s7798_s0  ;;  %p7804_p7 = scmp.lt.s32.totalorder %s7798_s0, %s7798_s0 }
  0x30   :  { %p7805_p8 = por %p7804_p7, %p7803_p6 }
  0x32   :  { %p7806_p9 = pnand %p7805_p8, %p7799_p5 }
  0x34   :  { %7809 = shalt.err (!%p7806_p9)
}
  0x35   :  { %50 = dma.hbm_to_vmem [thread:$0]  %s9864_s2, 16384, %s45_s25, [#allocation6], %s7863_s7, %s7863_s7, %s7864_s8  }
  0x36   :  { %s7810_s17 = scalar_lea.hbm %s9866_s4, 16384 }
  0x37   :  { %p7811_p10 = scmp.ne.s32.totalorder %s9866_s4, %s7810_s17  ;;  %p7814_p11 = scmp.lt.u32.totalorder %s7810_s17, %s9866_s4 }
  0x39   :  { %p7816_p12 = pnand %p7814_p11, %p7811_p10 }
  0x3b   :  { %7819 = shalt.err (!%p7816_p12)
}
  0x3c   :  { %s7820_s21 = scalar_lea.vmem %s7936_s27, 16384  ;;  %p7825_p0 = scmp.lt.s32.totalorder %s7936_s27, %s7936_s27 }
  0x3d   :  { %p7821_p13 = scmp.ne.s32.totalorder %s7936_s27, %s7820_s21  ;;  %p7826_p1 = scmp.lt.s32.totalorder %s7820_s21, %s7820_s21 }
  0x3f   :  { %p7827_p2 = por %p7826_p1, %p7825_p0 }
  0x41   :  { %p7828_p3 = pnand %p7827_p2, %p7821_p13 }
  0x43   :  { %7831 = shalt.err (!%p7828_p3)
}
  0x44   :  { %64 = dma.hbm_to_vmem [thread:$0]  %s9866_s4, 16384, %s7936_s27, [#allocation9], %s7863_s7, %s7863_s7, %s7864_s8  }
  0x45   :  { %7854 = dma.done.wait [#allocation3], 1024  }
  0x46   :  { %7855 = vsyncadd [#allocation3], 4294966272 }
  0x47   :  { %7856 = dma.done.wait [#allocation6], 24576  }
  0x48   :  { %7857 = vsyncadd [#allocation6], 4294942720 }
  0x49   :  { %7858 = dma.done.wait [#allocation9], 16384  }
  0x4a   :  { %7859 = vsyncadd [#allocation9], 4294950912  ;;  %v9869_v0 = vmov 0.0   ;;  %v80_v1 = vld [vmem:[#allocation5 + $0x8] sm:$0xff]  ;;  %v82_v3 = vld [vmem:[#allocation5 + $0x18] sm:$0xff] }
  0x4b   :  { %466 = vmatprep.mubr.f32.mxu0 %v9869_v0  ;;  %537 = vmatprep.mubr.f32.mxu1 %v9869_v0  ;;  %v84_v2 = vld [vmem:[#allocation5 + $0x28] sm:$0xff]  ;;  %v86_v5 = vld [vmem:[#allocation5 + $0x38] sm:$0xff]  ;;  %v79_v6 = vld [vmem:[#allocation5] sm:$0xff] }
  0x4c   :  { %v7975_v4 = vpack.c.bf16 %v84_v2, %v80_v1  ;;  %v83_v7 = vld [vmem:[#allocation5 + $0x20] sm:$0xff]  ;;  %v7977_v8 = vpack.c.bf16 %v86_v5, %v82_v3  ;;  %v81_v10 = vld [vmem:[#allocation5 + $0x10] sm:$0xff]  ;;  %v88_v12 = vld [vmem:[#allocation5 + $0x48] sm:$0xff] }
  0x4d   :  { %v7979_v9 = vpack.c.bf16 %v83_v7, %v79_v6  ;;  %v85_v11 = vld [vmem:[#allocation5 + $0x30] sm:$0xff]  ;;  %v92_v14 = vld [vmem:[#allocation5 + $0x68] sm:$0xff]  ;;  %v90_v15 = vld [vmem:[#allocation5 + $0x58] sm:$0xff] }
  0x4e   :  { %10156 = vst [vmem:[#allocation15_spill] sm:$0xff] %v7975_v4  ;;  %10157 = vst [vmem:[#allocation16_spill] sm:$0xff] %v7977_v8  ;;  %4789 = vmatprep.subr.bf16.mxu0 %v7975_v4  ;;  %v7982_v13 = vpack.c.bf16 %v85_v11, %v81_v10  ;;  %v94_v16 = vld [vmem:[#allocation5 + $0x78] sm:$0xff]  ;;  %4821 = vmatprep.subr.bf16.mxu1 %v7977_v8  ;;  %v7986_v17 = vpack.c.bf16 %v92_v14, %v88_v12  ;;  %v87_v19 = vld [vmem:[#allocation5 + $0x40] sm:$0xff] }
  0x4f   :  { %4791 = vmatpush1.bf16.msra.mxu0 %v7979_v9  ;;  %v7988_v18 = vpack.c.bf16 %v94_v16, %v90_v15  ;;  %v91_v20 = vld [vmem:[#allocation5 + $0x60] sm:$0xff]  ;;  %v89_v21 = vld [vmem:[#allocation5 + $0x50] sm:$0xff]  ;;  %v96_v24 = vld [vmem:[#allocation5 + $0x88] sm:$0xff] }
  0x50   :  { %4823 = vmatpush1.bf16.msra.mxu1 %v7982_v13  ;;  %v7991_v22 = vpack.c.bf16 %v91_v20, %v87_v19  ;;  %v93_v23 = vld [vmem:[#allocation5 + $0x70] sm:$0xff]  ;;  %v100_v25 = vld [vmem:[#allocation5 + $0xa8] sm:$0xff]  ;;  %4793 = vmatprep.subr.bf16.mxu0 %v7986_v17  ;;  %v98_v28 = vld [vmem:[#allocation5 + $0x98] sm:$0xff] }
  0x51   :  { %4825 = vmatprep.subr.bf16.mxu1 %v7988_v18  ;;  %v7995_v26 = vpack.c.bf16 %v93_v23, %v89_v21  ;;  %v7997_v27 = vpack.c.bf16 %v100_v25, %v96_v24  ;;  %v102_v29 = vld [vmem:[#allocation5 + $0xb8] sm:$0xff]  ;;  %v95_v30 = vld [vmem:[#allocation5 + $0x80] sm:$0xff]  ;;  %v97_v33 = vld [vmem:[#allocation5 + $0x90] sm:$0xff] }
  0x52   :  { %v7999_v31 = vpack.c.bf16 %v102_v29, %v98_v28  ;;  %v99_v32 = vld [vmem:[#allocation5 + $0xa0] sm:$0xff]  ;;  %v101_v34 = vld [vmem:[#allocation5 + $0xb0] sm:$0xff]  ;;  %v104_v36 = vld [vmem:[#allocation5 + $0xc8] sm:$0xff] }
  0x53   :  { %4795 = vmatpush1.bf16.msra.mxu0 %v7991_v22  ;;  %v8002_v35 = vpack.c.bf16 %v99_v32, %v95_v30  ;;  %v108_v37 = vld [vmem:[#allocation5 + $0xe8] sm:$0xff]  ;;  %v106_v38 = vld [vmem:[#allocation5 + $0xd8] sm:$0xff]  ;;  %v8006_v39 = vpack.c.bf16 %v101_v34, %v97_v33  ;;  %v103_v42 = vld [vmem:[#allocation5 + $0xc0] sm:$0xff] }
  0x54   :  { %4827 = vmatpush1.bf16.msra.mxu1 %v7995_v26  ;;  %4797 = vmatprep.subr.bf16.mxu0 %v7997_v27  ;;  %v8008_v40 = vpack.c.bf16 %v108_v37, %v104_v36  ;;  %v110_v41 = vld [vmem:[#allocation5 + $0xf8] sm:$0xff]  ;;  %v107_v43 = vld [vmem:[#allocation5 + $0xe0] sm:$0xff]  ;;  %v105_v45 = vld [vmem:[#allocation5 + $0xd0] sm:$0xff] }
  0x55   :  { %4829 = vmatprep.subr.bf16.mxu1 %v7999_v31  ;;  %v8011_v44 = vpack.c.bf16 %v110_v41, %v106_v38  ;;  %v109_v46 = vld [vmem:[#allocation5 + $0xf0] sm:$0xff]  ;;  %v112_v47 = vld [vmem:[#allocation5 + $0x108] sm:$0xff]  ;;  %v114_v49 = vld [vmem:[#allocation5 + $0x118] sm:$0xff]  ;;  %v8014_v51 = vpack.c.bf16 %v107_v43, %v103_v42 }
  0x56   :  { %v116_v48 = vld [vmem:[#allocation5 + $0x128] sm:$0xff]  ;;  %v118_v50 = vld [vmem:[#allocation5 + $0x138] sm:$0xff]  ;;  %v8018_v52 = vpack.c.bf16 %v109_v46, %v105_v45  ;;  %v111_v54 = vld [vmem:[#allocation5 + $0x100] sm:$0xff] }
  0x57   :  { %4799 = vmatpush1.bf16.msra.mxu0 %v8002_v35  ;;  %v8020_v53 = vpack.c.bf16 %v116_v48, %v112_v47  ;;  %v115_v55 = vld [vmem:[#allocation5 + $0x120] sm:$0xff]  ;;  %v113_v56 = vld [vmem:[#allocation5 + $0x110] sm:$0xff]  ;;  %v8023_v57 = vpack.c.bf16 %v118_v50, %v114_v49  ;;  %v120_v59 = vld [vmem:[#allocation5 + $0x148] sm:$0xff] }
  0x58   :  { %4831 = vmatpush1.bf16.msra.mxu1 %v8006_v39  ;;  %4801 = vmatprep.subr.bf16.mxu0 %v8008_v40  ;;  %v117_v58 = vld [vmem:[#allocation5 + $0x130] sm:$0xff]  ;;  %v124_v60 = vld [vmem:[#allocation5 + $0x168] sm:$0xff]  ;;  %v122_v61 = vld [vmem:[#allocation5 + $0x158] sm:$0xff]  ;;  %v8026_v63 = vpack.c.bf16 %v115_v55, %v111_v54 }
  0x59   :  { %4833 = vmatprep.subr.bf16.mxu1 %v8011_v44  ;;  %v126_v62 = vld [vmem:[#allocation5 + $0x178] sm:$0xff]  ;;  %v8030_v1 = vpack.c.bf16 %v117_v58, %v113_v56  ;;  %v8032_v2 = vpack.c.bf16 %v124_v60, %v120_v59  ;;  %v119_v3 = vld [vmem:[#allocation5 + $0x140] sm:$0xff]  ;;  %v121_v6 = vld [vmem:[#allocation5 + $0x150] sm:$0xff] }
  0x5a   :  { %v123_v5 = vld [vmem:[#allocation5 + $0x160] sm:$0xff]  ;;  %v8035_v7 = vpack.c.bf16 %v126_v62, %v122_v61  ;;  %v125_v10 = vld [vmem:[#allocation5 + $0x170] sm:$0xff]  ;;  %v128_v11 = vld [vmem:[#allocation5 + $0x188] sm:$0xff] }
  0x5b   :  { %4803 = vmatpush1.bf16.msra.mxu0 %v8014_v51  ;;  %v132_v12 = vld [vmem:[#allocation5 + $0x1a8] sm:$0xff]  ;;  %v130_v14 = vld [vmem:[#allocation5 + $0x198] sm:$0xff]  ;;  %v8038_v16 = vpack.c.bf16 %v123_v5, %v119_v3  ;;  %v8042_v19 = vpack.c.bf16 %v125_v10, %v121_v6  ;;  %v127_v21 = vld [vmem:[#allocation5 + $0x180] sm:$0xff] }
  0x5c   :  { %4835 = vmatpush1.bf16.msra.mxu1 %v8018_v52  ;;  %4805 = vmatprep.subr.bf16.mxu0 %v8020_v53  ;;  %v134_v15 = vld [vmem:[#allocation5 + $0x1b8] sm:$0xff]  ;;  %v8044_v20 = vpack.c.bf16 %v132_v12, %v128_v11  ;;  %v131_v23 = vld [vmem:[#allocation5 + $0x1a0] sm:$0xff]  ;;  %v129_v24 = vld [vmem:[#allocation5 + $0x190] sm:$0xff] }
  0x5d   :  { %4837 = vmatprep.subr.bf16.mxu1 %v8023_v57  ;;  %v8047_v25 = vpack.c.bf16 %v134_v15, %v130_v14  ;;  %v133_v28 = vld [vmem:[#allocation5 + $0x1b0] sm:$0xff]  ;;  %v136_v29 = vld [vmem:[#allocation5 + $0x1c8] sm:$0xff]  ;;  %v138_v32 = vld [vmem:[#allocation5 + $0x1d8] sm:$0xff]  ;;  %v8050_v34 = vpack.c.bf16 %v131_v23, %v127_v21 }
  0x5e   :  { %v140_v30 = vld [vmem:[#allocation5 + $0x1e8] sm:$0xff]  ;;  %v142_v33 = vld [vmem:[#allocation5 + $0x1f8] sm:$0xff]  ;;  %v8054_v36 = vpack.c.bf16 %v133_v28, %v129_v24  ;;  %v135_v38 = vld [vmem:[#allocation5 + $0x1c0] sm:$0xff] }
  0x5f   :  { %4807 = vmatpush1.bf16.msra.mxu0 %v8026_v63  ;;  %v8056_v37 = vpack.c.bf16 %v140_v30, %v136_v29  ;;  %v139_v41 = vld [vmem:[#allocation5 + $0x1e0] sm:$0xff]  ;;  %v137_v42 = vld [vmem:[#allocation5 + $0x1d0] sm:$0xff]  ;;  %v8059_v43 = vpack.c.bf16 %v142_v33, %v138_v32  ;;  %v144_v46 = vld [vmem:[#allocation7 + $0x8] sm:$0xff] }
  0x60   :  { %4839 = vmatpush1.bf16.msra.mxu1 %v8030_v1  ;;  %4809 = vmatprep.subr.bf16.mxu0 %v8032_v2  ;;  %v141_v45 = vld [vmem:[#allocation5 + $0x1f0] sm:$0xff]  ;;  %v148_v47 = vld [vmem:[#allocation7 + $0x28] sm:$0xff]  ;;  %v146_v48 = vld [vmem:[#allocation7 + $0x18] sm:$0xff]  ;;  %v8062_v50 = vpack.c.bf16 %v139_v41, %v135_v38 }
  0x61   :  { %4841 = vmatprep.subr.bf16.mxu1 %v8035_v7  ;;  %v150_v49 = vld [vmem:[#allocation7 + $0x38] sm:$0xff]  ;;  %v8066_v54 = vpack.c.bf16 %v141_v45, %v137_v42  ;;  %v8068_v55 = vpack.c.bf16 %v148_v47, %v144_v46  ;;  %v143_v56 = vld [vmem:[#allocation7] sm:$0xff]  ;;  %v145_v59 = vld [vmem:[#allocation7 + $0x10] sm:$0xff] }
  0x62   :  { %10158 = vst [vmem:[#allocation17_spill] sm:$0xff] %v8062_v50  ;;  %v147_v58 = vld [vmem:[#allocation7 + $0x20] sm:$0xff]  ;;  %v8071_v60 = vpack.c.bf16 %v150_v49, %v146_v48  ;;  %v149_v61 = vld [vmem:[#allocation7 + $0x30] sm:$0xff]  ;;  %v152_v62 = vld [vmem:[#allocation7 + $0x48] sm:$0xff] }
  0x63   :  { %4811 = vmatpush1.bf16.msra.mxu0 %v8038_v16  ;;  %10159 = vst [vmem:[#allocation18_spill] sm:$0xff] %v8066_v54  ;;  %10160 = vst [vmem:[#allocation19_spill] sm:$0xff] %v8068_v55  ;;  %v156_v3 = vld [vmem:[#allocation7 + $0x68] sm:$0xff]  ;;  %v154_v5 = vld [vmem:[#allocation7 + $0x58] sm:$0xff]  ;;  %v8074_v10 = vpack.c.bf16 %v147_v58, %v143_v56  ;;  %v8078_v11 = vpack.c.bf16 %v149_v61, %v145_v59 }
  0x64   :  { %4843 = vmatpush1.bf16.msra.mxu1 %v8042_v19  ;;  %4813 = vmatprep.subr.bf16.mxu0 %v8044_v20  ;;  %10161 = vst [vmem:[#allocation20_spill] sm:$0xff] %v8071_v60  ;;  %v158_v6 = vld [vmem:[#allocation7 + $0x78] sm:$0xff]  ;;  %v8080_v12 = vpack.c.bf16 %v156_v3, %v152_v62  ;;  %v151_v14 = vld [vmem:[#allocation7 + $0x40] sm:$0xff]  ;;  %v153_v21 = vld [vmem:[#allocation7 + $0x50] sm:$0xff] }
  0x65   :  { %4845 = vmatprep.subr.bf16.mxu1 %v8047_v25  ;;  %10162 = vst [vmem:[#allocation21_spill] sm:$0xff] %v8074_v10  ;;  %10163 = vst [vmem:[#allocation22_spill] sm:$0xff] %v8078_v11  ;;  %v155_v15 = vld [vmem:[#allocation7 + $0x60] sm:$0xff]  ;;  %v8083_v23 = vpack.c.bf16 %v158_v6, %v154_v5  ;;  %v157_v24 = vld [vmem:[#allocation7 + $0x70] sm:$0xff] }
  0x66   :  { %10164 = vst [vmem:[#allocation23_spill] sm:$0xff] %v8080_v12  ;;  %v160_v28 = vld [vmem:[#allocation7 + $0x88] sm:$0xff]  ;;  %v162_v30 = vld [vmem:[#allocation7 + $0x98] sm:$0xff]  ;;  %v8088_v33 = vpack.c.bf16 %v155_v15, %v151_v14  ;;  %v8092_v38 = vpack.c.bf16 %v157_v24, %v153_v21  ;;  %v159_v45 = vld [vmem:[#allocation7 + $0x80] sm:$0xff] }
  0x67   :  { %4815 = vmatpush1.bf16.msra.mxu0 %v8050_v34  ;;  %10165 = vst [vmem:[#allocation24_spill] sm:$0xff] %v8083_v23  ;;  %v164_v29 = vld [vmem:[#allocation7 + $0xa8] sm:$0xff]  ;;  %v166_v32 = vld [vmem:[#allocation7 + $0xb8] sm:$0xff]  ;;  %v163_v46 = vld [vmem:[#allocation7 + $0xa0] sm:$0xff] }
  0x68   :  { %4847 = vmatpush1.bf16.msra.mxu1 %v8054_v36  ;;  %4817 = vmatprep.subr.bf16.mxu0 %v8056_v37  ;;  %10166 = vst [vmem:[#allocation25_spill] sm:$0xff] %v8088_v33  ;;  %10167 = vst [vmem:[#allocation26_spill] sm:$0xff] %v8092_v38  ;;  %v8094_v41 = vpack.c.bf16 %v164_v29, %v160_v28  ;;  %v8097_v42 = vpack.c.bf16 %v166_v32, %v162_v30  ;;  %v161_v47 = vld [vmem:[#allocation7 + $0x90] sm:$0xff]  ;;  %v168_v58 = vld [vmem:[#allocation7 + $0xc8] sm:$0xff] }
  0x69   :  { %4849 = vmatprep.subr.bf16.mxu1 %v8059_v43  ;;  %v8105_v48 = vpack.c.bf16 %v163_v46, %v159_v45  ;;  %v165_v49 = vld [vmem:[#allocation7 + $0xb0] sm:$0xff]  ;;  %v172_v59 = vld [vmem:[#allocation7 + $0xe8] sm:$0xff]  ;;  %v170_v61 = vld [vmem:[#allocation7 + $0xd8] sm:$0xff] }
  0x6a   :  { %10168 = vst [vmem:[#allocation27_spill] sm:$0xff] %v8094_v41  ;;  %10169 = vst [vmem:[#allocation28_spill] sm:$0xff] %v8097_v42  ;;  %v8107_v56 = vpack.c.bf16 %v165_v49, %v161_v47  ;;  %v8111_v62 = vpack.c.bf16 %v172_v59, %v168_v58  ;;  %v174_v3 = vld [vmem:[#allocation7 + $0xf8] sm:$0xff]  ;;  %v167_v5 = vld [vmem:[#allocation7 + $0xc0] sm:$0xff] }
  0x6b   :  { %4819 = vmatpush1.bf16.msra.mxu0 %v8062_v50  ;;  %10170 = vst [vmem:[#allocation29_spill] sm:$0xff] %v8105_v48  ;;  %v171_v6 = vld [vmem:[#allocation7 + $0xe0] sm:$0xff]  ;;  %v8113_v14 = vpack.c.bf16 %v174_v3, %v170_v61  ;;  %v169_v21 = vld [vmem:[#allocation7 + $0xd0] sm:$0xff]  ;;  %v176_v29 = vld [vmem:[#allocation7 + $0x108] sm:$0xff] }
  0x6c   :  { %4851 = vmatpush1.bf16.msra.mxu1 %v8066_v54  ;;  %4853 = vmatprep.subr.bf16.mxu0 %v8068_v55  ;;  %10171 = vst [vmem:[#allocation30_spill] sm:$0xff] %v8107_v56  ;;  %10172 = vst [vmem:[#allocation31_spill] sm:$0xff] %v8111_v62  ;;  %v8115_v15 = vpack.c.bf16 %v171_v6, %v167_v5  ;;  %v173_v24 = vld [vmem:[#allocation7 + $0xf0] sm:$0xff]  ;;  %v180_v30 = vld [vmem:[#allocation7 + $0x128] sm:$0xff] }
  0x6d   :  { %4917 = vmatprep.subr.bf16.mxu1 %v8071_v60  ;;  %10173 = vst [vmem:[#allocation32_spill] sm:$0xff] %v8113_v14  ;;  %v8118_v28 = vpack.c.bf16 %v173_v24, %v169_v21  ;;  %v178_v32 = vld [vmem:[#allocation7 + $0x118] sm:$0xff]  ;;  %v8123_v45 = vpack.c.bf16 %v180_v30, %v176_v29  ;;  %v175_v47 = vld [vmem:[#allocation7 + $0x100] sm:$0xff]  ;;  %v177_v61 = vld [vmem:[#allocation7 + $0x110] sm:$0xff] }
  0x6e   :  { %467 = vmatmul.mubr.f32.vlgmr.msra.gmra.mrb[0].mxu0 %v9869_v0  ;;  %10174 = vst [vmem:[#allocation33_spill] sm:$0xff] %v8115_v15  ;;  %v182_v46 = vld [vmem:[#allocation7 + $0x138] sm:$0xff]  ;;  %v179_v49 = vld [vmem:[#allocation7 + $0x120] sm:$0xff]  ;;  %v181_v3 = vld [vmem:[#allocation7 + $0x130] sm:$0xff] }
  0x6f   :  { %538 = vmatmul.mubr.f32.vlgmr.msra.gmra.mrb[0].mxu1 %v9869_v0  ;;  %4855 = vmatpush1.bf16.msra.mxu0 %v8074_v10  ;;  %10175 = vst [vmem:[#allocation34_spill] sm:$0xff] %v8118_v28  ;;  %10176 = vst [vmem:[#allocation35_spill] sm:$0xff] %v8123_v45  ;;  %v8125_v58 = vpack.c.bf16 %v182_v46, %v178_v32  ;;  %v8127_v59 = vpack.c.bf16 %v179_v49, %v175_v47  ;;  %v184_v6 = vld [vmem:[#allocation7 + $0x148] sm:$0xff]  ;;  %v186_v24 = vld [vmem:[#allocation7 + $0x158] sm:$0xff] }
  0x70   :  { %4919 = vmatpush1.bf16.msra.mxu1 %v8078_v11  ;;  %4857 = vmatprep.subr.bf16.mxu0 %v8080_v12  ;;  %v8130_v5 = vpack.c.bf16 %v181_v3, %v177_v61  ;;  %v188_v21 = vld [vmem:[#allocation7 + $0x168] sm:$0xff]  ;;  %v190_v30 = vld [vmem:[#allocation7 + $0x178] sm:$0xff]  ;;  %v183_v32 = vld [vmem:[#allocation7 + $0x140] sm:$0xff] }
  0x71   :  { %4921 = vmatprep.subr.bf16.mxu1 %v8083_v23  ;;  %683 = vmatprep.mubr.f32.mxu0 %v9869_v0  ;;  %10177 = vst [vmem:[#allocation36_spill] sm:$0xff] %v8125_v58  ;;  %10178 = vst [vmem:[#allocation37_spill] sm:$0xff] %v8127_v59  ;;  %v8135_v29 = vpack.c.bf16 %v188_v21, %v184_v6  ;;  %v187_v46 = vld [vmem:[#allocation7 + $0x160] sm:$0xff]  ;;  %v8137_v47 = vpack.c.bf16 %v190_v30, %v186_v24  ;;  %v185_v61 = vld [vmem:[#allocation7 + $0x150] sm:$0xff] }
  0x72   :  { %754 = vmatprep.mubr.f32.mxu1 %v9869_v0  ;;  %10179 = vst [vmem:[#allocation38_spill] sm:$0xff] %v8130_v5  ;;  %v8139_v49 = vpack.c.bf16 %v187_v46, %v183_v32  ;;  %v189_v3 = vld [vmem:[#allocation7 + $0x170] sm:$0xff]  ;;  %v196_v6 = vld [vmem:[#allocation7 + $0x1a8] sm:$0xff]  ;;  %v194_v21 = vld [vmem:[#allocation7 + $0x198] sm:$0xff] }
  0x73   :  { %4859 = vmatpush1.bf16.msra.mxu0 %v8088_v33  ;;  %10180 = vst [vmem:[#allocation39_spill] sm:$0xff] %v8135_v29  ;;  %10181 = vst [vmem:[#allocation40_spill] sm:$0xff] %v8137_v47  ;;  %v8142_v0 = vpack.c.bf16 %v189_v3, %v185_v61  ;;  %v198_v24 = vld [vmem:[#allocation7 + $0x1b8] sm:$0xff]  ;;  %v191_v30 = vld [vmem:[#allocation7 + $0x180] sm:$0xff] }
  0x74   :  { %4923 = vmatpush1.bf16.msra.mxu1 %v8092_v38  ;;  %4861 = vmatprep.subr.bf16.mxu0 %v8094_v41  ;;  %10182 = vst [vmem:[#allocation41_spill] sm:$0xff] %v8139_v49  ;;  %v195_v32 = vld [vmem:[#allocation7 + $0x1a0] sm:$0xff]  ;;  %v8149_v46 = vpack.c.bf16 %v198_v24, %v194_v21  ;;  %v193_v61 = vld [vmem:[#allocation7 + $0x190] sm:$0xff]  ;;  %v206_v21 = vld [vmem:[#allocation7 + $0x1f8] sm:$0xff] }
  0x75   :  { %4925 = vmatprep.subr.bf16.mxu1 %v8097_v42  ;;  %10183 = vst [vmem:[#allocation42_spill] sm:$0xff] %v8142_v0  ;;  %v197_v3 = vld [vmem:[#allocation7 + $0x1b0] sm:$0xff]  ;;  %v199_v24 = vld [vmem:[#allocation7 + $0x1c0] sm:$0xff]  ;;  %v291_v42 = vld [vmem:[#allocation8 + $0x98] sm:$0xff] }
  0x76   :  { %10185 = vst [vmem:[#allocation44_spill] sm:$0xff] %v8149_v46  ;;  %v295_v41 = vld [vmem:[#allocation8 + $0xb8] sm:$0xff] }
  0x77   :  { %4863 = vmatpush1.bf16.msra.mxu0 %v8105_v48  ;;  %v293_v48 = vld [vmem:[#allocation8 + $0xa8] sm:$0xff]  ;;  %v307_v38 = vld [vmem:[#allocation8 + $0x118] sm:$0xff] }
  0x78   :  { %4927 = vmatpush1.bf16.msra.mxu1 %v8107_v56  ;;  %4865 = vmatprep.subr.bf16.mxu0 %v8111_v62 }
  0x79   :  { %4929 = vmatprep.subr.bf16.mxu1 %v8113_v14  ;;  %v266_v14 = vld [vmem:[#allocation7 + $0x3d8] sm:$0xff] }
  0x7b   :  { %4867 = vmatpush1.bf16.msra.mxu0 %v8115_v15  ;;  %v264_v15 = vld [vmem:[#allocation7 + $0x3c8] sm:$0xff] }
  0x7c   :  { %4931 = vmatpush1.bf16.msra.mxu1 %v8118_v28  ;;  %4869 = vmatprep.subr.bf16.mxu0 %v8123_v45  ;;  %v250_v45 = vld [vmem:[#allocation7 + $0x358] sm:$0xff] }
  0x7d   :  { %4933 = vmatprep.subr.bf16.mxu1 %v8125_v58  ;;  %v8151_v58 = vpack.c.bf16 %v195_v32, %v191_v30  ;;  %v203_v30 = vld [vmem:[#allocation7 + $0x1e0] sm:$0xff]  ;;  %v254_v28 = vld [vmem:[#allocation7 + $0x378] sm:$0xff] }
  0x7f   :  { %4871 = vmatpush1.bf16.msra.mxu0 %v8127_v59  ;;  %10186 = vst [vmem:[#allocation45_spill] sm:$0xff] %v8151_v58 }
  0x80   :  { %4935 = vmatpush1.bf16.msra.mxu1 %v8130_v5  ;;  %4873 = vmatprep.subr.bf16.mxu0 %v8135_v29  ;;  %v192_v5 = vld [vmem:[#allocation7 + $0x188] sm:$0xff]  ;;  %v8163_v29 = vpack.c.bf16 %v203_v30, %v199_v24  ;;  %v211_v24 = vld [vmem:[#allocation7 + $0x220] sm:$0xff] }
  0x81   :  { %4937 = vmatprep.subr.bf16.mxu1 %v8137_v47  ;;  %v8147_v59 = vpack.c.bf16 %v196_v6, %v192_v5  ;;  %v8154_v47 = vpack.c.bf16 %v197_v3, %v193_v61  ;;  %v204_v5 = vld [vmem:[#allocation7 + $0x1e8] sm:$0xff]  ;;  %v202_v6 = vld [vmem:[#allocation7 + $0x1d8] sm:$0xff]  ;;  %v201_v61 = vld [vmem:[#allocation7 + $0x1d0] sm:$0xff] }
  0x82   :  { %v8161_v32 = vpack.c.bf16 %v206_v21, %v202_v6  ;;  %10190 = vst [vmem:[#allocation49_spill] sm:$0xff] %v8163_v29  ;;  %v205_v3 = vld [vmem:[#allocation7 + $0x1f0] sm:$0xff]  ;;  %v214_v6 = vld [vmem:[#allocation7 + $0x238] sm:$0xff]  ;;  %v207_v21 = vld [vmem:[#allocation7 + $0x200] sm:$0xff] }
  0x83   :  { %4875 = vmatpush1.bf16.msra.mxu0 %v8139_v49  ;;  %10184 = vst [vmem:[#allocation43_spill] sm:$0xff] %v8147_v59  ;;  %10187 = vst [vmem:[#allocation46_spill] sm:$0xff] %v8154_v47 }
  0x84   :  { %4939 = vmatpush1.bf16.msra.mxu1 %v8142_v0  ;;  %4877 = vmatprep.subr.bf16.mxu0 %v8147_v59  ;;  %v200_v0 = vld [vmem:[#allocation7 + $0x1c8] sm:$0xff]  ;;  %10189 = vst [vmem:[#allocation48_spill] sm:$0xff] %v8161_v32  ;;  %v8175_v59 = vpack.c.bf16 %v211_v24, %v207_v21  ;;  %v219_v21 = vld [vmem:[#allocation7 + $0x260] sm:$0xff] }
  0x85   :  { %4941 = vmatprep.subr.bf16.mxu1 %v8149_v46  ;;  %v8159_v49 = vpack.c.bf16 %v204_v5, %v200_v0  ;;  %v8166_v46 = vpack.c.bf16 %v205_v3, %v201_v61  ;;  %v212_v0 = vld [vmem:[#allocation7 + $0x228] sm:$0xff]  ;;  %v210_v5 = vld [vmem:[#allocation7 + $0x218] sm:$0xff]  ;;  %v209_v61 = vld [vmem:[#allocation7 + $0x210] sm:$0xff] }
  0x86   :  { %v8173_v30 = vpack.c.bf16 %v214_v6, %v210_v5  ;;  %10194 = vst [vmem:[#allocation53_spill] sm:$0xff] %v8175_v59  ;;  %v213_v3 = vld [vmem:[#allocation7 + $0x230] sm:$0xff]  ;;  %v222_v5 = vld [vmem:[#allocation7 + $0x278] sm:$0xff]  ;;  %v215_v6 = vld [vmem:[#allocation7 + $0x240] sm:$0xff] }
  0x87   :  { %4879 = vmatpush1.bf16.msra.mxu0 %v8151_v58  ;;  %10188 = vst [vmem:[#allocation47_spill] sm:$0xff] %v8159_v49  ;;  %10191 = vst [vmem:[#allocation50_spill] sm:$0xff] %v8166_v46 }
  0x88   :  { %4943 = vmatpush1.bf16.msra.mxu1 %v8154_v47  ;;  %4881 = vmatprep.subr.bf16.mxu0 %v8159_v49  ;;  %v208_v47 = vld [vmem:[#allocation7 + $0x208] sm:$0xff]  ;;  %10193 = vst [vmem:[#allocation52_spill] sm:$0xff] %v8173_v30  ;;  %v8187_v49 = vpack.c.bf16 %v219_v21, %v215_v6  ;;  %v227_v6 = vld [vmem:[#allocation7 + $0x2a0] sm:$0xff] }
  0x89   :  { %4945 = vmatprep.subr.bf16.mxu1 %v8161_v32  ;;  %v8171_v58 = vpack.c.bf16 %v212_v0, %v208_v47  ;;  %v8178_v32 = vpack.c.bf16 %v213_v3, %v209_v61  ;;  %v220_v47 = vld [vmem:[#allocation7 + $0x268] sm:$0xff]  ;;  %v218_v0 = vld [vmem:[#allocation7 + $0x258] sm:$0xff]  ;;  %v217_v61 = vld [vmem:[#allocation7 + $0x250] sm:$0xff] }
  0x8a   :  { %v8185_v24 = vpack.c.bf16 %v222_v5, %v218_v0  ;;  %10198 = vst [vmem:[#allocation57_spill] sm:$0xff] %v8187_v49  ;;  %v221_v3 = vld [vmem:[#allocation7 + $0x270] sm:$0xff]  ;;  %v230_v0 = vld [vmem:[#allocation7 + $0x2b8] sm:$0xff]  ;;  %v223_v5 = vld [vmem:[#allocation7 + $0x280] sm:$0xff] }
  0x8b   :  { %4883 = vmatpush1.bf16.msra.mxu0 %v8163_v29  ;;  %10192 = vst [vmem:[#allocation51_spill] sm:$0xff] %v8171_v58  ;;  %10195 = vst [vmem:[#allocation54_spill] sm:$0xff] %v8178_v32 }
  0x8c   :  { %4947 = vmatpush1.bf16.msra.mxu1 %v8166_v46  ;;  %4885 = vmatprep.subr.bf16.mxu0 %v8171_v58  ;;  %v216_v46 = vld [vmem:[#allocation7 + $0x248] sm:$0xff]  ;;  %10197 = vst [vmem:[#allocation56_spill] sm:$0xff] %v8185_v24  ;;  %v8199_v58 = vpack.c.bf16 %v227_v6, %v223_v5  ;;  %v235_v5 = vld [vmem:[#allocation7 + $0x2e0] sm:$0xff] }
  0x8d   :  { %4949 = vmatprep.subr.bf16.mxu1 %v8173_v30  ;;  %v8183_v29 = vpack.c.bf16 %v220_v47, %v216_v46  ;;  %v8190_v30 = vpack.c.bf16 %v221_v3, %v217_v61  ;;  %v228_v46 = vld [vmem:[#allocation7 + $0x2a8] sm:$0xff]  ;;  %v226_v47 = vld [vmem:[#allocation7 + $0x298] sm:$0xff]  ;;  %v225_v61 = vld [vmem:[#allocation7 + $0x290] sm:$0xff] }
  0x8e   :  { %v8197_v21 = vpack.c.bf16 %v230_v0, %v226_v47  ;;  %10202 = vst [vmem:[#allocation61_spill] sm:$0xff] %v8199_v58  ;;  %v229_v3 = vld [vmem:[#allocation7 + $0x2b0] sm:$0xff]  ;;  %v238_v47 = vld [vmem:[#allocation7 + $0x2f8] sm:$0xff]  ;;  %v231_v0 = vld [vmem:[#allocation7 + $0x2c0] sm:$0xff] }
  0x8f   :  { %4887 = vmatpush1.bf16.msra.mxu0 %v8175_v59  ;;  %10196 = vst [vmem:[#allocation55_spill] sm:$0xff] %v8183_v29  ;;  %10199 = vst [vmem:[#allocation58_spill] sm:$0xff] %v8190_v30 }
  0x90   :  { %4951 = vmatpush1.bf16.msra.mxu1 %v8178_v32  ;;  %4889 = vmatprep.subr.bf16.mxu0 %v8183_v29  ;;  %v224_v32 = vld [vmem:[#allocation7 + $0x288] sm:$0xff]  ;;  %10201 = vst [vmem:[#allocation60_spill] sm:$0xff] %v8197_v21  ;;  %v8211_v29 = vpack.c.bf16 %v235_v5, %v231_v0  ;;  %v243_v0 = vld [vmem:[#allocation7 + $0x320] sm:$0xff] }
  0x91   :  { %4953 = vmatprep.subr.bf16.mxu1 %v8185_v24  ;;  %v8195_v59 = vpack.c.bf16 %v228_v46, %v224_v32  ;;  %v8202_v24 = vpack.c.bf16 %v229_v3, %v225_v61  ;;  %v236_v32 = vld [vmem:[#allocation7 + $0x2e8] sm:$0xff]  ;;  %v234_v46 = vld [vmem:[#allocation7 + $0x2d8] sm:$0xff]  ;;  %v233_v61 = vld [vmem:[#allocation7 + $0x2d0] sm:$0xff] }
  0x92   :  { %v8209_v6 = vpack.c.bf16 %v238_v47, %v234_v46  ;;  %10206 = vst [vmem:[#allocation65_spill] sm:$0xff] %v8211_v29  ;;  %v237_v3 = vld [vmem:[#allocation7 + $0x2f0] sm:$0xff]  ;;  %v246_v46 = vld [vmem:[#allocation7 + $0x338] sm:$0xff]  ;;  %v239_v47 = vld [vmem:[#allocation7 + $0x300] sm:$0xff] }
  0x93   :  { %4891 = vmatpush1.bf16.msra.mxu0 %v8187_v49  ;;  %10200 = vst [vmem:[#allocation59_spill] sm:$0xff] %v8195_v59  ;;  %10203 = vst [vmem:[#allocation62_spill] sm:$0xff] %v8202_v24 }
  0x94   :  { %4955 = vmatpush1.bf16.msra.mxu1 %v8190_v30  ;;  %4893 = vmatprep.subr.bf16.mxu0 %v8195_v59  ;;  %v232_v30 = vld [vmem:[#allocation7 + $0x2c8] sm:$0xff]  ;;  %10205 = vst [vmem:[#allocation64_spill] sm:$0xff] %v8209_v6  ;;  %v8223_v59 = vpack.c.bf16 %v243_v0, %v239_v47  ;;  %v249_v47 = vld [vmem:[#allocation7 + $0x350] sm:$0xff] }
  0x95   :  { %4957 = vmatprep.subr.bf16.mxu1 %v8197_v21  ;;  %v8207_v49 = vpack.c.bf16 %v236_v32, %v232_v30  ;;  %v8214_v21 = vpack.c.bf16 %v237_v3, %v233_v61  ;;  %v244_v30 = vld [vmem:[#allocation7 + $0x328] sm:$0xff]  ;;  %v242_v32 = vld [vmem:[#allocation7 + $0x318] sm:$0xff]  ;;  %v241_v61 = vld [vmem:[#allocation7 + $0x310] sm:$0xff] }
  0x96   :  { %v8221_v5 = vpack.c.bf16 %v246_v46, %v242_v32  ;;  %10210 = vst [vmem:[#allocation69_spill] sm:$0xff] %v8223_v59  ;;  %v245_v3 = vld [vmem:[#allocation7 + $0x330] sm:$0xff]  ;;  %v247_v32 = vld [vmem:[#allocation7 + $0x340] sm:$0xff] }
  0x97   :  { %4895 = vmatpush1.bf16.msra.mxu0 %v8199_v58  ;;  %10204 = vst [vmem:[#allocation63_spill] sm:$0xff] %v8207_v49  ;;  %10207 = vst [vmem:[#allocation66_spill] sm:$0xff] %v8214_v21  ;;  %v251_v46 = vld [vmem:[#allocation7 + $0x360] sm:$0xff] }
  0x98   :  { %4959 = vmatpush1.bf16.msra.mxu1 %v8202_v24  ;;  %4897 = vmatprep.subr.bf16.mxu0 %v8207_v49  ;;  %v240_v24 = vld [vmem:[#allocation7 + $0x308] sm:$0xff]  ;;  %10209 = vst [vmem:[#allocation68_spill] sm:$0xff] %v8221_v5  ;;  %v8235_v0 = vpack.c.bf16 %v251_v46, %v247_v32  ;;  %v261_v32 = vld [vmem:[#allocation7 + $0x3b0] sm:$0xff] }
  0x99   :  { %4961 = vmatprep.subr.bf16.mxu1 %v8209_v6  ;;  %v8219_v58 = vpack.c.bf16 %v244_v30, %v240_v24  ;;  %v248_v49 = vld [vmem:[#allocation7 + $0x348] sm:$0xff]  ;;  %v8232_v30 = vpack.c.bf16 %v254_v28, %v250_v45  ;;  %v258_v28 = vld [vmem:[#allocation7 + $0x398] sm:$0xff] }
  0x9a   :  { %v252_v6 = vld [vmem:[#allocation7 + $0x368] sm:$0xff]  ;;  %10214 = vst [vmem:[#allocation73_spill] sm:$0xff] %v8235_v0  ;;  %v262_v45 = vld [vmem:[#allocation7 + $0x3b8] sm:$0xff] }
  0x9b   :  { %4899 = vmatpush1.bf16.msra.mxu0 %v8211_v29  ;;  %10208 = vst [vmem:[#allocation67_spill] sm:$0xff] %v8219_v58  ;;  %v8226_v29 = vpack.c.bf16 %v245_v3, %v241_v61  ;;  %v8230_v24 = vpack.c.bf16 %v252_v6, %v248_v49  ;;  %10213 = vst [vmem:[#allocation72_spill] sm:$0xff] %v8232_v30  ;;  %v253_v61 = vld [vmem:[#allocation7 + $0x370] sm:$0xff]  ;;  %v256_v3 = vld [vmem:[#allocation7 + $0x388] sm:$0xff] }
  0x9c   :  { %4963 = vmatpush1.bf16.msra.mxu1 %v8214_v21  ;;  %4901 = vmatprep.subr.bf16.mxu0 %v8219_v58  ;;  %v260_v58 = vld [vmem:[#allocation7 + $0x3a8] sm:$0xff]  ;;  %v255_v6 = vld [vmem:[#allocation7 + $0x380] sm:$0xff] }
  0x9d   :  { %10211 = vst [vmem:[#allocation70_spill] sm:$0xff] %v8226_v29  ;;  %4965 = vmatprep.subr.bf16.mxu1 %v8221_v5  ;;  %10212 = vst [vmem:[#allocation71_spill] sm:$0xff] %v8230_v24  ;;  %v8239_v5 = vpack.c.bf16 %v253_v61, %v249_v47  ;;  %v8241_v49 = vpack.c.bf16 %v260_v58, %v256_v3  ;;  %v259_v21 = vld [vmem:[#allocation7 + $0x3a0] sm:$0xff]  ;;  %v270_v61 = vld [vmem:[#allocation7 + $0x3f8] sm:$0xff] }
  0x9e   :  { %v8246_v46 = vpack.c.bf16 %v259_v21, %v255_v6  ;;  %v263_v3 = vld [vmem:[#allocation7 + $0x3c0] sm:$0xff]  ;;  %v265_v21 = vld [vmem:[#allocation7 + $0x3d0] sm:$0xff] }
  0x9f   :  { %4903 = vmatpush1.bf16.msra.mxu0 %v8223_v59  ;;  %10215 = vst [vmem:[#allocation74_spill] sm:$0xff] %v8239_v5  ;;  %10216 = vst [vmem:[#allocation75_spill] sm:$0xff] %v8241_v49  ;;  %v8243_v59 = vpack.c.bf16 %v262_v45, %v258_v28  ;;  %v267_v28 = vld [vmem:[#allocation7 + $0x3e0] sm:$0xff]  ;;  %v8255_v45 = vpack.c.bf16 %v270_v61, %v266_v14  ;;  %v269_v6 = vld [vmem:[#allocation7 + $0x3f0] sm:$0xff] }
  0xa0   :  { %4967 = vmatpush1.bf16.msra.mxu1 %v8226_v29  ;;  %4905 = vmatprep.subr.bf16.mxu0 %v8230_v24  ;;  %v257_v29 = vld [vmem:[#allocation7 + $0x390] sm:$0xff]  ;;  %10218 = vst [vmem:[#allocation77_spill] sm:$0xff] %v8246_v46  ;;  %v268_v24 = vld [vmem:[#allocation7 + $0x3e8] sm:$0xff]  ;;  %v279_v61 = vld [vmem:[#allocation8 + $0x38] sm:$0xff] }
  0xa1   :  { %4969 = vmatprep.subr.bf16.mxu1 %v8232_v30  ;;  %10217 = vst [vmem:[#allocation76_spill] sm:$0xff] %v8243_v59  ;;  %v8250_v58 = vpack.c.bf16 %v261_v32, %v257_v29  ;;  %v8252_v47 = vpack.c.bf16 %v268_v24, %v264_v15  ;;  %10221 = vst [vmem:[#allocation80_spill] sm:$0xff] %v8255_v45  ;;  %v8262_v29 = vpack.c.bf16 %v269_v6, %v265_v21  ;;  %v273_v14 = vld [vmem:[#allocation8 + $0x8] sm:$0xff]  ;;  %v275_v24 = vld [vmem:[#allocation8 + $0x18] sm:$0xff]  ;;  %v553_v6 = vlaneseq }
  0xa2   :  { %v277_v15 = vld [vmem:[#allocation8 + $0x28] sm:$0xff] }
  0xa3   :  { %4907 = vmatpush1.bf16.msra.mxu0 %v8235_v0  ;;  %10219 = vst [vmem:[#allocation78_spill] sm:$0xff] %v8250_v58  ;;  %10220 = vst [vmem:[#allocation79_spill] sm:$0xff] %v8252_v47  ;;  %v8258_v0 = vpack.c.bf16 %v267_v28, %v263_v3  ;;  %v8267_v32 = vpack.c.bf16 %v277_v15, %v273_v14  ;;  %v8269_v3 = vpack.c.bf16 %v279_v61, %v275_v24  ;;  %v7871_v28 = vmov 1983009808  }
  0xa4   :  { %4971 = vmatpush1.bf16.msra.mxu1 %v8239_v5  ;;  %4909 = vmatprep.subr.bf16.mxu0 %v8241_v49  ;;  %10223 = vst [vmem:[#allocation82_spill] sm:$0xff] %v8262_v29  ;;  %v551_v21 = vunpack.c.l.s4 %v7871_v28 }
  0xa5   :  { %4973 = vmatprep.subr.bf16.mxu1 %v8243_v59  ;;  %10222 = vst [vmem:[#allocation81_spill] sm:$0xff] %v8258_v0  ;;  %10224 = vst [vmem:[#allocation83_spill] sm:$0xff] %v8267_v32 }
  0xa6   :  { %10225 = vst [vmem:[#allocation84_spill] sm:$0xff] %v8269_v3 }
  0xa7   :  { %4911 = vmatpush1.bf16.msra.mxu0 %v8246_v46 }
  0xa8   :  { %4975 = vmatpush1.bf16.msra.mxu1 %v8250_v58  ;;  %4913 = vmatprep.subr.bf16.mxu0 %v8252_v47  ;;  %v8273_v47 = vshrl.u32 %v553_v6, 7 }
  0xa9   :  { %4977 = vmatprep.subr.bf16.mxu1 %v8255_v45  ;;  %v552_v45 = vunpack.c.0.s8 %v551_v21 }
  0xab   :  { %4915 = vmatpush1.bf16.msra.mxu0 %v8258_v0 }
  0xac   :  { %4979 = vmatpush1.bf16.msra.mxu1 %v8262_v29  ;;  %4981 = vmatprep.subr.bf16.mxu0 %v8267_v32  ;;  %v8276_v29 = vsub.s32 %v552_v45, %v8273_v47 }
  0xad   :  { %5045 = vmatprep.subr.bf16.mxu1 %v8269_v3  ;;  %v401_v3 = vld [vmem:[#allocation2] sm:$0xff] }
  0xae   :  { %10226 = vst [vmem:[#allocation85_spill] sm:$0xff] %v8276_v29 }
 0x141   :  { %v468_v0 = vpop.f32.mrb[0].mxu0 }
 0x142   :  { %v539_v58 = vpop.f32.mrb[0].mxu1  ;;  %v470_v14 = vpop.f32.mrb[1].mxu0 }
 0x143   :  { %v548_v15 = vcombine.low %v468_v0, %v470_v14  ;;  %v541_v46 = vpop.f32.mrb[1].mxu1 }
 0x144   :  { %v549_v24 = vcombine.low %v539_v58, %v541_v46 }
 0x145   :  { %v556_v61 = vrot.slane %v548_v15, %v8276_v29 }
 0x146   :  { %v563_v32 = vrot.slane %v549_v24, %v8276_v29  ;;  %v289_v29 = vld [vmem:[#allocation8 + $0x88] sm:$0xff] }
 0x148   :  { %v564_v59 = vcombine.low %v556_v61, %v563_v32  ;;  %v274_v61 = vld [vmem:[#allocation8 + $0x10] sm:$0xff] }
 0x14a   :  { %v566_v28 = vadd.f32 %v564_v59, %v401_v3 }
 0x14c   :  { %v4716_v49 = vmul.f32 -1.442695, %v566_v28  ;;  %v574_v21 = vrot.slane %v566_v28, 2  ;;  %v585_v5 = vrot.slane %v566_v28, 6  ;;  %v582_v62 = vrot.slane %v566_v28, 4  ;;  %v278_v28 = vld [vmem:[#allocation8 + $0x30] sm:$0xff] }
 0x14e   :  { %7360 = vpow2.f32 %v4716_v49  ;;  %v4717_v6 = vmul.f32 -1.442695, %v574_v21  ;;  %v4718_v45 = vmul.f32 -1.442695, %v585_v5  ;;  %v272_v5 = vld [vmem:[#allocation8] sm:$0xff]  ;;  %v285_v21 = vld [vmem:[#allocation8 + $0x68] sm:$0xff] }
 0x150   :  { %7362 = vpow2.f32 %v4717_v6  ;;  %v287_v6 = vld [vmem:[#allocation8 + $0x78] sm:$0xff] }
 0x151   :  { %7364 = vpow2.f32 %v4718_v45 }
 0x158   :  { %v7361_v30 = vpop.eup %7360 }
 0x159   :  { %v570_v56 = vadd.f32 1.0, %v7361_v30  ;;  %v276_v30 = vld [vmem:[#allocation8 + $0x20] sm:$0xff] }
 0x15a   :  { %v7363_v0 = vpop.eup %7362 }
 0x15b   :  { %7366 = vrcp.f32 %v570_v56  ;;  %v579_v46 = vadd.f32 1.0, %v7363_v0  ;;  %v7365_v58 = vpop.eup %7364  ;;  %v281_v56 = vld [vmem:[#allocation8 + $0x48] sm:$0xff] }
 0x15c   :  { %7368 = vtanh.f32 %v582_v62  ;;  %v590_v3 = vadd.f32 1.0, %v7365_v58  ;;  %v283_v62 = vld [vmem:[#allocation8 + $0x58] sm:$0xff]  ;;  %v8285_v58 = vpack.c.bf16 %v278_v28, %v274_v61  ;;  %v288_v61 = vld [vmem:[#allocation8 + $0x80] sm:$0xff] }
 0x15d   :  { %7370 = vrcp.f32 %v579_v46  ;;  %v8283_v46 = vpack.c.bf16 %v276_v30, %v272_v5  ;;  %v292_v28 = vld [vmem:[#allocation8 + $0xa0] sm:$0xff] }
 0x15e   :  { %7372 = vrcp.f32 %v590_v3  ;;  %10229 = vst [vmem:[#allocation88_spill] sm:$0xff] %v8285_v58  ;;  %v8289_v3 = vpack.c.bf16 %v285_v21, %v281_v56  ;;  %v8303_v56 = vpack.c.bf16 %v293_v48, %v289_v29  ;;  %v8305_v21 = vpack.c.bf16 %v295_v41, %v291_v42  ;;  %v296_v41 = vld [vmem:[#allocation8 + $0xc0] sm:$0xff] }
 0x15f   :  { %10228 = vst [vmem:[#allocation87_spill] sm:$0xff] %v8283_v46  ;;  %v300_v42 = vld [vmem:[#allocation8 + $0xe0] sm:$0xff] }
 0x160   :  { %10230 = vst [vmem:[#allocation89_spill] sm:$0xff] %v8289_v3  ;;  %10234 = vst [vmem:[#allocation93_spill] sm:$0xff] %v8303_v56 }
 0x161   :  { %10235 = vst [vmem:[#allocation94_spill] sm:$0xff] %v8305_v21 }
 0x165   :  { %v7367_v14 = vpop.eup %7366 }
 0x166   :  { %v7369_v32 = vpop.eup %7368 }
 0x167   :  { %v7371_v59 = vpop.eup %7370  ;;  %v594_v49 = vmul.f32 %v7369_v32, %v7367_v14  ;;  %v280_v14 = vld [vmem:[#allocation8 + $0x40] sm:$0xff] }
 0x168   :  { %v593_v15 = vmul.f32 0.0, %v7371_v59  ;;  %v7373_v45 = vpop.eup %7372  ;;  %v284_v32 = vld [vmem:[#allocation8 + $0x60] sm:$0xff] }
 0x169   :  { %v8297_v5 = vpack.c.bf16 %v284_v32, %v280_v14  ;;  %v10236_v14 = vmov 0.0  }
 0x16a   :  { %v8280_v24 = vadd.f32 %v594_v49, %v593_v15  ;;  %v8291_v15 = vpack.c.bf16 %v287_v6, %v283_v62  ;;  %v282_v49 = vld [vmem:[#allocation8 + $0x50] sm:$0xff] }
 0x16b   :  { %10232 = vst [vmem:[#allocation91_spill] sm:$0xff] %v8297_v5  ;;  %v290_v62 = vld [vmem:[#allocation8 + $0x90] sm:$0xff] }
 0x16c   :  { %10227 = vst [vmem:[#allocation86_spill] sm:$0xff] %v8280_v24  ;;  %7374 = vtanh.f32 %v8280_v24  ;;  %10231 = vst [vmem:[#allocation90_spill] sm:$0xff] %v8291_v15  ;;  %v286_v24 = vld [vmem:[#allocation8 + $0x70] sm:$0xff] }
 0x16d   :  { %v8299_v30 = vpack.c.bf16 %v286_v24, %v282_v49  ;;  %v294_v6 = vld [vmem:[#allocation8 + $0xb0] sm:$0xff]  ;;  %v8311_v24 = vpack.c.bf16 %v292_v28, %v288_v61  ;;  %v8323_v61 = vpack.c.bf16 %v300_v42, %v296_v41  ;;  %v319_v42 = vld [vmem:[#allocation8 + $0x178] sm:$0xff] }
 0x16e   :  { %v8313_v48 = vpack.c.bf16 %v294_v6, %v290_v62  ;;  %v298_v49 = vld [vmem:[#allocation8 + $0xd0] sm:$0xff]  ;;  %v304_v62 = vld [vmem:[#allocation8 + $0x100] sm:$0xff] }
 0x16f   :  { %10233 = vst [vmem:[#allocation92_spill] sm:$0xff] %v8299_v30  ;;  %10237 = vst [vmem:[#allocation95_spill] sm:$0xff] %v8311_v24  ;;  %v308_v6 = vld [vmem:[#allocation8 + $0x120] sm:$0xff] }
 0x170   :  { %10238 = vst [vmem:[#allocation96_spill] sm:$0xff] %v8313_v48  ;;  %10241 = vst [vmem:[#allocation99_spill] sm:$0xff] %v8323_v61  ;;  %v8335_v41 = vpack.c.bf16 %v308_v6, %v304_v62 }
 0x172   :  { %10245 = vst [vmem:[#allocation103_spill] sm:$0xff] %v8335_v41 }
 0x176   :  { %v7375_v0 = vpop.eup %7374 }
 0x177   :  { %v8287_v59 = vmul.f32 %v7375_v0, %v7373_v45  ;;  %v297_v45 = vld [vmem:[#allocation8 + $0xc8] sm:$0xff] }
 0x178   :  { %v301_v0 = vld [vmem:[#allocation8 + $0xe8] sm:$0xff] }
 0x179   :  { %684 = vmatmul.mubr.f32.vlgmr.msra.gmra.mrb[2].mxu0 %v8287_v59  ;;  %755 = vmatmul.mubr.f32.vlgmr.msra.gmra.mrb[2].mxu1 %v8287_v59  ;;  %v8317_v29 = vpack.c.bf16 %v301_v0, %v297_v45  ;;  %v306_v45 = vld [vmem:[#allocation8 + $0x110] sm:$0xff] }
 0x17a   :  { %4983 = vmatpush1.bf16.msra.mxu0 %v8283_v46  ;;  %5047 = vmatpush1.bf16.msra.mxu1 %v8285_v58  ;;  %v299_v46 = vld [vmem:[#allocation8 + $0xd8] sm:$0xff]  ;;  %v310_v0 = vld [vmem:[#allocation8 + $0x130] sm:$0xff] }
 0x17b   :  { %4985 = vmatprep.subr.bf16.mxu0 %v8289_v3  ;;  %5049 = vmatprep.subr.bf16.mxu1 %v8291_v15  ;;  %v303_v58 = vld [vmem:[#allocation8 + $0xf8] sm:$0xff]  ;;  %10239 = vst [vmem:[#allocation97_spill] sm:$0xff] %v8317_v29  ;;  %v302_v15 = vld [vmem:[#allocation8 + $0xf0] sm:$0xff]  ;;  %v305_v3 = vld [vmem:[#allocation8 + $0x108] sm:$0xff] }
 0x17c   :  { %870 = vmatprep.mubr.f32.mxu0 %v10236_v14  ;;  %941 = vmatprep.mubr.f32.mxu1 %v10236_v14  ;;  %v8319_v32 = vpack.c.bf16 %v303_v58, %v299_v46  ;;  %v8325_v28 = vpack.c.bf16 %v302_v15, %v298_v49  ;;  %v8337_v15 = vpack.c.bf16 %v310_v0, %v306_v45  ;;  %v312_v49 = vld [vmem:[#allocation8 + $0x140] sm:$0xff]  ;;  %v314_v45 = vld [vmem:[#allocation8 + $0x150] sm:$0xff] }
 0x17d   :  { %v318_v0 = vld [vmem:[#allocation8 + $0x170] sm:$0xff] }
 0x17e   :  { %4987 = vmatpush1.bf16.msra.mxu0 %v8297_v5  ;;  %5051 = vmatpush1.bf16.msra.mxu1 %v8299_v30  ;;  %10240 = vst [vmem:[#allocation98_spill] sm:$0xff] %v8319_v32  ;;  %v309_v5 = vld [vmem:[#allocation8 + $0x128] sm:$0xff]  ;;  %v311_v30 = vld [vmem:[#allocation8 + $0x138] sm:$0xff]  ;;  %10242 = vst [vmem:[#allocation100_spill] sm:$0xff] %v8325_v28 }
 0x17f   :  { %4989 = vmatprep.subr.bf16.mxu0 %v8303_v56  ;;  %5053 = vmatprep.subr.bf16.mxu1 %v8305_v21  ;;  %v8329_v46 = vpack.c.bf16 %v309_v5, %v305_v3  ;;  %v8331_v58 = vpack.c.bf16 %v311_v30, %v307_v38  ;;  %10246 = vst [vmem:[#allocation104_spill] sm:$0xff] %v8337_v15  ;;  %v313_v38 = vld [vmem:[#allocation8 + $0x148] sm:$0xff]  ;;  %v315_v5 = vld [vmem:[#allocation8 + $0x158] sm:$0xff] }
 0x180   :  { %v317_v3 = vld [vmem:[#allocation8 + $0x168] sm:$0xff]  ;;  %v8345_v62 = vpack.c.bf16 %v319_v42, %v315_v5  ;;  %v327_v5 = vld [vmem:[#allocation8 + $0x1b8] sm:$0xff]  ;;  %v324_v42 = vld [vmem:[#allocation8 + $0x1a0] sm:$0xff] }
 0x181   :  { %10243 = vst [vmem:[#allocation101_spill] sm:$0xff] %v8329_v46  ;;  %10244 = vst [vmem:[#allocation102_spill] sm:$0xff] %v8331_v58  ;;  %v8343_v30 = vpack.c.bf16 %v317_v3, %v313_v38  ;;  %v325_v38 = vld [vmem:[#allocation8 + $0x1a8] sm:$0xff]  ;;  %v323_v3 = vld [vmem:[#allocation8 + $0x198] sm:$0xff] }
 0x182   :  { %4991 = vmatpush1.bf16.msra.mxu0 %v8311_v24  ;;  %5055 = vmatpush1.bf16.msra.mxu1 %v8313_v48  ;;  %10248 = vst [vmem:[#allocation106_spill] sm:$0xff] %v8345_v62 }
 0x183   :  { %4993 = vmatprep.subr.bf16.mxu0 %v8317_v29  ;;  %5057 = vmatprep.subr.bf16.mxu1 %v8319_v32  ;;  %10247 = vst [vmem:[#allocation105_spill] sm:$0xff] %v8343_v30  ;;  %v391_v32 = vld [vmem:[#allocation8 + $0x3b8] sm:$0xff] }
 0x186   :  { %4995 = vmatpush1.bf16.msra.mxu0 %v8323_v61  ;;  %5059 = vmatpush1.bf16.msra.mxu1 %v8325_v28  ;;  %v316_v28 = vld [vmem:[#allocation8 + $0x160] sm:$0xff]  ;;  %v387_v61 = vld [vmem:[#allocation8 + $0x398] sm:$0xff] }
 0x187   :  { %4997 = vmatprep.subr.bf16.mxu0 %v8329_v46  ;;  %5061 = vmatprep.subr.bf16.mxu1 %v8331_v58  ;;  %v8347_v6 = vpack.c.bf16 %v316_v28, %v312_v49  ;;  %v8350_v58 = vpack.c.bf16 %v318_v0, %v314_v45  ;;  %v320_v28 = vld [vmem:[#allocation8 + $0x180] sm:$0xff]  ;;  %v8357_v49 = vpack.c.bf16 %v327_v5, %v323_v3  ;;  %v322_v45 = vld [vmem:[#allocation8 + $0x190] sm:$0xff]  ;;  %v335_v3 = vld [vmem:[#allocation8 + $0x1f8] sm:$0xff] }
 0x188   :  { %v8359_v46 = vpack.c.bf16 %v324_v42, %v320_v28  ;;  %v326_v0 = vld [vmem:[#allocation8 + $0x1b0] sm:$0xff]  ;;  %v328_v5 = vld [vmem:[#allocation8 + $0x1c0] sm:$0xff] }
 0x189   :  { %10249 = vst [vmem:[#allocation107_spill] sm:$0xff] %v8347_v6  ;;  %10250 = vst [vmem:[#allocation108_spill] sm:$0xff] %v8350_v58  ;;  %v332_v28 = vld [vmem:[#allocation8 + $0x1e0] sm:$0xff] }
 0x18a   :  { %4999 = vmatpush1.bf16.msra.mxu0 %v8335_v41  ;;  %5063 = vmatpush1.bf16.msra.mxu1 %v8337_v15  ;;  %v321_v15 = vld [vmem:[#allocation8 + $0x188] sm:$0xff]  ;;  %10252 = vst [vmem:[#allocation110_spill] sm:$0xff] %v8357_v49  ;;  %10253 = vst [vmem:[#allocation111_spill] sm:$0xff] %v8359_v46 }
 0x18b   :  { %5001 = vmatprep.subr.bf16.mxu0 %v8343_v30  ;;  %5065 = vmatprep.subr.bf16.mxu1 %v8345_v62  ;;  %v8355_v41 = vpack.c.bf16 %v325_v38, %v321_v15  ;;  %v8362_v62 = vpack.c.bf16 %v326_v0, %v322_v45  ;;  %v333_v15 = vld [vmem:[#allocation8 + $0x1e8] sm:$0xff]  ;;  %v331_v38 = vld [vmem:[#allocation8 + $0x1d8] sm:$0xff]  ;;  %v8371_v30 = vpack.c.bf16 %v332_v28, %v328_v5  ;;  %v330_v45 = vld [vmem:[#allocation8 + $0x1d0] sm:$0xff] }
 0x18c   :  { %v8369_v42 = vpack.c.bf16 %v335_v3, %v331_v38  ;;  %v334_v0 = vld [vmem:[#allocation8 + $0x1f0] sm:$0xff]  ;;  %v343_v38 = vld [vmem:[#allocation8 + $0x238] sm:$0xff]  ;;  %v336_v3 = vld [vmem:[#allocation8 + $0x200] sm:$0xff] }
 0x18d   :  { %10251 = vst [vmem:[#allocation109_spill] sm:$0xff] %v8355_v41  ;;  %10254 = vst [vmem:[#allocation112_spill] sm:$0xff] %v8362_v62  ;;  %v340_v5 = vld [vmem:[#allocation8 + $0x220] sm:$0xff] }
 0x18e   :  { %5003 = vmatpush1.bf16.msra.mxu0 %v8347_v6  ;;  %5067 = vmatpush1.bf16.msra.mxu1 %v8350_v58  ;;  %v329_v58 = vld [vmem:[#allocation8 + $0x1c8] sm:$0xff]  ;;  %10256 = vst [vmem:[#allocation114_spill] sm:$0xff] %v8369_v42  ;;  %10257 = vst [vmem:[#allocation115_spill] sm:$0xff] %v8371_v30 }
 0x18f   :  { %5005 = vmatprep.subr.bf16.mxu0 %v8355_v41  ;;  %5069 = vmatprep.subr.bf16.mxu1 %v8357_v49  ;;  %v8367_v6 = vpack.c.bf16 %v333_v15, %v329_v58  ;;  %v8374_v49 = vpack.c.bf16 %v334_v0, %v330_v45  ;;  %v341_v58 = vld [vmem:[#allocation8 + $0x228] sm:$0xff]  ;;  %v339_v15 = vld [vmem:[#allocation8 + $0x218] sm:$0xff]  ;;  %v8383_v41 = vpack.c.bf16 %v340_v5, %v336_v3  ;;  %v338_v45 = vld [vmem:[#allocation8 + $0x210] sm:$0xff] }
 0x190   :  { %v8381_v28 = vpack.c.bf16 %v343_v38, %v339_v15  ;;  %v342_v0 = vld [vmem:[#allocation8 + $0x230] sm:$0xff]  ;;  %v351_v15 = vld [vmem:[#allocation8 + $0x278] sm:$0xff]  ;;  %v344_v38 = vld [vmem:[#allocation8 + $0x240] sm:$0xff] }
 0x191   :  { %10255 = vst [vmem:[#allocation113_spill] sm:$0xff] %v8367_v6  ;;  %10258 = vst [vmem:[#allocation116_spill] sm:$0xff] %v8374_v49  ;;  %v348_v3 = vld [vmem:[#allocation8 + $0x260] sm:$0xff] }
 0x192   :  { %5007 = vmatpush1.bf16.msra.mxu0 %v8359_v46  ;;  %5071 = vmatpush1.bf16.msra.mxu1 %v8362_v62  ;;  %v337_v62 = vld [vmem:[#allocation8 + $0x208] sm:$0xff]  ;;  %10260 = vst [vmem:[#allocation118_spill] sm:$0xff] %v8381_v28  ;;  %10261 = vst [vmem:[#allocation119_spill] sm:$0xff] %v8383_v41 }
 0x193   :  { %5009 = vmatprep.subr.bf16.mxu0 %v8367_v6  ;;  %5073 = vmatprep.subr.bf16.mxu1 %v8369_v42  ;;  %v8379_v46 = vpack.c.bf16 %v341_v58, %v337_v62  ;;  %v8386_v42 = vpack.c.bf16 %v342_v0, %v338_v45  ;;  %v349_v62 = vld [vmem:[#allocation8 + $0x268] sm:$0xff]  ;;  %v347_v58 = vld [vmem:[#allocation8 + $0x258] sm:$0xff]  ;;  %v8395_v6 = vpack.c.bf16 %v348_v3, %v344_v38  ;;  %v346_v45 = vld [vmem:[#allocation8 + $0x250] sm:$0xff] }
 0x194   :  { %v8393_v5 = vpack.c.bf16 %v351_v15, %v347_v58  ;;  %v350_v0 = vld [vmem:[#allocation8 + $0x270] sm:$0xff]  ;;  %v359_v58 = vld [vmem:[#allocation8 + $0x2b8] sm:$0xff]  ;;  %v352_v15 = vld [vmem:[#allocation8 + $0x280] sm:$0xff] }
 0x195   :  { %10259 = vst [vmem:[#allocation117_spill] sm:$0xff] %v8379_v46  ;;  %10262 = vst [vmem:[#allocation120_spill] sm:$0xff] %v8386_v42  ;;  %v356_v38 = vld [vmem:[#allocation8 + $0x2a0] sm:$0xff] }
 0x196   :  { %5011 = vmatpush1.bf16.msra.mxu0 %v8371_v30  ;;  %5075 = vmatpush1.bf16.msra.mxu1 %v8374_v49  ;;  %v345_v49 = vld [vmem:[#allocation8 + $0x248] sm:$0xff]  ;;  %10264 = vst [vmem:[#allocation122_spill] sm:$0xff] %v8393_v5  ;;  %10265 = vst [vmem:[#allocation123_spill] sm:$0xff] %v8395_v6 }
 0x197   :  { %5013 = vmatprep.subr.bf16.mxu0 %v8379_v46  ;;  %5077 = vmatprep.subr.bf16.mxu1 %v8381_v28  ;;  %v8391_v30 = vpack.c.bf16 %v349_v62, %v345_v49  ;;  %v8398_v28 = vpack.c.bf16 %v350_v0, %v346_v45  ;;  %v357_v49 = vld [vmem:[#allocation8 + $0x2a8] sm:$0xff]  ;;  %v355_v62 = vld [vmem:[#allocation8 + $0x298] sm:$0xff]  ;;  %v8407_v46 = vpack.c.bf16 %v356_v38, %v352_v15  ;;  %v354_v45 = vld [vmem:[#allocation8 + $0x290] sm:$0xff] }
 0x198   :  { %v8405_v3 = vpack.c.bf16 %v359_v58, %v355_v62  ;;  %v358_v0 = vld [vmem:[#allocation8 + $0x2b0] sm:$0xff]  ;;  %v367_v62 = vld [vmem:[#allocation8 + $0x2f8] sm:$0xff]  ;;  %v360_v58 = vld [vmem:[#allocation8 + $0x2c0] sm:$0xff] }
 0x199   :  { %10263 = vst [vmem:[#allocation121_spill] sm:$0xff] %v8391_v30  ;;  %10266 = vst [vmem:[#allocation124_spill] sm:$0xff] %v8398_v28  ;;  %v364_v15 = vld [vmem:[#allocation8 + $0x2e0] sm:$0xff] }
 0x19a   :  { %5015 = vmatpush1.bf16.msra.mxu0 %v8383_v41  ;;  %5079 = vmatpush1.bf16.msra.mxu1 %v8386_v42  ;;  %v353_v42 = vld [vmem:[#allocation8 + $0x288] sm:$0xff]  ;;  %10268 = vst [vmem:[#allocation126_spill] sm:$0xff] %v8405_v3  ;;  %10269 = vst [vmem:[#allocation127_spill] sm:$0xff] %v8407_v46 }
 0x19b   :  { %5017 = vmatprep.subr.bf16.mxu0 %v8391_v30  ;;  %5081 = vmatprep.subr.bf16.mxu1 %v8393_v5  ;;  %v8403_v41 = vpack.c.bf16 %v357_v49, %v353_v42  ;;  %v8410_v5 = vpack.c.bf16 %v358_v0, %v354_v45  ;;  %v365_v42 = vld [vmem:[#allocation8 + $0x2e8] sm:$0xff]  ;;  %v363_v49 = vld [vmem:[#allocation8 + $0x2d8] sm:$0xff]  ;;  %v8419_v30 = vpack.c.bf16 %v364_v15, %v360_v58  ;;  %v362_v45 = vld [vmem:[#allocation8 + $0x2d0] sm:$0xff] }
 0x19c   :  { %v8417_v38 = vpack.c.bf16 %v367_v62, %v363_v49  ;;  %v366_v0 = vld [vmem:[#allocation8 + $0x2f0] sm:$0xff]  ;;  %v375_v49 = vld [vmem:[#allocation8 + $0x338] sm:$0xff]  ;;  %v368_v62 = vld [vmem:[#allocation8 + $0x300] sm:$0xff] }
 0x19d   :  { %10267 = vst [vmem:[#allocation125_spill] sm:$0xff] %v8403_v41  ;;  %10270 = vst [vmem:[#allocation128_spill] sm:$0xff] %v8410_v5  ;;  %v372_v58 = vld [vmem:[#allocation8 + $0x320] sm:$0xff] }
 0x19e   :  { %5019 = vmatpush1.bf16.msra.mxu0 %v8395_v6  ;;  %5083 = vmatpush1.bf16.msra.mxu1 %v8398_v28  ;;  %v361_v28 = vld [vmem:[#allocation8 + $0x2c8] sm:$0xff]  ;;  %10272 = vst [vmem:[#allocation130_spill] sm:$0xff] %v8417_v38  ;;  %10273 = vst [vmem:[#allocation131_spill] sm:$0xff] %v8419_v30 }
 0x19f   :  { %5021 = vmatprep.subr.bf16.mxu0 %v8403_v41  ;;  %5085 = vmatprep.subr.bf16.mxu1 %v8405_v3  ;;  %v8415_v6 = vpack.c.bf16 %v365_v42, %v361_v28  ;;  %v8422_v3 = vpack.c.bf16 %v366_v0, %v362_v45  ;;  %v373_v28 = vld [vmem:[#allocation8 + $0x328] sm:$0xff]  ;;  %v371_v42 = vld [vmem:[#allocation8 + $0x318] sm:$0xff]  ;;  %v8431_v41 = vpack.c.bf16 %v372_v58, %v368_v62  ;;  %v370_v45 = vld [vmem:[#allocation8 + $0x310] sm:$0xff] }
 0x1a0   :  { %v8429_v15 = vpack.c.bf16 %v375_v49, %v371_v42  ;;  %v374_v0 = vld [vmem:[#allocation8 + $0x330] sm:$0xff]  ;;  %v383_v42 = vld [vmem:[#allocation8 + $0x378] sm:$0xff]  ;;  %v376_v49 = vld [vmem:[#allocation8 + $0x340] sm:$0xff] }
 0x1a1   :  { %10271 = vst [vmem:[#allocation129_spill] sm:$0xff] %v8415_v6  ;;  %10274 = vst [vmem:[#allocation132_spill] sm:$0xff] %v8422_v3  ;;  %v380_v62 = vld [vmem:[#allocation8 + $0x360] sm:$0xff] }
 0x1a2   :  { %5023 = vmatpush1.bf16.msra.mxu0 %v8407_v46  ;;  %5087 = vmatpush1.bf16.msra.mxu1 %v8410_v5  ;;  %v369_v5 = vld [vmem:[#allocation8 + $0x308] sm:$0xff]  ;;  %10276 = vst [vmem:[#allocation134_spill] sm:$0xff] %v8429_v15  ;;  %10277 = vst [vmem:[#allocation135_spill] sm:$0xff] %v8431_v41 }
 0x1a3   :  { %5025 = vmatprep.subr.bf16.mxu0 %v8415_v6  ;;  %5089 = vmatprep.subr.bf16.mxu1 %v8417_v38  ;;  %v8427_v46 = vpack.c.bf16 %v373_v28, %v369_v5  ;;  %v8434_v38 = vpack.c.bf16 %v374_v0, %v370_v45  ;;  %v381_v5 = vld [vmem:[#allocation8 + $0x368] sm:$0xff]  ;;  %v379_v28 = vld [vmem:[#allocation8 + $0x358] sm:$0xff]  ;;  %v8443_v6 = vpack.c.bf16 %v380_v62, %v376_v49  ;;  %v378_v45 = vld [vmem:[#allocation8 + $0x350] sm:$0xff] }
 0x1a4   :  { %v8441_v58 = vpack.c.bf16 %v383_v42, %v379_v28  ;;  %v382_v0 = vld [vmem:[#allocation8 + $0x370] sm:$0xff]  ;;  %v384_v28 = vld [vmem:[#allocation8 + $0x380] sm:$0xff] }
 0x1a5   :  { %10275 = vst [vmem:[#allocation133_spill] sm:$0xff] %v8427_v46  ;;  %10278 = vst [vmem:[#allocation136_spill] sm:$0xff] %v8434_v38  ;;  %v388_v42 = vld [vmem:[#allocation8 + $0x3a0] sm:$0xff]  ;;  %v386_v49 = vld [vmem:[#allocation8 + $0x390] sm:$0xff] }
 0x1a6   :  { %5027 = vmatpush1.bf16.msra.mxu0 %v8419_v30  ;;  %5091 = vmatpush1.bf16.msra.mxu1 %v8422_v3  ;;  %v377_v3 = vld [vmem:[#allocation8 + $0x348] sm:$0xff]  ;;  %10280 = vst [vmem:[#allocation138_spill] sm:$0xff] %v8441_v58  ;;  %10281 = vst [vmem:[#allocation139_spill] sm:$0xff] %v8443_v6  ;;  %v8455_v62 = vpack.c.bf16 %v388_v42, %v384_v28  ;;  %v398_v28 = vld [vmem:[#allocation8 + $0x3f0] sm:$0xff] }
 0x1a7   :  { %5029 = vmatprep.subr.bf16.mxu0 %v8427_v46  ;;  %5093 = vmatprep.subr.bf16.mxu1 %v8429_v15  ;;  %v8439_v30 = vpack.c.bf16 %v381_v5, %v377_v3  ;;  %v385_v46 = vld [vmem:[#allocation8 + $0x388] sm:$0xff]  ;;  %v8452_v5 = vpack.c.bf16 %v391_v32, %v387_v61  ;;  %v395_v32 = vld [vmem:[#allocation8 + $0x3d8] sm:$0xff] }
 0x1a8   :  { %v389_v15 = vld [vmem:[#allocation8 + $0x3a8] sm:$0xff]  ;;  %10285 = vst [vmem:[#allocation143_spill] sm:$0xff] %v8455_v62  ;;  %v399_v61 = vld [vmem:[#allocation8 + $0x3f8] sm:$0xff] }
 0x1a9   :  { %10279 = vst [vmem:[#allocation137_spill] sm:$0xff] %v8439_v30  ;;  %v8450_v3 = vpack.c.bf16 %v389_v15, %v385_v46  ;;  %10284 = vst [vmem:[#allocation142_spill] sm:$0xff] %v8452_v5  ;;  %v392_v15 = vld [vmem:[#allocation8 + $0x3c0] sm:$0xff] }
 0x1aa   :  { %5031 = vmatpush1.bf16.msra.mxu0 %v8431_v41  ;;  %5095 = vmatpush1.bf16.msra.mxu1 %v8434_v38  ;;  %v8446_v41 = vpack.c.bf16 %v382_v0, %v378_v45  ;;  %v390_v45 = vld [vmem:[#allocation8 + $0x3b0] sm:$0xff]  ;;  %v393_v0 = vld [vmem:[#allocation8 + $0x3c8] sm:$0xff]  ;;  %v396_v38 = vld [vmem:[#allocation8 + $0x3e0] sm:$0xff] }
 0x1ab   :  { %5033 = vmatprep.subr.bf16.mxu0 %v8439_v30  ;;  %5097 = vmatprep.subr.bf16.mxu1 %v8441_v58  ;;  %10283 = vst [vmem:[#allocation141_spill] sm:$0xff] %v8450_v3  ;;  %v397_v30 = vld [vmem:[#allocation8 + $0x3e8] sm:$0xff]  ;;  %v8459_v58 = vpack.c.bf16 %v390_v45, %v386_v49  ;;  %v8466_v42 = vpack.c.bf16 %v396_v38, %v392_v15  ;;  %v271_v38 = vld [vmem:[%s9865_s3] sm:$0xf]  ;;  %v10101_v45 = vsub.s32 1, %v8273_v47  ;;  %v10108_v15 = vsub.s32 3, %v8273_v47 }
 0x1ac   :  { %10282 = vst [vmem:[#allocation140_spill] sm:$0xff] %v8446_v41  ;;  %v8461_v46 = vpack.c.bf16 %v397_v30, %v393_v0  ;;  %v10100_v30 = vsub.s32 0, %v8273_v47 }
 0x1ad   :  { %10286 = vst [vmem:[#allocation144_spill] sm:$0xff] %v8459_v58  ;;  %10289 = vst [vmem:[#allocation147_spill] sm:$0xff] %v8466_v42  ;;  %v8488_v0 = vrot.slane %v271_v38, %v10101_v45  ;;  %v10117_v45 = vsub.s32 2, %v8273_v47 }
 0x1ae   :  { %5035 = vmatpush1.bf16.msra.mxu0 %v8443_v6  ;;  %5099 = vmatpush1.bf16.msra.mxu1 %v8446_v41  ;;  %10287 = vst [vmem:[#allocation145_spill] sm:$0xff] %v8461_v46  ;;  %v8463_v6 = vpack.c.bf16 %v399_v61, %v395_v32  ;;  %v394_v41 = vld [vmem:[#allocation8 + $0x3d0] sm:$0xff] }
 0x1af   :  { %5037 = vmatprep.subr.bf16.mxu0 %v8450_v3  ;;  %5101 = vmatprep.subr.bf16.mxu1 %v8452_v5  ;;  %v8470_v49 = vpack.c.bf16 %v398_v28, %v394_v41  ;;  %v8484_v41 = vrot.slane %v271_v38, %v10100_v30  ;;  %10292 = vst [vmem:[#allocation150_spill] sm:$0xff] %v8488_v0 }
 0x1b0   :  { %10288 = vst [vmem:[#allocation146_spill] sm:$0xff] %v8463_v6  ;;  %v8495_v30 = vrot.slane %v271_v38, %v10108_v15 }
 0x1b1   :  { %10290 = vst [vmem:[#allocation148_spill] sm:$0xff] %v8470_v49  ;;  %10291 = vst [vmem:[#allocation149_spill] sm:$0xff] %v8484_v41 }
 0x1b2   :  { %5039 = vmatpush1.bf16.msra.mxu0 %v8455_v62  ;;  %5103 = vmatpush1.bf16.msra.mxu1 %v8459_v58  ;;  %10293 = vst [vmem:[#allocation151_spill] sm:$0xff] %v8495_v30  ;;  %v8501_v58 = vrot.slane %v271_v38, %v10117_v45  ;;  %v10310_v45 = vld [vmem:[#allocation42_spill] sm:$0xff] }
 0x1b3   :  { %5041 = vmatprep.subr.bf16.mxu0 %v8461_v46  ;;  %5105 = vmatprep.subr.bf16.mxu1 %v8463_v6 }
 0x1b6   :  { %5043 = vmatpush1.bf16.msra.mxu0 %v8466_v42  ;;  %5107 = vmatpush1.bf16.msra.mxu1 %v8470_v49 }
 0x1b7   :  { %5109 = vmatprep.subr.bf16.mxu0 %v7975_v4  ;;  %5141 = vmatprep.subr.bf16.mxu1 %v7977_v8 }
 0x24c   :  { %v685_v32 = vpop.f32.mrb[2].mxu0  ;;  %v756_v61 = vpop.f32.mrb[2].mxu1 }
 0x24d   :  { %v686_v28 = vadd.f32 %v685_v32, %v8484_v41  ;;  %v687_v8 = vpop.f32.mrb[3].mxu0  ;;  %v758_v4 = vpop.f32.mrb[3].mxu1  ;;  %v757_v41 = vadd.f32 %v756_v61, %v8501_v58 }
 0x24e   :  { %v688_v49 = vadd.f32 %v687_v8, %v8488_v0  ;;  %v759_v46 = vadd.f32 %v758_v4, %v8495_v30 }
 0x24f   :  { %v4719_v42 = vmul.f32 -1.442695, %v686_v28 }
 0x250   :  { %v4720_v6 = vmul.f32 -1.442695, %v688_v49  ;;  %v4721_v32 = vmul.f32 -1.442695, %v759_v46 }
 0x251   :  { %7376 = vpow2.f32 %v4719_v42 }
 0x252   :  { %7378 = vpow2.f32 %v4720_v6 }
 0x253   :  { %7380 = vpow2.f32 %v4721_v32  ;;  %v10301_v32 = vld [vmem:[#allocation33_spill] sm:$0xff] }
 0x254   :  { %7382 = vtanh.f32 %v757_v41  ;;  %v10297_v41 = vld [vmem:[#allocation29_spill] sm:$0xff] }
 0x25b   :  { %v7377_v8 = vpop.eup %7376 }
 0x25c   :  { %v7379_v28 = vpop.eup %7378  ;;  %v764_v49 = vadd.f32 1.0, %v7377_v8 }
 0x25d   :  { %v770_v15 = vadd.f32 1.0, %v7379_v28  ;;  %v7381_v42 = vpop.eup %7380  ;;  %v10302_v28 = vld [vmem:[#allocation34_spill] sm:$0xff] }
 0x25e   :  { %7384 = vrcp.f32 %v764_v49  ;;  %v7383_v0 = vpop.eup %7382  ;;  %v777_v30 = vadd.f32 1.0, %v7381_v42  ;;  %v10303_v49 = vld [vmem:[#allocation35_spill] sm:$0xff]  ;;  %v10304_v42 = vld [vmem:[#allocation36_spill] sm:$0xff] }
 0x25f   :  { %7386 = vrcp.f32 %v770_v15  ;;  %v10300_v15 = vld [vmem:[#allocation32_spill] sm:$0xff] }
 0x260   :  { %7388 = vrcp.f32 %v777_v30  ;;  %v10296_v30 = vld [vmem:[#allocation28_spill] sm:$0xff] }
 0x268   :  { %v7385_v6 = vpop.eup %7384 }
 0x269   :  { %v7387_v62 = vpop.eup %7386  ;;  %v781_v4 = vmul.f32 %v7385_v6, %v7383_v0  ;;  %v10299_v0 = vld [vmem:[#allocation31_spill] sm:$0xff]  ;;  %v10305_v6 = vld [vmem:[#allocation37_spill] sm:$0xff] }
 0x26a   :  { %v780_v5 = vmul.f32 0.0, %v7387_v62  ;;  %v7389_v46 = vpop.eup %7388  ;;  %v10295_v62 = vld [vmem:[#allocation27_spill] sm:$0xff] }
 0x26c   :  { %v8504_v38 = vadd.f32 %v781_v4, %v780_v5  ;;  %v10294_v5 = vld [vmem:[#allocation26_spill] sm:$0xff] }
 0x26d   :  { %v10306_v4 = vld [vmem:[#allocation38_spill] sm:$0xff] }
 0x26e   :  { %7390 = vtanh.f32 %v8504_v38 }
 0x278   :  { %v7391_v61 = vpop.eup %7390 }
 0x279   :  { %v784_v8 = vmul.f32 %v7391_v61, %v7389_v46  ;;  %v10307_v46 = vld [vmem:[#allocation39_spill] sm:$0xff]  ;;  %v10308_v61 = vld [vmem:[#allocation40_spill] sm:$0xff] }
 0x27b   :  { %871 = vmatmul.mubr.f32.vlgmr.msra.gmra.mrb[4].mxu0 %v784_v8  ;;  %942 = vmatmul.mubr.f32.vlgmr.msra.gmra.mrb[4].mxu1 %v784_v8 }
 0x27c   :  { %5111 = vmatpush1.bf16.msra.mxu0 %v7979_v9  ;;  %5143 = vmatpush1.bf16.msra.mxu1 %v7982_v13 }
 0x27d   :  { %5113 = vmatprep.subr.bf16.mxu0 %v7986_v17  ;;  %5145 = vmatprep.subr.bf16.mxu1 %v7988_v18 }
 0x27e   :  { %1039 = vmatprep.mubr.f32.mxu0 %v10236_v14  ;;  %1110 = vmatprep.mubr.f32.mxu1 %v10236_v14 }
 0x280   :  { %5115 = vmatpush1.bf16.msra.mxu0 %v7991_v22  ;;  %5147 = vmatpush1.bf16.msra.mxu1 %v7995_v26 }
 0x281   :  { %5117 = vmatprep.subr.bf16.mxu0 %v7997_v27  ;;  %5149 = vmatprep.subr.bf16.mxu1 %v7999_v31 }
 0x284   :  { %5119 = vmatpush1.bf16.msra.mxu0 %v8002_v35  ;;  %5151 = vmatpush1.bf16.msra.mxu1 %v8006_v39 }
 0x285   :  { %5121 = vmatprep.subr.bf16.mxu0 %v8008_v40  ;;  %5153 = vmatprep.subr.bf16.mxu1 %v8011_v44 }
 0x288   :  { %5123 = vmatpush1.bf16.msra.mxu0 %v8014_v51  ;;  %5155 = vmatpush1.bf16.msra.mxu1 %v8018_v52 }
 0x289   :  { %5125 = vmatprep.subr.bf16.mxu0 %v8020_v53  ;;  %5157 = vmatprep.subr.bf16.mxu1 %v8023_v57 }
 0x28c   :  { %5127 = vmatpush1.bf16.msra.mxu0 %v8026_v63  ;;  %5159 = vmatpush1.bf16.msra.mxu1 %v8030_v1 }
 0x28d   :  { %5129 = vmatprep.subr.bf16.mxu0 %v8032_v2  ;;  %5161 = vmatprep.subr.bf16.mxu1 %v8035_v7 }
 0x290   :  { %5131 = vmatpush1.bf16.msra.mxu0 %v8038_v16  ;;  %5163 = vmatpush1.bf16.msra.mxu1 %v8042_v19 }
 0x291   :  { %5133 = vmatprep.subr.bf16.mxu0 %v8044_v20  ;;  %5165 = vmatprep.subr.bf16.mxu1 %v8047_v25 }
 0x294   :  { %5135 = vmatpush1.bf16.msra.mxu0 %v8050_v34  ;;  %5167 = vmatpush1.bf16.msra.mxu1 %v8054_v36 }
 0x295   :  { %5137 = vmatprep.subr.bf16.mxu0 %v8056_v37  ;;  %5169 = vmatprep.subr.bf16.mxu1 %v8059_v43 }
 0x298   :  { %5139 = vmatpush1.bf16.msra.mxu0 %v8062_v50  ;;  %5171 = vmatpush1.bf16.msra.mxu1 %v8066_v54 }
 0x299   :  { %5173 = vmatprep.subr.bf16.mxu0 %v8068_v55  ;;  %5237 = vmatprep.subr.bf16.mxu1 %v8071_v60 }
 0x29b   :  { %1040 = vmatmul.mubr.f32.vlgmr.msra.gmra.mrb[6].mxu0 %v8287_v59  ;;  %1111 = vmatmul.mubr.f32.vlgmr.msra.gmra.mrb[6].mxu1 %v8287_v59  ;;  %v10298_v59 = vld [vmem:[#allocation30_spill] sm:$0xff] }
 0x29c   :  { %1235 = vmatprep.mubr.f32.mxu0 %v784_v8  ;;  %1306 = vmatprep.mubr.f32.mxu1 %v784_v8  ;;  %v10309_v8 = vld [vmem:[#allocation41_spill] sm:$0xff] }
 0x29d   :  { %5175 = vmatpush1.bf16.msra.mxu0 %v8074_v10  ;;  %5239 = vmatpush1.bf16.msra.mxu1 %v8078_v11 }
 0x29e   :  { %5177 = vmatprep.subr.bf16.mxu0 %v8080_v12  ;;  %5241 = vmatprep.subr.bf16.mxu1 %v8083_v23 }
 0x2a1   :  { %5179 = vmatpush1.bf16.msra.mxu0 %v8088_v33  ;;  %5243 = vmatpush1.bf16.msra.mxu1 %v10294_v5 }
 0x2a2   :  { %5181 = vmatprep.subr.bf16.mxu0 %v10295_v62  ;;  %5245 = vmatprep.subr.bf16.mxu1 %v10296_v30 }
 0x2a5   :  { %5183 = vmatpush1.bf16.msra.mxu0 %v10297_v41  ;;  %5247 = vmatpush1.bf16.msra.mxu1 %v10298_v59  ;;  %v10357_v41 = vsub.s32 3, %v8273_v47 }
 0x2a6   :  { %5185 = vmatprep.subr.bf16.mxu0 %v10299_v0  ;;  %5249 = vmatprep.subr.bf16.mxu1 %v10300_v15  ;;  %v10311_v15 = vld [vmem:[#allocation43_spill] sm:$0xff] }
 0x2a9   :  { %5187 = vmatpush1.bf16.msra.mxu0 %v10301_v32  ;;  %5251 = vmatpush1.bf16.msra.mxu1 %v10302_v28  ;;  %v10312_v32 = vld [vmem:[#allocation44_spill] sm:$0xff]  ;;  %v10313_v28 = vld [vmem:[#allocation45_spill] sm:$0xff] }
 0x2aa   :  { %5189 = vmatprep.subr.bf16.mxu0 %v10303_v49  ;;  %5253 = vmatprep.subr.bf16.mxu1 %v10304_v42  ;;  %v10314_v49 = vld [vmem:[#allocation46_spill] sm:$0xff]  ;;  %v10315_v42 = vld [vmem:[#allocation47_spill] sm:$0xff] }
 0x2ad   :  { %5191 = vmatpush1.bf16.msra.mxu0 %v10305_v6  ;;  %5255 = vmatpush1.bf16.msra.mxu1 %v10306_v4  ;;  %v10316_v6 = vld [vmem:[#allocation48_spill] sm:$0xff]  ;;  %v10317_v4 = vld [vmem:[#allocation49_spill] sm:$0xff] }
 0x2ae   :  { %5193 = vmatprep.subr.bf16.mxu0 %v10307_v46  ;;  %5257 = vmatprep.subr.bf16.mxu1 %v10308_v61  ;;  %v10318_v46 = vld [vmem:[#allocation50_spill] sm:$0xff]  ;;  %v10319_v61 = vld [vmem:[#allocation51_spill] sm:$0xff] }
 0x2b1   :  { %5195 = vmatpush1.bf16.msra.mxu0 %v10309_v8  ;;  %5259 = vmatpush1.bf16.msra.mxu1 %v10310_v45  ;;  %v10320_v8 = vld [vmem:[#allocation52_spill] sm:$0xff]  ;;  %v10321_v45 = vld [vmem:[#allocation53_spill] sm:$0xff] }
 0x2b2   :  { %5197 = vmatprep.subr.bf16.mxu0 %v10311_v15  ;;  %5261 = vmatprep.subr.bf16.mxu1 %v10312_v32  ;;  %v10322_v15 = vld [vmem:[#allocation54_spill] sm:$0xff]  ;;  %v10323_v32 = vld [vmem:[#allocation55_spill] sm:$0xff] }
 0x2b5   :  { %5199 = vmatpush1.bf16.msra.mxu0 %v10313_v28  ;;  %5263 = vmatpush1.bf16.msra.mxu1 %v10314_v49  ;;  %v10324_v28 = vld [vmem:[#allocation56_spill] sm:$0xff]  ;;  %v10325_v49 = vld [vmem:[#allocation57_spill] sm:$0xff] }
 0x2b6   :  { %5201 = vmatprep.subr.bf16.mxu0 %v10315_v42  ;;  %5265 = vmatprep.subr.bf16.mxu1 %v10316_v6  ;;  %v10326_v42 = vld [vmem:[#allocation58_spill] sm:$0xff]  ;;  %v10327_v6 = vld [vmem:[#allocation59_spill] sm:$0xff] }
 0x2b9   :  { %5203 = vmatpush1.bf16.msra.mxu0 %v10317_v4  ;;  %5267 = vmatpush1.bf16.msra.mxu1 %v10318_v46  ;;  %v10328_v4 = vld [vmem:[#allocation60_spill] sm:$0xff]  ;;  %v10329_v46 = vld [vmem:[#allocation61_spill] sm:$0xff] }
 0x2ba   :  { %5205 = vmatprep.subr.bf16.mxu0 %v10319_v61  ;;  %5269 = vmatprep.subr.bf16.mxu1 %v10320_v8  ;;  %v10330_v61 = vld [vmem:[#allocation62_spill] sm:$0xff]  ;;  %v10331_v8 = vld [vmem:[#allocation63_spill] sm:$0xff] }
 0x2bd   :  { %5207 = vmatpush1.bf16.msra.mxu0 %v10321_v45  ;;  %5271 = vmatpush1.bf16.msra.mxu1 %v10322_v15  ;;  %v10332_v45 = vld [vmem:[#allocation64_spill] sm:$0xff]  ;;  %v10333_v15 = vld [vmem:[#allocation65_spill] sm:$0xff] }
 0x2be   :  { %5209 = vmatprep.subr.bf16.mxu0 %v10323_v32  ;;  %5273 = vmatprep.subr.bf16.mxu1 %v10324_v28  ;;  %v10334_v32 = vld [vmem:[#allocation66_spill] sm:$0xff]  ;;  %v10335_v28 = vld [vmem:[#allocation67_spill] sm:$0xff] }
 0x2c1   :  { %5211 = vmatpush1.bf16.msra.mxu0 %v10325_v49  ;;  %5275 = vmatpush1.bf16.msra.mxu1 %v10326_v42  ;;  %v10336_v49 = vld [vmem:[#allocation68_spill] sm:$0xff]  ;;  %v10337_v42 = vld [vmem:[#allocation69_spill] sm:$0xff] }
 0x2c2   :  { %5213 = vmatprep.subr.bf16.mxu0 %v10327_v6  ;;  %5277 = vmatprep.subr.bf16.mxu1 %v10328_v4  ;;  %v10338_v6 = vld [vmem:[#allocation70_spill] sm:$0xff]  ;;  %v10339_v4 = vld [vmem:[#allocation71_spill] sm:$0xff] }
 0x2c5   :  { %5215 = vmatpush1.bf16.msra.mxu0 %v10329_v46  ;;  %5279 = vmatpush1.bf16.msra.mxu1 %v10330_v61  ;;  %v10340_v46 = vld [vmem:[#allocation72_spill] sm:$0xff]  ;;  %v10341_v61 = vld [vmem:[#allocation73_spill] sm:$0xff] }
 0x2c6   :  { %5217 = vmatprep.subr.bf16.mxu0 %v10331_v8  ;;  %5281 = vmatprep.subr.bf16.mxu1 %v10332_v45  ;;  %v10342_v8 = vld [vmem:[#allocation74_spill] sm:$0xff]  ;;  %v10343_v45 = vld [vmem:[#allocation75_spill] sm:$0xff] }
 0x2c9   :  { %5219 = vmatpush1.bf16.msra.mxu0 %v10333_v15  ;;  %5283 = vmatpush1.bf16.msra.mxu1 %v10334_v32  ;;  %v10344_v15 = vld [vmem:[#allocation76_spill] sm:$0xff]  ;;  %v10345_v32 = vld [vmem:[#allocation77_spill] sm:$0xff] }
 0x2ca   :  { %5221 = vmatprep.subr.bf16.mxu0 %v10335_v28  ;;  %5285 = vmatprep.subr.bf16.mxu1 %v10336_v49  ;;  %v10346_v28 = vld [vmem:[#allocation78_spill] sm:$0xff]  ;;  %v10347_v49 = vld [vmem:[#allocation79_spill] sm:$0xff] }
 0x2cd   :  { %5223 = vmatpush1.bf16.msra.mxu0 %v10337_v42  ;;  %5287 = vmatpush1.bf16.msra.mxu1 %v10338_v6  ;;  %v10348_v42 = vld [vmem:[#allocation80_spill] sm:$0xff]  ;;  %v10349_v6 = vld [vmem:[#allocation81_spill] sm:$0xff] }
 0x2ce   :  { %5225 = vmatprep.subr.bf16.mxu0 %v10339_v4  ;;  %5289 = vmatprep.subr.bf16.mxu1 %v10340_v46  ;;  %v10350_v4 = vld [vmem:[#allocation82_spill] sm:$0xff]  ;;  %v10351_v46 = vld [vmem:[#allocation83_spill] sm:$0xff] }
 0x2d1   :  { %5227 = vmatpush1.bf16.msra.mxu0 %v10341_v61  ;;  %5291 = vmatpush1.bf16.msra.mxu1 %v10342_v8  ;;  %v10352_v61 = vld [vmem:[#allocation84_spill] sm:$0xff] }
 0x2d2   :  { %5229 = vmatprep.subr.bf16.mxu0 %v10343_v45  ;;  %5293 = vmatprep.subr.bf16.mxu1 %v10344_v15  ;;  %v400_v15 = vld [vmem:[%s9867_s5] sm:$0xf]  ;;  %s7872_s5 = smov [#allocation10]  }
 0x2d3   :  { %v8622_v30 = vrot.slane %v400_v15, %v10357_v41  ;;  %s4702_s24 = sshll.u32 %s7872_s5, 4  ;;  %s4703_s24 = int_to_ptr.vmem [resolvable:$true] %s4702_s24 }
 0x2d4   :  { %s7832_s25 = scalar_lea.vmem %s4703_s24, 256  ;;  %p7837_p5 = scmp.lt.s32.totalorder %s4703_s24, %s4703_s24 }
 0x2d5   :  { %5231 = vmatpush1.bf16.msra.mxu0 %v10345_v32  ;;  %5295 = vmatpush1.bf16.msra.mxu1 %v10346_v28  ;;  %v10353_v32 = vsub.s32 0, %v8273_v47  ;;  %10358 = vst [vmem:[#allocation154_spill] sm:$0xff] %v8622_v30  ;;  %p7833_p4 = scmp.ne.s32.totalorder %s4703_s24, %s7832_s25  ;;  %p7838_p6 = scmp.lt.s32.totalorder %s7832_s25, %s7832_s25 }
 0x2d6   :  { %5233 = vmatprep.subr.bf16.mxu0 %v10347_v49  ;;  %5297 = vmatprep.subr.bf16.mxu1 %v10348_v42  ;;  %v10355_v49 = vsub.s32 1, %v8273_v47 }
 0x2d7   :  { %v8612_v45 = vrot.slane %v400_v15, %v10353_v32  ;;  %p7839_p7 = por %p7838_p6, %p7837_p5 }
 0x2d8   :  { %v8616_v28 = vrot.slane %v400_v15, %v10355_v49  ;;  %v10359_v49 = vsub.s32 2, %v8273_v47 }
 0x2d9   :  { %5235 = vmatpush1.bf16.msra.mxu0 %v10349_v6  ;;  %5299 = vmatpush1.bf16.msra.mxu1 %v10350_v4  ;;  %10354 = vst [vmem:[#allocation152_spill] sm:$0xff] %v8612_v45  ;;  %p7840_p8 = pnand %p7839_p7, %p7833_p4 }
 0x2da   :  { %5301 = vmatprep.subr.bf16.mxu0 %v10351_v46  ;;  %5365 = vmatprep.subr.bf16.mxu1 %v10352_v61  ;;  %10356 = vst [vmem:[#allocation153_spill] sm:$0xff] %v8616_v28  ;;  %v8627_v62 = vrot.slane %v400_v15, %v10359_v49 }
 0x2dc   :  { %10360 = vst [vmem:[#allocation155_spill] sm:$0xff] %v8627_v62 }
 0x34e   :  { %v872_v42 = vpop.f32.mrb[4].mxu0  ;;  %v943_v6 = vpop.f32.mrb[4].mxu1 }
 0x34f   :  { %v873_v4 = vadd.f32 %v872_v42, %v8612_v45  ;;  %v874_v8 = vpop.f32.mrb[5].mxu0  ;;  %v945_v46 = vpop.f32.mrb[5].mxu1  ;;  %v944_v42 = vadd.f32 %v943_v6, %v8627_v62 }
 0x350   :  { %v875_v61 = vadd.f32 %v874_v8, %v8616_v28  ;;  %v946_v32 = vadd.f32 %v945_v46, %v8622_v30 }
 0x351   :  { %v4722_v0 = vmul.f32 -1.442695, %v873_v4 }
 0x352   :  { %v4723_v59 = vmul.f32 -1.442695, %v875_v61  ;;  %v4724_v5 = vmul.f32 -1.442695, %v946_v32 }
 0x353   :  { %7392 = vpow2.f32 %v4722_v0 }
 0x354   :  { %7394 = vpow2.f32 %v4723_v59 }
 0x355   :  { %7396 = vpow2.f32 %v4724_v5  ;;  %v10362_v5 = vld [vmem:[#allocation85_spill] sm:$0xff] }
 0x356   :  { %7398 = vtanh.f32 %v944_v42 }
 0x35d   :  { %v7393_v45 = vpop.eup %7392 }
 0x35e   :  { %v7395_v33 = vpop.eup %7394  ;;  %v951_v8 = vadd.f32 1.0, %v7393_v45 }
 0x35f   :  { %v957_v4 = vadd.f32 1.0, %v7395_v33  ;;  %v7397_v41 = vpop.eup %7396 }
 0x360   :  { %7400 = vrcp.f32 %v951_v8  ;;  %v7399_v0 = vpop.eup %7398  ;;  %v964_v30 = vadd.f32 1.0, %v7397_v41 }
 0x361   :  { %7402 = vrcp.f32 %v957_v4  ;;  %v974_v4 = vld [vmem:[#allocation2 + $0x8] sm:$0xff] }
 0x362   :  { %7404 = vrcp.f32 %v964_v30 }
 0x36a   :  { %v7401_v59 = vpop.eup %7400 }
 0x36b   :  { %v7403_v61 = vpop.eup %7402  ;;  %v968_v46 = vmul.f32 %v7401_v59, %v7399_v0 }
 0x36c   :  { %v967_v47 = vmul.f32 0.0, %v7403_v61  ;;  %v7405_v61 = vpop.eup %7404 }
 0x36e   :  { %v8630_v15 = vadd.f32 %v968_v46, %v967_v47  ;;  %v1041_v32 = vpop.f32.mrb[6].mxu0  ;;  %v1112_v49 = vpop.f32.mrb[6].mxu1 }
 0x36f   :  { %v1043_v6 = vpop.f32.mrb[7].mxu0  ;;  %v1114_v62 = vpop.f32.mrb[7].mxu1 }
 0x370   :  { %10361 = vst [vmem:[#allocation156_spill] sm:$0xff] %v8630_v15  ;;  %7406 = vtanh.f32 %v8630_v15  ;;  %v1121_v45 = vcombine.low %v1041_v32, %v1043_v6  ;;  %v1122_v33 = vcombine.low %v1112_v49, %v1114_v62 }
 0x372   :  { %v1129_v42 = vrot.slane %v1121_v45, %v10362_v5  ;;  %v1136_v8 = vrot.slane %v1122_v33, %v10362_v5 }
 0x374   :  { %v1137_v28 = vcombine.low %v1129_v42, %v1136_v8 }
 0x376   :  { %v1139_v0 = vadd.f32 %v1137_v28, %v974_v4 }
 0x378   :  { %v4725_v41 = vmul.f32 -1.442695, %v1139_v0  ;;  %v1147_v59 = vrot.slane %v1139_v0, 2  ;;  %v1158_v23 = vrot.slane %v1139_v0, 6  ;;  %v1155_v62 = vrot.slane %v1139_v0, 4 }
 0x37a   :  { %v7407_v46 = vpop.eup %7406  ;;  %7408 = vpow2.f32 %v4725_v41  ;;  %v4726_v47 = vmul.f32 -1.442695, %v1147_v59  ;;  %v4727_v15 = vmul.f32 -1.442695, %v1158_v23  ;;  %v10363_v41 = vld [vmem:[#allocation86_spill] sm:$0xff] }
 0x37b   :  { %v971_v30 = vmul.f32 %v7407_v46, %v7405_v61 }
 0x37c   :  { %7410 = vpow2.f32 %v4726_v47  ;;  %v10364_v47 = vld [vmem:[#allocation87_spill] sm:$0xff] }
 0x37d   :  { %972 = vst [vmem:[#allocation10] sm:$0x3] %v971_v30  ;;  %7412 = vpow2.f32 %v4727_v15 }
 0x384   :  { %v7409_v32 = vpop.eup %7408 }
 0x385   :  { %v1143_v49 = vadd.f32 1.0, %v7409_v32  ;;  %v10365_v32 = vld [vmem:[#allocation88_spill] sm:$0xff] }
 0x386   :  { %v7411_v6 = vpop.eup %7410 }
 0x387   :  { %7414 = vrcp.f32 %v1143_v49  ;;  %v1152_v45 = vadd.f32 1.0, %v7411_v6  ;;  %v7413_v28 = vpop.eup %7412  ;;  %v10367_v49 = vld [vmem:[#allocation90_spill] sm:$0xff]  ;;  %v10368_v6 = vld [vmem:[#allocation91_spill] sm:$0xff] }
 0x388   :  { %7416 = vtanh.f32 %v1155_v62  ;;  %v1163_v4 = vadd.f32 1.0, %v7413_v28  ;;  %v10366_v62 = vld [vmem:[#allocation89_spill] sm:$0xff]  ;;  %v10371_v28 = vld [vmem:[#allocation99_spill] sm:$0xff] }
 0x389   :  { %7418 = vrcp.f32 %v1152_v45  ;;  %v10369_v45 = vld [vmem:[#allocation92_spill] sm:$0xff] }
 0x38a   :  { %7420 = vrcp.f32 %v1163_v4  ;;  %v10375_v4 = vld [vmem:[#allocation103_spill] sm:$0xff] }
 0x391   :  { %v7415_v33 = vpop.eup %7414 }
 0x392   :  { %v7417_v42 = vpop.eup %7416 }
 0x393   :  { %v7419_v8 = vpop.eup %7418  ;;  %v1167_v61 = vmul.f32 %v7417_v42, %v7415_v33  ;;  %v10372_v33 = vld [vmem:[#allocation100_spill] sm:$0xff]  ;;  %v10373_v42 = vld [vmem:[#allocation101_spill] sm:$0xff] }
 0x394   :  { %v1166_v59 = vmul.f32 %v7419_v8, %v10363_v41  ;;  %v7421_v23 = vpop.eup %7420  ;;  %v10374_v8 = vld [vmem:[#allocation102_spill] sm:$0xff]  ;;  %v10376_v41 = vld [vmem:[#allocation104_spill] sm:$0xff] }
 0x396   :  { %v8636_v46 = vadd.f32 %v1167_v61, %v1166_v59  ;;  %v10377_v59 = vld [vmem:[#allocation105_spill] sm:$0xff]  ;;  %v10378_v61 = vld [vmem:[#allocation106_spill] sm:$0xff] }
 0x398   :  { %7422 = vtanh.f32 %v8636_v46 }
 0x3a2   :  { %v7423_v0 = vpop.eup %7422 }
 0x3a3   :  { %v8639_v15 = vmul.f32 %v7423_v0, %v7421_v23  ;;  %v10379_v23 = vld [vmem:[#allocation107_spill] sm:$0xff]  ;;  %v10380_v0 = vld [vmem:[#allocation108_spill] sm:$0xff] }
 0x3a5   :  { %1236 = vmatmul.mubr.f32.vlgmr.msra.gmra.mrb[8].mxu0 %v8639_v15  ;;  %1307 = vmatmul.mubr.f32.vlgmr.msra.gmra.mrb[8].mxu1 %v8639_v15 }
 0x3a6   :  { %1401 = vmatprep.mubr.f32.mxu0 %v971_v30  ;;  %1472 = vmatprep.mubr.f32.mxu1 %v971_v30  ;;  %v10370_v30 = vld [vmem:[#allocation98_spill] sm:$0xff] }
 0x3a7   :  { %5303 = vmatpush1.bf16.msra.mxu0 %v10364_v47  ;;  %5367 = vmatpush1.bf16.msra.mxu1 %v10365_v32 }
 0x3a8   :  { %5305 = vmatprep.subr.bf16.mxu0 %v10366_v62  ;;  %5369 = vmatprep.subr.bf16.mxu1 %v10367_v49 }
 0x3ab   :  { %5307 = vmatpush1.bf16.msra.mxu0 %v10368_v6  ;;  %5371 = vmatpush1.bf16.msra.mxu1 %v10369_v45 }
 0x3ac   :  { %5309 = vmatprep.subr.bf16.mxu0 %v8303_v56  ;;  %5373 = vmatprep.subr.bf16.mxu1 %v8305_v21 }
 0x3af   :  { %5311 = vmatpush1.bf16.msra.mxu0 %v8311_v24  ;;  %5375 = vmatpush1.bf16.msra.mxu1 %v8313_v48  ;;  %v10423_v48 = vld [vmem:[#allocation150_spill] sm:$0xff] }
 0x3b0   :  { %5313 = vmatprep.subr.bf16.mxu0 %v8317_v29  ;;  %5377 = vmatprep.subr.bf16.mxu1 %v10370_v30  ;;  %v10381_v30 = vld [vmem:[#allocation109_spill] sm:$0xff] }
 0x3b3   :  { %5315 = vmatpush1.bf16.msra.mxu0 %v10371_v28  ;;  %5379 = vmatpush1.bf16.msra.mxu1 %v10372_v33  ;;  %v10382_v28 = vld [vmem:[#allocation110_spill] sm:$0xff]  ;;  %v10383_v33 = vld [vmem:[#allocation111_spill] sm:$0xff] }
 0x3b4   :  { %5317 = vmatprep.subr.bf16.mxu0 %v10373_v42  ;;  %5381 = vmatprep.subr.bf16.mxu1 %v10374_v8  ;;  %v10384_v42 = vld [vmem:[#allocation112_spill] sm:$0xff]  ;;  %v10385_v8 = vld [vmem:[#allocation113_spill] sm:$0xff] }
 0x3b7   :  { %5319 = vmatpush1.bf16.msra.mxu0 %v10375_v4  ;;  %5383 = vmatpush1.bf16.msra.mxu1 %v10376_v41  ;;  %v10386_v4 = vld [vmem:[#allocation114_spill] sm:$0xff]  ;;  %v10387_v41 = vld [vmem:[#allocation115_spill] sm:$0xff] }
 0x3b8   :  { %5321 = vmatprep.subr.bf16.mxu0 %v10377_v59  ;;  %5385 = vmatprep.subr.bf16.mxu1 %v10378_v61  ;;  %v10388_v59 = vld [vmem:[#allocation116_spill] sm:$0xff]  ;;  %v10389_v61 = vld [vmem:[#allocation117_spill] sm:$0xff] }
 0x3bb   :  { %5323 = vmatpush1.bf16.msra.mxu0 %v10379_v23  ;;  %5387 = vmatpush1.bf16.msra.mxu1 %v10380_v0  ;;  %v10390_v23 = vld [vmem:[#allocation118_spill] sm:$0xff]  ;;  %v10391_v0 = vld [vmem:[#allocation119_spill] sm:$0xff] }
 0x3bc   :  { %5325 = vmatprep.subr.bf16.mxu0 %v10381_v30  ;;  %5389 = vmatprep.subr.bf16.mxu1 %v10382_v28  ;;  %v10392_v30 = vld [vmem:[#allocation120_spill] sm:$0xff]  ;;  %v10393_v28 = vld [vmem:[#allocation121_spill] sm:$0xff] }
 0x3bf   :  { %5327 = vmatpush1.bf16.msra.mxu0 %v10383_v33  ;;  %5391 = vmatpush1.bf16.msra.mxu1 %v10384_v42  ;;  %v10394_v33 = vld [vmem:[#allocation122_spill] sm:$0xff]  ;;  %v10395_v42 = vld [vmem:[#allocation123_spill] sm:$0xff] }
 0x3c0   :  { %5329 = vmatprep.subr.bf16.mxu0 %v10385_v8  ;;  %5393 = vmatprep.subr.bf16.mxu1 %v10386_v4  ;;  %v10396_v8 = vld [vmem:[#allocation124_spill] sm:$0xff]  ;;  %v10397_v4 = vld [vmem:[#allocation125_spill] sm:$0xff] }
 0x3c3   :  { %5331 = vmatpush1.bf16.msra.mxu0 %v10387_v41  ;;  %5395 = vmatpush1.bf16.msra.mxu1 %v10388_v59  ;;  %v10398_v41 = vld [vmem:[#allocation126_spill] sm:$0xff]  ;;  %v10399_v59 = vld [vmem:[#allocation127_spill] sm:$0xff] }
 0x3c4   :  { %5333 = vmatprep.subr.bf16.mxu0 %v10389_v61  ;;  %5397 = vmatprep.subr.bf16.mxu1 %v10390_v23  ;;  %v10400_v61 = vld [vmem:[#allocation128_spill] sm:$0xff]  ;;  %v10401_v23 = vld [vmem:[#allocation129_spill] sm:$0xff] }
 0x3c7   :  { %5335 = vmatpush1.bf16.msra.mxu0 %v10391_v0  ;;  %5399 = vmatpush1.bf16.msra.mxu1 %v10392_v30  ;;  %v10402_v0 = vld [vmem:[#allocation130_spill] sm:$0xff]  ;;  %v10403_v30 = vld [vmem:[#allocation131_spill] sm:$0xff] }
 0x3c8   :  { %5337 = vmatprep.subr.bf16.mxu0 %v10393_v28  ;;  %5401 = vmatprep.subr.bf16.mxu1 %v10394_v33  ;;  %v10404_v28 = vld [vmem:[#allocation132_spill] sm:$0xff]  ;;  %v10405_v33 = vld [vmem:[#allocation133_spill] sm:$0xff] }
 0x3cb   :  { %5339 = vmatpush1.bf16.msra.mxu0 %v10395_v42  ;;  %5403 = vmatpush1.bf16.msra.mxu1 %v10396_v8  ;;  %v10406_v42 = vld [vmem:[#allocation134_spill] sm:$0xff]  ;;  %v10407_v8 = vld [vmem:[#allocation135_spill] sm:$0xff] }
 0x3cc   :  { %5341 = vmatprep.subr.bf16.mxu0 %v10397_v4  ;;  %5405 = vmatprep.subr.bf16.mxu1 %v10398_v41  ;;  %v10408_v4 = vld [vmem:[#allocation136_spill] sm:$0xff]  ;;  %v10409_v41 = vld [vmem:[#allocation137_spill] sm:$0xff] }
 0x3cf   :  { %5343 = vmatpush1.bf16.msra.mxu0 %v10399_v59  ;;  %5407 = vmatpush1.bf16.msra.mxu1 %v10400_v61  ;;  %v10410_v59 = vld [vmem:[#allocation138_spill] sm:$0xff]  ;;  %v10411_v61 = vld [vmem:[#allocation139_spill] sm:$0xff] }
 0x3d0   :  { %5345 = vmatprep.subr.bf16.mxu0 %v10401_v23  ;;  %5409 = vmatprep.subr.bf16.mxu1 %v10402_v0  ;;  %v10412_v23 = vld [vmem:[#allocation140_spill] sm:$0xff]  ;;  %v10422_v0 = vld [vmem:[#allocation149_spill] sm:$0xff] }
 0x3d3   :  { %5347 = vmatpush1.bf16.msra.mxu0 %v10403_v30  ;;  %5411 = vmatpush1.bf16.msra.mxu1 %v10404_v28  ;;  %v10413_v30 = vld [vmem:[#allocation142_spill] sm:$0xff]  ;;  %v10414_v28 = vld [vmem:[#allocation143_spill] sm:$0xff] }
 0x3d4   :  { %5349 = vmatprep.subr.bf16.mxu0 %v10405_v33  ;;  %5413 = vmatprep.subr.bf16.mxu1 %v10406_v42  ;;  %v10415_v33 = vld [vmem:[#allocation144_spill] sm:$0xff]  ;;  %v10416_v42 = vld [vmem:[#allocation145_spill] sm:$0xff] }
 0x3d7   :  { %5351 = vmatpush1.bf16.msra.mxu0 %v10407_v8  ;;  %5415 = vmatpush1.bf16.msra.mxu1 %v10408_v4  ;;  %v10417_v8 = vld [vmem:[#allocation146_spill] sm:$0xff]  ;;  %v10418_v4 = vld [vmem:[#allocation147_spill] sm:$0xff] }
 0x3d8   :  { %5353 = vmatprep.subr.bf16.mxu0 %v10409_v41  ;;  %5417 = vmatprep.subr.bf16.mxu1 %v10410_v59  ;;  %v10419_v41 = vld [vmem:[#allocation148_spill] sm:$0xff]  ;;  %v10420_v59 = vld [vmem:[#allocation15_spill] sm:$0xff] }
 0x3db   :  { %5355 = vmatpush1.bf16.msra.mxu0 %v10411_v61  ;;  %5419 = vmatpush1.bf16.msra.mxu1 %v10412_v23  ;;  %v10421_v61 = vld [vmem:[#allocation16_spill] sm:$0xff] }
 0x3dc   :  { %5357 = vmatprep.subr.bf16.mxu0 %v8450_v3  ;;  %5421 = vmatprep.subr.bf16.mxu1 %v10413_v30 }
 0x3df   :  { %5359 = vmatpush1.bf16.msra.mxu0 %v10414_v28  ;;  %5423 = vmatpush1.bf16.msra.mxu1 %v10415_v33 }
 0x3e0   :  { %5361 = vmatprep.subr.bf16.mxu0 %v10416_v42  ;;  %5425 = vmatprep.subr.bf16.mxu1 %v10417_v8  ;;  %v10424_v8 = vld [vmem:[#allocation151_spill] sm:$0xff] }
 0x3e3   :  { %5363 = vmatpush1.bf16.msra.mxu0 %v10418_v4  ;;  %5427 = vmatpush1.bf16.msra.mxu1 %v10419_v41 }
 0x3e4   :  { %5429 = vmatprep.subr.bf16.mxu0 %v10420_v59  ;;  %5461 = vmatprep.subr.bf16.mxu1 %v10421_v61 }
 0x478   :  { %v1237_v23 = vpop.f32.mrb[8].mxu0  ;;  %v1308_v3 = vpop.f32.mrb[8].mxu1 }
 0x479   :  { %v1238_v30 = vadd.f32 %v1237_v23, %v10422_v0  ;;  %v1239_v29 = vpop.f32.mrb[9].mxu0  ;;  %v1310_v28 = vpop.f32.mrb[9].mxu1  ;;  %v1309_v41 = vadd.f32 %v1308_v3, %v8501_v58 }
 0x47a   :  { %v1240_v33 = vadd.f32 %v1239_v29, %v10423_v48  ;;  %v1311_v4 = vadd.f32 %v1310_v28, %v10424_v8 }
 0x47b   :  { %v4728_v24 = vmul.f32 -1.442695, %v1238_v30 }
 0x47c   :  { %v4729_v42 = vmul.f32 -1.442695, %v1240_v33  ;;  %v4730_v21 = vmul.f32 -1.442695, %v1311_v4 }
 0x47d   :  { %7424 = vpow2.f32 %v4728_v24 }
 0x47e   :  { %7426 = vpow2.f32 %v4729_v42 }
 0x47f   :  { %7428 = vpow2.f32 %v4730_v21 }
 0x480   :  { %7430 = vtanh.f32 %v1309_v41  ;;  %v10428_v41 = vld [vmem:[#allocation27_spill] sm:$0xff] }
 0x487   :  { %v7425_v59 = vpop.eup %7424 }
 0x488   :  { %v7427_v56 = vpop.eup %7426  ;;  %v1316_v61 = vadd.f32 1.0, %v7425_v59  ;;  %v10429_v59 = vld [vmem:[#allocation28_spill] sm:$0xff] }
 0x489   :  { %v1322_v45 = vadd.f32 1.0, %v7427_v56  ;;  %v7429_v23 = vpop.eup %7428  ;;  %v10425_v56 = vld [vmem:[#allocation24_spill] sm:$0xff] }
 0x48a   :  { %7432 = vrcp.f32 %v1316_v61  ;;  %v7431_v0 = vpop.eup %7430  ;;  %v1329_v24 = vadd.f32 1.0, %v7429_v23  ;;  %v10430_v61 = vld [vmem:[#allocation29_spill] sm:$0xff]  ;;  %v10433_v23 = vld [vmem:[#allocation32_spill] sm:$0xff] }
 0x48b   :  { %7434 = vrcp.f32 %v1322_v45  ;;  %v10427_v45 = vld [vmem:[#allocation26_spill] sm:$0xff] }
 0x48c   :  { %7436 = vrcp.f32 %v1329_v24  ;;  %v10437_v24 = vld [vmem:[#allocation36_spill] sm:$0xff] }
 0x494   :  { %v7433_v29 = vpop.eup %7432 }
 0x495   :  { %v7435_v30 = vpop.eup %7434  ;;  %v1333_v33 = vmul.f32 %v7433_v29, %v7431_v0  ;;  %v10432_v0 = vld [vmem:[#allocation31_spill] sm:$0xff]  ;;  %v10434_v29 = vld [vmem:[#allocation33_spill] sm:$0xff] }
 0x496   :  { %v1332_v42 = vmul.f32 %v7435_v30, %v8504_v38  ;;  %v7437_v3 = vpop.eup %7436  ;;  %v10426_v38 = vld [vmem:[#allocation25_spill] sm:$0xff]  ;;  %v10435_v30 = vld [vmem:[#allocation34_spill] sm:$0xff] }
 0x498   :  { %v8712_v28 = vadd.f32 %v1333_v33, %v1332_v42  ;;  %v10436_v33 = vld [vmem:[#allocation35_spill] sm:$0xff]  ;;  %v10438_v42 = vld [vmem:[#allocation37_spill] sm:$0xff] }
 0x49a   :  { %7438 = vtanh.f32 %v8712_v28 }
 0x4a4   :  { %v7439_v4 = vpop.eup %7438 }
 0x4a5   :  { %v1336_v21 = vmul.f32 %v7439_v4, %v7437_v3  ;;  %v10439_v3 = vld [vmem:[#allocation38_spill] sm:$0xff]  ;;  %v10440_v4 = vld [vmem:[#allocation39_spill] sm:$0xff] }
 0x4a7   :  { %1402 = vmatmul.mubr.f32.vlgmr.msra.gmra.mrb[10].mxu0 %v1336_v21  ;;  %1473 = vmatmul.mubr.f32.vlgmr.msra.gmra.mrb[10].mxu1 %v1336_v21 }
 0x4a8   :  { %5431 = vmatpush1.bf16.msra.mxu0 %v7979_v9  ;;  %5463 = vmatpush1.bf16.msra.mxu1 %v7982_v13 }
 0x4a9   :  { %5433 = vmatprep.subr.bf16.mxu0 %v7986_v17  ;;  %5465 = vmatprep.subr.bf16.mxu1 %v7988_v18 }
 0x4aa   :  { %1571 = vmatprep.mubr.f32.mxu0 %v10236_v14  ;;  %1642 = vmatprep.mubr.f32.mxu1 %v10236_v14 }
 0x4ac   :  { %5435 = vmatpush1.bf16.msra.mxu0 %v7991_v22  ;;  %5467 = vmatpush1.bf16.msra.mxu1 %v7995_v26 }
 0x4ad   :  { %5437 = vmatprep.subr.bf16.mxu0 %v7997_v27  ;;  %5469 = vmatprep.subr.bf16.mxu1 %v7999_v31 }
 0x4b0   :  { %5439 = vmatpush1.bf16.msra.mxu0 %v8002_v35  ;;  %5471 = vmatpush1.bf16.msra.mxu1 %v8006_v39 }
 0x4b1   :  { %5441 = vmatprep.subr.bf16.mxu0 %v8008_v40  ;;  %5473 = vmatprep.subr.bf16.mxu1 %v8011_v44 }
 0x4b4   :  { %5443 = vmatpush1.bf16.msra.mxu0 %v8014_v51  ;;  %5475 = vmatpush1.bf16.msra.mxu1 %v8018_v52 }
 0x4b5   :  { %5445 = vmatprep.subr.bf16.mxu0 %v8020_v53  ;;  %5477 = vmatprep.subr.bf16.mxu1 %v8023_v57 }
 0x4b8   :  { %5447 = vmatpush1.bf16.msra.mxu0 %v8026_v63  ;;  %5479 = vmatpush1.bf16.msra.mxu1 %v8030_v1 }
 0x4b9   :  { %5449 = vmatprep.subr.bf16.mxu0 %v8032_v2  ;;  %5481 = vmatprep.subr.bf16.mxu1 %v8035_v7 }
 0x4bc   :  { %5451 = vmatpush1.bf16.msra.mxu0 %v8038_v16  ;;  %5483 = vmatpush1.bf16.msra.mxu1 %v8042_v19 }
 0x4bd   :  { %5453 = vmatprep.subr.bf16.mxu0 %v8044_v20  ;;  %5485 = vmatprep.subr.bf16.mxu1 %v8047_v25 }
 0x4c0   :  { %5455 = vmatpush1.bf16.msra.mxu0 %v8050_v34  ;;  %5487 = vmatpush1.bf16.msra.mxu1 %v8054_v36 }
 0x4c1   :  { %5457 = vmatprep.subr.bf16.mxu0 %v8056_v37  ;;  %5489 = vmatprep.subr.bf16.mxu1 %v8059_v43 }
 0x4c4   :  { %5459 = vmatpush1.bf16.msra.mxu0 %v8062_v50  ;;  %5491 = vmatpush1.bf16.msra.mxu1 %v8066_v54 }
 0x4c5   :  { %5493 = vmatprep.subr.bf16.mxu0 %v8068_v55  ;;  %5557 = vmatprep.subr.bf16.mxu1 %v8071_v60 }
 0x4c7   :  { %1572 = vmatmul.mubr.f32.vlgmr.msra.gmra.mrb[12].mxu0 %v8639_v15  ;;  %1643 = vmatmul.mubr.f32.vlgmr.msra.gmra.mrb[12].mxu1 %v8639_v15  ;;  %v10431_v15 = vld [vmem:[#allocation30_spill] sm:$0xff] }
 0x4c8   :  { %1767 = vmatprep.mubr.f32.mxu0 %v1336_v21  ;;  %1838 = vmatprep.mubr.f32.mxu1 %v1336_v21  ;;  %v10441_v21 = vld [vmem:[#allocation40_spill] sm:$0xff] }
 0x4c9   :  { %5495 = vmatpush1.bf16.msra.mxu0 %v8074_v10  ;;  %5559 = vmatpush1.bf16.msra.mxu1 %v8078_v11 }
 0x4ca   :  { %5497 = vmatprep.subr.bf16.mxu0 %v8080_v12  ;;  %5561 = vmatprep.subr.bf16.mxu1 %v10425_v56 }
 0x4cd   :  { %5499 = vmatpush1.bf16.msra.mxu0 %v10426_v38  ;;  %5563 = vmatpush1.bf16.msra.mxu1 %v10427_v45 }
 0x4ce   :  { %5501 = vmatprep.subr.bf16.mxu0 %v10428_v41  ;;  %5565 = vmatprep.subr.bf16.mxu1 %v10429_v59  ;;  %v10487_v41 = vld [vmem:[#allocation153_spill] sm:$0xff] }
 0x4d1   :  { %5503 = vmatpush1.bf16.msra.mxu0 %v10430_v61  ;;  %5567 = vmatpush1.bf16.msra.mxu1 %v10431_v15  ;;  %v10442_v15 = vld [vmem:[#allocation41_spill] sm:$0xff]  ;;  %v10486_v61 = vld [vmem:[#allocation152_spill] sm:$0xff] }
 0x4d2   :  { %5505 = vmatprep.subr.bf16.mxu0 %v10432_v0  ;;  %5569 = vmatprep.subr.bf16.mxu1 %v10433_v23  ;;  %v10443_v0 = vld [vmem:[#allocation42_spill] sm:$0xff]  ;;  %v10444_v23 = vld [vmem:[#allocation43_spill] sm:$0xff] }
 0x4d5   :  { %5507 = vmatpush1.bf16.msra.mxu0 %v10434_v29  ;;  %5571 = vmatpush1.bf16.msra.mxu1 %v10435_v30  ;;  %v10445_v29 = vld [vmem:[#allocation44_spill] sm:$0xff]  ;;  %v10446_v30 = vld [vmem:[#allocation45_spill] sm:$0xff] }
 0x4d6   :  { %5509 = vmatprep.subr.bf16.mxu0 %v10436_v33  ;;  %5573 = vmatprep.subr.bf16.mxu1 %v10437_v24  ;;  %v10447_v33 = vld [vmem:[#allocation46_spill] sm:$0xff]  ;;  %v10448_v24 = vld [vmem:[#allocation47_spill] sm:$0xff] }
 0x4d9   :  { %5511 = vmatpush1.bf16.msra.mxu0 %v10438_v42  ;;  %5575 = vmatpush1.bf16.msra.mxu1 %v10439_v3  ;;  %v10449_v42 = vld [vmem:[#allocation48_spill] sm:$0xff]  ;;  %v10450_v3 = vld [vmem:[#allocation49_spill] sm:$0xff] }
 0x4da   :  { %5513 = vmatprep.subr.bf16.mxu0 %v10440_v4  ;;  %5577 = vmatprep.subr.bf16.mxu1 %v10441_v21  ;;  %v10451_v4 = vld [vmem:[#allocation50_spill] sm:$0xff]  ;;  %v10452_v21 = vld [vmem:[#allocation51_spill] sm:$0xff] }
 0x4dd   :  { %5515 = vmatpush1.bf16.msra.mxu0 %v10442_v15  ;;  %5579 = vmatpush1.bf16.msra.mxu1 %v10443_v0  ;;  %v10453_v15 = vld [vmem:[#allocation52_spill] sm:$0xff]  ;;  %v10454_v0 = vld [vmem:[#allocation53_spill] sm:$0xff] }
 0x4de   :  { %5517 = vmatprep.subr.bf16.mxu0 %v10444_v23  ;;  %5581 = vmatprep.subr.bf16.mxu1 %v10445_v29  ;;  %v10455_v23 = vld [vmem:[#allocation54_spill] sm:$0xff]  ;;  %v10456_v29 = vld [vmem:[#allocation55_spill] sm:$0xff] }
 0x4e1   :  { %5519 = vmatpush1.bf16.msra.mxu0 %v10446_v30  ;;  %5583 = vmatpush1.bf16.msra.mxu1 %v10447_v33  ;;  %v10457_v30 = vld [vmem:[#allocation56_spill] sm:$0xff]  ;;  %v10458_v33 = vld [vmem:[#allocation57_spill] sm:$0xff] }
 0x4e2   :  { %5521 = vmatprep.subr.bf16.mxu0 %v10448_v24  ;;  %5585 = vmatprep.subr.bf16.mxu1 %v10449_v42  ;;  %v10459_v24 = vld [vmem:[#allocation58_spill] sm:$0xff]  ;;  %v10460_v42 = vld [vmem:[#allocation59_spill] sm:$0xff] }
 0x4e5   :  { %5523 = vmatpush1.bf16.msra.mxu0 %v10450_v3  ;;  %5587 = vmatpush1.bf16.msra.mxu1 %v10451_v4  ;;  %v10461_v3 = vld [vmem:[#allocation60_spill] sm:$0xff]  ;;  %v10462_v4 = vld [vmem:[#allocation61_spill] sm:$0xff] }
 0x4e6   :  { %5525 = vmatprep.subr.bf16.mxu0 %v10452_v21  ;;  %5589 = vmatprep.subr.bf16.mxu1 %v10453_v15  ;;  %v10463_v21 = vld [vmem:[#allocation62_spill] sm:$0xff]  ;;  %v10464_v15 = vld [vmem:[#allocation63_spill] sm:$0xff] }
 0x4e9   :  { %5527 = vmatpush1.bf16.msra.mxu0 %v10454_v0  ;;  %5591 = vmatpush1.bf16.msra.mxu1 %v10455_v23  ;;  %v10465_v0 = vld [vmem:[#allocation64_spill] sm:$0xff]  ;;  %v10466_v23 = vld [vmem:[#allocation65_spill] sm:$0xff] }
 0x4ea   :  { %5529 = vmatprep.subr.bf16.mxu0 %v10456_v29  ;;  %5593 = vmatprep.subr.bf16.mxu1 %v10457_v30  ;;  %v10467_v29 = vld [vmem:[#allocation66_spill] sm:$0xff]  ;;  %v10468_v30 = vld [vmem:[#allocation67_spill] sm:$0xff] }
 0x4ed   :  { %5531 = vmatpush1.bf16.msra.mxu0 %v10458_v33  ;;  %5595 = vmatpush1.bf16.msra.mxu1 %v10459_v24  ;;  %v10469_v33 = vld [vmem:[#allocation68_spill] sm:$0xff]  ;;  %v10470_v24 = vld [vmem:[#allocation69_spill] sm:$0xff] }
 0x4ee   :  { %5533 = vmatprep.subr.bf16.mxu0 %v10460_v42  ;;  %5597 = vmatprep.subr.bf16.mxu1 %v10461_v3  ;;  %v10471_v42 = vld [vmem:[#allocation70_spill] sm:$0xff]  ;;  %v10472_v3 = vld [vmem:[#allocation71_spill] sm:$0xff] }
 0x4f1   :  { %5535 = vmatpush1.bf16.msra.mxu0 %v10462_v4  ;;  %5599 = vmatpush1.bf16.msra.mxu1 %v10463_v21  ;;  %v10473_v4 = vld [vmem:[#allocation72_spill] sm:$0xff]  ;;  %v10474_v21 = vld [vmem:[#allocation73_spill] sm:$0xff] }
 0x4f2   :  { %5537 = vmatprep.subr.bf16.mxu0 %v10464_v15  ;;  %5601 = vmatprep.subr.bf16.mxu1 %v10465_v0  ;;  %v10475_v15 = vld [vmem:[#allocation74_spill] sm:$0xff]  ;;  %v10476_v0 = vld [vmem:[#allocation75_spill] sm:$0xff] }
 0x4f5   :  { %5539 = vmatpush1.bf16.msra.mxu0 %v10466_v23  ;;  %5603 = vmatpush1.bf16.msra.mxu1 %v10467_v29  ;;  %v10477_v23 = vld [vmem:[#allocation76_spill] sm:$0xff]  ;;  %v10478_v29 = vld [vmem:[#allocation77_spill] sm:$0xff] }
 0x4f6   :  { %5541 = vmatprep.subr.bf16.mxu0 %v10468_v30  ;;  %5605 = vmatprep.subr.bf16.mxu1 %v10469_v33  ;;  %v10479_v30 = vld [vmem:[#allocation78_spill] sm:$0xff]  ;;  %v10480_v33 = vld [vmem:[#allocation79_spill] sm:$0xff] }
 0x4f9   :  { %5543 = vmatpush1.bf16.msra.mxu0 %v10470_v24  ;;  %5607 = vmatpush1.bf16.msra.mxu1 %v10471_v42  ;;  %v10481_v24 = vld [vmem:[#allocation80_spill] sm:$0xff]  ;;  %v10482_v42 = vld [vmem:[#allocation81_spill] sm:$0xff] }
 0x4fa   :  { %5545 = vmatprep.subr.bf16.mxu0 %v10472_v3  ;;  %5609 = vmatprep.subr.bf16.mxu1 %v10473_v4  ;;  %v10483_v3 = vld [vmem:[#allocation82_spill] sm:$0xff]  ;;  %v10484_v4 = vld [vmem:[#allocation83_spill] sm:$0xff] }
 0x4fd   :  { %5547 = vmatpush1.bf16.msra.mxu0 %v10474_v21  ;;  %5611 = vmatpush1.bf16.msra.mxu1 %v10475_v15  ;;  %v10485_v21 = vld [vmem:[#allocation84_spill] sm:$0xff] }
 0x4fe   :  { %5549 = vmatprep.subr.bf16.mxu0 %v10476_v0  ;;  %5613 = vmatprep.subr.bf16.mxu1 %v10477_v23 }
 0x501   :  { %5551 = vmatpush1.bf16.msra.mxu0 %v10478_v29  ;;  %5615 = vmatpush1.bf16.msra.mxu1 %v10479_v30 }
 0x502   :  { %5553 = vmatprep.subr.bf16.mxu0 %v10480_v33  ;;  %5617 = vmatprep.subr.bf16.mxu1 %v10481_v24  ;;  %v10488_v24 = vld [vmem:[#allocation154_spill] sm:$0xff] }
 0x505   :  { %5555 = vmatpush1.bf16.msra.mxu0 %v10482_v42  ;;  %5619 = vmatpush1.bf16.msra.mxu1 %v10483_v3  ;;  %v10489_v3 = vld [vmem:[#allocation155_spill] sm:$0xff] }
 0x506   :  { %5621 = vmatprep.subr.bf16.mxu0 %v10484_v4  ;;  %5685 = vmatprep.subr.bf16.mxu1 %v10485_v21 }
 0x57a   :  { %v1403_v15 = vpop.f32.mrb[10].mxu0  ;;  %v1474_v0 = vpop.f32.mrb[10].mxu1 }
 0x57b   :  { %v1404_v23 = vadd.f32 %v1403_v15, %v10486_v61  ;;  %v1405_v59 = vpop.f32.mrb[11].mxu0  ;;  %v1476_v29 = vpop.f32.mrb[11].mxu1  ;;  %v1475_v56 = vadd.f32 %v1474_v0, %v10489_v3 }
 0x57c   :  { %v1406_v30 = vadd.f32 %v1405_v59, %v10487_v41  ;;  %v1477_v42 = vadd.f32 %v1476_v29, %v10488_v24 }
 0x57d   :  { %v4731_v45 = vmul.f32 -1.442695, %v1404_v23 }
 0x57e   :  { %v4732_v33 = vmul.f32 -1.442695, %v1406_v30  ;;  %v4733_v38 = vmul.f32 -1.442695, %v1477_v42 }
 0x57f   :  { %7440 = vpow2.f32 %v4731_v45 }
 0x580   :  { %7442 = vpow2.f32 %v4732_v33  ;;  %v10490_v33 = vld [vmem:[#allocation156_spill] sm:$0xff] }
 0x581   :  { %7444 = vpow2.f32 %v4733_v38 }
 0x582   :  { %7446 = vtanh.f32 %v1475_v56 }
 0x589   :  { %v7441_v4 = vpop.eup %7440 }
 0x58a   :  { %v7443_v12 = vpop.eup %7442  ;;  %v1482_v21 = vadd.f32 1.0, %v7441_v4 }
 0x58b   :  { %v1488_v11 = vadd.f32 1.0, %v7443_v12  ;;  %v7445_v15 = vpop.eup %7444 }
 0x58c   :  { %7448 = vrcp.f32 %v1482_v21  ;;  %v7447_v61 = vpop.eup %7446  ;;  %v1495_v45 = vadd.f32 1.0, %v7445_v15  ;;  %v1506_v21 = vld [vmem:[#allocation2 + $0x10] sm:$0xff] }
 0x58d   :  { %7450 = vrcp.f32 %v1488_v11 }
 0x58e   :  { %7452 = vrcp.f32 %v1495_v45 }
 0x596   :  { %v7449_v59 = vpop.eup %7448 }
 0x597   :  { %v7451_v23 = vpop.eup %7450  ;;  %v1499_v30 = vmul.f32 %v7449_v59, %v7447_v61 }
 0x598   :  { %v1498_v41 = vmul.f32 %v7451_v23, %v10490_v33  ;;  %v7453_v33 = vpop.eup %7452 }
 0x59a   :  { %v1573_v29 = vpop.f32.mrb[12].mxu0  ;;  %v1644_v42 = vpop.f32.mrb[12].mxu1  ;;  %v8820_v24 = vadd.f32 %v1499_v30, %v1498_v41 }
 0x59b   :  { %v1575_v0 = vpop.f32.mrb[13].mxu0  ;;  %v1646_v4 = vpop.f32.mrb[13].mxu1 }
 0x59c   :  { %v1653_v38 = vcombine.low %v1573_v29, %v1575_v0  ;;  %v1654_v56 = vcombine.low %v1644_v42, %v1646_v4  ;;  %7454 = vtanh.f32 %v8820_v24 }
 0x59e   :  { %v1661_v11 = vrot.slane %v1653_v38, %v10362_v5  ;;  %v1668_v12 = vrot.slane %v1654_v56, %v10362_v5 }
 0x5a0   :  { %v1669_v61 = vcombine.low %v1661_v11, %v1668_v12 }
 0x5a2   :  { %v1671_v15 = vadd.f32 %v1669_v61, %v1506_v21 }
 0x5a4   :  { %v4734_v59 = vmul.f32 -1.442695, %v1671_v15  ;;  %v1679_v23 = vrot.slane %v1671_v15, 2  ;;  %v1690_v45 = vrot.slane %v1671_v15, 6  ;;  %v1687_v0 = vrot.slane %v1671_v15, 4 }
 0x5a6   :  { %v7455_v3 = vpop.eup %7454  ;;  %7456 = vpow2.f32 %v4734_v59  ;;  %v4735_v41 = vmul.f32 -1.442695, %v1679_v23  ;;  %v4736_v29 = vmul.f32 -1.442695, %v1690_v45 }
 0x5a7   :  { %v1502_v30 = vmul.f32 %v7455_v3, %v7453_v33 }
 0x5a8   :  { %7458 = vpow2.f32 %v4735_v41 }
 0x5a9   :  { %1504 = vst [vmem:[#allocation10 + $0x2] sm:$0x3] %v1502_v30  ;;  %7460 = vpow2.f32 %v4736_v29  ;;  %v10492_v29 = vld [vmem:[#allocation93_spill] sm:$0xff] }
 0x5b0   :  { %v7457_v42 = vpop.eup %7456 }
 0x5b1   :  { %v1675_v4 = vadd.f32 1.0, %v7457_v42  ;;  %v10493_v42 = vld [vmem:[#allocation94_spill] sm:$0xff] }
 0x5b2   :  { %v7459_v38 = vpop.eup %7458 }
 0x5b3   :  { %7462 = vrcp.f32 %v1675_v4  ;;  %v1684_v56 = vadd.f32 1.0, %v7459_v38  ;;  %v7461_v11 = vpop.eup %7460  ;;  %v10495_v4 = vld [vmem:[#allocation96_spill] sm:$0xff]  ;;  %v10497_v38 = vld [vmem:[#allocation98_spill] sm:$0xff] }
 0x5b4   :  { %7464 = vtanh.f32 %v1687_v0  ;;  %v1695_v59 = vadd.f32 1.0, %v7461_v11  ;;  %v10494_v0 = vld [vmem:[#allocation95_spill] sm:$0xff]  ;;  %v10499_v11 = vld [vmem:[#allocation100_spill] sm:$0xff] }
 0x5b5   :  { %7466 = vrcp.f32 %v1684_v56  ;;  %v10498_v56 = vld [vmem:[#allocation99_spill] sm:$0xff] }
 0x5b6   :  { %7468 = vrcp.f32 %v1695_v59  ;;  %v10503_v59 = vld [vmem:[#allocation104_spill] sm:$0xff] }
 0x5bd   :  { %v7463_v12 = vpop.eup %7462 }
 0x5be   :  { %v7465_v21 = vpop.eup %7464 }
 0x5bf   :  { %v7467_v61 = vpop.eup %7466  ;;  %v1699_v23 = vmul.f32 %v7465_v21, %v7463_v12  ;;  %v10500_v12 = vld [vmem:[#allocation101_spill] sm:$0xff]  ;;  %v10501_v21 = vld [vmem:[#allocation102_spill] sm:$0xff] }
 0x5c0   :  { %v1698_v3 = vmul.f32 %v7467_v61, %v8636_v46  ;;  %v7469_v15 = vpop.eup %7468  ;;  %v10491_v46 = vld [vmem:[#allocation92_spill] sm:$0xff]  ;;  %v10502_v61 = vld [vmem:[#allocation103_spill] sm:$0xff] }
 0x5c2   :  { %v8826_v33 = vadd.f32 %v1699_v23, %v1698_v3  ;;  %v10504_v3 = vld [vmem:[#allocation105_spill] sm:$0xff]  ;;  %v10505_v23 = vld [vmem:[#allocation106_spill] sm:$0xff] }
 0x5c4   :  { %7470 = vtanh.f32 %v8826_v33 }
 0x5ce   :  { %v7471_v41 = vpop.eup %7470 }
 0x5cf   :  { %v8829_v45 = vmul.f32 %v7471_v41, %v7469_v15  ;;  %v10506_v15 = vld [vmem:[#allocation107_spill] sm:$0xff]  ;;  %v10507_v41 = vld [vmem:[#allocation108_spill] sm:$0xff] }
 0x5d1   :  { %1768 = vmatmul.mubr.f32.vlgmr.msra.gmra.mrb[14].mxu0 %v8829_v45  ;;  %1839 = vmatmul.mubr.f32.vlgmr.msra.gmra.mrb[14].mxu1 %v8829_v45 }
 0x5d2   :  { %1933 = vmatprep.mubr.f32.mxu0 %v1502_v30  ;;  %2004 = vmatprep.mubr.f32.mxu1 %v1502_v30  ;;  %v10496_v30 = vld [vmem:[#allocation97_spill] sm:$0xff] }
 0x5d3   :  { %5623 = vmatpush1.bf16.msra.mxu0 %v10364_v47  ;;  %5687 = vmatpush1.bf16.msra.mxu1 %v10365_v32 }
 0x5d4   :  { %5625 = vmatprep.subr.bf16.mxu0 %v10366_v62  ;;  %5689 = vmatprep.subr.bf16.mxu1 %v10367_v49 }
 0x5d7   :  { %5627 = vmatpush1.bf16.msra.mxu0 %v10368_v6  ;;  %5691 = vmatpush1.bf16.msra.mxu1 %v10491_v46 }
 0x5d8   :  { %5629 = vmatprep.subr.bf16.mxu0 %v10492_v29  ;;  %5693 = vmatprep.subr.bf16.mxu1 %v10493_v42 }
 0x5db   :  { %5631 = vmatpush1.bf16.msra.mxu0 %v10494_v0  ;;  %5695 = vmatpush1.bf16.msra.mxu1 %v10495_v4 }
 0x5dc   :  { %5633 = vmatprep.subr.bf16.mxu0 %v10496_v30  ;;  %5697 = vmatprep.subr.bf16.mxu1 %v10497_v38  ;;  %v10508_v38 = vld [vmem:[#allocation109_spill] sm:$0xff] }
 0x5dd   :  { %v10550_v30 = vld [vmem:[#allocation149_spill] sm:$0xff] }
 0x5df   :  { %5635 = vmatpush1.bf16.msra.mxu0 %v10498_v56  ;;  %5699 = vmatpush1.bf16.msra.mxu1 %v10499_v11  ;;  %v10509_v56 = vld [vmem:[#allocation110_spill] sm:$0xff]  ;;  %v10510_v11 = vld [vmem:[#allocation111_spill] sm:$0xff] }
 0x5e0   :  { %5637 = vmatprep.subr.bf16.mxu0 %v10500_v12  ;;  %5701 = vmatprep.subr.bf16.mxu1 %v10501_v21  ;;  %v10511_v12 = vld [vmem:[#allocation112_spill] sm:$0xff]  ;;  %v10512_v21 = vld [vmem:[#allocation113_spill] sm:$0xff] }
 0x5e3   :  { %5639 = vmatpush1.bf16.msra.mxu0 %v10502_v61  ;;  %5703 = vmatpush1.bf16.msra.mxu1 %v10503_v59  ;;  %v10513_v61 = vld [vmem:[#allocation114_spill] sm:$0xff]  ;;  %v10514_v59 = vld [vmem:[#allocation115_spill] sm:$0xff] }
 0x5e4   :  { %5641 = vmatprep.subr.bf16.mxu0 %v10504_v3  ;;  %5705 = vmatprep.subr.bf16.mxu1 %v10505_v23  ;;  %v10515_v3 = vld [vmem:[#allocation116_spill] sm:$0xff]  ;;  %v10516_v23 = vld [vmem:[#allocation117_spill] sm:$0xff] }
 0x5e7   :  { %5643 = vmatpush1.bf16.msra.mxu0 %v10506_v15  ;;  %5707 = vmatpush1.bf16.msra.mxu1 %v10507_v41  ;;  %v10517_v15 = vld [vmem:[#allocation118_spill] sm:$0xff]  ;;  %v10518_v41 = vld [vmem:[#allocation119_spill] sm:$0xff] }
 0x5e8   :  { %5645 = vmatprep.subr.bf16.mxu0 %v10508_v38  ;;  %5709 = vmatprep.subr.bf16.mxu1 %v10509_v56  ;;  %v10519_v38 = vld [vmem:[#allocation120_spill] sm:$0xff]  ;;  %v10520_v56 = vld [vmem:[#allocation121_spill] sm:$0xff] }
 0x5eb   :  { %5647 = vmatpush1.bf16.msra.mxu0 %v10510_v11  ;;  %5711 = vmatpush1.bf16.msra.mxu1 %v10511_v12  ;;  %v10521_v11 = vld [vmem:[#allocation122_spill] sm:$0xff]  ;;  %v10522_v12 = vld [vmem:[#allocation123_spill] sm:$0xff] }
 0x5ec   :  { %5649 = vmatprep.subr.bf16.mxu0 %v10512_v21  ;;  %5713 = vmatprep.subr.bf16.mxu1 %v10513_v61  ;;  %v10523_v21 = vld [vmem:[#allocation124_spill] sm:$0xff]  ;;  %v10524_v61 = vld [vmem:[#allocation125_spill] sm:$0xff] }
 0x5ef   :  { %5651 = vmatpush1.bf16.msra.mxu0 %v10514_v59  ;;  %5715 = vmatpush1.bf16.msra.mxu1 %v10515_v3  ;;  %v10525_v59 = vld [vmem:[#allocation126_spill] sm:$0xff]  ;;  %v10526_v3 = vld [vmem:[#allocation127_spill] sm:$0xff] }
 0x5f0   :  { %5653 = vmatprep.subr.bf16.mxu0 %v10516_v23  ;;  %5717 = vmatprep.subr.bf16.mxu1 %v10517_v15  ;;  %v10527_v23 = vld [vmem:[#allocation128_spill] sm:$0xff]  ;;  %v10528_v15 = vld [vmem:[#allocation129_spill] sm:$0xff] }
 0x5f3   :  { %5655 = vmatpush1.bf16.msra.mxu0 %v10518_v41  ;;  %5719 = vmatpush1.bf16.msra.mxu1 %v10519_v38  ;;  %v10529_v41 = vld [vmem:[#allocation130_spill] sm:$0xff]  ;;  %v10530_v38 = vld [vmem:[#allocation131_spill] sm:$0xff] }
 0x5f4   :  { %5657 = vmatprep.subr.bf16.mxu0 %v10520_v56  ;;  %5721 = vmatprep.subr.bf16.mxu1 %v10521_v11  ;;  %v10531_v56 = vld [vmem:[#allocation132_spill] sm:$0xff]  ;;  %v10532_v11 = vld [vmem:[#allocation133_spill] sm:$0xff] }
 0x5f7   :  { %5659 = vmatpush1.bf16.msra.mxu0 %v10522_v12  ;;  %5723 = vmatpush1.bf16.msra.mxu1 %v10523_v21  ;;  %v10533_v12 = vld [vmem:[#allocation134_spill] sm:$0xff]  ;;  %v10534_v21 = vld [vmem:[#allocation135_spill] sm:$0xff] }
 0x5f8   :  { %5661 = vmatprep.subr.bf16.mxu0 %v10524_v61  ;;  %5725 = vmatprep.subr.bf16.mxu1 %v10525_v59  ;;  %v10535_v61 = vld [vmem:[#allocation136_spill] sm:$0xff]  ;;  %v10536_v59 = vld [vmem:[#allocation137_spill] sm:$0xff] }
 0x5fb   :  { %5663 = vmatpush1.bf16.msra.mxu0 %v10526_v3  ;;  %5727 = vmatpush1.bf16.msra.mxu1 %v10527_v23  ;;  %v10537_v3 = vld [vmem:[#allocation138_spill] sm:$0xff]  ;;  %v10538_v23 = vld [vmem:[#allocation139_spill] sm:$0xff] }
 0x5fc   :  { %5665 = vmatprep.subr.bf16.mxu0 %v10528_v15  ;;  %5729 = vmatprep.subr.bf16.mxu1 %v10529_v41  ;;  %v10539_v15 = vld [vmem:[#allocation140_spill] sm:$0xff]  ;;  %v10540_v41 = vld [vmem:[#allocation141_spill] sm:$0xff] }
 0x5ff   :  { %5667 = vmatpush1.bf16.msra.mxu0 %v10530_v38  ;;  %5731 = vmatpush1.bf16.msra.mxu1 %v10531_v56  ;;  %v10541_v38 = vld [vmem:[#allocation142_spill] sm:$0xff]  ;;  %v10542_v56 = vld [vmem:[#allocation143_spill] sm:$0xff] }
 0x600   :  { %5669 = vmatprep.subr.bf16.mxu0 %v10532_v11  ;;  %5733 = vmatprep.subr.bf16.mxu1 %v10533_v12  ;;  %v10543_v11 = vld [vmem:[#allocation144_spill] sm:$0xff]  ;;  %v10544_v12 = vld [vmem:[#allocation145_spill] sm:$0xff] }
 0x603   :  { %5671 = vmatpush1.bf16.msra.mxu0 %v10534_v21  ;;  %5735 = vmatpush1.bf16.msra.mxu1 %v10535_v61  ;;  %v10545_v21 = vld [vmem:[#allocation146_spill] sm:$0xff]  ;;  %v10546_v61 = vld [vmem:[#allocation147_spill] sm:$0xff] }
 0x604   :  { %5673 = vmatprep.subr.bf16.mxu0 %v10536_v59  ;;  %5737 = vmatprep.subr.bf16.mxu1 %v10537_v3  ;;  %v10547_v59 = vld [vmem:[#allocation148_spill] sm:$0xff]  ;;  %v10548_v3 = vld [vmem:[#allocation15_spill] sm:$0xff] }
 0x607   :  { %5675 = vmatpush1.bf16.msra.mxu0 %v10538_v23  ;;  %5739 = vmatpush1.bf16.msra.mxu1 %v10539_v15  ;;  %v10549_v23 = vld [vmem:[#allocation16_spill] sm:$0xff] }
 0x608   :  { %5677 = vmatprep.subr.bf16.mxu0 %v10540_v41  ;;  %5741 = vmatprep.subr.bf16.mxu1 %v10541_v38 }
 0x60b   :  { %5679 = vmatpush1.bf16.msra.mxu0 %v10542_v56  ;;  %5743 = vmatpush1.bf16.msra.mxu1 %v10543_v11 }
 0x60c   :  { %5681 = vmatprep.subr.bf16.mxu0 %v10544_v12  ;;  %5745 = vmatprep.subr.bf16.mxu1 %v10545_v21 }
 0x60f   :  { %5683 = vmatpush1.bf16.msra.mxu0 %v10546_v61  ;;  %5747 = vmatpush1.bf16.msra.mxu1 %v10547_v59 }
 0x610   :  { %5749 = vmatprep.subr.bf16.mxu0 %v10548_v3  ;;  %5781 = vmatprep.subr.bf16.mxu1 %v10549_v23 }
 0x6a4   :  { %v1769_v15 = vpop.f32.mrb[14].mxu0  ;;  %v1840_v41 = vpop.f32.mrb[14].mxu1 }
 0x6a5   :  { %v1770_v38 = vadd.f32 %v1769_v15, %v10550_v30  ;;  %v1771_v4 = vpop.f32.mrb[15].mxu0  ;;  %v1842_v56 = vpop.f32.mrb[15].mxu1  ;;  %v1841_v59 = vadd.f32 %v1840_v41, %v8501_v58  ;;  %v10557_v41 = vld [vmem:[#allocation28_spill] sm:$0xff] }
 0x6a6   :  { %v1772_v11 = vadd.f32 %v1771_v4, %v10423_v48  ;;  %v1843_v61 = vadd.f32 %v1842_v56, %v10424_v8 }
 0x6a7   :  { %v4737_v0 = vmul.f32 -1.442695, %v1770_v38 }
 0x6a8   :  { %v4738_v12 = vmul.f32 -1.442695, %v1772_v11  ;;  %v4739_v21 = vmul.f32 -1.442695, %v1843_v61 }
 0x6a9   :  { %7472 = vpow2.f32 %v4737_v0 }
 0x6aa   :  { %7474 = vpow2.f32 %v4738_v12 }
 0x6ab   :  { %7476 = vpow2.f32 %v4739_v21 }
 0x6ac   :  { %7478 = vtanh.f32 %v1841_v59  ;;  %v10555_v59 = vld [vmem:[#allocation26_spill] sm:$0xff] }
 0x6b3   :  { %v7473_v3 = vpop.eup %7472 }
 0x6b4   :  { %v7475_v42 = vpop.eup %7474  ;;  %v1848_v23 = vadd.f32 1.0, %v7473_v3 }
 0x6b5   :  { %v1854_v29 = vadd.f32 1.0, %v7475_v42  ;;  %v7477_v15 = vpop.eup %7476  ;;  %v10553_v42 = vld [vmem:[#allocation24_spill] sm:$0xff] }
 0x6b6   :  { %7480 = vrcp.f32 %v1848_v23  ;;  %v7479_v30 = vpop.eup %7478  ;;  %v1861_v0 = vadd.f32 1.0, %v7477_v15  ;;  %v10556_v23 = vld [vmem:[#allocation27_spill] sm:$0xff]  ;;  %v10558_v15 = vld [vmem:[#allocation29_spill] sm:$0xff] }
 0x6b7   :  { %7482 = vrcp.f32 %v1854_v29  ;;  %v10552_v29 = vld [vmem:[#allocation23_spill] sm:$0xff] }
 0x6b8   :  { %7484 = vrcp.f32 %v1861_v0  ;;  %v10563_v0 = vld [vmem:[#allocation34_spill] sm:$0xff] }
 0x6c0   :  { %v7481_v4 = vpop.eup %7480 }
 0x6c1   :  { %v7483_v38 = vpop.eup %7482  ;;  %v1865_v11 = vmul.f32 %v7481_v4, %v7479_v30  ;;  %v10554_v30 = vld [vmem:[#allocation25_spill] sm:$0xff]  ;;  %v10560_v4 = vld [vmem:[#allocation31_spill] sm:$0xff] }
 0x6c2   :  { %v1864_v12 = vmul.f32 %v7483_v38, %v8712_v28  ;;  %v7485_v61 = vpop.eup %7484  ;;  %v10551_v28 = vld [vmem:[#allocation22_spill] sm:$0xff]  ;;  %v10561_v38 = vld [vmem:[#allocation32_spill] sm:$0xff] }
 0x6c4   :  { %v8902_v56 = vadd.f32 %v1865_v11, %v1864_v12  ;;  %v10562_v11 = vld [vmem:[#allocation33_spill] sm:$0xff]  ;;  %v10564_v12 = vld [vmem:[#allocation35_spill] sm:$0xff] }
 0x6c6   :  { %7486 = vtanh.f32 %v8902_v56 }
 0x6d0   :  { %v7487_v3 = vpop.eup %7486 }
 0x6d1   :  { %v1868_v21 = vmul.f32 %v7487_v3, %v7485_v61  ;;  %v10565_v61 = vld [vmem:[#allocation36_spill] sm:$0xff]  ;;  %v10566_v3 = vld [vmem:[#allocation37_spill] sm:$0xff] }
 0x6d3   :  { %1934 = vmatmul.mubr.f32.vlgmr.msra.gmra.mrb[16].mxu0 %v1868_v21  ;;  %2005 = vmatmul.mubr.f32.vlgmr.msra.gmra.mrb[16].mxu1 %v1868_v21 }
 0x6d4   :  { %5751 = vmatpush1.bf16.msra.mxu0 %v7979_v9  ;;  %5783 = vmatpush1.bf16.msra.mxu1 %v7982_v13 }
 0x6d5   :  { %5753 = vmatprep.subr.bf16.mxu0 %v7986_v17  ;;  %5785 = vmatprep.subr.bf16.mxu1 %v7988_v18 }
 0x6d6   :  { %2103 = vmatprep.mubr.f32.mxu0 %v10236_v14  ;;  %2174 = vmatprep.mubr.f32.mxu1 %v10236_v14 }
 0x6d8   :  { %5755 = vmatpush1.bf16.msra.mxu0 %v7991_v22  ;;  %5787 = vmatpush1.bf16.msra.mxu1 %v7995_v26 }
 0x6d9   :  { %5757 = vmatprep.subr.bf16.mxu0 %v7997_v27  ;;  %5789 = vmatprep.subr.bf16.mxu1 %v7999_v31 }
 0x6dc   :  { %5759 = vmatpush1.bf16.msra.mxu0 %v8002_v35  ;;  %5791 = vmatpush1.bf16.msra.mxu1 %v8006_v39 }
 0x6dd   :  { %5761 = vmatprep.subr.bf16.mxu0 %v8008_v40  ;;  %5793 = vmatprep.subr.bf16.mxu1 %v8011_v44 }
 0x6e0   :  { %5763 = vmatpush1.bf16.msra.mxu0 %v8014_v51  ;;  %5795 = vmatpush1.bf16.msra.mxu1 %v8018_v52 }
 0x6e1   :  { %5765 = vmatprep.subr.bf16.mxu0 %v8020_v53  ;;  %5797 = vmatprep.subr.bf16.mxu1 %v8023_v57 }
 0x6e4   :  { %5767 = vmatpush1.bf16.msra.mxu0 %v8026_v63  ;;  %5799 = vmatpush1.bf16.msra.mxu1 %v8030_v1 }
 0x6e5   :  { %5769 = vmatprep.subr.bf16.mxu0 %v8032_v2  ;;  %5801 = vmatprep.subr.bf16.mxu1 %v8035_v7 }
 0x6e8   :  { %5771 = vmatpush1.bf16.msra.mxu0 %v8038_v16  ;;  %5803 = vmatpush1.bf16.msra.mxu1 %v8042_v19 }
 0x6e9   :  { %5773 = vmatprep.subr.bf16.mxu0 %v8044_v20  ;;  %5805 = vmatprep.subr.bf16.mxu1 %v8047_v25 }
 0x6ec   :  { %5775 = vmatpush1.bf16.msra.mxu0 %v8050_v34  ;;  %5807 = vmatpush1.bf16.msra.mxu1 %v8054_v36 }
 0x6ed   :  { %5777 = vmatprep.subr.bf16.mxu0 %v8056_v37  ;;  %5809 = vmatprep.subr.bf16.mxu1 %v8059_v43 }
 0x6f0   :  { %5779 = vmatpush1.bf16.msra.mxu0 %v8062_v50  ;;  %5811 = vmatpush1.bf16.msra.mxu1 %v8066_v54 }
 0x6f1   :  { %5813 = vmatprep.subr.bf16.mxu0 %v8068_v55  ;;  %5877 = vmatprep.subr.bf16.mxu1 %v8071_v60 }
 0x6f3   :  { %2104 = vmatmul.mubr.f32.vlgmr.msra.gmra.mrb[18].mxu0 %v8829_v45  ;;  %2175 = vmatmul.mubr.f32.vlgmr.msra.gmra.mrb[18].mxu1 %v8829_v45  ;;  %v10559_v45 = vld [vmem:[#allocation30_spill] sm:$0xff] }
 0x6f4   :  { %2299 = vmatprep.mubr.f32.mxu0 %v1868_v21  ;;  %2370 = vmatprep.mubr.f32.mxu1 %v1868_v21  ;;  %v10567_v21 = vld [vmem:[#allocation38_spill] sm:$0xff] }
 0x6f5   :  { %5815 = vmatpush1.bf16.msra.mxu0 %v8074_v10  ;;  %5879 = vmatpush1.bf16.msra.mxu1 %v10551_v28 }
 0x6f6   :  { %5817 = vmatprep.subr.bf16.mxu0 %v10552_v29  ;;  %5881 = vmatprep.subr.bf16.mxu1 %v10553_v42 }
 0x6f9   :  { %5819 = vmatpush1.bf16.msra.mxu0 %v10554_v30  ;;  %5883 = vmatpush1.bf16.msra.mxu1 %v10555_v59  ;;  %v10615_v30 = vld [vmem:[#allocation153_spill] sm:$0xff] }
 0x6fa   :  { %5821 = vmatprep.subr.bf16.mxu0 %v10556_v23  ;;  %5885 = vmatprep.subr.bf16.mxu1 %v10557_v41  ;;  %v10568_v41 = vld [vmem:[#allocation39_spill] sm:$0xff]  ;;  %v10614_v23 = vld [vmem:[#allocation152_spill] sm:$0xff] }
 0x6fd   :  { %5823 = vmatpush1.bf16.msra.mxu0 %v10558_v15  ;;  %5887 = vmatpush1.bf16.msra.mxu1 %v10559_v45  ;;  %v10569_v15 = vld [vmem:[#allocation40_spill] sm:$0xff]  ;;  %v10570_v45 = vld [vmem:[#allocation41_spill] sm:$0xff] }
 0x6fe   :  { %5825 = vmatprep.subr.bf16.mxu0 %v10560_v4  ;;  %5889 = vmatprep.subr.bf16.mxu1 %v10561_v38  ;;  %v10571_v4 = vld [vmem:[#allocation42_spill] sm:$0xff]  ;;  %v10572_v38 = vld [vmem:[#allocation43_spill] sm:$0xff] }
 0x701   :  { %5827 = vmatpush1.bf16.msra.mxu0 %v10562_v11  ;;  %5891 = vmatpush1.bf16.msra.mxu1 %v10563_v0  ;;  %v10573_v11 = vld [vmem:[#allocation44_spill] sm:$0xff]  ;;  %v10574_v0 = vld [vmem:[#allocation45_spill] sm:$0xff] }
 0x702   :  { %5829 = vmatprep.subr.bf16.mxu0 %v10564_v12  ;;  %5893 = vmatprep.subr.bf16.mxu1 %v10565_v61  ;;  %v10575_v12 = vld [vmem:[#allocation46_spill] sm:$0xff]  ;;  %v10576_v61 = vld [vmem:[#allocation47_spill] sm:$0xff] }
 0x705   :  { %5831 = vmatpush1.bf16.msra.mxu0 %v10566_v3  ;;  %5895 = vmatpush1.bf16.msra.mxu1 %v10567_v21  ;;  %v10577_v3 = vld [vmem:[#allocation48_spill] sm:$0xff]  ;;  %v10578_v21 = vld [vmem:[#allocation49_spill] sm:$0xff] }
 0x706   :  { %5833 = vmatprep.subr.bf16.mxu0 %v10568_v41  ;;  %5897 = vmatprep.subr.bf16.mxu1 %v10569_v15  ;;  %v10579_v41 = vld [vmem:[#allocation50_spill] sm:$0xff]  ;;  %v10580_v15 = vld [vmem:[#allocation51_spill] sm:$0xff] }
 0x709   :  { %5835 = vmatpush1.bf16.msra.mxu0 %v10570_v45  ;;  %5899 = vmatpush1.bf16.msra.mxu1 %v10571_v4  ;;  %v10581_v45 = vld [vmem:[#allocation52_spill] sm:$0xff]  ;;  %v10582_v4 = vld [vmem:[#allocation53_spill] sm:$0xff] }
 0x70a   :  { %5837 = vmatprep.subr.bf16.mxu0 %v10572_v38  ;;  %5901 = vmatprep.subr.bf16.mxu1 %v10573_v11  ;;  %v10583_v38 = vld [vmem:[#allocation54_spill] sm:$0xff]  ;;  %v10584_v11 = vld [vmem:[#allocation55_spill] sm:$0xff] }
 0x70d   :  { %5839 = vmatpush1.bf16.msra.mxu0 %v10574_v0  ;;  %5903 = vmatpush1.bf16.msra.mxu1 %v10575_v12  ;;  %v10585_v0 = vld [vmem:[#allocation56_spill] sm:$0xff]  ;;  %v10586_v12 = vld [vmem:[#allocation57_spill] sm:$0xff] }
 0x70e   :  { %5841 = vmatprep.subr.bf16.mxu0 %v10576_v61  ;;  %5905 = vmatprep.subr.bf16.mxu1 %v10577_v3  ;;  %v10587_v61 = vld [vmem:[#allocation58_spill] sm:$0xff]  ;;  %v10588_v3 = vld [vmem:[#allocation59_spill] sm:$0xff] }
 0x711   :  { %5843 = vmatpush1.bf16.msra.mxu0 %v10578_v21  ;;  %5907 = vmatpush1.bf16.msra.mxu1 %v10579_v41  ;;  %v10589_v21 = vld [vmem:[#allocation60_spill] sm:$0xff]  ;;  %v10590_v41 = vld [vmem:[#allocation61_spill] sm:$0xff] }
 0x712   :  { %5845 = vmatprep.subr.bf16.mxu0 %v10580_v15  ;;  %5909 = vmatprep.subr.bf16.mxu1 %v10581_v45  ;;  %v10591_v15 = vld [vmem:[#allocation62_spill] sm:$0xff]  ;;  %v10592_v45 = vld [vmem:[#allocation63_spill] sm:$0xff] }
 0x715   :  { %5847 = vmatpush1.bf16.msra.mxu0 %v10582_v4  ;;  %5911 = vmatpush1.bf16.msra.mxu1 %v10583_v38  ;;  %v10593_v4 = vld [vmem:[#allocation64_spill] sm:$0xff]  ;;  %v10594_v38 = vld [vmem:[#allocation65_spill] sm:$0xff] }
 0x716   :  { %5849 = vmatprep.subr.bf16.mxu0 %v10584_v11  ;;  %5913 = vmatprep.subr.bf16.mxu1 %v10585_v0  ;;  %v10595_v11 = vld [vmem:[#allocation66_spill] sm:$0xff]  ;;  %v10596_v0 = vld [vmem:[#allocation67_spill] sm:$0xff] }
 0x719   :  { %5851 = vmatpush1.bf16.msra.mxu0 %v10586_v12  ;;  %5915 = vmatpush1.bf16.msra.mxu1 %v10587_v61  ;;  %v10597_v12 = vld [vmem:[#allocation68_spill] sm:$0xff]  ;;  %v10598_v61 = vld [vmem:[#allocation69_spill] sm:$0xff] }
 0x71a   :  { %5853 = vmatprep.subr.bf16.mxu0 %v10588_v3  ;;  %5917 = vmatprep.subr.bf16.mxu1 %v10589_v21  ;;  %v10599_v3 = vld [vmem:[#allocation70_spill] sm:$0xff]  ;;  %v10600_v21 = vld [vmem:[#allocation71_spill] sm:$0xff] }
 0x71d   :  { %5855 = vmatpush1.bf16.msra.mxu0 %v10590_v41  ;;  %5919 = vmatpush1.bf16.msra.mxu1 %v10591_v15  ;;  %v10601_v41 = vld [vmem:[#allocation72_spill] sm:$0xff]  ;;  %v10602_v15 = vld [vmem:[#allocation73_spill] sm:$0xff] }
 0x71e   :  { %5857 = vmatprep.subr.bf16.mxu0 %v10592_v45  ;;  %5921 = vmatprep.subr.bf16.mxu1 %v10593_v4  ;;  %v10603_v45 = vld [vmem:[#allocation74_spill] sm:$0xff]  ;;  %v10604_v4 = vld [vmem:[#allocation75_spill] sm:$0xff] }
 0x721   :  { %5859 = vmatpush1.bf16.msra.mxu0 %v10594_v38  ;;  %5923 = vmatpush1.bf16.msra.mxu1 %v10595_v11  ;;  %v10605_v38 = vld [vmem:[#allocation76_spill] sm:$0xff]  ;;  %v10606_v11 = vld [vmem:[#allocation77_spill] sm:$0xff] }
 0x722   :  { %5861 = vmatprep.subr.bf16.mxu0 %v10596_v0  ;;  %5925 = vmatprep.subr.bf16.mxu1 %v10597_v12  ;;  %v10607_v0 = vld [vmem:[#allocation78_spill] sm:$0xff]  ;;  %v10608_v12 = vld [vmem:[#allocation79_spill] sm:$0xff] }
 0x725   :  { %5863 = vmatpush1.bf16.msra.mxu0 %v10598_v61  ;;  %5927 = vmatpush1.bf16.msra.mxu1 %v10599_v3  ;;  %v10609_v61 = vld [vmem:[#allocation80_spill] sm:$0xff]  ;;  %v10610_v3 = vld [vmem:[#allocation81_spill] sm:$0xff] }
 0x726   :  { %5865 = vmatprep.subr.bf16.mxu0 %v10600_v21  ;;  %5929 = vmatprep.subr.bf16.mxu1 %v10601_v41  ;;  %v10611_v21 = vld [vmem:[#allocation82_spill] sm:$0xff]  ;;  %v10612_v41 = vld [vmem:[#allocation83_spill] sm:$0xff] }
 0x729   :  { %5867 = vmatpush1.bf16.msra.mxu0 %v10602_v15  ;;  %5931 = vmatpush1.bf16.msra.mxu1 %v10603_v45  ;;  %v10613_v15 = vld [vmem:[#allocation84_spill] sm:$0xff] }
 0x72a   :  { %5869 = vmatprep.subr.bf16.mxu0 %v10604_v4  ;;  %5933 = vmatprep.subr.bf16.mxu1 %v10605_v38 }
 0x72d   :  { %5871 = vmatpush1.bf16.msra.mxu0 %v10606_v11  ;;  %5935 = vmatpush1.bf16.msra.mxu1 %v10607_v0 }
 0x72e   :  { %5873 = vmatprep.subr.bf16.mxu0 %v10608_v12  ;;  %5937 = vmatprep.subr.bf16.mxu1 %v10609_v61  ;;  %v10616_v61 = vld [vmem:[#allocation154_spill] sm:$0xff] }
 0x731   :  { %5875 = vmatpush1.bf16.msra.mxu0 %v10610_v3  ;;  %5939 = vmatpush1.bf16.msra.mxu1 %v10611_v21  ;;  %v10617_v21 = vld [vmem:[#allocation155_spill] sm:$0xff] }
 0x732   :  { %5941 = vmatprep.subr.bf16.mxu0 %v10612_v41  ;;  %6005 = vmatprep.subr.bf16.mxu1 %v10613_v15 }
 0x7a6   :  { %v1935_v45 = vpop.f32.mrb[16].mxu0  ;;  %v2006_v4 = vpop.f32.mrb[16].mxu1 }
 0x7a7   :  { %v1936_v38 = vadd.f32 %v1935_v45, %v10614_v23  ;;  %v1937_v59 = vpop.f32.mrb[17].mxu0  ;;  %v2008_v11 = vpop.f32.mrb[17].mxu1  ;;  %v2007_v28 = vadd.f32 %v2006_v4, %v10617_v21 }
 0x7a8   :  { %v1938_v0 = vadd.f32 %v1937_v59, %v10615_v30  ;;  %v2009_v3 = vadd.f32 %v2008_v11, %v10616_v61 }
 0x7a9   :  { %v4740_v42 = vmul.f32 -1.442695, %v1936_v38 }
 0x7aa   :  { %v4741_v12 = vmul.f32 -1.442695, %v1938_v0  ;;  %v4742_v29 = vmul.f32 -1.442695, %v2009_v3 }
 0x7ab   :  { %7488 = vpow2.f32 %v4740_v42 }
 0x7ac   :  { %7490 = vpow2.f32 %v4741_v12 }
 0x7ad   :  { %7492 = vpow2.f32 %v4742_v29 }
 0x7ae   :  { %7494 = vtanh.f32 %v2007_v28 }
 0x7b5   :  { %v7489_v41 = vpop.eup %7488 }
 0x7b6   :  { %v7491_v10 = vpop.eup %7490  ;;  %v2014_v15 = vadd.f32 1.0, %v7489_v41 }
 0x7b7   :  { %v2020_v60 = vadd.f32 1.0, %v7491_v10  ;;  %v7493_v45 = vpop.eup %7492 }
 0x7b8   :  { %7496 = vrcp.f32 %v2014_v15  ;;  %v7495_v23 = vpop.eup %7494  ;;  %v2027_v42 = vadd.f32 1.0, %v7493_v45  ;;  %v2038_v15 = vld [vmem:[#allocation2 + $0x18] sm:$0xff] }
 0x7b9   :  { %7498 = vrcp.f32 %v2020_v60 }
 0x7ba   :  { %7500 = vrcp.f32 %v2027_v42 }
 0x7c2   :  { %v7497_v59 = vpop.eup %7496 }
 0x7c3   :  { %v7499_v38 = vpop.eup %7498  ;;  %v2031_v0 = vmul.f32 %v7497_v59, %v7495_v23 }
 0x7c4   :  { %v2030_v12 = vmul.f32 %v7499_v38, %v8820_v24  ;;  %v7501_v38 = vpop.eup %7500 }
 0x7c6   :  { %v2105_v11 = vpop.f32.mrb[18].mxu0  ;;  %v2176_v3 = vpop.f32.mrb[18].mxu1  ;;  %v9010_v61 = vadd.f32 %v2031_v0, %v2030_v12 }
 0x7c7   :  { %v2107_v4 = vpop.f32.mrb[19].mxu0  ;;  %v2178_v41 = vpop.f32.mrb[19].mxu1 }
 0x7c8   :  { %v2185_v29 = vcombine.low %v2105_v11, %v2107_v4  ;;  %v2186_v28 = vcombine.low %v2176_v3, %v2178_v41  ;;  %7502 = vtanh.f32 %v9010_v61 }
 0x7ca   :  { %v2193_v60 = vrot.slane %v2185_v29, %v10362_v5  ;;  %v2200_v10 = vrot.slane %v2186_v28, %v10362_v5 }
 0x7cc   :  { %v2201_v23 = vcombine.low %v2193_v60, %v2200_v10 }
 0x7ce   :  { %v2203_v45 = vadd.f32 %v2201_v23, %v2038_v15 }
 0x7d0   :  { %v4743_v59 = vmul.f32 -1.442695, %v2203_v45  ;;  %v2211_v24 = vrot.slane %v2203_v45, 2  ;;  %v2222_v12 = vrot.slane %v2203_v45, 6  ;;  %v2219_v4 = vrot.slane %v2203_v45, 4 }
 0x7d2   :  { %v7503_v21 = vpop.eup %7502  ;;  %7504 = vpow2.f32 %v4743_v59  ;;  %v4744_v0 = vmul.f32 -1.442695, %v2211_v24  ;;  %v4745_v11 = vmul.f32 -1.442695, %v2222_v12 }
 0x7d3   :  { %v2034_v42 = vmul.f32 %v7503_v21, %v7501_v38 }
 0x7d4   :  { %7506 = vpow2.f32 %v4744_v0 }
 0x7d5   :  { %2036 = vst [vmem:[#allocation10 + $0x4] sm:$0x3] %v2034_v42  ;;  %7508 = vpow2.f32 %v4745_v11  ;;  %v10619_v11 = vld [vmem:[#allocation94_spill] sm:$0xff] }
 0x7dc   :  { %v7505_v3 = vpop.eup %7504 }
 0x7dd   :  { %v2207_v41 = vadd.f32 1.0, %v7505_v3  ;;  %v10620_v3 = vld [vmem:[#allocation95_spill] sm:$0xff] }
 0x7de   :  { %v7507_v29 = vpop.eup %7506 }
 0x7df   :  { %7510 = vrcp.f32 %v2207_v41  ;;  %v2216_v28 = vadd.f32 1.0, %v7507_v29  ;;  %v7509_v60 = vpop.eup %7508  ;;  %v10623_v41 = vld [vmem:[#allocation98_spill] sm:$0xff]  ;;  %v10624_v29 = vld [vmem:[#allocation99_spill] sm:$0xff] }
 0x7e0   :  { %7512 = vtanh.f32 %v2219_v4  ;;  %v2227_v59 = vadd.f32 1.0, %v7509_v60  ;;  %v10621_v4 = vld [vmem:[#allocation96_spill] sm:$0xff]  ;;  %v10626_v60 = vld [vmem:[#allocation101_spill] sm:$0xff] }
 0x7e1   :  { %7514 = vrcp.f32 %v2216_v28  ;;  %v10625_v28 = vld [vmem:[#allocation100_spill] sm:$0xff] }
 0x7e2   :  { %7516 = vrcp.f32 %v2227_v59  ;;  %v10630_v59 = vld [vmem:[#allocation105_spill] sm:$0xff] }
 0x7e9   :  { %v7511_v10 = vpop.eup %7510 }
 0x7ea   :  { %v7513_v15 = vpop.eup %7512 }
 0x7eb   :  { %v7515_v23 = vpop.eup %7514  ;;  %v2231_v24 = vmul.f32 %v7513_v15, %v7511_v10  ;;  %v10627_v10 = vld [vmem:[#allocation102_spill] sm:$0xff]  ;;  %v10628_v15 = vld [vmem:[#allocation103_spill] sm:$0xff] }
 0x7ec   :  { %v2230_v21 = vmul.f32 %v7515_v23, %v8826_v33  ;;  %v7517_v45 = vpop.eup %7516  ;;  %v10618_v33 = vld [vmem:[#allocation93_spill] sm:$0xff]  ;;  %v10629_v23 = vld [vmem:[#allocation104_spill] sm:$0xff] }
 0x7ee   :  { %v9016_v38 = vadd.f32 %v2231_v24, %v2230_v21  ;;  %v10631_v21 = vld [vmem:[#allocation106_spill] sm:$0xff]  ;;  %v10632_v24 = vld [vmem:[#allocation107_spill] sm:$0xff] }
 0x7f0   :  { %7518 = vtanh.f32 %v9016_v38 }
 0x7fa   :  { %v7519_v0 = vpop.eup %7518 }
 0x7fb   :  { %v9019_v12 = vmul.f32 %v7519_v0, %v7517_v45  ;;  %v10633_v45 = vld [vmem:[#allocation108_spill] sm:$0xff]  ;;  %v10634_v0 = vld [vmem:[#allocation109_spill] sm:$0xff] }
 0x7fd   :  { %2300 = vmatmul.mubr.f32.vlgmr.msra.gmra.mrb[20].mxu0 %v9019_v12  ;;  %2371 = vmatmul.mubr.f32.vlgmr.msra.gmra.mrb[20].mxu1 %v9019_v12 }
 0x7fe   :  { %2465 = vmatprep.mubr.f32.mxu0 %v2034_v42  ;;  %2536 = vmatprep.mubr.f32.mxu1 %v2034_v42  ;;  %v10622_v42 = vld [vmem:[#allocation97_spill] sm:$0xff] }
 0x7ff   :  { %5943 = vmatpush1.bf16.msra.mxu0 %v10364_v47  ;;  %6007 = vmatpush1.bf16.msra.mxu1 %v10365_v32 }
 0x800   :  { %5945 = vmatprep.subr.bf16.mxu0 %v10366_v62  ;;  %6009 = vmatprep.subr.bf16.mxu1 %v10367_v49 }
 0x803   :  { %5947 = vmatpush1.bf16.msra.mxu0 %v10368_v6  ;;  %6011 = vmatpush1.bf16.msra.mxu1 %v10491_v46 }
 0x804   :  { %5949 = vmatprep.subr.bf16.mxu0 %v10618_v33  ;;  %6013 = vmatprep.subr.bf16.mxu1 %v10619_v11 }
 0x807   :  { %5951 = vmatpush1.bf16.msra.mxu0 %v10620_v3  ;;  %6015 = vmatpush1.bf16.msra.mxu1 %v10621_v4 }
 0x808   :  { %5953 = vmatprep.subr.bf16.mxu0 %v10622_v42  ;;  %6017 = vmatprep.subr.bf16.mxu1 %v10623_v41  ;;  %v10676_v41 = vld [vmem:[#allocation149_spill] sm:$0xff] }
 0x80b   :  { %5955 = vmatpush1.bf16.msra.mxu0 %v10624_v29  ;;  %6019 = vmatpush1.bf16.msra.mxu1 %v10625_v28  ;;  %v10635_v29 = vld [vmem:[#allocation110_spill] sm:$0xff]  ;;  %v10636_v28 = vld [vmem:[#allocation111_spill] sm:$0xff] }
 0x80c   :  { %5957 = vmatprep.subr.bf16.mxu0 %v10626_v60  ;;  %6021 = vmatprep.subr.bf16.mxu1 %v10627_v10  ;;  %v10637_v60 = vld [vmem:[#allocation112_spill] sm:$0xff]  ;;  %v10638_v10 = vld [vmem:[#allocation113_spill] sm:$0xff] }
 0x80f   :  { %5959 = vmatpush1.bf16.msra.mxu0 %v10628_v15  ;;  %6023 = vmatpush1.bf16.msra.mxu1 %v10629_v23  ;;  %v10639_v15 = vld [vmem:[#allocation114_spill] sm:$0xff]  ;;  %v10640_v23 = vld [vmem:[#allocation115_spill] sm:$0xff] }
 0x810   :  { %5961 = vmatprep.subr.bf16.mxu0 %v10630_v59  ;;  %6025 = vmatprep.subr.bf16.mxu1 %v10631_v21  ;;  %v10641_v59 = vld [vmem:[#allocation116_spill] sm:$0xff]  ;;  %v10642_v21 = vld [vmem:[#allocation117_spill] sm:$0xff] }
 0x813   :  { %5963 = vmatpush1.bf16.msra.mxu0 %v10632_v24  ;;  %6027 = vmatpush1.bf16.msra.mxu1 %v10633_v45  ;;  %v10643_v24 = vld [vmem:[#allocation118_spill] sm:$0xff]  ;;  %v10644_v45 = vld [vmem:[#allocation119_spill] sm:$0xff] }
 0x814   :  { %5965 = vmatprep.subr.bf16.mxu0 %v10634_v0  ;;  %6029 = vmatprep.subr.bf16.mxu1 %v10635_v29  ;;  %v10645_v0 = vld [vmem:[#allocation120_spill] sm:$0xff]  ;;  %v10646_v29 = vld [vmem:[#allocation121_spill] sm:$0xff] }
 0x817   :  { %5967 = vmatpush1.bf16.msra.mxu0 %v10636_v28  ;;  %6031 = vmatpush1.bf16.msra.mxu1 %v10637_v60  ;;  %v10647_v28 = vld [vmem:[#allocation122_spill] sm:$0xff]  ;;  %v10648_v60 = vld [vmem:[#allocation123_spill] sm:$0xff] }
 0x818   :  { %5969 = vmatprep.subr.bf16.mxu0 %v10638_v10  ;;  %6033 = vmatprep.subr.bf16.mxu1 %v10639_v15  ;;  %v10649_v10 = vld [vmem:[#allocation124_spill] sm:$0xff]  ;;  %v10650_v15 = vld [vmem:[#allocation125_spill] sm:$0xff] }
 0x81b   :  { %5971 = vmatpush1.bf16.msra.mxu0 %v10640_v23  ;;  %6035 = vmatpush1.bf16.msra.mxu1 %v10641_v59  ;;  %v10651_v23 = vld [vmem:[#allocation126_spill] sm:$0xff]  ;;  %v10652_v59 = vld [vmem:[#allocation127_spill] sm:$0xff] }
 0x81c   :  { %5973 = vmatprep.subr.bf16.mxu0 %v10642_v21  ;;  %6037 = vmatprep.subr.bf16.mxu1 %v10643_v24  ;;  %v10653_v21 = vld [vmem:[#allocation128_spill] sm:$0xff]  ;;  %v10654_v24 = vld [vmem:[#allocation129_spill] sm:$0xff] }
 0x81f   :  { %5975 = vmatpush1.bf16.msra.mxu0 %v10644_v45  ;;  %6039 = vmatpush1.bf16.msra.mxu1 %v10645_v0  ;;  %v10655_v45 = vld [vmem:[#allocation130_spill] sm:$0xff]  ;;  %v10656_v0 = vld [vmem:[#allocation131_spill] sm:$0xff] }
 0x820   :  { %5977 = vmatprep.subr.bf16.mxu0 %v10646_v29  ;;  %6041 = vmatprep.subr.bf16.mxu1 %v10647_v28  ;;  %v10657_v29 = vld [vmem:[#allocation132_spill] sm:$0xff]  ;;  %v10658_v28 = vld [vmem:[#allocation133_spill] sm:$0xff] }
 0x823   :  { %5979 = vmatpush1.bf16.msra.mxu0 %v10648_v60  ;;  %6043 = vmatpush1.bf16.msra.mxu1 %v10649_v10  ;;  %v10659_v60 = vld [vmem:[#allocation134_spill] sm:$0xff]  ;;  %v10660_v10 = vld [vmem:[#allocation135_spill] sm:$0xff] }
 0x824   :  { %5981 = vmatprep.subr.bf16.mxu0 %v10650_v15  ;;  %6045 = vmatprep.subr.bf16.mxu1 %v10651_v23  ;;  %v10661_v15 = vld [vmem:[#allocation136_spill] sm:$0xff]  ;;  %v10662_v23 = vld [vmem:[#allocation137_spill] sm:$0xff] }
 0x827   :  { %5983 = vmatpush1.bf16.msra.mxu0 %v10652_v59  ;;  %6047 = vmatpush1.bf16.msra.mxu1 %v10653_v21  ;;  %v10663_v59 = vld [vmem:[#allocation138_spill] sm:$0xff]  ;;  %v10664_v21 = vld [vmem:[#allocation139_spill] sm:$0xff] }
 0x828   :  { %5985 = vmatprep.subr.bf16.mxu0 %v10654_v24  ;;  %6049 = vmatprep.subr.bf16.mxu1 %v10655_v45  ;;  %v10665_v24 = vld [vmem:[#allocation140_spill] sm:$0xff]  ;;  %v10666_v45 = vld [vmem:[#allocation141_spill] sm:$0xff] }
 0x82b   :  { %5987 = vmatpush1.bf16.msra.mxu0 %v10656_v0  ;;  %6051 = vmatpush1.bf16.msra.mxu1 %v10657_v29  ;;  %v10667_v0 = vld [vmem:[#allocation142_spill] sm:$0xff]  ;;  %v10668_v29 = vld [vmem:[#allocation143_spill] sm:$0xff] }
 0x82c   :  { %5989 = vmatprep.subr.bf16.mxu0 %v10658_v28  ;;  %6053 = vmatprep.subr.bf16.mxu1 %v10659_v60  ;;  %v10669_v28 = vld [vmem:[#allocation144_spill] sm:$0xff]  ;;  %v10670_v60 = vld [vmem:[#allocation145_spill] sm:$0xff] }
 0x82f   :  { %5991 = vmatpush1.bf16.msra.mxu0 %v10660_v10  ;;  %6055 = vmatpush1.bf16.msra.mxu1 %v10661_v15  ;;  %v10671_v10 = vld [vmem:[#allocation146_spill] sm:$0xff]  ;;  %v10672_v15 = vld [vmem:[#allocation147_spill] sm:$0xff] }
 0x830   :  { %5993 = vmatprep.subr.bf16.mxu0 %v10662_v23  ;;  %6057 = vmatprep.subr.bf16.mxu1 %v10663_v59  ;;  %v10673_v23 = vld [vmem:[#allocation148_spill] sm:$0xff]  ;;  %v10674_v59 = vld [vmem:[#allocation15_spill] sm:$0xff] }
 0x833   :  { %5995 = vmatpush1.bf16.msra.mxu0 %v10664_v21  ;;  %6059 = vmatpush1.bf16.msra.mxu1 %v10665_v24  ;;  %v10675_v21 = vld [vmem:[#allocation16_spill] sm:$0xff] }
 0x834   :  { %5997 = vmatprep.subr.bf16.mxu0 %v10666_v45  ;;  %6061 = vmatprep.subr.bf16.mxu1 %v10667_v0 }
 0x837   :  { %5999 = vmatpush1.bf16.msra.mxu0 %v10668_v29  ;;  %6063 = vmatpush1.bf16.msra.mxu1 %v10669_v28 }
 0x838   :  { %6001 = vmatprep.subr.bf16.mxu0 %v10670_v60  ;;  %6065 = vmatprep.subr.bf16.mxu1 %v10671_v10 }
 0x83b   :  { %6003 = vmatpush1.bf16.msra.mxu0 %v10672_v15  ;;  %6067 = vmatpush1.bf16.msra.mxu1 %v10673_v23 }
 0x83c   :  { %6069 = vmatprep.subr.bf16.mxu0 %v10674_v59  ;;  %6101 = vmatprep.subr.bf16.mxu1 %v10675_v21 }
 0x8d0   :  { %v2301_v24 = vpop.f32.mrb[20].mxu0  ;;  %v2372_v45 = vpop.f32.mrb[20].mxu1 }
 0x8d1   :  { %v2302_v0 = vadd.f32 %v2301_v24, %v10676_v41  ;;  %v2303_v42 = vpop.f32.mrb[21].mxu0  ;;  %v2374_v29 = vpop.f32.mrb[21].mxu1  ;;  %v2373_v23 = vadd.f32 %v2372_v45, %v8501_v58  ;;  %v10683_v45 = vld [vmem:[#allocation26_spill] sm:$0xff] }
 0x8d2   :  { %v2304_v28 = vadd.f32 %v2303_v42, %v10423_v48  ;;  %v2375_v15 = vadd.f32 %v2374_v29, %v10424_v8 }
 0x8d3   :  { %v4746_v4 = vmul.f32 -1.442695, %v2302_v0 }
 0x8d4   :  { %v4747_v60 = vmul.f32 -1.442695, %v2304_v28  ;;  %v4748_v10 = vmul.f32 -1.442695, %v2375_v15 }
 0x8d5   :  { %7520 = vpow2.f32 %v4746_v4 }
 0x8d6   :  { %7522 = vpow2.f32 %v4747_v60 }
 0x8d7   :  { %7524 = vpow2.f32 %v4748_v10 }
 0x8d8   :  { %7526 = vtanh.f32 %v2373_v23  ;;  %v10681_v23 = vld [vmem:[#allocation24_spill] sm:$0xff] }
 0x8df   :  { %v7521_v59 = vpop.eup %7520 }
 0x8e0   :  { %v7523_v3 = vpop.eup %7522  ;;  %v2380_v21 = vadd.f32 1.0, %v7521_v59 }
 0x8e1   :  { %v2386_v11 = vadd.f32 1.0, %v7523_v3  ;;  %v7525_v24 = vpop.eup %7524  ;;  %v10679_v3 = vld [vmem:[#allocation22_spill] sm:$0xff] }
 0x8e2   :  { %7528 = vrcp.f32 %v2380_v21  ;;  %v7527_v41 = vpop.eup %7526  ;;  %v2393_v4 = vadd.f32 1.0, %v7525_v24  ;;  %v10682_v21 = vld [vmem:[#allocation25_spill] sm:$0xff]  ;;  %v10684_v24 = vld [vmem:[#allocation27_spill] sm:$0xff] }
 0x8e3   :  { %7530 = vrcp.f32 %v2386_v11  ;;  %v10678_v11 = vld [vmem:[#allocation21_spill] sm:$0xff] }
 0x8e4   :  { %7532 = vrcp.f32 %v2393_v4  ;;  %v10689_v4 = vld [vmem:[#allocation32_spill] sm:$0xff] }
 0x8ec   :  { %v7529_v42 = vpop.eup %7528 }
 0x8ed   :  { %v7531_v0 = vpop.eup %7530  ;;  %v2397_v28 = vmul.f32 %v7529_v42, %v7527_v41  ;;  %v10680_v41 = vld [vmem:[#allocation23_spill] sm:$0xff]  ;;  %v10685_v42 = vld [vmem:[#allocation28_spill] sm:$0xff] }
 0x8ee   :  { %v2396_v60 = vmul.f32 %v7531_v0, %v8902_v56  ;;  %v7533_v15 = vpop.eup %7532  ;;  %v10677_v56 = vld [vmem:[#allocation20_spill] sm:$0xff]  ;;  %v10686_v0 = vld [vmem:[#allocation29_spill] sm:$0xff] }
 0x8f0   :  { %v9092_v29 = vadd.f32 %v2397_v28, %v2396_v60  ;;  %v10688_v28 = vld [vmem:[#allocation31_spill] sm:$0xff]  ;;  %v10690_v60 = vld [vmem:[#allocation33_spill] sm:$0xff] }
 0x8f2   :  { %7534 = vtanh.f32 %v9092_v29 }
 0x8fc   :  { %v7535_v59 = vpop.eup %7534 }
 0x8fd   :  { %v2400_v10 = vmul.f32 %v7535_v59, %v7533_v15  ;;  %v10691_v15 = vld [vmem:[#allocation34_spill] sm:$0xff]  ;;  %v10692_v59 = vld [vmem:[#allocation35_spill] sm:$0xff] }
 0x8ff   :  { %2466 = vmatmul.mubr.f32.vlgmr.msra.gmra.mrb[22].mxu0 %v2400_v10  ;;  %2537 = vmatmul.mubr.f32.vlgmr.msra.gmra.mrb[22].mxu1 %v2400_v10 }
 0x900   :  { %6071 = vmatpush1.bf16.msra.mxu0 %v7979_v9  ;;  %6103 = vmatpush1.bf16.msra.mxu1 %v7982_v13 }
 0x901   :  { %6073 = vmatprep.subr.bf16.mxu0 %v7986_v17  ;;  %6105 = vmatprep.subr.bf16.mxu1 %v7988_v18 }
 0x902   :  { %2635 = vmatprep.mubr.f32.mxu0 %v10236_v14  ;;  %2706 = vmatprep.mubr.f32.mxu1 %v10236_v14 }
 0x904   :  { %6075 = vmatpush1.bf16.msra.mxu0 %v7991_v22  ;;  %6107 = vmatpush1.bf16.msra.mxu1 %v7995_v26 }
 0x905   :  { %6077 = vmatprep.subr.bf16.mxu0 %v7997_v27  ;;  %6109 = vmatprep.subr.bf16.mxu1 %v7999_v31 }
 0x908   :  { %6079 = vmatpush1.bf16.msra.mxu0 %v8002_v35  ;;  %6111 = vmatpush1.bf16.msra.mxu1 %v8006_v39 }
 0x909   :  { %6081 = vmatprep.subr.bf16.mxu0 %v8008_v40  ;;  %6113 = vmatprep.subr.bf16.mxu1 %v8011_v44 }
 0x90c   :  { %6083 = vmatpush1.bf16.msra.mxu0 %v8014_v51  ;;  %6115 = vmatpush1.bf16.msra.mxu1 %v8018_v52 }
 0x90d   :  { %6085 = vmatprep.subr.bf16.mxu0 %v8020_v53  ;;  %6117 = vmatprep.subr.bf16.mxu1 %v8023_v57 }
 0x910   :  { %6087 = vmatpush1.bf16.msra.mxu0 %v8026_v63  ;;  %6119 = vmatpush1.bf16.msra.mxu1 %v8030_v1 }
 0x911   :  { %6089 = vmatprep.subr.bf16.mxu0 %v8032_v2  ;;  %6121 = vmatprep.subr.bf16.mxu1 %v8035_v7 }
 0x914   :  { %6091 = vmatpush1.bf16.msra.mxu0 %v8038_v16  ;;  %6123 = vmatpush1.bf16.msra.mxu1 %v8042_v19 }
 0x915   :  { %6093 = vmatprep.subr.bf16.mxu0 %v8044_v20  ;;  %6125 = vmatprep.subr.bf16.mxu1 %v8047_v25 }
 0x918   :  { %6095 = vmatpush1.bf16.msra.mxu0 %v8050_v34  ;;  %6127 = vmatpush1.bf16.msra.mxu1 %v8054_v36 }
 0x919   :  { %6097 = vmatprep.subr.bf16.mxu0 %v8056_v37  ;;  %6129 = vmatprep.subr.bf16.mxu1 %v8059_v43 }
 0x91c   :  { %6099 = vmatpush1.bf16.msra.mxu0 %v8062_v50  ;;  %6131 = vmatpush1.bf16.msra.mxu1 %v8066_v54 }
 0x91d   :  { %6133 = vmatprep.subr.bf16.mxu0 %v8068_v55  ;;  %6197 = vmatprep.subr.bf16.mxu1 %v10677_v56 }
 0x91f   :  { %2636 = vmatmul.mubr.f32.vlgmr.msra.gmra.mrb[24].mxu0 %v9019_v12  ;;  %2707 = vmatmul.mubr.f32.vlgmr.msra.gmra.mrb[24].mxu1 %v9019_v12  ;;  %v10687_v12 = vld [vmem:[#allocation30_spill] sm:$0xff] }
 0x920   :  { %2831 = vmatprep.mubr.f32.mxu0 %v2400_v10  ;;  %2902 = vmatprep.mubr.f32.mxu1 %v2400_v10  ;;  %v10693_v10 = vld [vmem:[#allocation36_spill] sm:$0xff] }
 0x921   :  { %6135 = vmatpush1.bf16.msra.mxu0 %v10678_v11  ;;  %6199 = vmatpush1.bf16.msra.mxu1 %v10679_v3 }
 0x922   :  { %6137 = vmatprep.subr.bf16.mxu0 %v10680_v41  ;;  %6201 = vmatprep.subr.bf16.mxu1 %v10681_v23 }
 0x925   :  { %6139 = vmatpush1.bf16.msra.mxu0 %v10682_v21  ;;  %6203 = vmatpush1.bf16.msra.mxu1 %v10683_v45  ;;  %v10694_v45 = vld [vmem:[#allocation37_spill] sm:$0xff]  ;;  %v10742_v21 = vld [vmem:[#allocation152_spill] sm:$0xff] }
 0x926   :  { %6141 = vmatprep.subr.bf16.mxu0 %v10684_v24  ;;  %6205 = vmatprep.subr.bf16.mxu1 %v10685_v42  ;;  %v10695_v24 = vld [vmem:[#allocation38_spill] sm:$0xff]  ;;  %v10696_v42 = vld [vmem:[#allocation39_spill] sm:$0xff] }
 0x929   :  { %6143 = vmatpush1.bf16.msra.mxu0 %v10686_v0  ;;  %6207 = vmatpush1.bf16.msra.mxu1 %v10687_v12  ;;  %v10697_v0 = vld [vmem:[#allocation40_spill] sm:$0xff]  ;;  %v10698_v12 = vld [vmem:[#allocation41_spill] sm:$0xff] }
 0x92a   :  { %6145 = vmatprep.subr.bf16.mxu0 %v10688_v28  ;;  %6209 = vmatprep.subr.bf16.mxu1 %v10689_v4  ;;  %v10699_v28 = vld [vmem:[#allocation42_spill] sm:$0xff]  ;;  %v10700_v4 = vld [vmem:[#allocation43_spill] sm:$0xff] }
 0x92d   :  { %6147 = vmatpush1.bf16.msra.mxu0 %v10690_v60  ;;  %6211 = vmatpush1.bf16.msra.mxu1 %v10691_v15  ;;  %v10701_v60 = vld [vmem:[#allocation44_spill] sm:$0xff]  ;;  %v10702_v15 = vld [vmem:[#allocation45_spill] sm:$0xff] }
 0x92e   :  { %6149 = vmatprep.subr.bf16.mxu0 %v10692_v59  ;;  %6213 = vmatprep.subr.bf16.mxu1 %v10693_v10  ;;  %v10703_v59 = vld [vmem:[#allocation46_spill] sm:$0xff]  ;;  %v10704_v10 = vld [vmem:[#allocation47_spill] sm:$0xff] }
 0x931   :  { %6151 = vmatpush1.bf16.msra.mxu0 %v10694_v45  ;;  %6215 = vmatpush1.bf16.msra.mxu1 %v10695_v24  ;;  %v10705_v45 = vld [vmem:[#allocation48_spill] sm:$0xff]  ;;  %v10706_v24 = vld [vmem:[#allocation49_spill] sm:$0xff] }
 0x932   :  { %6153 = vmatprep.subr.bf16.mxu0 %v10696_v42  ;;  %6217 = vmatprep.subr.bf16.mxu1 %v10697_v0  ;;  %v10707_v42 = vld [vmem:[#allocation50_spill] sm:$0xff]  ;;  %v10708_v0 = vld [vmem:[#allocation51_spill] sm:$0xff] }
 0x935   :  { %6155 = vmatpush1.bf16.msra.mxu0 %v10698_v12  ;;  %6219 = vmatpush1.bf16.msra.mxu1 %v10699_v28  ;;  %v10709_v12 = vld [vmem:[#allocation52_spill] sm:$0xff]  ;;  %v10710_v28 = vld [vmem:[#allocation53_spill] sm:$0xff] }
 0x936   :  { %6157 = vmatprep.subr.bf16.mxu0 %v10700_v4  ;;  %6221 = vmatprep.subr.bf16.mxu1 %v10701_v60  ;;  %v10711_v4 = vld [vmem:[#allocation54_spill] sm:$0xff]  ;;  %v10712_v60 = vld [vmem:[#allocation55_spill] sm:$0xff] }
 0x939   :  { %6159 = vmatpush1.bf16.msra.mxu0 %v10702_v15  ;;  %6223 = vmatpush1.bf16.msra.mxu1 %v10703_v59  ;;  %v10713_v15 = vld [vmem:[#allocation56_spill] sm:$0xff]  ;;  %v10714_v59 = vld [vmem:[#allocation57_spill] sm:$0xff] }
 0x93a   :  { %6161 = vmatprep.subr.bf16.mxu0 %v10704_v10  ;;  %6225 = vmatprep.subr.bf16.mxu1 %v10705_v45  ;;  %v10715_v10 = vld [vmem:[#allocation58_spill] sm:$0xff]  ;;  %v10716_v45 = vld [vmem:[#allocation59_spill] sm:$0xff] }
 0x93d   :  { %6163 = vmatpush1.bf16.msra.mxu0 %v10706_v24  ;;  %6227 = vmatpush1.bf16.msra.mxu1 %v10707_v42  ;;  %v10717_v24 = vld [vmem:[#allocation60_spill] sm:$0xff]  ;;  %v10718_v42 = vld [vmem:[#allocation61_spill] sm:$0xff] }
 0x93e   :  { %6165 = vmatprep.subr.bf16.mxu0 %v10708_v0  ;;  %6229 = vmatprep.subr.bf16.mxu1 %v10709_v12  ;;  %v10719_v0 = vld [vmem:[#allocation62_spill] sm:$0xff]  ;;  %v10720_v12 = vld [vmem:[#allocation63_spill] sm:$0xff] }
 0x941   :  { %6167 = vmatpush1.bf16.msra.mxu0 %v10710_v28  ;;  %6231 = vmatpush1.bf16.msra.mxu1 %v10711_v4  ;;  %v10721_v28 = vld [vmem:[#allocation64_spill] sm:$0xff]  ;;  %v10722_v4 = vld [vmem:[#allocation65_spill] sm:$0xff] }
 0x942   :  { %6169 = vmatprep.subr.bf16.mxu0 %v10712_v60  ;;  %6233 = vmatprep.subr.bf16.mxu1 %v10713_v15  ;;  %v10723_v60 = vld [vmem:[#allocation66_spill] sm:$0xff]  ;;  %v10724_v15 = vld [vmem:[#allocation67_spill] sm:$0xff] }
 0x945   :  { %6171 = vmatpush1.bf16.msra.mxu0 %v10714_v59  ;;  %6235 = vmatpush1.bf16.msra.mxu1 %v10715_v10  ;;  %v10725_v59 = vld [vmem:[#allocation68_spill] sm:$0xff]  ;;  %v10726_v10 = vld [vmem:[#allocation69_spill] sm:$0xff] }
 0x946   :  { %6173 = vmatprep.subr.bf16.mxu0 %v10716_v45  ;;  %6237 = vmatprep.subr.bf16.mxu1 %v10717_v24  ;;  %v10727_v45 = vld [vmem:[#allocation70_spill] sm:$0xff]  ;;  %v10728_v24 = vld [vmem:[#allocation71_spill] sm:$0xff] }
 0x949   :  { %6175 = vmatpush1.bf16.msra.mxu0 %v10718_v42  ;;  %6239 = vmatpush1.bf16.msra.mxu1 %v10719_v0  ;;  %v10729_v42 = vld [vmem:[#allocation72_spill] sm:$0xff]  ;;  %v10730_v0 = vld [vmem:[#allocation73_spill] sm:$0xff] }
 0x94a   :  { %6177 = vmatprep.subr.bf16.mxu0 %v10720_v12  ;;  %6241 = vmatprep.subr.bf16.mxu1 %v10721_v28  ;;  %v10731_v12 = vld [vmem:[#allocation74_spill] sm:$0xff]  ;;  %v10732_v28 = vld [vmem:[#allocation75_spill] sm:$0xff] }
 0x94d   :  { %6179 = vmatpush1.bf16.msra.mxu0 %v10722_v4  ;;  %6243 = vmatpush1.bf16.msra.mxu1 %v10723_v60  ;;  %v10733_v4 = vld [vmem:[#allocation76_spill] sm:$0xff]  ;;  %v10734_v60 = vld [vmem:[#allocation77_spill] sm:$0xff] }
 0x94e   :  { %6181 = vmatprep.subr.bf16.mxu0 %v10724_v15  ;;  %6245 = vmatprep.subr.bf16.mxu1 %v10725_v59  ;;  %v10735_v15 = vld [vmem:[#allocation78_spill] sm:$0xff]  ;;  %v10736_v59 = vld [vmem:[#allocation79_spill] sm:$0xff] }
 0x951   :  { %6183 = vmatpush1.bf16.msra.mxu0 %v10726_v10  ;;  %6247 = vmatpush1.bf16.msra.mxu1 %v10727_v45  ;;  %v10737_v10 = vld [vmem:[#allocation80_spill] sm:$0xff]  ;;  %v10738_v45 = vld [vmem:[#allocation81_spill] sm:$0xff] }
 0x952   :  { %6185 = vmatprep.subr.bf16.mxu0 %v10728_v24  ;;  %6249 = vmatprep.subr.bf16.mxu1 %v10729_v42  ;;  %v10739_v24 = vld [vmem:[#allocation82_spill] sm:$0xff]  ;;  %v10740_v42 = vld [vmem:[#allocation83_spill] sm:$0xff] }
 0x955   :  { %6187 = vmatpush1.bf16.msra.mxu0 %v10730_v0  ;;  %6251 = vmatpush1.bf16.msra.mxu1 %v10731_v12  ;;  %v10741_v0 = vld [vmem:[#allocation84_spill] sm:$0xff] }
 0x956   :  { %6189 = vmatprep.subr.bf16.mxu0 %v10732_v28  ;;  %6253 = vmatprep.subr.bf16.mxu1 %v10733_v4 }
 0x959   :  { %6191 = vmatpush1.bf16.msra.mxu0 %v10734_v60  ;;  %6255 = vmatpush1.bf16.msra.mxu1 %v10735_v15 }
 0x95a   :  { %6193 = vmatprep.subr.bf16.mxu0 %v10736_v59  ;;  %6257 = vmatprep.subr.bf16.mxu1 %v10737_v10  ;;  %v10743_v10 = vld [vmem:[#allocation154_spill] sm:$0xff] }
 0x95d   :  { %6195 = vmatpush1.bf16.msra.mxu0 %v10738_v45  ;;  %6259 = vmatpush1.bf16.msra.mxu1 %v10739_v24  ;;  %v10744_v24 = vld [vmem:[#allocation155_spill] sm:$0xff] }
 0x95e   :  { %6261 = vmatprep.subr.bf16.mxu0 %v10740_v42  ;;  %6325 = vmatprep.subr.bf16.mxu1 %v10741_v0 }
 0x9d2   :  { %v2467_v12 = vpop.f32.mrb[22].mxu0  ;;  %v2538_v28 = vpop.f32.mrb[22].mxu1 }
 0x9d3   :  { %v2468_v4 = vadd.f32 %v2467_v12, %v10742_v21  ;;  %v2469_v23 = vpop.f32.mrb[23].mxu0  ;;  %v2540_v60 = vpop.f32.mrb[23].mxu1  ;;  %v2539_v11 = vadd.f32 %v2538_v28, %v10744_v24 }
 0x9d4   :  { %v2470_v15 = vadd.f32 %v2469_v23, %v10615_v30  ;;  %v2541_v45 = vadd.f32 %v2540_v60, %v10743_v10 }
 0x9d5   :  { %v4749_v41 = vmul.f32 -1.442695, %v2468_v4 }
 0x9d6   :  { %v4750_v59 = vmul.f32 -1.442695, %v2470_v15  ;;  %v4751_v3 = vmul.f32 -1.442695, %v2541_v45 }
 0x9d7   :  { %7536 = vpow2.f32 %v4749_v41 }
 0x9d8   :  { %7538 = vpow2.f32 %v4750_v59 }
 0x9d9   :  { %7540 = vpow2.f32 %v4751_v3 }
 0x9da   :  { %7542 = vtanh.f32 %v2539_v11 }
 0x9e1   :  { %v7537_v42 = vpop.eup %7536 }
 0x9e2   :  { %v7539_v56 = vpop.eup %7538  ;;  %v2546_v0 = vadd.f32 1.0, %v7537_v42 }
 0x9e3   :  { %v2552_v55 = vadd.f32 1.0, %v7539_v56  ;;  %v7541_v12 = vpop.eup %7540 }
 0x9e4   :  { %7544 = vrcp.f32 %v2546_v0  ;;  %v7543_v21 = vpop.eup %7542  ;;  %v2559_v41 = vadd.f32 1.0, %v7541_v12  ;;  %v2570_v0 = vld [vmem:[#allocation2 + $0x20] sm:$0xff] }
 0x9e5   :  { %7546 = vrcp.f32 %v2552_v55 }
 0x9e6   :  { %7548 = vrcp.f32 %v2559_v41 }
 0x9ee   :  { %v7545_v23 = vpop.eup %7544 }
 0x9ef   :  { %v7547_v4 = vpop.eup %7546  ;;  %v2563_v15 = vmul.f32 %v7545_v23, %v7543_v21 }
 0x9f0   :  { %v2562_v59 = vmul.f32 %v7547_v4, %v9010_v61  ;;  %v7549_v4 = vpop.eup %7548 }
 0x9f2   :  { %v2637_v60 = vpop.f32.mrb[24].mxu0  ;;  %v2708_v45 = vpop.f32.mrb[24].mxu1  ;;  %v9200_v10 = vadd.f32 %v2563_v15, %v2562_v59 }
 0x9f3   :  { %v2639_v28 = vpop.f32.mrb[25].mxu0  ;;  %v2710_v42 = vpop.f32.mrb[25].mxu1 }
 0x9f4   :  { %v2717_v3 = vcombine.low %v2637_v60, %v2639_v28  ;;  %v2718_v11 = vcombine.low %v2708_v45, %v2710_v42  ;;  %7550 = vtanh.f32 %v9200_v10 }
 0x9f6   :  { %v2725_v55 = vrot.slane %v2717_v3, %v10362_v5  ;;  %v2732_v56 = vrot.slane %v2718_v11, %v10362_v5 }
 0x9f8   :  { %v2733_v21 = vcombine.low %v2725_v55, %v2732_v56 }
 0x9fa   :  { %v2735_v12 = vadd.f32 %v2733_v21, %v2570_v0 }
 0x9fc   :  { %v4752_v23 = vmul.f32 -1.442695, %v2735_v12  ;;  %v2743_v61 = vrot.slane %v2735_v12, 2  ;;  %v2754_v59 = vrot.slane %v2735_v12, 6  ;;  %v2751_v28 = vrot.slane %v2735_v12, 4 }
 0x9fe   :  { %v7551_v24 = vpop.eup %7550  ;;  %7552 = vpow2.f32 %v4752_v23  ;;  %v4753_v15 = vmul.f32 -1.442695, %v2743_v61  ;;  %v4754_v60 = vmul.f32 -1.442695, %v2754_v59 }
 0x9ff   :  { %v2566_v41 = vmul.f32 %v7551_v24, %v7549_v4 }
 0xa00   :  { %7554 = vpow2.f32 %v4753_v15 }
 0xa01   :  { %2568 = vst [vmem:[#allocation10 + $0x6] sm:$0x3] %v2566_v41  ;;  %7556 = vpow2.f32 %v4754_v60  ;;  %v10746_v60 = vld [vmem:[#allocation95_spill] sm:$0xff] }
 0xa08   :  { %v7553_v45 = vpop.eup %7552 }
 0xa09   :  { %v2739_v42 = vadd.f32 1.0, %v7553_v45  ;;  %v10747_v45 = vld [vmem:[#allocation96_spill] sm:$0xff] }
 0xa0a   :  { %v7555_v3 = vpop.eup %7554 }
 0xa0b   :  { %7558 = vrcp.f32 %v2739_v42  ;;  %v2748_v11 = vadd.f32 1.0, %v7555_v3  ;;  %v7557_v55 = vpop.eup %7556  ;;  %v10750_v42 = vld [vmem:[#allocation99_spill] sm:$0xff]  ;;  %v10751_v3 = vld [vmem:[#allocation100_spill] sm:$0xff] }
 0xa0c   :  { %7560 = vtanh.f32 %v2751_v28  ;;  %v2759_v23 = vadd.f32 1.0, %v7557_v55  ;;  %v10749_v28 = vld [vmem:[#allocation98_spill] sm:$0xff] }
 0xa0d   :  { %7562 = vrcp.f32 %v2748_v11  ;;  %v10752_v11 = vld [vmem:[#allocation101_spill] sm:$0xff]  ;;  %v10753_v55 = vld [vmem:[#allocation102_spill] sm:$0xff] }
 0xa0e   :  { %7564 = vrcp.f32 %v2759_v23  ;;  %v10757_v23 = vld [vmem:[#allocation106_spill] sm:$0xff] }
 0xa15   :  { %v7559_v56 = vpop.eup %7558 }
 0xa16   :  { %v7561_v0 = vpop.eup %7560 }
 0xa17   :  { %v7563_v21 = vpop.eup %7562  ;;  %v2763_v61 = vmul.f32 %v7561_v0, %v7559_v56  ;;  %v10754_v56 = vld [vmem:[#allocation103_spill] sm:$0xff]  ;;  %v10755_v0 = vld [vmem:[#allocation104_spill] sm:$0xff] }
 0xa18   :  { %v2762_v24 = vmul.f32 %v7563_v21, %v9016_v38  ;;  %v7565_v12 = vpop.eup %7564  ;;  %v10745_v38 = vld [vmem:[#allocation94_spill] sm:$0xff]  ;;  %v10756_v21 = vld [vmem:[#allocation105_spill] sm:$0xff] }
 0xa1a   :  { %v9206_v4 = vadd.f32 %v2763_v61, %v2762_v24  ;;  %v10758_v24 = vld [vmem:[#allocation107_spill] sm:$0xff]  ;;  %v10759_v61 = vld [vmem:[#allocation108_spill] sm:$0xff] }
 0xa1c   :  { %7566 = vtanh.f32 %v9206_v4 }
 0xa26   :  { %v7567_v15 = vpop.eup %7566 }
 0xa27   :  { %v9209_v59 = vmul.f32 %v7567_v15, %v7565_v12  ;;  %v10760_v12 = vld [vmem:[#allocation109_spill] sm:$0xff]  ;;  %v10761_v15 = vld [vmem:[#allocation110_spill] sm:$0xff] }
 0xa29   :  { %2832 = vmatmul.mubr.f32.vlgmr.msra.gmra.mrb[26].mxu0 %v9209_v59  ;;  %2903 = vmatmul.mubr.f32.vlgmr.msra.gmra.mrb[26].mxu1 %v9209_v59 }
 0xa2a   :  { %2997 = vmatprep.mubr.f32.mxu0 %v2566_v41  ;;  %3068 = vmatprep.mubr.f32.mxu1 %v2566_v41  ;;  %v10748_v41 = vld [vmem:[#allocation97_spill] sm:$0xff] }
 0xa2b   :  { %6263 = vmatpush1.bf16.msra.mxu0 %v10364_v47  ;;  %6327 = vmatpush1.bf16.msra.mxu1 %v10365_v32 }
 0xa2c   :  { %6265 = vmatprep.subr.bf16.mxu0 %v10366_v62  ;;  %6329 = vmatprep.subr.bf16.mxu1 %v10367_v49 }
 0xa2f   :  { %6267 = vmatpush1.bf16.msra.mxu0 %v10368_v6  ;;  %6331 = vmatpush1.bf16.msra.mxu1 %v10491_v46 }
 0xa30   :  { %6269 = vmatprep.subr.bf16.mxu0 %v10618_v33  ;;  %6333 = vmatprep.subr.bf16.mxu1 %v10745_v38 }
 0xa33   :  { %6271 = vmatpush1.bf16.msra.mxu0 %v10746_v60  ;;  %6335 = vmatpush1.bf16.msra.mxu1 %v10747_v45 }
 0xa34   :  { %6273 = vmatprep.subr.bf16.mxu0 %v10748_v41  ;;  %6337 = vmatprep.subr.bf16.mxu1 %v10749_v28 }
 0xa37   :  { %6275 = vmatpush1.bf16.msra.mxu0 %v10750_v42  ;;  %6339 = vmatpush1.bf16.msra.mxu1 %v10751_v3  ;;  %v10762_v3 = vld [vmem:[#allocation111_spill] sm:$0xff]  ;;  %v10802_v42 = vld [vmem:[#allocation149_spill] sm:$0xff] }
 0xa38   :  { %6277 = vmatprep.subr.bf16.mxu0 %v10752_v11  ;;  %6341 = vmatprep.subr.bf16.mxu1 %v10753_v55  ;;  %v10763_v11 = vld [vmem:[#allocation112_spill] sm:$0xff]  ;;  %v10764_v55 = vld [vmem:[#allocation113_spill] sm:$0xff] }
 0xa3b   :  { %6279 = vmatpush1.bf16.msra.mxu0 %v10754_v56  ;;  %6343 = vmatpush1.bf16.msra.mxu1 %v10755_v0  ;;  %v10765_v56 = vld [vmem:[#allocation114_spill] sm:$0xff]  ;;  %v10766_v0 = vld [vmem:[#allocation115_spill] sm:$0xff] }
 0xa3c   :  { %6281 = vmatprep.subr.bf16.mxu0 %v10756_v21  ;;  %6345 = vmatprep.subr.bf16.mxu1 %v10757_v23  ;;  %v10767_v21 = vld [vmem:[#allocation116_spill] sm:$0xff]  ;;  %v10768_v23 = vld [vmem:[#allocation117_spill] sm:$0xff] }
 0xa3f   :  { %6283 = vmatpush1.bf16.msra.mxu0 %v10758_v24  ;;  %6347 = vmatpush1.bf16.msra.mxu1 %v10759_v61  ;;  %v10769_v24 = vld [vmem:[#allocation118_spill] sm:$0xff]  ;;  %v10770_v61 = vld [vmem:[#allocation119_spill] sm:$0xff] }
 0xa40   :  { %6285 = vmatprep.subr.bf16.mxu0 %v10760_v12  ;;  %6349 = vmatprep.subr.bf16.mxu1 %v10761_v15  ;;  %v10771_v12 = vld [vmem:[#allocation120_spill] sm:$0xff]  ;;  %v10772_v15 = vld [vmem:[#allocation121_spill] sm:$0xff] }
 0xa43   :  { %6287 = vmatpush1.bf16.msra.mxu0 %v10762_v3  ;;  %6351 = vmatpush1.bf16.msra.mxu1 %v10763_v11  ;;  %v10773_v3 = vld [vmem:[#allocation122_spill] sm:$0xff]  ;;  %v10774_v11 = vld [vmem:[#allocation123_spill] sm:$0xff] }
 0xa44   :  { %6289 = vmatprep.subr.bf16.mxu0 %v10764_v55  ;;  %6353 = vmatprep.subr.bf16.mxu1 %v10765_v56  ;;  %v10775_v55 = vld [vmem:[#allocation124_spill] sm:$0xff]  ;;  %v10776_v56 = vld [vmem:[#allocation125_spill] sm:$0xff] }
 0xa47   :  { %6291 = vmatpush1.bf16.msra.mxu0 %v10766_v0  ;;  %6355 = vmatpush1.bf16.msra.mxu1 %v10767_v21  ;;  %v10777_v0 = vld [vmem:[#allocation126_spill] sm:$0xff]  ;;  %v10778_v21 = vld [vmem:[#allocation127_spill] sm:$0xff] }
 0xa48   :  { %6293 = vmatprep.subr.bf16.mxu0 %v10768_v23  ;;  %6357 = vmatprep.subr.bf16.mxu1 %v10769_v24  ;;  %v10779_v23 = vld [vmem:[#allocation128_spill] sm:$0xff]  ;;  %v10780_v24 = vld [vmem:[#allocation129_spill] sm:$0xff] }
 0xa4b   :  { %6295 = vmatpush1.bf16.msra.mxu0 %v10770_v61  ;;  %6359 = vmatpush1.bf16.msra.mxu1 %v10771_v12  ;;  %v10781_v61 = vld [vmem:[#allocation130_spill] sm:$0xff]  ;;  %v10782_v12 = vld [vmem:[#allocation131_spill] sm:$0xff] }
 0xa4c   :  { %6297 = vmatprep.subr.bf16.mxu0 %v10772_v15  ;;  %6361 = vmatprep.subr.bf16.mxu1 %v10773_v3  ;;  %v10783_v15 = vld [vmem:[#allocation132_spill] sm:$0xff]  ;;  %v10784_v3 = vld [vmem:[#allocation133_spill] sm:$0xff] }
 0xa4f   :  { %6299 = vmatpush1.bf16.msra.mxu0 %v10774_v11  ;;  %6363 = vmatpush1.bf16.msra.mxu1 %v10775_v55  ;;  %v10785_v11 = vld [vmem:[#allocation134_spill] sm:$0xff]  ;;  %v10786_v55 = vld [vmem:[#allocation135_spill] sm:$0xff] }
 0xa50   :  { %6301 = vmatprep.subr.bf16.mxu0 %v10776_v56  ;;  %6365 = vmatprep.subr.bf16.mxu1 %v10777_v0  ;;  %v10787_v56 = vld [vmem:[#allocation136_spill] sm:$0xff]  ;;  %v10788_v0 = vld [vmem:[#allocation137_spill] sm:$0xff] }
 0xa53   :  { %6303 = vmatpush1.bf16.msra.mxu0 %v10778_v21  ;;  %6367 = vmatpush1.bf16.msra.mxu1 %v10779_v23  ;;  %v10789_v21 = vld [vmem:[#allocation138_spill] sm:$0xff]  ;;  %v10790_v23 = vld [vmem:[#allocation139_spill] sm:$0xff] }
 0xa54   :  { %6305 = vmatprep.subr.bf16.mxu0 %v10780_v24  ;;  %6369 = vmatprep.subr.bf16.mxu1 %v10781_v61  ;;  %v10791_v24 = vld [vmem:[#allocation140_spill] sm:$0xff]  ;;  %v10792_v61 = vld [vmem:[#allocation141_spill] sm:$0xff] }
 0xa57   :  { %6307 = vmatpush1.bf16.msra.mxu0 %v10782_v12  ;;  %6371 = vmatpush1.bf16.msra.mxu1 %v10783_v15  ;;  %v10793_v12 = vld [vmem:[#allocation142_spill] sm:$0xff]  ;;  %v10794_v15 = vld [vmem:[#allocation143_spill] sm:$0xff] }
 0xa58   :  { %6309 = vmatprep.subr.bf16.mxu0 %v10784_v3  ;;  %6373 = vmatprep.subr.bf16.mxu1 %v10785_v11  ;;  %v10795_v3 = vld [vmem:[#allocation144_spill] sm:$0xff]  ;;  %v10796_v11 = vld [vmem:[#allocation145_spill] sm:$0xff] }
 0xa5b   :  { %6311 = vmatpush1.bf16.msra.mxu0 %v10786_v55  ;;  %6375 = vmatpush1.bf16.msra.mxu1 %v10787_v56  ;;  %v10797_v55 = vld [vmem:[#allocation146_spill] sm:$0xff]  ;;  %v10798_v56 = vld [vmem:[#allocation147_spill] sm:$0xff] }
 0xa5c   :  { %6313 = vmatprep.subr.bf16.mxu0 %v10788_v0  ;;  %6377 = vmatprep.subr.bf16.mxu1 %v10789_v21  ;;  %v10799_v0 = vld [vmem:[#allocation148_spill] sm:$0xff]  ;;  %v10800_v21 = vld [vmem:[#allocation15_spill] sm:$0xff] }
 0xa5f   :  { %6315 = vmatpush1.bf16.msra.mxu0 %v10790_v23  ;;  %6379 = vmatpush1.bf16.msra.mxu1 %v10791_v24  ;;  %v10801_v23 = vld [vmem:[#allocation16_spill] sm:$0xff] }
 0xa60   :  { %6317 = vmatprep.subr.bf16.mxu0 %v10792_v61  ;;  %6381 = vmatprep.subr.bf16.mxu1 %v10793_v12 }
 0xa63   :  { %6319 = vmatpush1.bf16.msra.mxu0 %v10794_v15  ;;  %6383 = vmatpush1.bf16.msra.mxu1 %v10795_v3 }
 0xa64   :  { %6321 = vmatprep.subr.bf16.mxu0 %v10796_v11  ;;  %6385 = vmatprep.subr.bf16.mxu1 %v10797_v55 }
 0xa67   :  { %6323 = vmatpush1.bf16.msra.mxu0 %v10798_v56  ;;  %6387 = vmatpush1.bf16.msra.mxu1 %v10799_v0 }
 0xa68   :  { %6389 = vmatprep.subr.bf16.mxu0 %v10800_v21  ;;  %6421 = vmatprep.subr.bf16.mxu1 %v10801_v23 }
 0xafc   :  { %v2833_v24 = vpop.f32.mrb[26].mxu0  ;;  %v2904_v61 = vpop.f32.mrb[26].mxu1 }
 0xafd   :  { %v2834_v12 = vadd.f32 %v2833_v24, %v10802_v42  ;;  %v2835_v28 = vpop.f32.mrb[27].mxu0  ;;  %v2906_v15 = vpop.f32.mrb[27].mxu1  ;;  %v2905_v0 = vadd.f32 %v2904_v61, %v8501_v58  ;;  %v10809_v61 = vld [vmem:[#allocation25_spill] sm:$0xff] }
 0xafe   :  { %v2836_v3 = vadd.f32 %v2835_v28, %v10423_v48  ;;  %v2907_v56 = vadd.f32 %v2906_v15, %v10424_v8 }
 0xaff   :  { %v4755_v41 = vmul.f32 -1.442695, %v2834_v12 }
 0xb00   :  { %v4756_v11 = vmul.f32 -1.442695, %v2836_v3  ;;  %v4757_v55 = vmul.f32 -1.442695, %v2907_v56 }
 0xb01   :  { %7568 = vpow2.f32 %v4755_v41 }
 0xb02   :  { %7570 = vpow2.f32 %v4756_v11 }
 0xb03   :  { %7572 = vpow2.f32 %v4757_v55 }
 0xb04   :  { %7574 = vtanh.f32 %v2905_v0  ;;  %v10807_v0 = vld [vmem:[#allocation23_spill] sm:$0xff] }
 0xb0b   :  { %v7569_v21 = vpop.eup %7568 }
 0xb0c   :  { %v7571_v45 = vpop.eup %7570  ;;  %v2912_v23 = vadd.f32 1.0, %v7569_v21 }
 0xb0d   :  { %v2918_v60 = vadd.f32 1.0, %v7571_v45  ;;  %v7573_v24 = vpop.eup %7572  ;;  %v10805_v45 = vld [vmem:[#allocation21_spill] sm:$0xff] }
 0xb0e   :  { %7576 = vrcp.f32 %v2912_v23  ;;  %v7575_v42 = vpop.eup %7574  ;;  %v2925_v41 = vadd.f32 1.0, %v7573_v24  ;;  %v10808_v23 = vld [vmem:[#allocation24_spill] sm:$0xff]  ;;  %v10810_v24 = vld [vmem:[#allocation26_spill] sm:$0xff] }
 0xb0f   :  { %7578 = vrcp.f32 %v2918_v60  ;;  %v10804_v60 = vld [vmem:[#allocation20_spill] sm:$0xff] }
 0xb10   :  { %7580 = vrcp.f32 %v2925_v41  ;;  %v10815_v41 = vld [vmem:[#allocation31_spill] sm:$0xff] }
 0xb18   :  { %v7577_v28 = vpop.eup %7576 }
 0xb19   :  { %v7579_v12 = vpop.eup %7578  ;;  %v2929_v3 = vmul.f32 %v7577_v28, %v7575_v42  ;;  %v10806_v42 = vld [vmem:[#allocation22_spill] sm:$0xff]  ;;  %v10811_v28 = vld [vmem:[#allocation27_spill] sm:$0xff] }
 0xb1a   :  { %v2928_v11 = vmul.f32 %v7579_v12, %v9092_v29  ;;  %v7581_v56 = vpop.eup %7580  ;;  %v10803_v29 = vld [vmem:[#allocation19_spill] sm:$0xff]  ;;  %v10812_v12 = vld [vmem:[#allocation28_spill] sm:$0xff] }
 0xb1c   :  { %v9282_v15 = vadd.f32 %v2929_v3, %v2928_v11  ;;  %v10813_v3 = vld [vmem:[#allocation29_spill] sm:$0xff]  ;;  %v10816_v11 = vld [vmem:[#allocation32_spill] sm:$0xff] }
 0xb1e   :  { %7582 = vtanh.f32 %v9282_v15 }
 0xb28   :  { %v7583_v21 = vpop.eup %7582 }
 0xb29   :  { %v2932_v55 = vmul.f32 %v7583_v21, %v7581_v56  ;;  %v10817_v56 = vld [vmem:[#allocation33_spill] sm:$0xff]  ;;  %v10818_v21 = vld [vmem:[#allocation34_spill] sm:$0xff] }
 0xb2b   :  { %2998 = vmatmul.mubr.f32.vlgmr.msra.gmra.mrb[28].mxu0 %v2932_v55  ;;  %3069 = vmatmul.mubr.f32.vlgmr.msra.gmra.mrb[28].mxu1 %v2932_v55 }
 0xb2c   :  { %6391 = vmatpush1.bf16.msra.mxu0 %v7979_v9  ;;  %6423 = vmatpush1.bf16.msra.mxu1 %v7982_v13 }
 0xb2d   :  { %6393 = vmatprep.subr.bf16.mxu0 %v7986_v17  ;;  %6425 = vmatprep.subr.bf16.mxu1 %v7988_v18 }
 0xb2e   :  { %3167 = vmatprep.mubr.f32.mxu0 %v10236_v14  ;;  %3238 = vmatprep.mubr.f32.mxu1 %v10236_v14 }
 0xb30   :  { %6395 = vmatpush1.bf16.msra.mxu0 %v7991_v22  ;;  %6427 = vmatpush1.bf16.msra.mxu1 %v7995_v26 }
 0xb31   :  { %6397 = vmatprep.subr.bf16.mxu0 %v7997_v27  ;;  %6429 = vmatprep.subr.bf16.mxu1 %v7999_v31 }
 0xb34   :  { %6399 = vmatpush1.bf16.msra.mxu0 %v8002_v35  ;;  %6431 = vmatpush1.bf16.msra.mxu1 %v8006_v39 }
 0xb35   :  { %6401 = vmatprep.subr.bf16.mxu0 %v8008_v40  ;;  %6433 = vmatprep.subr.bf16.mxu1 %v8011_v44 }
 0xb38   :  { %6403 = vmatpush1.bf16.msra.mxu0 %v8014_v51  ;;  %6435 = vmatpush1.bf16.msra.mxu1 %v8018_v52 }
 0xb39   :  { %6405 = vmatprep.subr.bf16.mxu0 %v8020_v53  ;;  %6437 = vmatprep.subr.bf16.mxu1 %v8023_v57 }
 0xb3c   :  { %6407 = vmatpush1.bf16.msra.mxu0 %v8026_v63  ;;  %6439 = vmatpush1.bf16.msra.mxu1 %v8030_v1 }
 0xb3d   :  { %6409 = vmatprep.subr.bf16.mxu0 %v8032_v2  ;;  %6441 = vmatprep.subr.bf16.mxu1 %v8035_v7 }
 0xb40   :  { %6411 = vmatpush1.bf16.msra.mxu0 %v8038_v16  ;;  %6443 = vmatpush1.bf16.msra.mxu1 %v8042_v19 }
 0xb41   :  { %6413 = vmatprep.subr.bf16.mxu0 %v8044_v20  ;;  %6445 = vmatprep.subr.bf16.mxu1 %v8047_v25 }
 0xb44   :  { %6415 = vmatpush1.bf16.msra.mxu0 %v8050_v34  ;;  %6447 = vmatpush1.bf16.msra.mxu1 %v8054_v36 }
 0xb45   :  { %6417 = vmatprep.subr.bf16.mxu0 %v8056_v37  ;;  %6449 = vmatprep.subr.bf16.mxu1 %v8059_v43 }
 0xb48   :  { %6419 = vmatpush1.bf16.msra.mxu0 %v8062_v50  ;;  %6451 = vmatpush1.bf16.msra.mxu1 %v8066_v54 }
 0xb49   :  { %6453 = vmatprep.subr.bf16.mxu0 %v10803_v29  ;;  %6517 = vmatprep.subr.bf16.mxu1 %v10804_v60 }
 0xb4b   :  { %3168 = vmatmul.mubr.f32.vlgmr.msra.gmra.mrb[30].mxu0 %v9209_v59  ;;  %3239 = vmatmul.mubr.f32.vlgmr.msra.gmra.mrb[30].mxu1 %v9209_v59  ;;  %v10814_v59 = vld [vmem:[#allocation30_spill] sm:$0xff] }
 0xb4c   :  { %3363 = vmatprep.mubr.f32.mxu0 %v2932_v55  ;;  %3434 = vmatprep.mubr.f32.mxu1 %v2932_v55  ;;  %v10819_v55 = vld [vmem:[#allocation35_spill] sm:$0xff] }
 0xb4d   :  { %6455 = vmatpush1.bf16.msra.mxu0 %v10805_v45  ;;  %6519 = vmatpush1.bf16.msra.mxu1 %v10806_v42 }
 0xb4e   :  { %6457 = vmatprep.subr.bf16.mxu0 %v10807_v0  ;;  %6521 = vmatprep.subr.bf16.mxu1 %v10808_v23  ;;  %v10869_v23 = vld [vmem:[#allocation152_spill] sm:$0xff] }
 0xb51   :  { %6459 = vmatpush1.bf16.msra.mxu0 %v10809_v61  ;;  %6523 = vmatpush1.bf16.msra.mxu1 %v10810_v24  ;;  %v10820_v61 = vld [vmem:[#allocation36_spill] sm:$0xff]  ;;  %v10821_v24 = vld [vmem:[#allocation37_spill] sm:$0xff] }
 0xb52   :  { %6461 = vmatprep.subr.bf16.mxu0 %v10811_v28  ;;  %6525 = vmatprep.subr.bf16.mxu1 %v10812_v12  ;;  %v10822_v28 = vld [vmem:[#allocation38_spill] sm:$0xff]  ;;  %v10823_v12 = vld [vmem:[#allocation39_spill] sm:$0xff] }
 0xb55   :  { %6463 = vmatpush1.bf16.msra.mxu0 %v10813_v3  ;;  %6527 = vmatpush1.bf16.msra.mxu1 %v10814_v59  ;;  %v10824_v3 = vld [vmem:[#allocation40_spill] sm:$0xff]  ;;  %v10825_v59 = vld [vmem:[#allocation41_spill] sm:$0xff] }
 0xb56   :  { %6465 = vmatprep.subr.bf16.mxu0 %v10815_v41  ;;  %6529 = vmatprep.subr.bf16.mxu1 %v10816_v11  ;;  %v10826_v41 = vld [vmem:[#allocation42_spill] sm:$0xff]  ;;  %v10827_v11 = vld [vmem:[#allocation43_spill] sm:$0xff] }
 0xb59   :  { %6467 = vmatpush1.bf16.msra.mxu0 %v10817_v56  ;;  %6531 = vmatpush1.bf16.msra.mxu1 %v10818_v21  ;;  %v10828_v56 = vld [vmem:[#allocation44_spill] sm:$0xff]  ;;  %v10829_v21 = vld [vmem:[#allocation45_spill] sm:$0xff] }
 0xb5a   :  { %6469 = vmatprep.subr.bf16.mxu0 %v10819_v55  ;;  %6533 = vmatprep.subr.bf16.mxu1 %v10820_v61  ;;  %v10830_v55 = vld [vmem:[#allocation46_spill] sm:$0xff]  ;;  %v10831_v61 = vld [vmem:[#allocation47_spill] sm:$0xff] }
 0xb5d   :  { %6471 = vmatpush1.bf16.msra.mxu0 %v10821_v24  ;;  %6535 = vmatpush1.bf16.msra.mxu1 %v10822_v28  ;;  %v10832_v24 = vld [vmem:[#allocation48_spill] sm:$0xff]  ;;  %v10833_v28 = vld [vmem:[#allocation49_spill] sm:$0xff] }
 0xb5e   :  { %6473 = vmatprep.subr.bf16.mxu0 %v10823_v12  ;;  %6537 = vmatprep.subr.bf16.mxu1 %v10824_v3  ;;  %v10834_v12 = vld [vmem:[#allocation50_spill] sm:$0xff]  ;;  %v10835_v3 = vld [vmem:[#allocation51_spill] sm:$0xff] }
 0xb61   :  { %6475 = vmatpush1.bf16.msra.mxu0 %v10825_v59  ;;  %6539 = vmatpush1.bf16.msra.mxu1 %v10826_v41  ;;  %v10836_v59 = vld [vmem:[#allocation52_spill] sm:$0xff]  ;;  %v10837_v41 = vld [vmem:[#allocation53_spill] sm:$0xff] }
 0xb62   :  { %6477 = vmatprep.subr.bf16.mxu0 %v10827_v11  ;;  %6541 = vmatprep.subr.bf16.mxu1 %v10828_v56  ;;  %v10838_v11 = vld [vmem:[#allocation54_spill] sm:$0xff]  ;;  %v10839_v56 = vld [vmem:[#allocation55_spill] sm:$0xff] }
 0xb65   :  { %6479 = vmatpush1.bf16.msra.mxu0 %v10829_v21  ;;  %6543 = vmatpush1.bf16.msra.mxu1 %v10830_v55  ;;  %v10840_v21 = vld [vmem:[#allocation56_spill] sm:$0xff]  ;;  %v10841_v55 = vld [vmem:[#allocation57_spill] sm:$0xff] }
 0xb66   :  { %6481 = vmatprep.subr.bf16.mxu0 %v10831_v61  ;;  %6545 = vmatprep.subr.bf16.mxu1 %v10832_v24  ;;  %v10842_v61 = vld [vmem:[#allocation58_spill] sm:$0xff]  ;;  %v10843_v24 = vld [vmem:[#allocation59_spill] sm:$0xff] }
 0xb69   :  { %6483 = vmatpush1.bf16.msra.mxu0 %v10833_v28  ;;  %6547 = vmatpush1.bf16.msra.mxu1 %v10834_v12  ;;  %v10844_v28 = vld [vmem:[#allocation60_spill] sm:$0xff]  ;;  %v10845_v12 = vld [vmem:[#allocation61_spill] sm:$0xff] }
 0xb6a   :  { %6485 = vmatprep.subr.bf16.mxu0 %v10835_v3  ;;  %6549 = vmatprep.subr.bf16.mxu1 %v10836_v59  ;;  %v10846_v3 = vld [vmem:[#allocation62_spill] sm:$0xff]  ;;  %v10847_v59 = vld [vmem:[#allocation63_spill] sm:$0xff] }
 0xb6d   :  { %6487 = vmatpush1.bf16.msra.mxu0 %v10837_v41  ;;  %6551 = vmatpush1.bf16.msra.mxu1 %v10838_v11  ;;  %v10848_v41 = vld [vmem:[#allocation64_spill] sm:$0xff]  ;;  %v10849_v11 = vld [vmem:[#allocation65_spill] sm:$0xff] }
 0xb6e   :  { %6489 = vmatprep.subr.bf16.mxu0 %v10839_v56  ;;  %6553 = vmatprep.subr.bf16.mxu1 %v10840_v21  ;;  %v10850_v56 = vld [vmem:[#allocation66_spill] sm:$0xff]  ;;  %v10851_v21 = vld [vmem:[#allocation67_spill] sm:$0xff] }
 0xb71   :  { %6491 = vmatpush1.bf16.msra.mxu0 %v10841_v55  ;;  %6555 = vmatpush1.bf16.msra.mxu1 %v10842_v61  ;;  %v10852_v55 = vld [vmem:[#allocation68_spill] sm:$0xff]  ;;  %v10853_v61 = vld [vmem:[#allocation69_spill] sm:$0xff] }
 0xb72   :  { %6493 = vmatprep.subr.bf16.mxu0 %v10843_v24  ;;  %6557 = vmatprep.subr.bf16.mxu1 %v10844_v28  ;;  %v10854_v24 = vld [vmem:[#allocation70_spill] sm:$0xff]  ;;  %v10855_v28 = vld [vmem:[#allocation71_spill] sm:$0xff] }
 0xb75   :  { %6495 = vmatpush1.bf16.msra.mxu0 %v10845_v12  ;;  %6559 = vmatpush1.bf16.msra.mxu1 %v10846_v3  ;;  %v10856_v12 = vld [vmem:[#allocation72_spill] sm:$0xff]  ;;  %v10857_v3 = vld [vmem:[#allocation73_spill] sm:$0xff] }
 0xb76   :  { %6497 = vmatprep.subr.bf16.mxu0 %v10847_v59  ;;  %6561 = vmatprep.subr.bf16.mxu1 %v10848_v41  ;;  %v10858_v59 = vld [vmem:[#allocation74_spill] sm:$0xff]  ;;  %v10859_v41 = vld [vmem:[#allocation75_spill] sm:$0xff] }
 0xb79   :  { %6499 = vmatpush1.bf16.msra.mxu0 %v10849_v11  ;;  %6563 = vmatpush1.bf16.msra.mxu1 %v10850_v56  ;;  %v10860_v11 = vld [vmem:[#allocation76_spill] sm:$0xff]  ;;  %v10861_v56 = vld [vmem:[#allocation77_spill] sm:$0xff] }
 0xb7a   :  { %6501 = vmatprep.subr.bf16.mxu0 %v10851_v21  ;;  %6565 = vmatprep.subr.bf16.mxu1 %v10852_v55  ;;  %v10862_v21 = vld [vmem:[#allocation78_spill] sm:$0xff]  ;;  %v10863_v55 = vld [vmem:[#allocation79_spill] sm:$0xff] }
 0xb7d   :  { %6503 = vmatpush1.bf16.msra.mxu0 %v10853_v61  ;;  %6567 = vmatpush1.bf16.msra.mxu1 %v10854_v24  ;;  %v10864_v61 = vld [vmem:[#allocation80_spill] sm:$0xff]  ;;  %v10865_v24 = vld [vmem:[#allocation81_spill] sm:$0xff] }
 0xb7e   :  { %6505 = vmatprep.subr.bf16.mxu0 %v10855_v28  ;;  %6569 = vmatprep.subr.bf16.mxu1 %v10856_v12  ;;  %v10866_v28 = vld [vmem:[#allocation82_spill] sm:$0xff]  ;;  %v10867_v12 = vld [vmem:[#allocation83_spill] sm:$0xff] }
 0xb81   :  { %6507 = vmatpush1.bf16.msra.mxu0 %v10857_v3  ;;  %6571 = vmatpush1.bf16.msra.mxu1 %v10858_v59  ;;  %v10868_v3 = vld [vmem:[#allocation84_spill] sm:$0xff] }
 0xb82   :  { %6509 = vmatprep.subr.bf16.mxu0 %v10859_v41  ;;  %6573 = vmatprep.subr.bf16.mxu1 %v10860_v11 }
 0xb85   :  { %6511 = vmatpush1.bf16.msra.mxu0 %v10861_v56  ;;  %6575 = vmatpush1.bf16.msra.mxu1 %v10862_v21 }
 0xb86   :  { %6513 = vmatprep.subr.bf16.mxu0 %v10863_v55  ;;  %6577 = vmatprep.subr.bf16.mxu1 %v10864_v61  ;;  %v10870_v61 = vld [vmem:[#allocation154_spill] sm:$0xff] }
 0xb89   :  { %6515 = vmatpush1.bf16.msra.mxu0 %v10865_v24  ;;  %6579 = vmatpush1.bf16.msra.mxu1 %v10866_v28  ;;  %v10871_v28 = vld [vmem:[#allocation155_spill] sm:$0xff] }
 0xb8a   :  { %6581 = vmatprep.subr.bf16.mxu0 %v10867_v12  ;;  %6645 = vmatprep.subr.bf16.mxu1 %v10868_v3 }
 0xbfe   :  { %v2999_v59 = vpop.f32.mrb[28].mxu0  ;;  %v3070_v41 = vpop.f32.mrb[28].mxu1 }
 0xbff   :  { %v3000_v11 = vadd.f32 %v2999_v59, %v10869_v23  ;;  %v3001_v0 = vpop.f32.mrb[29].mxu0  ;;  %v3072_v56 = vpop.f32.mrb[29].mxu1  ;;  %v3071_v60 = vadd.f32 %v3070_v41, %v10871_v28 }
 0xc00   :  { %v3002_v21 = vadd.f32 %v3001_v0, %v10615_v30  ;;  %v3073_v24 = vadd.f32 %v3072_v56, %v10870_v61 }
 0xc01   :  { %v4758_v42 = vmul.f32 -1.442695, %v3000_v11 }
 0xc02   :  { %v4759_v55 = vmul.f32 -1.442695, %v3002_v21  ;;  %v4760_v45 = vmul.f32 -1.442695, %v3073_v24 }
 0xc03   :  { %7584 = vpow2.f32 %v4758_v42 }
 0xc04   :  { %7586 = vpow2.f32 %v4759_v55 }
 0xc05   :  { %7588 = vpow2.f32 %v4760_v45 }
 0xc06   :  { %7590 = vtanh.f32 %v3071_v60 }
 0xc0d   :  { %v7585_v12 = vpop.eup %7584 }
 0xc0e   :  { %v7587_v29 = vpop.eup %7586  ;;  %v3078_v3 = vadd.f32 1.0, %v7585_v12 }
 0xc0f   :  { %v3084_v54 = vadd.f32 1.0, %v7587_v29  ;;  %v7589_v59 = vpop.eup %7588 }
 0xc10   :  { %7592 = vrcp.f32 %v3078_v3  ;;  %v7591_v23 = vpop.eup %7590  ;;  %v3091_v42 = vadd.f32 1.0, %v7589_v59  ;;  %v3102_v3 = vld [vmem:[#allocation2 + $0x28] sm:$0xff] }
 0xc11   :  { %7594 = vrcp.f32 %v3084_v54 }
 0xc12   :  { %7596 = vrcp.f32 %v3091_v42 }
 0xc1a   :  { %v7593_v0 = vpop.eup %7592 }
 0xc1b   :  { %v7595_v11 = vpop.eup %7594  ;;  %v3095_v21 = vmul.f32 %v7593_v0, %v7591_v23 }
 0xc1c   :  { %v3094_v55 = vmul.f32 %v7595_v11, %v9200_v10  ;;  %v7597_v11 = vpop.eup %7596 }
 0xc1e   :  { %v3169_v56 = vpop.f32.mrb[30].mxu0  ;;  %v3240_v24 = vpop.f32.mrb[30].mxu1  ;;  %v9390_v61 = vadd.f32 %v3095_v21, %v3094_v55 }
 0xc1f   :  { %v3171_v41 = vpop.f32.mrb[31].mxu0  ;;  %v3242_v12 = vpop.f32.mrb[31].mxu1 }
 0xc20   :  { %v3249_v45 = vcombine.low %v3169_v56, %v3171_v41  ;;  %v3250_v60 = vcombine.low %v3240_v24, %v3242_v12  ;;  %7598 = vtanh.f32 %v9390_v61 }
 0xc22   :  { %v3257_v54 = vrot.slane %v3249_v45, %v10362_v5  ;;  %v3264_v29 = vrot.slane %v3250_v60, %v10362_v5 }
 0xc24   :  { %v3265_v23 = vcombine.low %v3257_v54, %v3264_v29 }
 0xc26   :  { %v3267_v59 = vadd.f32 %v3265_v23, %v3102_v3 }
 0xc28   :  { %v4761_v0 = vmul.f32 -1.442695, %v3267_v59  ;;  %v3275_v10 = vrot.slane %v3267_v59, 2  ;;  %v3286_v55 = vrot.slane %v3267_v59, 6  ;;  %v3283_v41 = vrot.slane %v3267_v59, 4 }
 0xc2a   :  { %v7599_v28 = vpop.eup %7598  ;;  %7600 = vpow2.f32 %v4761_v0  ;;  %v4762_v21 = vmul.f32 -1.442695, %v3275_v10  ;;  %v4763_v56 = vmul.f32 -1.442695, %v3286_v55 }
 0xc2b   :  { %v3098_v42 = vmul.f32 %v7599_v28, %v7597_v11 }
 0xc2c   :  { %7602 = vpow2.f32 %v4762_v21 }
 0xc2d   :  { %3100 = vst [vmem:[#allocation10 + $0x8] sm:$0x3] %v3098_v42  ;;  %7604 = vpow2.f32 %v4763_v56  ;;  %v10873_v56 = vld [vmem:[#allocation96_spill] sm:$0xff] }
 0xc34   :  { %v7601_v24 = vpop.eup %7600 }
 0xc35   :  { %v3271_v12 = vadd.f32 1.0, %v7601_v24  ;;  %v10875_v24 = vld [vmem:[#allocation98_spill] sm:$0xff] }
 0xc36   :  { %v7603_v45 = vpop.eup %7602 }
 0xc37   :  { %7606 = vrcp.f32 %v3271_v12  ;;  %v3280_v60 = vadd.f32 1.0, %v7603_v45  ;;  %v7605_v54 = vpop.eup %7604  ;;  %v10877_v12 = vld [vmem:[#allocation100_spill] sm:$0xff]  ;;  %v10878_v45 = vld [vmem:[#allocation101_spill] sm:$0xff] }
 0xc38   :  { %7608 = vtanh.f32 %v3283_v41  ;;  %v3291_v0 = vadd.f32 1.0, %v7605_v54  ;;  %v10876_v41 = vld [vmem:[#allocation99_spill] sm:$0xff] }
 0xc39   :  { %7610 = vrcp.f32 %v3280_v60  ;;  %v10879_v60 = vld [vmem:[#allocation102_spill] sm:$0xff]  ;;  %v10880_v54 = vld [vmem:[#allocation103_spill] sm:$0xff] }
 0xc3a   :  { %7612 = vrcp.f32 %v3291_v0  ;;  %v10884_v0 = vld [vmem:[#allocation107_spill] sm:$0xff] }
 0xc41   :  { %v7607_v29 = vpop.eup %7606 }
 0xc42   :  { %v7609_v3 = vpop.eup %7608 }
 0xc43   :  { %v7611_v23 = vpop.eup %7610  ;;  %v3295_v10 = vmul.f32 %v7609_v3, %v7607_v29  ;;  %v10881_v29 = vld [vmem:[#allocation104_spill] sm:$0xff]  ;;  %v10882_v3 = vld [vmem:[#allocation105_spill] sm:$0xff] }
 0xc44   :  { %v3294_v28 = vmul.f32 %v7611_v23, %v9206_v4  ;;  %v7613_v59 = vpop.eup %7612  ;;  %v10872_v4 = vld [vmem:[#allocation95_spill] sm:$0xff]  ;;  %v10883_v23 = vld [vmem:[#allocation106_spill] sm:$0xff] }
 0xc46   :  { %v9396_v11 = vadd.f32 %v3295_v10, %v3294_v28  ;;  %v10885_v28 = vld [vmem:[#allocation108_spill] sm:$0xff]  ;;  %v10886_v10 = vld [vmem:[#allocation109_spill] sm:$0xff] }
 0xc48   :  { %7614 = vtanh.f32 %v9396_v11 }
 0xc52   :  { %v7615_v21 = vpop.eup %7614 }
 0xc53   :  { %v9399_v55 = vmul.f32 %v7615_v21, %v7613_v59  ;;  %v10887_v59 = vld [vmem:[#allocation110_spill] sm:$0xff]  ;;  %v10888_v21 = vld [vmem:[#allocation111_spill] sm:$0xff] }
 0xc55   :  { %3364 = vmatmul.mubr.f32.vlgmr.msra.gmra.mrb[32].mxu0 %v9399_v55  ;;  %3435 = vmatmul.mubr.f32.vlgmr.msra.gmra.mrb[32].mxu1 %v9399_v55 }
 0xc56   :  { %3529 = vmatprep.mubr.f32.mxu0 %v3098_v42  ;;  %3600 = vmatprep.mubr.f32.mxu1 %v3098_v42  ;;  %v10874_v42 = vld [vmem:[#allocation97_spill] sm:$0xff] }
 0xc57   :  { %6583 = vmatpush1.bf16.msra.mxu0 %v10364_v47  ;;  %6647 = vmatpush1.bf16.msra.mxu1 %v10365_v32 }
 0xc58   :  { %6585 = vmatprep.subr.bf16.mxu0 %v10366_v62  ;;  %6649 = vmatprep.subr.bf16.mxu1 %v10367_v49 }
 0xc5b   :  { %6587 = vmatpush1.bf16.msra.mxu0 %v10368_v6  ;;  %6651 = vmatpush1.bf16.msra.mxu1 %v10491_v46 }
 0xc5c   :  { %6589 = vmatprep.subr.bf16.mxu0 %v10618_v33  ;;  %6653 = vmatprep.subr.bf16.mxu1 %v10745_v38 }
 0xc5f   :  { %6591 = vmatpush1.bf16.msra.mxu0 %v10872_v4  ;;  %6655 = vmatpush1.bf16.msra.mxu1 %v10873_v56 }
 0xc60   :  { %6593 = vmatprep.subr.bf16.mxu0 %v10874_v42  ;;  %6657 = vmatprep.subr.bf16.mxu1 %v10875_v24 }
 0xc63   :  { %6595 = vmatpush1.bf16.msra.mxu0 %v10876_v41  ;;  %6659 = vmatpush1.bf16.msra.mxu1 %v10877_v12  ;;  %v10928_v12 = vld [vmem:[#allocation149_spill] sm:$0xff] }
 0xc64   :  { %6597 = vmatprep.subr.bf16.mxu0 %v10878_v45  ;;  %6661 = vmatprep.subr.bf16.mxu1 %v10879_v60  ;;  %v10889_v45 = vld [vmem:[#allocation112_spill] sm:$0xff]  ;;  %v10890_v60 = vld [vmem:[#allocation113_spill] sm:$0xff] }
 0xc67   :  { %6599 = vmatpush1.bf16.msra.mxu0 %v10880_v54  ;;  %6663 = vmatpush1.bf16.msra.mxu1 %v10881_v29  ;;  %v10891_v54 = vld [vmem:[#allocation114_spill] sm:$0xff]  ;;  %v10892_v29 = vld [vmem:[#allocation115_spill] sm:$0xff] }
 0xc68   :  { %6601 = vmatprep.subr.bf16.mxu0 %v10882_v3  ;;  %6665 = vmatprep.subr.bf16.mxu1 %v10883_v23  ;;  %v10893_v3 = vld [vmem:[#allocation116_spill] sm:$0xff]  ;;  %v10894_v23 = vld [vmem:[#allocation117_spill] sm:$0xff] }
 0xc6b   :  { %6603 = vmatpush1.bf16.msra.mxu0 %v10884_v0  ;;  %6667 = vmatpush1.bf16.msra.mxu1 %v10885_v28  ;;  %v10895_v0 = vld [vmem:[#allocation118_spill] sm:$0xff]  ;;  %v10896_v28 = vld [vmem:[#allocation119_spill] sm:$0xff] }
 0xc6c   :  { %6605 = vmatprep.subr.bf16.mxu0 %v10886_v10  ;;  %6669 = vmatprep.subr.bf16.mxu1 %v10887_v59  ;;  %v10897_v10 = vld [vmem:[#allocation120_spill] sm:$0xff]  ;;  %v10898_v59 = vld [vmem:[#allocation121_spill] sm:$0xff] }
 0xc6f   :  { %6607 = vmatpush1.bf16.msra.mxu0 %v10888_v21  ;;  %6671 = vmatpush1.bf16.msra.mxu1 %v10889_v45  ;;  %v10899_v21 = vld [vmem:[#allocation122_spill] sm:$0xff]  ;;  %v10900_v45 = vld [vmem:[#allocation123_spill] sm:$0xff] }
 0xc70   :  { %6609 = vmatprep.subr.bf16.mxu0 %v10890_v60  ;;  %6673 = vmatprep.subr.bf16.mxu1 %v10891_v54  ;;  %v10901_v60 = vld [vmem:[#allocation124_spill] sm:$0xff]  ;;  %v10902_v54 = vld [vmem:[#allocation125_spill] sm:$0xff] }
 0xc73   :  { %6611 = vmatpush1.bf16.msra.mxu0 %v10892_v29  ;;  %6675 = vmatpush1.bf16.msra.mxu1 %v10893_v3  ;;  %v10903_v29 = vld [vmem:[#allocation126_spill] sm:$0xff]  ;;  %v10904_v3 = vld [vmem:[#allocation127_spill] sm:$0xff] }
 0xc74   :  { %6613 = vmatprep.subr.bf16.mxu0 %v10894_v23  ;;  %6677 = vmatprep.subr.bf16.mxu1 %v10895_v0  ;;  %v10905_v23 = vld [vmem:[#allocation128_spill] sm:$0xff]  ;;  %v10906_v0 = vld [vmem:[#allocation129_spill] sm:$0xff] }
 0xc77   :  { %6615 = vmatpush1.bf16.msra.mxu0 %v10896_v28  ;;  %6679 = vmatpush1.bf16.msra.mxu1 %v10897_v10  ;;  %v10907_v28 = vld [vmem:[#allocation130_spill] sm:$0xff]  ;;  %v10908_v10 = vld [vmem:[#allocation131_spill] sm:$0xff] }
 0xc78   :  { %6617 = vmatprep.subr.bf16.mxu0 %v10898_v59  ;;  %6681 = vmatprep.subr.bf16.mxu1 %v10899_v21  ;;  %v10909_v59 = vld [vmem:[#allocation132_spill] sm:$0xff]  ;;  %v10910_v21 = vld [vmem:[#allocation133_spill] sm:$0xff] }
 0xc7b   :  { %6619 = vmatpush1.bf16.msra.mxu0 %v10900_v45  ;;  %6683 = vmatpush1.bf16.msra.mxu1 %v10901_v60  ;;  %v10911_v45 = vld [vmem:[#allocation134_spill] sm:$0xff]  ;;  %v10912_v60 = vld [vmem:[#allocation135_spill] sm:$0xff] }
 0xc7c   :  { %6621 = vmatprep.subr.bf16.mxu0 %v10902_v54  ;;  %6685 = vmatprep.subr.bf16.mxu1 %v10903_v29  ;;  %v10913_v54 = vld [vmem:[#allocation136_spill] sm:$0xff]  ;;  %v10914_v29 = vld [vmem:[#allocation137_spill] sm:$0xff] }
 0xc7f   :  { %6623 = vmatpush1.bf16.msra.mxu0 %v10904_v3  ;;  %6687 = vmatpush1.bf16.msra.mxu1 %v10905_v23  ;;  %v10915_v3 = vld [vmem:[#allocation138_spill] sm:$0xff]  ;;  %v10916_v23 = vld [vmem:[#allocation139_spill] sm:$0xff] }
 0xc80   :  { %6625 = vmatprep.subr.bf16.mxu0 %v10906_v0  ;;  %6689 = vmatprep.subr.bf16.mxu1 %v10907_v28  ;;  %v10917_v0 = vld [vmem:[#allocation140_spill] sm:$0xff]  ;;  %v10918_v28 = vld [vmem:[#allocation141_spill] sm:$0xff] }
 0xc83   :  { %6627 = vmatpush1.bf16.msra.mxu0 %v10908_v10  ;;  %6691 = vmatpush1.bf16.msra.mxu1 %v10909_v59  ;;  %v10919_v10 = vld [vmem:[#allocation142_spill] sm:$0xff]  ;;  %v10920_v59 = vld [vmem:[#allocation143_spill] sm:$0xff] }
 0xc84   :  { %6629 = vmatprep.subr.bf16.mxu0 %v10910_v21  ;;  %6693 = vmatprep.subr.bf16.mxu1 %v10911_v45  ;;  %v10921_v21 = vld [vmem:[#allocation144_spill] sm:$0xff]  ;;  %v10922_v45 = vld [vmem:[#allocation145_spill] sm:$0xff] }
 0xc87   :  { %6631 = vmatpush1.bf16.msra.mxu0 %v10912_v60  ;;  %6695 = vmatpush1.bf16.msra.mxu1 %v10913_v54  ;;  %v10923_v60 = vld [vmem:[#allocation146_spill] sm:$0xff]  ;;  %v10924_v54 = vld [vmem:[#allocation147_spill] sm:$0xff] }
 0xc88   :  { %6633 = vmatprep.subr.bf16.mxu0 %v10914_v29  ;;  %6697 = vmatprep.subr.bf16.mxu1 %v10915_v3  ;;  %v10925_v29 = vld [vmem:[#allocation148_spill] sm:$0xff]  ;;  %v10926_v3 = vld [vmem:[#allocation15_spill] sm:$0xff] }
 0xc8b   :  { %6635 = vmatpush1.bf16.msra.mxu0 %v10916_v23  ;;  %6699 = vmatpush1.bf16.msra.mxu1 %v10917_v0  ;;  %v10927_v23 = vld [vmem:[#allocation16_spill] sm:$0xff] }
 0xc8c   :  { %6637 = vmatprep.subr.bf16.mxu0 %v10918_v28  ;;  %6701 = vmatprep.subr.bf16.mxu1 %v10919_v10 }
 0xc8f   :  { %6639 = vmatpush1.bf16.msra.mxu0 %v10920_v59  ;;  %6703 = vmatpush1.bf16.msra.mxu1 %v10921_v21 }
 0xc90   :  { %6641 = vmatprep.subr.bf16.mxu0 %v10922_v45  ;;  %6705 = vmatprep.subr.bf16.mxu1 %v10923_v60 }
 0xc93   :  { %6643 = vmatpush1.bf16.msra.mxu0 %v10924_v54  ;;  %6707 = vmatpush1.bf16.msra.mxu1 %v10925_v29 }
 0xc94   :  { %6709 = vmatprep.subr.bf16.mxu0 %v10926_v3  ;;  %6741 = vmatprep.subr.bf16.mxu1 %v10927_v23 }
 0xd28   :  { %v3365_v0 = vpop.f32.mrb[32].mxu0  ;;  %v3436_v28 = vpop.f32.mrb[32].mxu1 }
 0xd29   :  { %v3366_v10 = vadd.f32 %v3365_v0, %v10928_v12  ;;  %v3367_v41 = vpop.f32.mrb[33].mxu0  ;;  %v3438_v59 = vpop.f32.mrb[33].mxu1  ;;  %v3437_v29 = vadd.f32 %v3436_v28, %v8501_v58  ;;  %v10935_v28 = vld [vmem:[#allocation24_spill] sm:$0xff] }
 0xd2a   :  { %v3368_v21 = vadd.f32 %v3367_v41, %v10423_v48  ;;  %v3439_v54 = vadd.f32 %v3438_v59, %v10424_v8 }
 0xd2b   :  { %v4764_v24 = vmul.f32 -1.442695, %v3366_v10 }
 0xd2c   :  { %v4765_v45 = vmul.f32 -1.442695, %v3368_v21  ;;  %v4766_v60 = vmul.f32 -1.442695, %v3439_v54 }
 0xd2d   :  { %7616 = vpow2.f32 %v4764_v24 }
 0xd2e   :  { %7618 = vpow2.f32 %v4765_v45 }
 0xd2f   :  { %7620 = vpow2.f32 %v4766_v60 }
 0xd30   :  { %7622 = vtanh.f32 %v3437_v29  ;;  %v10933_v29 = vld [vmem:[#allocation22_spill] sm:$0xff] }
 0xd37   :  { %v7617_v3 = vpop.eup %7616 }
 0xd38   :  { %v7619_v42 = vpop.eup %7618  ;;  %v3444_v23 = vadd.f32 1.0, %v7617_v3 }
 0xd39   :  { %v3450_v56 = vadd.f32 1.0, %v7619_v42  ;;  %v7621_v0 = vpop.eup %7620  ;;  %v10931_v42 = vld [vmem:[#allocation20_spill] sm:$0xff] }
 0xd3a   :  { %7624 = vrcp.f32 %v3444_v23  ;;  %v7623_v12 = vpop.eup %7622  ;;  %v3457_v24 = vadd.f32 1.0, %v7621_v0  ;;  %v10934_v23 = vld [vmem:[#allocation23_spill] sm:$0xff]  ;;  %v10936_v0 = vld [vmem:[#allocation25_spill] sm:$0xff] }
 0xd3b   :  { %7626 = vrcp.f32 %v3450_v56  ;;  %v10930_v56 = vld [vmem:[#allocation19_spill] sm:$0xff] }
 0xd3c   :  { %7628 = vrcp.f32 %v3457_v24  ;;  %v10940_v24 = vld [vmem:[#allocation29_spill] sm:$0xff] }
 0xd44   :  { %v7625_v41 = vpop.eup %7624 }
 0xd45   :  { %v7627_v10 = vpop.eup %7626  ;;  %v3461_v21 = vmul.f32 %v7625_v41, %v7623_v12  ;;  %v10932_v12 = vld [vmem:[#allocation21_spill] sm:$0xff]  ;;  %v10937_v41 = vld [vmem:[#allocation26_spill] sm:$0xff] }
 0xd46   :  { %v3460_v45 = vmul.f32 %v7627_v10, %v9282_v15  ;;  %v7629_v54 = vpop.eup %7628  ;;  %v10929_v15 = vld [vmem:[#allocation18_spill] sm:$0xff]  ;;  %v10938_v10 = vld [vmem:[#allocation27_spill] sm:$0xff] }
 0xd48   :  { %v9472_v59 = vadd.f32 %v3461_v21, %v3460_v45  ;;  %v10939_v21 = vld [vmem:[#allocation28_spill] sm:$0xff]  ;;  %v10942_v45 = vld [vmem:[#allocation31_spill] sm:$0xff] }
 0xd4a   :  { %7630 = vtanh.f32 %v9472_v59 }
 0xd54   :  { %v7631_v3 = vpop.eup %7630 }
 0xd55   :  { %v3464_v60 = vmul.f32 %v7631_v3, %v7629_v54  ;;  %v10943_v54 = vld [vmem:[#allocation32_spill] sm:$0xff]  ;;  %v10944_v3 = vld [vmem:[#allocation33_spill] sm:$0xff] }
 0xd57   :  { %3530 = vmatmul.mubr.f32.vlgmr.msra.gmra.mrb[34].mxu0 %v3464_v60  ;;  %3601 = vmatmul.mubr.f32.vlgmr.msra.gmra.mrb[34].mxu1 %v3464_v60 }
 0xd58   :  { %6711 = vmatpush1.bf16.msra.mxu0 %v7979_v9  ;;  %6743 = vmatpush1.bf16.msra.mxu1 %v7982_v13 }
 0xd59   :  { %6713 = vmatprep.subr.bf16.mxu0 %v7986_v17  ;;  %6745 = vmatprep.subr.bf16.mxu1 %v7988_v18 }
 0xd5a   :  { %3699 = vmatprep.mubr.f32.mxu0 %v10236_v14  ;;  %3770 = vmatprep.mubr.f32.mxu1 %v10236_v14 }
 0xd5c   :  { %6715 = vmatpush1.bf16.msra.mxu0 %v7991_v22  ;;  %6747 = vmatpush1.bf16.msra.mxu1 %v7995_v26 }
 0xd5d   :  { %6717 = vmatprep.subr.bf16.mxu0 %v7997_v27  ;;  %6749 = vmatprep.subr.bf16.mxu1 %v7999_v31 }
 0xd60   :  { %6719 = vmatpush1.bf16.msra.mxu0 %v8002_v35  ;;  %6751 = vmatpush1.bf16.msra.mxu1 %v8006_v39 }
 0xd61   :  { %6721 = vmatprep.subr.bf16.mxu0 %v8008_v40  ;;  %6753 = vmatprep.subr.bf16.mxu1 %v8011_v44 }
 0xd64   :  { %6723 = vmatpush1.bf16.msra.mxu0 %v8014_v51  ;;  %6755 = vmatpush1.bf16.msra.mxu1 %v8018_v52 }
 0xd65   :  { %6725 = vmatprep.subr.bf16.mxu0 %v8020_v53  ;;  %6757 = vmatprep.subr.bf16.mxu1 %v8023_v57 }
 0xd68   :  { %6727 = vmatpush1.bf16.msra.mxu0 %v8026_v63  ;;  %6759 = vmatpush1.bf16.msra.mxu1 %v8030_v1 }
 0xd69   :  { %6729 = vmatprep.subr.bf16.mxu0 %v8032_v2  ;;  %6761 = vmatprep.subr.bf16.mxu1 %v8035_v7 }
 0xd6c   :  { %6731 = vmatpush1.bf16.msra.mxu0 %v8038_v16  ;;  %6763 = vmatpush1.bf16.msra.mxu1 %v8042_v19 }
 0xd6d   :  { %6733 = vmatprep.subr.bf16.mxu0 %v8044_v20  ;;  %6765 = vmatprep.subr.bf16.mxu1 %v8047_v25 }
 0xd70   :  { %6735 = vmatpush1.bf16.msra.mxu0 %v8050_v34  ;;  %6767 = vmatpush1.bf16.msra.mxu1 %v8054_v36 }
 0xd71   :  { %6737 = vmatprep.subr.bf16.mxu0 %v8056_v37  ;;  %6769 = vmatprep.subr.bf16.mxu1 %v8059_v43 }
 0xd74   :  { %6739 = vmatpush1.bf16.msra.mxu0 %v8062_v50  ;;  %6771 = vmatpush1.bf16.msra.mxu1 %v10929_v15 }
 0xd75   :  { %6773 = vmatprep.subr.bf16.mxu0 %v10930_v56  ;;  %6837 = vmatprep.subr.bf16.mxu1 %v10931_v42 }
 0xd77   :  { %3700 = vmatmul.mubr.f32.vlgmr.msra.gmra.mrb[36].mxu0 %v9399_v55  ;;  %3771 = vmatmul.mubr.f32.vlgmr.msra.gmra.mrb[36].mxu1 %v9399_v55  ;;  %v10941_v55 = vld [vmem:[#allocation30_spill] sm:$0xff] }
 0xd78   :  { %3895 = vmatprep.mubr.f32.mxu0 %v3464_v60  ;;  %3966 = vmatprep.mubr.f32.mxu1 %v3464_v60  ;;  %v10945_v60 = vld [vmem:[#allocation34_spill] sm:$0xff] }
 0xd79   :  { %6775 = vmatpush1.bf16.msra.mxu0 %v10932_v12  ;;  %6839 = vmatpush1.bf16.msra.mxu1 %v10933_v29 }
 0xd7a   :  { %6777 = vmatprep.subr.bf16.mxu0 %v10934_v23  ;;  %6841 = vmatprep.subr.bf16.mxu1 %v10935_v28  ;;  %v10946_v28 = vld [vmem:[#allocation35_spill] sm:$0xff]  ;;  %v10996_v23 = vld [vmem:[#allocation152_spill] sm:$0xff] }
 0xd7d   :  { %6779 = vmatpush1.bf16.msra.mxu0 %v10936_v0  ;;  %6843 = vmatpush1.bf16.msra.mxu1 %v10937_v41  ;;  %v10947_v0 = vld [vmem:[#allocation36_spill] sm:$0xff]  ;;  %v10948_v41 = vld [vmem:[#allocation37_spill] sm:$0xff] }
 0xd7e   :  { %6781 = vmatprep.subr.bf16.mxu0 %v10938_v10  ;;  %6845 = vmatprep.subr.bf16.mxu1 %v10939_v21  ;;  %v10949_v10 = vld [vmem:[#allocation38_spill] sm:$0xff]  ;;  %v10950_v21 = vld [vmem:[#allocation39_spill] sm:$0xff] }
 0xd81   :  { %6783 = vmatpush1.bf16.msra.mxu0 %v10940_v24  ;;  %6847 = vmatpush1.bf16.msra.mxu1 %v10941_v55  ;;  %v10951_v24 = vld [vmem:[#allocation40_spill] sm:$0xff]  ;;  %v10952_v55 = vld [vmem:[#allocation41_spill] sm:$0xff] }
 0xd82   :  { %6785 = vmatprep.subr.bf16.mxu0 %v10942_v45  ;;  %6849 = vmatprep.subr.bf16.mxu1 %v10943_v54  ;;  %v10953_v45 = vld [vmem:[#allocation42_spill] sm:$0xff]  ;;  %v10954_v54 = vld [vmem:[#allocation43_spill] sm:$0xff] }
 0xd85   :  { %6787 = vmatpush1.bf16.msra.mxu0 %v10944_v3  ;;  %6851 = vmatpush1.bf16.msra.mxu1 %v10945_v60  ;;  %v10955_v3 = vld [vmem:[#allocation44_spill] sm:$0xff]  ;;  %v10956_v60 = vld [vmem:[#allocation45_spill] sm:$0xff] }
 0xd86   :  { %6789 = vmatprep.subr.bf16.mxu0 %v10946_v28  ;;  %6853 = vmatprep.subr.bf16.mxu1 %v10947_v0  ;;  %v10957_v28 = vld [vmem:[#allocation46_spill] sm:$0xff]  ;;  %v10958_v0 = vld [vmem:[#allocation47_spill] sm:$0xff] }
 0xd89   :  { %6791 = vmatpush1.bf16.msra.mxu0 %v10948_v41  ;;  %6855 = vmatpush1.bf16.msra.mxu1 %v10949_v10  ;;  %v10959_v41 = vld [vmem:[#allocation48_spill] sm:$0xff]  ;;  %v10960_v10 = vld [vmem:[#allocation49_spill] sm:$0xff] }
 0xd8a   :  { %6793 = vmatprep.subr.bf16.mxu0 %v10950_v21  ;;  %6857 = vmatprep.subr.bf16.mxu1 %v10951_v24  ;;  %v10961_v21 = vld [vmem:[#allocation50_spill] sm:$0xff]  ;;  %v10962_v24 = vld [vmem:[#allocation51_spill] sm:$0xff] }
 0xd8d   :  { %6795 = vmatpush1.bf16.msra.mxu0 %v10952_v55  ;;  %6859 = vmatpush1.bf16.msra.mxu1 %v10953_v45  ;;  %v10963_v55 = vld [vmem:[#allocation52_spill] sm:$0xff]  ;;  %v10964_v45 = vld [vmem:[#allocation53_spill] sm:$0xff] }
 0xd8e   :  { %6797 = vmatprep.subr.bf16.mxu0 %v10954_v54  ;;  %6861 = vmatprep.subr.bf16.mxu1 %v10955_v3  ;;  %v10965_v54 = vld [vmem:[#allocation54_spill] sm:$0xff]  ;;  %v10966_v3 = vld [vmem:[#allocation55_spill] sm:$0xff] }
 0xd91   :  { %6799 = vmatpush1.bf16.msra.mxu0 %v10956_v60  ;;  %6863 = vmatpush1.bf16.msra.mxu1 %v10957_v28  ;;  %v10967_v60 = vld [vmem:[#allocation56_spill] sm:$0xff]  ;;  %v10968_v28 = vld [vmem:[#allocation57_spill] sm:$0xff] }
 0xd92   :  { %6801 = vmatprep.subr.bf16.mxu0 %v10958_v0  ;;  %6865 = vmatprep.subr.bf16.mxu1 %v10959_v41  ;;  %v10969_v0 = vld [vmem:[#allocation58_spill] sm:$0xff]  ;;  %v10970_v41 = vld [vmem:[#allocation59_spill] sm:$0xff] }
 0xd95   :  { %6803 = vmatpush1.bf16.msra.mxu0 %v10960_v10  ;;  %6867 = vmatpush1.bf16.msra.mxu1 %v10961_v21  ;;  %v10971_v10 = vld [vmem:[#allocation60_spill] sm:$0xff]  ;;  %v10972_v21 = vld [vmem:[#allocation61_spill] sm:$0xff] }
 0xd96   :  { %6805 = vmatprep.subr.bf16.mxu0 %v10962_v24  ;;  %6869 = vmatprep.subr.bf16.mxu1 %v10963_v55  ;;  %v10973_v24 = vld [vmem:[#allocation62_spill] sm:$0xff]  ;;  %v10974_v55 = vld [vmem:[#allocation63_spill] sm:$0xff] }
 0xd99   :  { %6807 = vmatpush1.bf16.msra.mxu0 %v10964_v45  ;;  %6871 = vmatpush1.bf16.msra.mxu1 %v10965_v54  ;;  %v10975_v45 = vld [vmem:[#allocation64_spill] sm:$0xff]  ;;  %v10976_v54 = vld [vmem:[#allocation65_spill] sm:$0xff] }
 0xd9a   :  { %6809 = vmatprep.subr.bf16.mxu0 %v10966_v3  ;;  %6873 = vmatprep.subr.bf16.mxu1 %v10967_v60  ;;  %v10977_v3 = vld [vmem:[#allocation66_spill] sm:$0xff]  ;;  %v10978_v60 = vld [vmem:[#allocation67_spill] sm:$0xff] }
 0xd9d   :  { %6811 = vmatpush1.bf16.msra.mxu0 %v10968_v28  ;;  %6875 = vmatpush1.bf16.msra.mxu1 %v10969_v0  ;;  %v10979_v28 = vld [vmem:[#allocation68_spill] sm:$0xff]  ;;  %v10980_v0 = vld [vmem:[#allocation69_spill] sm:$0xff] }
 0xd9e   :  { %6813 = vmatprep.subr.bf16.mxu0 %v10970_v41  ;;  %6877 = vmatprep.subr.bf16.mxu1 %v10971_v10  ;;  %v10981_v41 = vld [vmem:[#allocation70_spill] sm:$0xff]  ;;  %v10982_v10 = vld [vmem:[#allocation71_spill] sm:$0xff] }
 0xda1   :  { %6815 = vmatpush1.bf16.msra.mxu0 %v10972_v21  ;;  %6879 = vmatpush1.bf16.msra.mxu1 %v10973_v24  ;;  %v10983_v21 = vld [vmem:[#allocation72_spill] sm:$0xff]  ;;  %v10984_v24 = vld [vmem:[#allocation73_spill] sm:$0xff] }
 0xda2   :  { %6817 = vmatprep.subr.bf16.mxu0 %v10974_v55  ;;  %6881 = vmatprep.subr.bf16.mxu1 %v10975_v45  ;;  %v10985_v55 = vld [vmem:[#allocation74_spill] sm:$0xff]  ;;  %v10986_v45 = vld [vmem:[#allocation75_spill] sm:$0xff] }
 0xda5   :  { %6819 = vmatpush1.bf16.msra.mxu0 %v10976_v54  ;;  %6883 = vmatpush1.bf16.msra.mxu1 %v10977_v3  ;;  %v10987_v54 = vld [vmem:[#allocation76_spill] sm:$0xff]  ;;  %v10988_v3 = vld [vmem:[#allocation77_spill] sm:$0xff] }
 0xda6   :  { %6821 = vmatprep.subr.bf16.mxu0 %v10978_v60  ;;  %6885 = vmatprep.subr.bf16.mxu1 %v10979_v28  ;;  %v10989_v60 = vld [vmem:[#allocation78_spill] sm:$0xff]  ;;  %v10990_v28 = vld [vmem:[#allocation79_spill] sm:$0xff] }
 0xda9   :  { %6823 = vmatpush1.bf16.msra.mxu0 %v10980_v0  ;;  %6887 = vmatpush1.bf16.msra.mxu1 %v10981_v41  ;;  %v10991_v0 = vld [vmem:[#allocation80_spill] sm:$0xff]  ;;  %v10992_v41 = vld [vmem:[#allocation81_spill] sm:$0xff] }
 0xdaa   :  { %6825 = vmatprep.subr.bf16.mxu0 %v10982_v10  ;;  %6889 = vmatprep.subr.bf16.mxu1 %v10983_v21  ;;  %v10993_v10 = vld [vmem:[#allocation82_spill] sm:$0xff]  ;;  %v10994_v21 = vld [vmem:[#allocation83_spill] sm:$0xff] }
 0xdad   :  { %6827 = vmatpush1.bf16.msra.mxu0 %v10984_v24  ;;  %6891 = vmatpush1.bf16.msra.mxu1 %v10985_v55  ;;  %v10995_v24 = vld [vmem:[#allocation84_spill] sm:$0xff] }
 0xdae   :  { %6829 = vmatprep.subr.bf16.mxu0 %v10986_v45  ;;  %6893 = vmatprep.subr.bf16.mxu1 %v10987_v54 }
 0xdb1   :  { %6831 = vmatpush1.bf16.msra.mxu0 %v10988_v3  ;;  %6895 = vmatpush1.bf16.msra.mxu1 %v10989_v60 }
 0xdb2   :  { %6833 = vmatprep.subr.bf16.mxu0 %v10990_v28  ;;  %6897 = vmatprep.subr.bf16.mxu1 %v10991_v0  ;;  %v10997_v0 = vld [vmem:[#allocation154_spill] sm:$0xff] }
 0xdb5   :  { %6835 = vmatpush1.bf16.msra.mxu0 %v10992_v41  ;;  %6899 = vmatpush1.bf16.msra.mxu1 %v10993_v10  ;;  %v10998_v10 = vld [vmem:[#allocation155_spill] sm:$0xff] }
 0xdb6   :  { %6901 = vmatprep.subr.bf16.mxu0 %v10994_v21  ;;  %6965 = vmatprep.subr.bf16.mxu1 %v10995_v24 }
 0xe2a   :  { %v3531_v55 = vpop.f32.mrb[34].mxu0  ;;  %v3602_v45 = vpop.f32.mrb[34].mxu1 }
 0xe2b   :  { %v3532_v54 = vadd.f32 %v3531_v55, %v10996_v23  ;;  %v3533_v29 = vpop.f32.mrb[35].mxu0  ;;  %v3604_v3 = vpop.f32.mrb[35].mxu1  ;;  %v3603_v56 = vadd.f32 %v3602_v45, %v10998_v10 }
 0xe2c   :  { %v3534_v60 = vadd.f32 %v3533_v29, %v10615_v30  ;;  %v3605_v41 = vadd.f32 %v3604_v3, %v10997_v0 }
 0xe2d   :  { %v4767_v12 = vmul.f32 -1.442695, %v3532_v54 }
 0xe2e   :  { %v4768_v28 = vmul.f32 -1.442695, %v3534_v60  ;;  %v4769_v42 = vmul.f32 -1.442695, %v3605_v41 }
 0xe2f   :  { %7632 = vpow2.f32 %v4767_v12 }
 0xe30   :  { %7634 = vpow2.f32 %v4768_v28 }
 0xe31   :  { %7636 = vpow2.f32 %v4769_v42 }
 0xe32   :  { %7638 = vtanh.f32 %v3603_v56 }
 0xe39   :  { %v7633_v21 = vpop.eup %7632 }
 0xe3a   :  { %v7635_v15 = vpop.eup %7634  ;;  %v3610_v24 = vadd.f32 1.0, %v7633_v21 }
 0xe3b   :  { %v3616_v50 = vadd.f32 1.0, %v7635_v15  ;;  %v7637_v55 = vpop.eup %7636 }
 0xe3c   :  { %7640 = vrcp.f32 %v3610_v24  ;;  %v7639_v23 = vpop.eup %7638  ;;  %v3623_v12 = vadd.f32 1.0, %v7637_v55  ;;  %v3634_v24 = vld [vmem:[#allocation2 + $0x30] sm:$0xff] }
 0xe3d   :  { %7642 = vrcp.f32 %v3616_v50 }
 0xe3e   :  { %7644 = vrcp.f32 %v3623_v12 }
 0xe46   :  { %v7641_v29 = vpop.eup %7640 }
 0xe47   :  { %v7643_v54 = vpop.eup %7642  ;;  %v3627_v60 = vmul.f32 %v7641_v29, %v7639_v23 }
 0xe48   :  { %v3626_v28 = vmul.f32 %v7643_v54, %v9390_v61  ;;  %v7645_v54 = vpop.eup %7644 }
 0xe4a   :  { %v3701_v3 = vpop.f32.mrb[36].mxu0  ;;  %v3772_v41 = vpop.f32.mrb[36].mxu1  ;;  %v9580_v0 = vadd.f32 %v3627_v60, %v3626_v28 }
 0xe4b   :  { %v3703_v45 = vpop.f32.mrb[37].mxu0  ;;  %v3774_v21 = vpop.f32.mrb[37].mxu1 }
 0xe4c   :  { %v3781_v42 = vcombine.low %v3701_v3, %v3703_v45  ;;  %v3782_v56 = vcombine.low %v3772_v41, %v3774_v21  ;;  %7646 = vtanh.f32 %v9580_v0 }
 0xe4e   :  { %v3789_v50 = vrot.slane %v3781_v42, %v10362_v5  ;;  %v3796_v15 = vrot.slane %v3782_v56, %v10362_v5 }
 0xe50   :  { %v3797_v23 = vcombine.low %v3789_v50, %v3796_v15 }
 0xe52   :  { %v3799_v55 = vadd.f32 %v3797_v23, %v3634_v24 }
 0xe54   :  { %v4770_v29 = vmul.f32 -1.442695, %v3799_v55  ;;  %v3807_v61 = vrot.slane %v3799_v55, 2  ;;  %v3818_v28 = vrot.slane %v3799_v55, 6  ;;  %v3815_v45 = vrot.slane %v3799_v55, 4 }
 0xe56   :  { %v7647_v10 = vpop.eup %7646  ;;  %7648 = vpow2.f32 %v4770_v29  ;;  %v4771_v60 = vmul.f32 -1.442695, %v3807_v61  ;;  %v4772_v3 = vmul.f32 -1.442695, %v3818_v28 }
 0xe57   :  { %v3630_v12 = vmul.f32 %v7647_v10, %v7645_v54 }
 0xe58   :  { %7650 = vpow2.f32 %v4771_v60 }
 0xe59   :  { %3632 = vst [vmem:[#allocation10 + $0xa] sm:$0x3] %v3630_v12  ;;  %7652 = vpow2.f32 %v4772_v3  ;;  %v11001_v3 = vld [vmem:[#allocation98_spill] sm:$0xff] }
 0xe60   :  { %v7649_v41 = vpop.eup %7648 }
 0xe61   :  { %v3803_v21 = vadd.f32 1.0, %v7649_v41  ;;  %v11002_v41 = vld [vmem:[#allocation99_spill] sm:$0xff] }
 0xe62   :  { %v7651_v42 = vpop.eup %7650 }
 0xe63   :  { %7654 = vrcp.f32 %v3803_v21  ;;  %v3812_v56 = vadd.f32 1.0, %v7651_v42  ;;  %v7653_v50 = vpop.eup %7652  ;;  %v11004_v21 = vld [vmem:[#allocation101_spill] sm:$0xff]  ;;  %v11005_v42 = vld [vmem:[#allocation102_spill] sm:$0xff] }
 0xe64   :  { %7656 = vtanh.f32 %v3815_v45  ;;  %v3823_v29 = vadd.f32 1.0, %v7653_v50  ;;  %v11003_v45 = vld [vmem:[#allocation100_spill] sm:$0xff] }
 0xe65   :  { %7658 = vrcp.f32 %v3812_v56  ;;  %v11006_v56 = vld [vmem:[#allocation103_spill] sm:$0xff]  ;;  %v11007_v50 = vld [vmem:[#allocation104_spill] sm:$0xff] }
 0xe66   :  { %7660 = vrcp.f32 %v3823_v29  ;;  %v11011_v29 = vld [vmem:[#allocation108_spill] sm:$0xff] }
 0xe6d   :  { %v7655_v15 = vpop.eup %7654 }
 0xe6e   :  { %v7657_v24 = vpop.eup %7656 }
 0xe6f   :  { %v7659_v23 = vpop.eup %7658  ;;  %v3827_v61 = vmul.f32 %v7657_v24, %v7655_v15  ;;  %v11008_v15 = vld [vmem:[#allocation105_spill] sm:$0xff]  ;;  %v11009_v24 = vld [vmem:[#allocation106_spill] sm:$0xff] }
 0xe70   :  { %v3826_v10 = vmul.f32 %v7659_v23, %v9396_v11  ;;  %v7661_v55 = vpop.eup %7660  ;;  %v10999_v11 = vld [vmem:[#allocation96_spill] sm:$0xff]  ;;  %v11010_v23 = vld [vmem:[#allocation107_spill] sm:$0xff] }
 0xe72   :  { %v9586_v54 = vadd.f32 %v3827_v61, %v3826_v10  ;;  %v11012_v10 = vld [vmem:[#allocation109_spill] sm:$0xff]  ;;  %v11013_v61 = vld [vmem:[#allocation110_spill] sm:$0xff] }
 0xe74   :  { %7662 = vtanh.f32 %v9586_v54 }
 0xe7e   :  { %v7663_v60 = vpop.eup %7662 }
 0xe7f   :  { %v9589_v28 = vmul.f32 %v7663_v60, %v7661_v55  ;;  %v11014_v55 = vld [vmem:[#allocation111_spill] sm:$0xff]  ;;  %v11015_v60 = vld [vmem:[#allocation112_spill] sm:$0xff] }
 0xe81   :  { %3896 = vmatmul.mubr.f32.vlgmr.msra.gmra.mrb[38].mxu0 %v9589_v28  ;;  %3967 = vmatmul.mubr.f32.vlgmr.msra.gmra.mrb[38].mxu1 %v9589_v28 }
 0xe82   :  { %4061 = vmatprep.mubr.f32.mxu0 %v3630_v12  ;;  %4132 = vmatprep.mubr.f32.mxu1 %v3630_v12  ;;  %v11000_v12 = vld [vmem:[#allocation97_spill] sm:$0xff] }
 0xe83   :  { %6903 = vmatpush1.bf16.msra.mxu0 %v10364_v47  ;;  %6967 = vmatpush1.bf16.msra.mxu1 %v10365_v32 }
 0xe84   :  { %6905 = vmatprep.subr.bf16.mxu0 %v10366_v62  ;;  %6969 = vmatprep.subr.bf16.mxu1 %v10367_v49 }
 0xe87   :  { %6907 = vmatpush1.bf16.msra.mxu0 %v10368_v6  ;;  %6971 = vmatpush1.bf16.msra.mxu1 %v10491_v46 }
 0xe88   :  { %6909 = vmatprep.subr.bf16.mxu0 %v10618_v33  ;;  %6973 = vmatprep.subr.bf16.mxu1 %v10745_v38 }
 0xe8b   :  { %6911 = vmatpush1.bf16.msra.mxu0 %v10872_v4  ;;  %6975 = vmatpush1.bf16.msra.mxu1 %v10999_v11 }
 0xe8c   :  { %6913 = vmatprep.subr.bf16.mxu0 %v11000_v12  ;;  %6977 = vmatprep.subr.bf16.mxu1 %v11001_v3 }
 0xe8f   :  { %6915 = vmatpush1.bf16.msra.mxu0 %v11002_v41  ;;  %6979 = vmatpush1.bf16.msra.mxu1 %v11003_v45 }
 0xe90   :  { %6917 = vmatprep.subr.bf16.mxu0 %v11004_v21  ;;  %6981 = vmatprep.subr.bf16.mxu1 %v11005_v42  ;;  %v11016_v42 = vld [vmem:[#allocation113_spill] sm:$0xff] }
 0xe91   :  { %v11054_v21 = vld [vmem:[#allocation149_spill] sm:$0xff] }
 0xe93   :  { %6919 = vmatpush1.bf16.msra.mxu0 %v11006_v56  ;;  %6983 = vmatpush1.bf16.msra.mxu1 %v11007_v50  ;;  %v11017_v56 = vld [vmem:[#allocation114_spill] sm:$0xff]  ;;  %v11018_v50 = vld [vmem:[#allocation115_spill] sm:$0xff] }
 0xe94   :  { %6921 = vmatprep.subr.bf16.mxu0 %v11008_v15  ;;  %6985 = vmatprep.subr.bf16.mxu1 %v11009_v24  ;;  %v11019_v15 = vld [vmem:[#allocation116_spill] sm:$0xff]  ;;  %v11020_v24 = vld [vmem:[#allocation117_spill] sm:$0xff] }
 0xe97   :  { %6923 = vmatpush1.bf16.msra.mxu0 %v11010_v23  ;;  %6987 = vmatpush1.bf16.msra.mxu1 %v11011_v29  ;;  %v11021_v23 = vld [vmem:[#allocation118_spill] sm:$0xff]  ;;  %v11022_v29 = vld [vmem:[#allocation119_spill] sm:$0xff] }
 0xe98   :  { %6925 = vmatprep.subr.bf16.mxu0 %v11012_v10  ;;  %6989 = vmatprep.subr.bf16.mxu1 %v11013_v61  ;;  %v11023_v10 = vld [vmem:[#allocation120_spill] sm:$0xff]  ;;  %v11024_v61 = vld [vmem:[#allocation121_spill] sm:$0xff] }
 0xe9b   :  { %6927 = vmatpush1.bf16.msra.mxu0 %v11014_v55  ;;  %6991 = vmatpush1.bf16.msra.mxu1 %v11015_v60  ;;  %v11025_v55 = vld [vmem:[#allocation122_spill] sm:$0xff]  ;;  %v11026_v60 = vld [vmem:[#allocation123_spill] sm:$0xff] }
 0xe9c   :  { %6929 = vmatprep.subr.bf16.mxu0 %v11016_v42  ;;  %6993 = vmatprep.subr.bf16.mxu1 %v11017_v56  ;;  %v11027_v42 = vld [vmem:[#allocation124_spill] sm:$0xff]  ;;  %v11028_v56 = vld [vmem:[#allocation125_spill] sm:$0xff] }
 0xe9f   :  { %6931 = vmatpush1.bf16.msra.mxu0 %v11018_v50  ;;  %6995 = vmatpush1.bf16.msra.mxu1 %v11019_v15  ;;  %v11029_v50 = vld [vmem:[#allocation126_spill] sm:$0xff]  ;;  %v11030_v15 = vld [vmem:[#allocation127_spill] sm:$0xff] }
 0xea0   :  { %6933 = vmatprep.subr.bf16.mxu0 %v11020_v24  ;;  %6997 = vmatprep.subr.bf16.mxu1 %v11021_v23  ;;  %v11031_v24 = vld [vmem:[#allocation128_spill] sm:$0xff]  ;;  %v11032_v23 = vld [vmem:[#allocation129_spill] sm:$0xff] }
 0xea3   :  { %6935 = vmatpush1.bf16.msra.mxu0 %v11022_v29  ;;  %6999 = vmatpush1.bf16.msra.mxu1 %v11023_v10  ;;  %v11033_v29 = vld [vmem:[#allocation130_spill] sm:$0xff]  ;;  %v11034_v10 = vld [vmem:[#allocation131_spill] sm:$0xff] }
 0xea4   :  { %6937 = vmatprep.subr.bf16.mxu0 %v11024_v61  ;;  %7001 = vmatprep.subr.bf16.mxu1 %v11025_v55  ;;  %v11035_v61 = vld [vmem:[#allocation132_spill] sm:$0xff]  ;;  %v11036_v55 = vld [vmem:[#allocation133_spill] sm:$0xff] }
 0xea7   :  { %6939 = vmatpush1.bf16.msra.mxu0 %v11026_v60  ;;  %7003 = vmatpush1.bf16.msra.mxu1 %v11027_v42  ;;  %v11037_v60 = vld [vmem:[#allocation134_spill] sm:$0xff]  ;;  %v11038_v42 = vld [vmem:[#allocation135_spill] sm:$0xff] }
 0xea8   :  { %6941 = vmatprep.subr.bf16.mxu0 %v11028_v56  ;;  %7005 = vmatprep.subr.bf16.mxu1 %v11029_v50  ;;  %v11039_v56 = vld [vmem:[#allocation136_spill] sm:$0xff]  ;;  %v11040_v50 = vld [vmem:[#allocation137_spill] sm:$0xff] }
 0xeab   :  { %6943 = vmatpush1.bf16.msra.mxu0 %v11030_v15  ;;  %7007 = vmatpush1.bf16.msra.mxu1 %v11031_v24  ;;  %v11041_v15 = vld [vmem:[#allocation138_spill] sm:$0xff]  ;;  %v11042_v24 = vld [vmem:[#allocation139_spill] sm:$0xff] }
 0xeac   :  { %6945 = vmatprep.subr.bf16.mxu0 %v11032_v23  ;;  %7009 = vmatprep.subr.bf16.mxu1 %v11033_v29  ;;  %v11043_v23 = vld [vmem:[#allocation140_spill] sm:$0xff]  ;;  %v11044_v29 = vld [vmem:[#allocation141_spill] sm:$0xff] }
 0xeaf   :  { %6947 = vmatpush1.bf16.msra.mxu0 %v11034_v10  ;;  %7011 = vmatpush1.bf16.msra.mxu1 %v11035_v61  ;;  %v11045_v10 = vld [vmem:[#allocation142_spill] sm:$0xff]  ;;  %v11046_v61 = vld [vmem:[#allocation143_spill] sm:$0xff] }
 0xeb0   :  { %6949 = vmatprep.subr.bf16.mxu0 %v11036_v55  ;;  %7013 = vmatprep.subr.bf16.mxu1 %v11037_v60  ;;  %v11047_v55 = vld [vmem:[#allocation144_spill] sm:$0xff]  ;;  %v11048_v60 = vld [vmem:[#allocation145_spill] sm:$0xff] }
 0xeb3   :  { %6951 = vmatpush1.bf16.msra.mxu0 %v11038_v42  ;;  %7015 = vmatpush1.bf16.msra.mxu1 %v11039_v56  ;;  %v11049_v42 = vld [vmem:[#allocation146_spill] sm:$0xff]  ;;  %v11050_v56 = vld [vmem:[#allocation147_spill] sm:$0xff] }
 0xeb4   :  { %6953 = vmatprep.subr.bf16.mxu0 %v11040_v50  ;;  %7017 = vmatprep.subr.bf16.mxu1 %v11041_v15  ;;  %v11051_v50 = vld [vmem:[#allocation148_spill] sm:$0xff]  ;;  %v11052_v15 = vld [vmem:[#allocation15_spill] sm:$0xff] }
 0xeb7   :  { %6955 = vmatpush1.bf16.msra.mxu0 %v11042_v24  ;;  %7019 = vmatpush1.bf16.msra.mxu1 %v11043_v23  ;;  %v11053_v24 = vld [vmem:[#allocation16_spill] sm:$0xff] }
 0xeb8   :  { %6957 = vmatprep.subr.bf16.mxu0 %v11044_v29  ;;  %7021 = vmatprep.subr.bf16.mxu1 %v11045_v10 }
 0xebb   :  { %6959 = vmatpush1.bf16.msra.mxu0 %v11046_v61  ;;  %7023 = vmatpush1.bf16.msra.mxu1 %v11047_v55 }
 0xebc   :  { %6961 = vmatprep.subr.bf16.mxu0 %v11048_v60  ;;  %7025 = vmatprep.subr.bf16.mxu1 %v11049_v42 }
 0xebf   :  { %6963 = vmatpush1.bf16.msra.mxu0 %v11050_v56  ;;  %7027 = vmatpush1.bf16.msra.mxu1 %v11051_v50 }
 0xec0   :  { %7029 = vmatprep.subr.bf16.mxu0 %v11052_v15  ;;  %7061 = vmatprep.subr.bf16.mxu1 %v11053_v24 }
 0xf54   :  { %v3897_v23 = vpop.f32.mrb[38].mxu0  ;;  %v3968_v29 = vpop.f32.mrb[38].mxu1 }
 0xf55   :  { %v3898_v10 = vadd.f32 %v3897_v23, %v11054_v21  ;;  %v3899_v45 = vpop.f32.mrb[39].mxu0  ;;  %v3970_v61 = vpop.f32.mrb[39].mxu1  ;;  %v3969_v50 = vadd.f32 %v3968_v29, %v8501_v58 }
 0xf56   :  { %v3900_v55 = vadd.f32 %v3899_v45, %v10423_v48  ;;  %v3971_v56 = vadd.f32 %v3970_v61, %v10424_v8 }
 0xf57   :  { %v4773_v41 = vmul.f32 -1.442695, %v3898_v10 }
 0xf58   :  { %v4774_v60 = vmul.f32 -1.442695, %v3900_v55  ;;  %v4775_v42 = vmul.f32 -1.442695, %v3971_v56 }
 0xf59   :  { %7664 = vpow2.f32 %v4773_v41 }
 0xf5a   :  { %7666 = vpow2.f32 %v4774_v60 }
 0xf5b   :  { %7668 = vpow2.f32 %v4775_v42 }
 0xf5c   :  { %7670 = vtanh.f32 %v3969_v50  ;;  %v11089_v50 = vld [vmem:[#allocation51_spill] sm:$0xff] }
 0xf63   :  { %v7665_v15 = vpop.eup %7664 }
 0xf64   :  { %v7667_v3 = vpop.eup %7666  ;;  %v3976_v24 = vadd.f32 1.0, %v7665_v15  ;;  %v11090_v15 = vld [vmem:[#allocation52_spill] sm:$0xff] }
 0xf65   :  { %v3982_v12 = vadd.f32 1.0, %v7667_v3  ;;  %v7669_v23 = vpop.eup %7668  ;;  %v11087_v3 = vld [vmem:[#allocation49_spill] sm:$0xff] }
 0xf66   :  { %7672 = vrcp.f32 %v3976_v24  ;;  %v7671_v21 = vpop.eup %7670  ;;  %v3989_v41 = vadd.f32 1.0, %v7669_v23  ;;  %v11091_v24 = vld [vmem:[#allocation53_spill] sm:$0xff]  ;;  %v11092_v23 = vld [vmem:[#allocation54_spill] sm:$0xff] }
 0xf67   :  { %7674 = vrcp.f32 %v3982_v12  ;;  %v11086_v12 = vld [vmem:[#allocation48_spill] sm:$0xff] }
 0xf68   :  { %7676 = vrcp.f32 %v3989_v41  ;;  %v11096_v41 = vld [vmem:[#allocation58_spill] sm:$0xff] }
 0xf70   :  { %v7673_v45 = vpop.eup %7672 }
 0xf71   :  { %v7675_v10 = vpop.eup %7674  ;;  %v3993_v55 = vmul.f32 %v7673_v45, %v7671_v21  ;;  %v11088_v21 = vld [vmem:[#allocation50_spill] sm:$0xff]  ;;  %v11093_v45 = vld [vmem:[#allocation55_spill] sm:$0xff] }
 0xf72   :  { %v3992_v60 = vmul.f32 %v7675_v10, %v9472_v59  ;;  %v7677_v56 = vpop.eup %7676  ;;  %v11084_v59 = vld [vmem:[#allocation46_spill] sm:$0xff]  ;;  %v11094_v10 = vld [vmem:[#allocation56_spill] sm:$0xff] }
 0xf74   :  { %v9662_v61 = vadd.f32 %v3993_v55, %v3992_v60  ;;  %v11095_v55 = vld [vmem:[#allocation57_spill] sm:$0xff]  ;;  %v11097_v60 = vld [vmem:[#allocation59_spill] sm:$0xff] }
 0xf76   :  { %7678 = vtanh.f32 %v9662_v61 }
 0xf80   :  { %v7679_v29 = vpop.eup %7678 }
 0xf81   :  { %v3996_v42 = vmul.f32 %v7679_v29, %v7677_v56  ;;  %v11098_v56 = vld [vmem:[#allocation60_spill] sm:$0xff]  ;;  %v11099_v29 = vld [vmem:[#allocation61_spill] sm:$0xff] }
 0xf83   :  { %4062 = vmatmul.mubr.f32.vlgmr.msra.gmra.mrb[40].mxu0 %v3996_v42  ;;  %4133 = vmatmul.mubr.f32.vlgmr.msra.gmra.mrb[40].mxu1 %v3996_v42 }
 0xf84   :  { %7031 = vmatpush1.bf16.msra.mxu0 %v7979_v9  ;;  %7063 = vmatpush1.bf16.msra.mxu1 %v7982_v13  ;;  %v11055_v9 = vld [vmem:[#allocation17_spill] sm:$0xff]  ;;  %v11056_v13 = vld [vmem:[#allocation18_spill] sm:$0xff] }
 0xf85   :  { %7033 = vmatprep.subr.bf16.mxu0 %v7986_v17  ;;  %7065 = vmatprep.subr.bf16.mxu1 %v7988_v18  ;;  %v11057_v17 = vld [vmem:[#allocation19_spill] sm:$0xff]  ;;  %v11058_v18 = vld [vmem:[#allocation20_spill] sm:$0xff] }
 0xf86   :  { %4231 = vmatprep.mubr.f32.mxu0 %v10236_v14  ;;  %4302 = vmatprep.mubr.f32.mxu1 %v10236_v14  ;;  %v11083_v14 = vld [vmem:[#allocation45_spill] sm:$0xff] }
 0xf88   :  { %7035 = vmatpush1.bf16.msra.mxu0 %v7991_v22  ;;  %7067 = vmatpush1.bf16.msra.mxu1 %v7995_v26  ;;  %v11059_v22 = vld [vmem:[#allocation21_spill] sm:$0xff]  ;;  %v11060_v26 = vld [vmem:[#allocation22_spill] sm:$0xff] }
 0xf89   :  { %7037 = vmatprep.subr.bf16.mxu0 %v7997_v27  ;;  %7069 = vmatprep.subr.bf16.mxu1 %v7999_v31  ;;  %v11061_v27 = vld [vmem:[#allocation23_spill] sm:$0xff]  ;;  %v11062_v31 = vld [vmem:[#allocation24_spill] sm:$0xff] }
 0xf8c   :  { %7039 = vmatpush1.bf16.msra.mxu0 %v8002_v35  ;;  %7071 = vmatpush1.bf16.msra.mxu1 %v8006_v39  ;;  %v11063_v35 = vld [vmem:[#allocation25_spill] sm:$0xff]  ;;  %v11064_v39 = vld [vmem:[#allocation26_spill] sm:$0xff] }
 0xf8d   :  { %7041 = vmatprep.subr.bf16.mxu0 %v8008_v40  ;;  %7073 = vmatprep.subr.bf16.mxu1 %v8011_v44  ;;  %v11065_v40 = vld [vmem:[#allocation27_spill] sm:$0xff]  ;;  %v11066_v44 = vld [vmem:[#allocation28_spill] sm:$0xff] }
 0xf90   :  { %7043 = vmatpush1.bf16.msra.mxu0 %v8014_v51  ;;  %7075 = vmatpush1.bf16.msra.mxu1 %v8018_v52  ;;  %v11067_v51 = vld [vmem:[#allocation29_spill] sm:$0xff]  ;;  %v11068_v52 = vld [vmem:[#allocation30_spill] sm:$0xff] }
 0xf91   :  { %7045 = vmatprep.subr.bf16.mxu0 %v8020_v53  ;;  %7077 = vmatprep.subr.bf16.mxu1 %v8023_v57  ;;  %v11069_v53 = vld [vmem:[#allocation31_spill] sm:$0xff]  ;;  %v11070_v57 = vld [vmem:[#allocation32_spill] sm:$0xff] }
 0xf94   :  { %7047 = vmatpush1.bf16.msra.mxu0 %v8026_v63  ;;  %7079 = vmatpush1.bf16.msra.mxu1 %v8030_v1  ;;  %v11071_v63 = vld [vmem:[#allocation33_spill] sm:$0xff]  ;;  %v11072_v1 = vld [vmem:[#allocation34_spill] sm:$0xff] }
 0xf95   :  { %7049 = vmatprep.subr.bf16.mxu0 %v8032_v2  ;;  %7081 = vmatprep.subr.bf16.mxu1 %v8035_v7  ;;  %v11073_v2 = vld [vmem:[#allocation35_spill] sm:$0xff]  ;;  %v11074_v7 = vld [vmem:[#allocation36_spill] sm:$0xff] }
 0xf98   :  { %7051 = vmatpush1.bf16.msra.mxu0 %v8038_v16  ;;  %7083 = vmatpush1.bf16.msra.mxu1 %v8042_v19  ;;  %v11075_v16 = vld [vmem:[#allocation37_spill] sm:$0xff]  ;;  %v11076_v19 = vld [vmem:[#allocation38_spill] sm:$0xff] }
 0xf99   :  { %7053 = vmatprep.subr.bf16.mxu0 %v8044_v20  ;;  %7085 = vmatprep.subr.bf16.mxu1 %v8047_v25  ;;  %v11077_v20 = vld [vmem:[#allocation39_spill] sm:$0xff]  ;;  %v11078_v25 = vld [vmem:[#allocation40_spill] sm:$0xff] }
 0xf9c   :  { %7055 = vmatpush1.bf16.msra.mxu0 %v8050_v34  ;;  %7087 = vmatpush1.bf16.msra.mxu1 %v8054_v36  ;;  %v11079_v34 = vld [vmem:[#allocation41_spill] sm:$0xff]  ;;  %v11080_v36 = vld [vmem:[#allocation42_spill] sm:$0xff] }
 0xf9d   :  { %7057 = vmatprep.subr.bf16.mxu0 %v8056_v37  ;;  %7089 = vmatprep.subr.bf16.mxu1 %v8059_v43  ;;  %v11081_v37 = vld [vmem:[#allocation43_spill] sm:$0xff]  ;;  %v11082_v43 = vld [vmem:[#allocation44_spill] sm:$0xff] }
 0xfa0   :  { %7059 = vmatpush1.bf16.msra.mxu0 %v11055_v9  ;;  %7091 = vmatpush1.bf16.msra.mxu1 %v11056_v13  ;;  %v11101_v9 = vld [vmem:[#allocation63_spill] sm:$0xff]  ;;  %v11102_v13 = vld [vmem:[#allocation64_spill] sm:$0xff] }
 0xfa1   :  { %7093 = vmatprep.subr.bf16.mxu0 %v11057_v17  ;;  %7157 = vmatprep.subr.bf16.mxu1 %v11058_v18  ;;  %v11103_v17 = vld [vmem:[#allocation65_spill] sm:$0xff]  ;;  %v11104_v18 = vld [vmem:[#allocation66_spill] sm:$0xff] }
 0xfa3   :  { %4232 = vmatmul.mubr.f32.vlgmr.msra.gmra.mrb[42].mxu0 %v9589_v28  ;;  %4303 = vmatmul.mubr.f32.vlgmr.msra.gmra.mrb[42].mxu1 %v9589_v28  ;;  %v11085_v28 = vld [vmem:[#allocation47_spill] sm:$0xff] }
 0xfa4   :  { %4427 = vmatprep.mubr.f32.mxu0 %v3996_v42  ;;  %4498 = vmatprep.mubr.f32.mxu1 %v3996_v42  ;;  %v11100_v42 = vld [vmem:[#allocation62_spill] sm:$0xff] }
 0xfa5   :  { %7095 = vmatpush1.bf16.msra.mxu0 %v11059_v22  ;;  %7159 = vmatpush1.bf16.msra.mxu1 %v11060_v26  ;;  %v11105_v22 = vld [vmem:[#allocation67_spill] sm:$0xff]  ;;  %v11106_v26 = vld [vmem:[#allocation68_spill] sm:$0xff] }
 0xfa6   :  { %7097 = vmatprep.subr.bf16.mxu0 %v11061_v27  ;;  %7161 = vmatprep.subr.bf16.mxu1 %v11062_v31  ;;  %v11107_v27 = vld [vmem:[#allocation69_spill] sm:$0xff]  ;;  %v11108_v31 = vld [vmem:[#allocation70_spill] sm:$0xff] }
 0xfa9   :  { %7099 = vmatpush1.bf16.msra.mxu0 %v11063_v35  ;;  %7163 = vmatpush1.bf16.msra.mxu1 %v11064_v39  ;;  %v11109_v35 = vld [vmem:[#allocation71_spill] sm:$0xff]  ;;  %v11110_v39 = vld [vmem:[#allocation72_spill] sm:$0xff] }
 0xfaa   :  { %7101 = vmatprep.subr.bf16.mxu0 %v11065_v40  ;;  %7165 = vmatprep.subr.bf16.mxu1 %v11066_v44  ;;  %v11111_v40 = vld [vmem:[#allocation73_spill] sm:$0xff]  ;;  %v11112_v44 = vld [vmem:[#allocation74_spill] sm:$0xff] }
 0xfad   :  { %7103 = vmatpush1.bf16.msra.mxu0 %v11067_v51  ;;  %7167 = vmatpush1.bf16.msra.mxu1 %v11068_v52  ;;  %v11113_v51 = vld [vmem:[#allocation75_spill] sm:$0xff]  ;;  %v11114_v52 = vld [vmem:[#allocation76_spill] sm:$0xff] }
 0xfae   :  { %7105 = vmatprep.subr.bf16.mxu0 %v11069_v53  ;;  %7169 = vmatprep.subr.bf16.mxu1 %v11070_v57  ;;  %v11115_v53 = vld [vmem:[#allocation77_spill] sm:$0xff]  ;;  %v11116_v57 = vld [vmem:[#allocation78_spill] sm:$0xff] }
 0xfb1   :  { %7107 = vmatpush1.bf16.msra.mxu0 %v11071_v63  ;;  %7171 = vmatpush1.bf16.msra.mxu1 %v11072_v1  ;;  %v11117_v63 = vld [vmem:[#allocation79_spill] sm:$0xff]  ;;  %v11118_v1 = vld [vmem:[#allocation80_spill] sm:$0xff] }
 0xfb2   :  { %7109 = vmatprep.subr.bf16.mxu0 %v11073_v2  ;;  %7173 = vmatprep.subr.bf16.mxu1 %v11074_v7  ;;  %v11119_v2 = vld [vmem:[#allocation81_spill] sm:$0xff]  ;;  %v11120_v7 = vld [vmem:[#allocation82_spill] sm:$0xff] }
 0xfb5   :  { %7111 = vmatpush1.bf16.msra.mxu0 %v11075_v16  ;;  %7175 = vmatpush1.bf16.msra.mxu1 %v11076_v19  ;;  %v11121_v16 = vld [vmem:[#allocation83_spill] sm:$0xff]  ;;  %v11122_v19 = vld [vmem:[#allocation84_spill] sm:$0xff] }
 0xfb6   :  { %7113 = vmatprep.subr.bf16.mxu0 %v11077_v20  ;;  %7177 = vmatprep.subr.bf16.mxu1 %v11078_v25 }
 0xfb9   :  { %7115 = vmatpush1.bf16.msra.mxu0 %v11079_v34  ;;  %7179 = vmatpush1.bf16.msra.mxu1 %v11080_v36  ;;  %v11123_v34 = vld [vmem:[#allocation152_spill] sm:$0xff] }
 0xfba   :  { %7117 = vmatprep.subr.bf16.mxu0 %v11081_v37  ;;  %7181 = vmatprep.subr.bf16.mxu1 %v11082_v43 }
 0xfbd   :  { %7119 = vmatpush1.bf16.msra.mxu0 %v11083_v14  ;;  %7183 = vmatpush1.bf16.msra.mxu1 %v11084_v59 }
 0xfbe   :  { %7121 = vmatprep.subr.bf16.mxu0 %v11085_v28  ;;  %7185 = vmatprep.subr.bf16.mxu1 %v11086_v12  ;;  %v11124_v12 = vld [vmem:[#allocation154_spill] sm:$0xff] }
 0xfc1   :  { %7123 = vmatpush1.bf16.msra.mxu0 %v11087_v3  ;;  %7187 = vmatpush1.bf16.msra.mxu1 %v11088_v21 }
 0xfc2   :  { %7125 = vmatprep.subr.bf16.mxu0 %v11089_v50  ;;  %7189 = vmatprep.subr.bf16.mxu1 %v11090_v15  ;;  %v11125_v50 = vld [vmem:[#allocation155_spill] sm:$0xff] }
 0xfc5   :  { %7127 = vmatpush1.bf16.msra.mxu0 %v11091_v24  ;;  %7191 = vmatpush1.bf16.msra.mxu1 %v11092_v23 }
 0xfc6   :  { %7129 = vmatprep.subr.bf16.mxu0 %v11093_v45  ;;  %7193 = vmatprep.subr.bf16.mxu1 %v11094_v10 }
 0xfc9   :  { %7131 = vmatpush1.bf16.msra.mxu0 %v11095_v55  ;;  %7195 = vmatpush1.bf16.msra.mxu1 %v11096_v41 }
 0xfca   :  { %7133 = vmatprep.subr.bf16.mxu0 %v11097_v60  ;;  %7197 = vmatprep.subr.bf16.mxu1 %v11098_v56 }
 0xfcd   :  { %7135 = vmatpush1.bf16.msra.mxu0 %v11099_v29  ;;  %7199 = vmatpush1.bf16.msra.mxu1 %v11100_v42 }
 0xfce   :  { %7137 = vmatprep.subr.bf16.mxu0 %v11101_v9  ;;  %7201 = vmatprep.subr.bf16.mxu1 %v11102_v13 }
 0xfd1   :  { %7139 = vmatpush1.bf16.msra.mxu0 %v11103_v17  ;;  %7203 = vmatpush1.bf16.msra.mxu1 %v11104_v18 }
 0xfd2   :  { %7141 = vmatprep.subr.bf16.mxu0 %v11105_v22  ;;  %7205 = vmatprep.subr.bf16.mxu1 %v11106_v26 }
 0xfd5   :  { %7143 = vmatpush1.bf16.msra.mxu0 %v11107_v27  ;;  %7207 = vmatpush1.bf16.msra.mxu1 %v11108_v31 }
 0xfd6   :  { %7145 = vmatprep.subr.bf16.mxu0 %v11109_v35  ;;  %7209 = vmatprep.subr.bf16.mxu1 %v11110_v39 }
 0xfd9   :  { %7147 = vmatpush1.bf16.msra.mxu0 %v11111_v40  ;;  %7211 = vmatpush1.bf16.msra.mxu1 %v11112_v44  ;;  %v4166_v40 = vld [vmem:[#allocation2 + $0x38] sm:$0xff] }
 0xfda   :  { %7149 = vmatprep.subr.bf16.mxu0 %v11113_v51  ;;  %7213 = vmatprep.subr.bf16.mxu1 %v11114_v52 }
 0xfdd   :  { %7151 = vmatpush1.bf16.msra.mxu0 %v11115_v53  ;;  %7215 = vmatpush1.bf16.msra.mxu1 %v11116_v57 }
 0xfde   :  { %7153 = vmatprep.subr.bf16.mxu0 %v11117_v63  ;;  %7217 = vmatprep.subr.bf16.mxu1 %v11118_v1 }
 0xfe1   :  { %7155 = vmatpush1.bf16.msra.mxu0 %v11119_v2  ;;  %7219 = vmatpush1.bf16.msra.mxu1 %v11120_v7 }
 0xfe2   :  { %7221 = vmatprep.subr.bf16.mxu0 %v11121_v16  ;;  %7285 = vmatprep.subr.bf16.mxu1 %v11122_v19 }
0x1056   :  { %v4063_v20 = vpop.f32.mrb[40].mxu0  ;;  %v4134_v25 = vpop.f32.mrb[40].mxu1 }
0x1057   :  { %v4064_v36 = vadd.f32 %v4063_v20, %v11123_v34  ;;  %v4065_v37 = vpop.f32.mrb[41].mxu0  ;;  %v4136_v43 = vpop.f32.mrb[41].mxu1  ;;  %v4135_v15 = vadd.f32 %v4134_v25, %v11125_v50 }
0x1058   :  { %v4066_v14 = vadd.f32 %v4065_v37, %v10615_v30  ;;  %v4137_v3 = vadd.f32 %v4136_v43, %v11124_v12 }
0x1059   :  { %v4776_v59 = vmul.f32 -1.442695, %v4064_v36 }
0x105a   :  { %v4777_v28 = vmul.f32 -1.442695, %v4066_v14  ;;  %v4778_v21 = vmul.f32 -1.442695, %v4137_v3 }
0x105b   :  { %7680 = vpow2.f32 %v4776_v59 }
0x105c   :  { %7682 = vpow2.f32 %v4777_v28 }
0x105d   :  { %7684 = vpow2.f32 %v4778_v21 }
0x105e   :  { %7686 = vtanh.f32 %v4135_v15 }
0x1065   :  { %v7681_v24 = vpop.eup %7680 }
0x1066   :  { %v7683_v23 = vpop.eup %7682  ;;  %v4142_v45 = vadd.f32 1.0, %v7681_v24 }
0x1067   :  { %v4148_v10 = vadd.f32 1.0, %v7683_v23  ;;  %v7685_v55 = vpop.eup %7684 }
0x1068   :  { %7688 = vrcp.f32 %v4142_v45  ;;  %v7687_v41 = vpop.eup %7686  ;;  %v4155_v42 = vadd.f32 1.0, %v7685_v55  ;;  %v11137_v45 = vld [vmem:[#allocation108_spill] sm:$0xff]  ;;  %v11139_v55 = vld [vmem:[#allocation110_spill] sm:$0xff] }
0x1069   :  { %7690 = vrcp.f32 %v4148_v10  ;;  %v11138_v10 = vld [vmem:[#allocation109_spill] sm:$0xff] }
0x106a   :  { %7692 = vrcp.f32 %v4155_v42  ;;  %v11144_v42 = vld [vmem:[#allocation115_spill] sm:$0xff] }
0x1072   :  { %v7689_v60 = vpop.eup %7688 }
0x1073   :  { %v7691_v56 = vpop.eup %7690  ;;  %v4159_v29 = vmul.f32 %v7689_v60, %v7687_v41  ;;  %v11140_v41 = vld [vmem:[#allocation111_spill] sm:$0xff]  ;;  %v11141_v60 = vld [vmem:[#allocation112_spill] sm:$0xff] }
0x1074   :  { %v4158_v9 = vmul.f32 %v7691_v56, %v9580_v0  ;;  %v7693_v53 = vpop.eup %7692  ;;  %v11142_v56 = vld [vmem:[#allocation113_spill] sm:$0xff] }
0x1076   :  { %v4233_v13 = vpop.f32.mrb[42].mxu0  ;;  %v4304_v17 = vpop.f32.mrb[42].mxu1  ;;  %v9770_v18 = vadd.f32 %v4159_v29, %v4158_v9  ;;  %v11143_v29 = vld [vmem:[#allocation114_spill] sm:$0xff]  ;;  %v11145_v9 = vld [vmem:[#allocation116_spill] sm:$0xff] }
0x1077   :  { %v4235_v22 = vpop.f32.mrb[43].mxu0  ;;  %v4306_v26 = vpop.f32.mrb[43].mxu1 }
0x1078   :  { %v4313_v27 = vcombine.low %v4233_v13, %v4235_v22  ;;  %v4314_v31 = vcombine.low %v4304_v17, %v4306_v26  ;;  %7694 = vtanh.f32 %v9770_v18  ;;  %v11146_v13 = vld [vmem:[#allocation117_spill] sm:$0xff]  ;;  %v11147_v17 = vld [vmem:[#allocation118_spill] sm:$0xff]  ;;  %v11148_v22 = vld [vmem:[#allocation119_spill] sm:$0xff] }
0x1079   :  { %v11149_v26 = vld [vmem:[#allocation120_spill] sm:$0xff] }
0x107a   :  { %v4321_v35 = vrot.slane %v4313_v27, %v10362_v5  ;;  %v4328_v39 = vrot.slane %v4314_v31, %v10362_v5  ;;  %v11150_v27 = vld [vmem:[#allocation121_spill] sm:$0xff]  ;;  %v11151_v31 = vld [vmem:[#allocation122_spill] sm:$0xff] }
0x107c   :  { %v4329_v44 = vcombine.low %v4321_v35, %v4328_v39  ;;  %v11152_v35 = vld [vmem:[#allocation123_spill] sm:$0xff]  ;;  %v11153_v39 = vld [vmem:[#allocation124_spill] sm:$0xff] }
0x107e   :  { %v4331_v51 = vadd.f32 %v4329_v44, %v4166_v40  ;;  %v11154_v40 = vld [vmem:[#allocation125_spill] sm:$0xff]  ;;  %v11155_v44 = vld [vmem:[#allocation126_spill] sm:$0xff] }
0x1080   :  { %v4779_v52 = vmul.f32 -1.442695, %v4331_v51  ;;  %v4339_v0 = vrot.slane %v4331_v51, 2  ;;  %v4350_v2 = vrot.slane %v4331_v51, 6  ;;  %v4347_v19 = vrot.slane %v4331_v51, 4  ;;  %v11156_v51 = vld [vmem:[#allocation127_spill] sm:$0xff] }
0x1082   :  { %v7695_v57 = vpop.eup %7694  ;;  %7696 = vpow2.f32 %v4779_v52  ;;  %v4780_v63 = vmul.f32 -1.442695, %v4339_v0  ;;  %v4781_v7 = vmul.f32 -1.442695, %v4350_v2  ;;  %v11157_v52 = vld [vmem:[#allocation128_spill] sm:$0xff]  ;;  %v11158_v0 = vld [vmem:[#allocation129_spill] sm:$0xff] }
0x1083   :  { %v4162_v1 = vmul.f32 %v7695_v57, %v7693_v53  ;;  %v11159_v53 = vld [vmem:[#allocation130_spill] sm:$0xff]  ;;  %v11160_v57 = vld [vmem:[#allocation131_spill] sm:$0xff] }
0x1084   :  { %7698 = vpow2.f32 %v4780_v63  ;;  %v11161_v63 = vld [vmem:[#allocation132_spill] sm:$0xff]  ;;  %v11163_v2 = vld [vmem:[#allocation134_spill] sm:$0xff] }
0x1085   :  { %4164 = vst [vmem:[#allocation10 + $0xc] sm:$0x3] %v4162_v1  ;;  %7700 = vpow2.f32 %v4781_v7  ;;  %v11164_v7 = vld [vmem:[#allocation135_spill] sm:$0xff] }
0x108c   :  { %v7697_v16 = vpop.eup %7696 }
0x108d   :  { %v4335_v20 = vadd.f32 1.0, %v7697_v16  ;;  %v11165_v16 = vld [vmem:[#allocation136_spill] sm:$0xff] }
0x108e   :  { %v7699_v25 = vpop.eup %7698 }
0x108f   :  { %7702 = vrcp.f32 %v4335_v20  ;;  %v4344_v5 = vadd.f32 1.0, %v7699_v25  ;;  %v7701_v36 = vpop.eup %7700  ;;  %v11167_v20 = vld [vmem:[#allocation138_spill] sm:$0xff]  ;;  %v11168_v25 = vld [vmem:[#allocation139_spill] sm:$0xff] }
0x1090   :  { %7704 = vtanh.f32 %v4347_v19  ;;  %v4355_v59 = vadd.f32 1.0, %v7701_v36  ;;  %v11166_v19 = vld [vmem:[#allocation137_spill] sm:$0xff] }
0x1091   :  { %7706 = vrcp.f32 %v4344_v5  ;;  %v11169_v5 = vld [vmem:[#allocation140_spill] sm:$0xff]  ;;  %v11170_v36 = vld [vmem:[#allocation141_spill] sm:$0xff] }
0x1092   :  { %7708 = vrcp.f32 %v4355_v59  ;;  %v11174_v59 = vld [vmem:[#allocation145_spill] sm:$0xff] }
0x1099   :  { %v7703_v37 = vpop.eup %7702 }
0x109a   :  { %v7705_v43 = vpop.eup %7704 }
0x109b   :  { %v7707_v14 = vpop.eup %7706  ;;  %v4359_v3 = vmul.f32 %v7705_v43, %v7703_v37  ;;  %v11171_v37 = vld [vmem:[#allocation142_spill] sm:$0xff]  ;;  %v11172_v43 = vld [vmem:[#allocation143_spill] sm:$0xff] }
0x109c   :  { %v4358_v28 = vmul.f32 %v7707_v14, %v9586_v54  ;;  %v7709_v15 = vpop.eup %7708  ;;  %v11126_v54 = vld [vmem:[#allocation97_spill] sm:$0xff]  ;;  %v11173_v14 = vld [vmem:[#allocation144_spill] sm:$0xff] }
0x109e   :  { %v4360_v21 = vadd.f32 %v4359_v3, %v4358_v28  ;;  %v11175_v28 = vld [vmem:[#allocation146_spill] sm:$0xff]  ;;  %v11176_v3 = vld [vmem:[#allocation147_spill] sm:$0xff] }
0x10a0   :  { %7710 = vtanh.f32 %v4360_v21  ;;  %v11177_v21 = vld [vmem:[#allocation148_spill] sm:$0xff] }
0x10aa   :  { %v7711_v24 = vpop.eup %7710 }
0x10ab   :  { %v4362_v23 = vmul.f32 %v7711_v24, %v7709_v15 }
0x10ad   :  { %4428 = vmatmul.mubr.f32.vlgmr.msra.gmra.mrb[44].mxu0 %v4362_v23  ;;  %4499 = vmatmul.mubr.f32.vlgmr.msra.gmra.mrb[44].mxu1 %v4362_v23  ;;  %v11178_v23 = vld [vmem:[#allocation149_spill] sm:$0xff] }
0x10ae   :  { %4593 = vmatprep.mubr.f32.mxu0 %v4162_v1  ;;  %4664 = vmatprep.mubr.f32.mxu1 %v4162_v1  ;;  %v11162_v1 = vld [vmem:[#allocation133_spill] sm:$0xff] }
0x10af   :  { %7223 = vmatpush1.bf16.msra.mxu0 %v10364_v47  ;;  %7287 = vmatpush1.bf16.msra.mxu1 %v10365_v32  ;;  %v11127_v47 = vld [vmem:[#allocation98_spill] sm:$0xff]  ;;  %v11128_v32 = vld [vmem:[#allocation99_spill] sm:$0xff] }
0x10b0   :  { %7225 = vmatprep.subr.bf16.mxu0 %v10366_v62  ;;  %7289 = vmatprep.subr.bf16.mxu1 %v10367_v49  ;;  %v11129_v62 = vld [vmem:[#allocation100_spill] sm:$0xff]  ;;  %v11130_v49 = vld [vmem:[#allocation101_spill] sm:$0xff] }
0x10b3   :  { %7227 = vmatpush1.bf16.msra.mxu0 %v10368_v6  ;;  %7291 = vmatpush1.bf16.msra.mxu1 %v10491_v46  ;;  %v11131_v6 = vld [vmem:[#allocation102_spill] sm:$0xff]  ;;  %v11132_v46 = vld [vmem:[#allocation103_spill] sm:$0xff] }
0x10b4   :  { %7229 = vmatprep.subr.bf16.mxu0 %v10618_v33  ;;  %7293 = vmatprep.subr.bf16.mxu1 %v10745_v38  ;;  %v11133_v33 = vld [vmem:[#allocation104_spill] sm:$0xff]  ;;  %v11134_v38 = vld [vmem:[#allocation105_spill] sm:$0xff] }
0x10b7   :  { %7231 = vmatpush1.bf16.msra.mxu0 %v10872_v4  ;;  %7295 = vmatpush1.bf16.msra.mxu1 %v10999_v11  ;;  %v11135_v4 = vld [vmem:[#allocation106_spill] sm:$0xff]  ;;  %v11136_v11 = vld [vmem:[#allocation107_spill] sm:$0xff] }
0x10b8   :  { %7233 = vmatprep.subr.bf16.mxu0 %v11126_v54  ;;  %7297 = vmatprep.subr.bf16.mxu1 %v11127_v47 }
0x10bb   :  { %7235 = vmatpush1.bf16.msra.mxu0 %v11128_v32  ;;  %7299 = vmatpush1.bf16.msra.mxu1 %v11129_v62 }
0x10bc   :  { %7237 = vmatprep.subr.bf16.mxu0 %v11130_v49  ;;  %7301 = vmatprep.subr.bf16.mxu1 %v11131_v6 }
0x10bf   :  { %7239 = vmatpush1.bf16.msra.mxu0 %v11132_v46  ;;  %7303 = vmatpush1.bf16.msra.mxu1 %v11133_v33 }
0x10c0   :  { %7241 = vmatprep.subr.bf16.mxu0 %v11134_v38  ;;  %7305 = vmatprep.subr.bf16.mxu1 %v11135_v4 }
0x10c3   :  { %7243 = vmatpush1.bf16.msra.mxu0 %v11136_v11  ;;  %7307 = vmatpush1.bf16.msra.mxu1 %v11137_v45 }
0x10c4   :  { %7245 = vmatprep.subr.bf16.mxu0 %v11138_v10  ;;  %7309 = vmatprep.subr.bf16.mxu1 %v11139_v55 }
0x10c7   :  { %7247 = vmatpush1.bf16.msra.mxu0 %v11140_v41  ;;  %7311 = vmatpush1.bf16.msra.mxu1 %v11141_v60 }
0x10c8   :  { %7249 = vmatprep.subr.bf16.mxu0 %v11142_v56  ;;  %7313 = vmatprep.subr.bf16.mxu1 %v11143_v29 }
0x10cb   :  { %7251 = vmatpush1.bf16.msra.mxu0 %v11144_v42  ;;  %7315 = vmatpush1.bf16.msra.mxu1 %v11145_v9 }
0x10cc   :  { %7253 = vmatprep.subr.bf16.mxu0 %v11146_v13  ;;  %7317 = vmatprep.subr.bf16.mxu1 %v11147_v17 }
0x10cf   :  { %7255 = vmatpush1.bf16.msra.mxu0 %v11148_v22  ;;  %7319 = vmatpush1.bf16.msra.mxu1 %v11149_v26 }
0x10d0   :  { %7257 = vmatprep.subr.bf16.mxu0 %v11150_v27  ;;  %7321 = vmatprep.subr.bf16.mxu1 %v11151_v31 }
0x10d3   :  { %7259 = vmatpush1.bf16.msra.mxu0 %v11152_v35  ;;  %7323 = vmatpush1.bf16.msra.mxu1 %v11153_v39 }
0x10d4   :  { %7261 = vmatprep.subr.bf16.mxu0 %v11154_v40  ;;  %7325 = vmatprep.subr.bf16.mxu1 %v11155_v44 }
0x10d7   :  { %7263 = vmatpush1.bf16.msra.mxu0 %v11156_v51  ;;  %7327 = vmatpush1.bf16.msra.mxu1 %v11157_v52 }
0x10d8   :  { %7265 = vmatprep.subr.bf16.mxu0 %v11158_v0  ;;  %7329 = vmatprep.subr.bf16.mxu1 %v11159_v53 }
0x10db   :  { %7267 = vmatpush1.bf16.msra.mxu0 %v11160_v57  ;;  %7331 = vmatpush1.bf16.msra.mxu1 %v11161_v63 }
0x10dc   :  { %7269 = vmatprep.subr.bf16.mxu0 %v11162_v1  ;;  %7333 = vmatprep.subr.bf16.mxu1 %v11163_v2 }
0x10df   :  { %7271 = vmatpush1.bf16.msra.mxu0 %v11164_v7  ;;  %7335 = vmatpush1.bf16.msra.mxu1 %v11165_v16 }
0x10e0   :  { %7273 = vmatprep.subr.bf16.mxu0 %v11166_v19  ;;  %7337 = vmatprep.subr.bf16.mxu1 %v11167_v20 }
0x10e3   :  { %7275 = vmatpush1.bf16.msra.mxu0 %v11168_v25  ;;  %7339 = vmatpush1.bf16.msra.mxu1 %v11169_v5 }
0x10e4   :  { %7277 = vmatprep.subr.bf16.mxu0 %v11170_v36  ;;  %7341 = vmatprep.subr.bf16.mxu1 %v11171_v37 }
0x10e7   :  { %7279 = vmatpush1.bf16.msra.mxu0 %v11172_v43  ;;  %7343 = vmatpush1.bf16.msra.mxu1 %v11173_v14 }
0x10e8   :  { %7281 = vmatprep.subr.bf16.mxu0 %v11174_v59  ;;  %7345 = vmatprep.subr.bf16.mxu1 %v11175_v28 }
0x10eb   :  { %7283 = vmatpush1.bf16.msra.mxu0 %v11176_v3  ;;  %7347 = vmatpush1.bf16.msra.mxu1 %v11177_v21 }
0x1180   :  { %v4429_v15 = vpop.f32.mrb[44].mxu0  ;;  %v4500_v24 = vpop.f32.mrb[44].mxu1 }
0x1181   :  { %v4430_v54 = vadd.f32 %v4429_v15, %v11178_v23  ;;  %v4431_v47 = vpop.f32.mrb[45].mxu0  ;;  %v4502_v32 = vpop.f32.mrb[45].mxu1  ;;  %v4501_v38 = vadd.f32 %v4500_v24, %v8501_v58 }
0x1182   :  { %v4432_v62 = vadd.f32 %v4431_v47, %v10423_v48  ;;  %v4503_v46 = vadd.f32 %v4502_v32, %v10424_v8 }
0x1183   :  { %v4782_v49 = vmul.f32 -1.442695, %v4430_v54 }
0x1184   :  { %v4783_v6 = vmul.f32 -1.442695, %v4432_v62  ;;  %v4784_v33 = vmul.f32 -1.442695, %v4503_v46 }
0x1185   :  { %7712 = vpow2.f32 %v4782_v49 }
0x1186   :  { %7714 = vpow2.f32 %v4783_v6 }
0x1187   :  { %7716 = vpow2.f32 %v4784_v33 }
0x1188   :  { %7718 = vtanh.f32 %v4501_v38 }
0x118f   :  { %v7713_v4 = vpop.eup %7712 }
0x1190   :  { %v7715_v11 = vpop.eup %7714  ;;  %v4508_v45 = vadd.f32 1.0, %v7713_v4 }
0x1191   :  { %v4514_v10 = vadd.f32 1.0, %v7715_v11  ;;  %v7717_v55 = vpop.eup %7716 }
0x1192   :  { %7720 = vrcp.f32 %v4508_v45  ;;  %v7719_v41 = vpop.eup %7718  ;;  %v4521_v29 = vadd.f32 1.0, %v7717_v55 }
0x1193   :  { %7722 = vrcp.f32 %v4514_v10 }
0x1194   :  { %7724 = vrcp.f32 %v4521_v29 }
0x119c   :  { %v7721_v48 = vpop.eup %7720 }
0x119d   :  { %v7723_v60 = vpop.eup %7722  ;;  %v4525_v56 = vmul.f32 %v7721_v48, %v7719_v41 }
0x119e   :  { %v4524_v42 = vmul.f32 %v7723_v60, %v9662_v61  ;;  %v7725_v58 = vpop.eup %7724 }
0x11a0   :  { %v4526_v8 = vadd.f32 %v4525_v56, %v4524_v42 }
0x11a2   :  { %7726 = vtanh.f32 %v4526_v8 }
0x11ac   :  { %v7727_v9 = vpop.eup %7726 }
0x11ad   :  { %v4528_v13 = vmul.f32 %v7727_v9, %v7725_v58 }
0x11af   :  { %4594 = vmatmul.mubr.f32.vlgmr.msra.gmra.mrb[46].mxu0 %v4528_v13  ;;  %4665 = vmatmul.mubr.f32.vlgmr.msra.gmra.mrb[46].mxu1 %v4528_v13 }
0x1282   :  { %v4595_v17 = vpop.f32.mrb[46].mxu0  ;;  %v4666_v22 = vpop.f32.mrb[46].mxu1 }
0x1283   :  { %v4596_v26 = vadd.f32 %v4595_v17, %v11123_v34  ;;  %v4597_v27 = vpop.f32.mrb[47].mxu0  ;;  %v4668_v31 = vpop.f32.mrb[47].mxu1  ;;  %v4667_v51 = vadd.f32 %v4666_v22, %v11125_v50 }
0x1284   :  { %v4598_v35 = vadd.f32 %v4597_v27, %v10615_v30  ;;  %v4669_v61 = vadd.f32 %v4668_v31, %v11124_v12 }
0x1285   :  { %v4785_v39 = vmul.f32 -1.442695, %v4596_v26 }
0x1286   :  { %v4786_v40 = vmul.f32 -1.442695, %v4598_v35  ;;  %v4787_v44 = vmul.f32 -1.442695, %v4669_v61 }
0x1287   :  { %7728 = vpow2.f32 %v4785_v39 }
0x1288   :  { %7730 = vpow2.f32 %v4786_v40 }
0x1289   :  { %7732 = vpow2.f32 %v4787_v44 }
0x128a   :  { %7734 = vtanh.f32 %v4667_v51 }
0x1291   :  { %v7729_v52 = vpop.eup %7728 }
0x1292   :  { %v7731_v0 = vpop.eup %7730  ;;  %v4674_v53 = vadd.f32 1.0, %v7729_v52 }
0x1293   :  { %v4680_v57 = vadd.f32 1.0, %v7731_v0  ;;  %v7733_v34 = vpop.eup %7732 }
0x1294   :  { %7736 = vrcp.f32 %v4674_v53  ;;  %v7735_v63 = vpop.eup %7734  ;;  %v4687_v7 = vadd.f32 1.0, %v7733_v34 }
0x1295   :  { %7738 = vrcp.f32 %v4680_v57 }
0x1296   :  { %7740 = vrcp.f32 %v4687_v7 }
0x129e   :  { %v7737_v30 = vpop.eup %7736 }
0x129f   :  { %v7739_v1 = vpop.eup %7738  ;;  %v4691_v2 = vmul.f32 %v7737_v30, %v7735_v63 }
0x12a0   :  { %v4690_v16 = vmul.f32 %v7739_v1, %v9770_v18  ;;  %v7741_v50 = vpop.eup %7740 }
0x12a2   :  { %v4692_v12 = vadd.f32 %v4691_v2, %v4690_v16 }
0x12a4   :  { %7742 = vtanh.f32 %v4692_v12 }
0x12ae   :  { %v7743_v19 = vpop.eup %7742 }
0x12af   :  { %v4694_v20 = vmul.f32 %v7743_v19, %v7741_v50 }
0x12b1   :  { %4696 = vst [vmem:[#allocation10 + $0xe] sm:$0x3] %v4694_v20 }
0x12b2   :  { %7843 = shalt.err (!%p7840_p8)
}
0x12b3   :  { %s7844_s28 = scalar_lea.hbm %s9868_s6, 256 }
0x12b4   :  { %p7845_p9 = scmp.ne.s32.totalorder %s9868_s6, %s7844_s28  ;;  %p7848_p10 = scmp.lt.u32.totalorder %s7844_s28, %s9868_s6 }
0x12b6   :  { %p7850_p11 = pnand %p7848_p10, %p7845_p9 }
0x12b8   :  { %7853 = shalt.err (!%p7850_p11)
}
0x12b9   :  { %s7873_s11 = smov 2  }
0x12ba   :  { %4708 = dma.vmem_to_hbm [thread:$0]  %s4703_s24, 256, %s9868_s6, [#allocation4], %s7864_s8, %s7864_s8, %s7873_s11  }
0x12bb   :  { %7860 = dma.done.wait [#allocation4], 256  }
0x12bc   :  { %7861 = vsyncadd [#allocation4], 4294967040 }
0x12bd   :  { %4712 = vsyncpa [#allocation3], 1 }
0x12be   :  { %4713 = vsyncpa [#allocation6], 1 }
0x12bf   :  { %4714 = vsyncpa [#allocation9], 1 }
0x12c0   :  { %4715 = vsyncpa [#allocation4], 1 }

</bundles_post_ra>
